<compile_context>
chip_gen: v7x
topology: tpu7x:2x2x1
jax: 0.10.0
libtpu: 0.0.40
codegen_flags: <defaults>
</compile_context>

<pallas_src>
import functools
import math

import jax
import jax.numpy as jnp
from jax.experimental import pallas as pl
from jax.experimental.pallas import tpu as pltpu

EPS = 1e-5


# ----------------------------------------------------------------------------
# In-kernel helpers
# ----------------------------------------------------------------------------
def _conv3x3(x_flat_bf16, wcat_bf16, *, Hin, Win, Ho, Wo, Cout, stride):
    """3x3 conv, padding 1, given stride, on a flattened (Hin*Win, Cin) input.

    wcat_bf16 is the HWIO weight transposed to (Cin, kh, kw, Cout) and
    flattened to (Cin, 9*Cout), so ONE matmul produces all 9 per-tap partial
    products:  Z[:, t*Cout:(t+1)*Cout] = X @ W[kh_t, kw_t]   (f32 accumulate).

    The spatial gather (tap shift, stride, zero halo) is an exact 0/1 row
    selection done as 9 small matmuls on the MXU -- no layout copies, no
    padded scratch, and only the strided output positions are computed.

    Returns (conv_out f32 of shape (Ho*Wo, Cout), centre-tap selection matrix
    in bf16 -- reused by the strided 1x1 shortcut).
    """
    HW = Hin * Win
    z = jnp.dot(x_flat_bf16, wcat_bf16, preferred_element_type=jnp.float32)
    zb = z.astype(jnp.bfloat16)                                  # (HW, 9*Cout)

    oh = jax.lax.broadcasted_iota(jnp.int32, (Ho, Wo, HW), 0)
    ow = jax.lax.broadcasted_iota(jnp.int32, (Ho, Wo, HW), 1)
    jj = jax.lax.broadcasted_iota(jnp.int32, (Ho, Wo, HW), 2)

    acc = jnp.zeros((Ho * Wo, Cout), jnp.float32)
    center_sel = None
    t = 0
    for kh in range(3):
        for kw in range(3):
            r = stride * oh + (kh - 1)          # source row (pre-padding)
            c = stride * ow + (kw - 1)          # source col (pre-padding)
            hit = ((jj == r * Win + c)
                   & (r >= 0) & (r < Hin) & (c >= 0) & (c < Win))
            sel = jnp.where(hit, 1.0, 0.0).reshape(Ho * Wo, HW)
            sel = sel.astype(jnp.bfloat16)      # exact 0/1 in bf16
            acc = acc + jnp.dot(sel, zb[:, t * Cout:(t + 1) * Cout],
                                preferred_element_type=jnp.float32)
            if kh == 1 and kw == 1:
                center_sel = sel
            t += 1
    return acc, center_sel


# ----------------------------------------------------------------------------
# Fused BasicBlock kernel (one grid step == one batch element)
# ----------------------------------------------------------------------------
def _basic_block_kernel(*refs, stride, equal_in_out, preact_conv1,
                        H, W, Cin, Cout):
    if equal_in_out:
        (x_ref, s1_ref, b1_ref, w1_ref, s2_ref, b2_ref, w2_ref, o_ref) = refs
        ws_ref = None
    else:
        (x_ref, s1_ref, b1_ref, w1_ref, s2_ref, b2_ref, w2_ref, ws_ref,
         o_ref) = refs

    Ho, Wo = H // stride, W // stride

    # ---- load + BN1 (folded affine) + LeakyReLU(0.1), f32 on the VPU -------
    x = x_ref[0].astype(jnp.float32).reshape(H * W, Cin)          # (H*W, Cin)
    pre = x * s1_ref[0] + b1_ref[0]
    pre = jnp.where(pre > 0.0, pre, 0.1 * pre)

    conv1_in = pre if preact_conv1 else x          # static (Python) choice
    conv1_in_bf = conv1_in.astype(jnp.bfloat16)

    # ---- conv1: 3x3, stride `stride`, pad 1 (bf16 MXU, f32 accumulate) -----
    h, center_sel = _conv3x3(conv1_in_bf, w1_ref[...],
                             Hin=H, Win=W, Ho=Ho, Wo=Wo, Cout=Cout,
                             stride=stride)

    # ---- BN2 + LeakyReLU(0.1), f32 -----------------------------------------
    h = h * s2_ref[0] + b2_ref[0]
    h = jnp.where(h > 0.0, h, 0.1 * h)
    # TODO(synk): dropout skipped (dropRate == 0.0 in this configuration).

    # ---- conv2: 3x3, stride 1, pad 1 ---------------------------------------
    y, _ = _conv3x3(h.astype(jnp.bfloat16), w2_ref[...],
                    Hin=Ho, Win=Wo, Ho=Ho, Wo=Wo, Cout=Cout, stride=1)

    # ---- shortcut + residual add, fused into the epilogue ------------------
    if equal_in_out:
        sc = x                                   # identity shortcut (f32)
    else:
        # strided 1x1 conv on the same tensor conv1 consumed; the strided
        # spatial subsample reuses the exact centre-tap selection matrix.
        sc_in = jnp.dot(center_sel, conv1_in_bf,
                        preferred_element_type=jnp.float32)      # (Ho*Wo, Cin)
        sc = jnp.dot(sc_in.astype(jnp.bfloat16), ws_ref[...],
                     preferred_element_type=jnp.float32)         # (Ho*Wo, Cout)

    o_ref[0] = (y + sc).reshape(Ho, Wo, Cout).astype(o_ref.dtype)


# ----------------------------------------------------------------------------
# Wrappers
# ----------------------------------------------------------------------------
def _fold_bn(gamma, beta, mean, var):
    scale = gamma / jnp.sqrt(var + EPS)
    return scale, beta - mean * scale


def _wcat(w_hwio):
    """HWIO (3,3,Cin,Cout) -> (Cin, 9*Cout), taps along the weight output dim."""
    kh, kw, cin, cout = w_hwio.shape
    return jnp.transpose(w_hwio, (2, 0, 1, 3)).reshape(cin, kh * kw * cout)


def basic_block_forward(x, p, in_planes, out_planes, stride, abr):
    """x: (N, H, W, Cin) NHWC float32.  One fused Pallas call per block."""
    N, H, W, Cin = x.shape
    Cout = out_planes
    equal_in_out = (in_planes == out_planes)
    Ho, Wo = H // stride, W // stride

    s1, b1 = _fold_bn(p["bn1_gamma"], p["bn1_beta"], p["bn1_mean"], p["bn1_var"])
    s2, b2 = _fold_bn(p["bn2_gamma"], p["bn2_beta"], p["bn2_mean"], p["bn2_var"])

    args = [x.astype(jnp.float32),
            s1.reshape(1, Cin).astype(jnp.float32),
            b1.reshape(1, Cin).astype(jnp.float32),
            _wcat(p["conv1_w"]).astype(jnp.bfloat16),
            s2.reshape(1, Cout).astype(jnp.float32),
            b2.reshape(1, Cout).astype(jnp.float32),
            _wcat(p["conv2_w"]).astype(jnp.bfloat16)]
    in_specs = [
        pl.BlockSpec((1, H, W, Cin), lambda n: (n, 0, 0, 0)),
        pl.BlockSpec((1, Cin), lambda n: (0, 0)),
        pl.BlockSpec((1, Cin), lambda n: (0, 0)),
        pl.BlockSpec((Cin, 9 * Cout), lambda n: (0, 0)),
        pl.BlockSpec((1, Cout), lambda n: (0, 0)),
        pl.BlockSpec((1, Cout), lambda n: (0, 0)),
        pl.BlockSpec((Cout, 9 * Cout), lambda n: (0, 0)),
    ]
    if not equal_in_out:
        args.append(p["convs_w"].astype(jnp.bfloat16))            # (Cin, Cout)
        in_specs.append(pl.BlockSpec((Cin, Cout), lambda n: (0, 0)))

    kernel = functools.partial(
        _basic_block_kernel, stride=stride, equal_in_out=equal_in_out,
        preact_conv1=(equal_in_out or abr), H=H, W=W, Cin=Cin, Cout=Cout)

    return pl.pallas_call(
        kernel,
        out_shape=jax.ShapeDtypeStruct((N, Ho, Wo, Cout), jnp.float32),
        grid=(N,),
        in_specs=in_specs,
        out_specs=pl.BlockSpec((1, Ho, Wo, Cout), lambda n: (n, 0, 0, 0)),
        compiler_params=pltpu.CompilerParams(
            dimension_semantics=("parallel",)),
    )(*args)


@functools.partial(jax.jit, static_argnums=(2, 3, 4, 5))
def network_block_forward(x_nchw, params, in_planes, out_planes, stride, abr):
    """Forward of NetworkBlock.  Accepts NCHW like PyTorch, returns NCHW."""
    x = jnp.transpose(x_nchw, (0, 2, 3, 1)).astype(jnp.float32)   # NCHW -> NHWC
    for i, p in enumerate(params):
        ip = in_planes if i == 0 else out_planes
        st = stride if i == 0 else 1
        x = basic_block_forward(x, p, ip, out_planes, st, abr)
    return jnp.transpose(x, (0, 3, 1, 2))                         # back to NCHW


# ----------------------------------------------------------------------------
# Deterministic parameter init (synthetic -- shapes follow the PyTorch module)
# ----------------------------------------------------------------------------
def init_params(key, nb_layers, in_planes, out_planes):
    params = []
    for i in range(nb_layers):
        ip = in_planes if i == 0 else out_planes
        key, *ks = jax.random.split(key, 13)
        p = {
            "bn1_gamma": 1.0 + 0.1 * jax.random.normal(ks[0], (ip,), jnp.float32),
            "bn1_beta": 0.1 * jax.random.normal(ks[1], (ip,), jnp.float32),
            "bn1_mean": 0.1 * jax.random.normal(ks[2], (ip,), jnp.float32),
            "bn1_var": jnp.abs(jax.random.normal(ks[3], (ip,), jnp.float32)) + 0.5,
            "conv1_w": jax.random.normal(ks[4], (3, 3, ip, out_planes),
                                         jnp.float32) * math.sqrt(2.0 / (9 * ip)),
            "bn2_gamma": 1.0 + 0.1 * jax.random.normal(ks[5], (out_planes,), jnp.float32),
            "bn2_beta": 0.1 * jax.random.normal(ks[6], (out_planes,), jnp.float32),
            "bn2_mean": 0.1 * jax.random.normal(ks[7], (out_planes,), jnp.float32),
            "bn2_var": jnp.abs(jax.random.normal(ks[8], (out_planes,), jnp.float32)) + 0.5,
            "conv2_w": jax.random.normal(ks[9], (3, 3, out_planes, out_planes),
                                         jnp.float32) * math.sqrt(2.0 / (9 * out_planes)),
        }
        if ip != out_planes:
            p["convs_w"] = jax.random.normal(ks[10], (ip, out_planes),
                                             jnp.float32) * math.sqrt(2.0 / ip)
        params.append(p)
    return params


# ----------------------------------------------------------------------------
# Pure-JAX reference (for correctness check)
# ----------------------------------------------------------------------------
def _ref_conv3x3(x, w, stride):
    return jax.lax.conv_general_dilated(
        x, w, (stride, stride), ((1, 1), (1, 1)),
        dimension_numbers=("NHWC", "HWIO", "NHWC"))


def _ref_bn_lrelu(x, g, b, m, v):
    y = (x - m) / jnp.sqrt(v + EPS) * g + b
    return jnp.where(y > 0.0, y, 0.1 * y)


def _ref_block(x, p, ip, op, stride, abr):
    equal = (ip == op)
    if (not equal) and abr:
        x = _ref_bn_lrelu(x, p["bn1_gamma"], p["bn1_beta"], p["bn1_mean"], p["bn1_var"])
        out = x
    else:
        out = _ref_bn_lrelu(x, p["bn1_gamma"], p["bn1_beta"], p["bn1_mean"], p["bn1_var"])
    h = _ref_conv3x3(out if equal else x, p["conv1_w"], stride)
    h = _ref_bn_lrelu(h, p["bn2_gamma"], p["bn2_beta"], p["bn2_mean"], p["bn2_var"])
    h = _ref_conv3x3(h, p["conv2_w"], 1)
    if equal:
        sc = x
    else:
        sc = jax.lax.conv_general_dilated(
            x, p["convs_w"].reshape(1, 1, ip, op), (stride, stride), ((0, 0), (0, 0)),
            dimension_numbers=("NHWC", "HWIO", "NHWC"))
    return h + sc


def _ref_network_block(x_nchw, params, ip, op, stride, abr):
    x = jnp.transpose(x_nchw, (0, 2, 3, 1)).astype(jnp.float32)
    for i, p in enumerate(params):
        x = _ref_block(x, p, ip if i == 0 else op, op,
                       stride if i == 0 else 1, abr)
    return jnp.transpose(x, (0, 3, 1, 2))


# ----------------------------------------------------------------------------
if __name__ == "__main__":
    key = jax.random.PRNGKey(0)
    k_x, k_p = jax.random.split(key)

    # NetworkBlock(nb_layers=2, in_planes=4, out_planes=8, block=BasicBlock,
    #              stride=2, dropRate=0.0, activate_before_residual=True)
    nb_layers, in_planes, out_planes, stride, abr = 2, 4, 8, 2, True

    x = jax.random.normal(k_x, (2, in_planes, 16, 16), jnp.float32)  # NCHW
    params = init_params(k_p, nb_layers, in_planes, out_planes)

    out = network_block_forward(x, params, in_planes, out_planes, stride, abr)
    out = jax.block_until_ready(out)

    ref = jax.block_until_ready(
        _ref_network_block(x, params, in_planes, out_planes, stride, abr))

    assert out.shape == (2, out_planes, 8, 8), out.shape
    # bf16 MXU path vs f32 reference -> loosened tolerance (expected, not a bug).
    assert jnp.allclose(out, ref, rtol=5e-2, atol=1e-1), \
        float(jnp.max(jnp.abs(out - ref)))

    print("KERNEL_OK")
</pallas_src>

<mosaic_0001>
module attributes {stable_mosaic.version = 11 : i64} {
  func.func @_basic_block_kernel(%arg0: i32, %arg1: memref<1x8x8x8xf32, #tpu.memory_space<vmem>>, %arg2: memref<1x8xf32, #tpu.memory_space<vmem>>, %arg3: memref<1x8xf32, #tpu.memory_space<vmem>>, %arg4: memref<8x72xbf16, #tpu.memory_space<vmem>>, %arg5: memref<1x8xf32, #tpu.memory_space<vmem>>, %arg6: memref<1x8xf32, #tpu.memory_space<vmem>>, %arg7: memref<8x72xbf16, #tpu.memory_space<vmem>>, %arg8: memref<1x8x8x8xf32, #tpu.memory_space<vmem>>) attributes {dimension_semantics = [#tpu.dimension_semantics<parallel>], iteration_bounds = array<i64: 2>, scalar_prefetch = 0 : i64, scratch_operands = 0 : i64, tpu.core_type = #tpu.core_type<tc>, window_params = [{transform_indices = @transform_0, window_bounds = array<i64: 1, 8, 8, 8>}, {pipeline_mode = #tpu.pipeline_mode<synchronous>, transform_indices = @transform_1, window_bounds = array<i64: 1, 8>}, {pipeline_mode = #tpu.pipeline_mode<synchronous>, transform_indices = @transform_2, window_bounds = array<i64: 1, 8>}, {pipeline_mode = #tpu.pipeline_mode<synchronous>, transform_indices = @transform_3, window_bounds = array<i64: 8, 72>}, {pipeline_mode = #tpu.pipeline_mode<synchronous>, transform_indices = @transform_4, window_bounds = array<i64: 1, 8>}, {pipeline_mode = #tpu.pipeline_mode<synchronous>, transform_indices = @transform_5, window_bounds = array<i64: 1, 8>}, {pipeline_mode = #tpu.pipeline_mode<synchronous>, transform_indices = @transform_6, window_bounds = array<i64: 8, 72>}, {transform_indices = @transform_7, window_bounds = array<i64: 1, 8, 8, 8>}]} {
    %c0 = arith.constant 0 : index
    %c0_0 = arith.constant 0 : index
    %c0_1 = arith.constant 0 : index
    %c0_2 = arith.constant 0 : index
    %0 = vector.load %arg1[%c0, %c0_0, %c0_1, %c0_2] : memref<1x8x8x8xf32, #tpu.memory_space<vmem>>, vector<1x8x8x8xf32>
    %1 = vector.shape_cast %0 : vector<1x8x8x8xf32> to vector<8x8x8xf32>
    %2 = vector.shape_cast %1 : vector<8x8x8xf32> to vector<64x8xf32>
    %c0_3 = arith.constant 0 : index
    %c0_4 = arith.constant 0 : index
    %3 = vector.load %arg2[%c0_3, %c0_4] : memref<1x8xf32, #tpu.memory_space<vmem>>, vector<1x8xf32>
    %4 = vector.shape_cast %3 : vector<1x8xf32> to vector<8xf32>
    %5 = vector.shape_cast %4 : vector<8xf32> to vector<1x8xf32>
    %6 = vector.broadcast %5 : vector<1x8xf32> to vector<64x8xf32>
    %7 = arith.mulf %2, %6 : vector<64x8xf32>
    %c0_5 = arith.constant 0 : index
    %c0_6 = arith.constant 0 : index
    %8 = vector.load %arg3[%c0_5, %c0_6] : memref<1x8xf32, #tpu.memory_space<vmem>>, vector<1x8xf32>
    %9 = vector.shape_cast %8 : vector<1x8xf32> to vector<8xf32>
    %10 = vector.shape_cast %9 : vector<8xf32> to vector<1x8xf32>
    %11 = vector.broadcast %10 : vector<1x8xf32> to vector<64x8xf32>
    %12 = arith.addf %7, %11 : vector<64x8xf32>
    %cst = arith.constant 0.000000e+00 : f32
    %13 = vector.broadcast %cst : f32 to vector<64x8xf32>
    %14 = arith.cmpf ogt, %12, %13 : vector<64x8xf32>
    %cst_7 = arith.constant 1.000000e-01 : f32
    %15 = vector.broadcast %cst_7 : f32 to vector<64x8xf32>
    %16 = arith.mulf %15, %12 : vector<64x8xf32>
    %17 = arith.select %14, %12, %16 : vector<64x8xi1>, vector<64x8xf32>
    %18 = arith.truncf %17 : vector<64x8xf32> to vector<64x8xbf16>
    %c0_8 = arith.constant 0 : index
    %c0_9 = arith.constant 0 : index
    %19 = vector.load %arg4[%c0_8, %c0_9] : memref<8x72xbf16, #tpu.memory_space<vmem>>, vector<8x72xbf16>
    %cst_10 = arith.constant dense<0.000000e+00> : vector<64x72xf32>
    %20 = tpu.matmul %18, %19, %cst_10 {dimension_numbers = #tpu.dot_dimension_numbers<[1], [0], [0], [1], [0, 0, 1, 1], [], []>} : vector<64x8xbf16>, vector<8x72xbf16>, vector<64x72xf32> -> vector<64x72xf32>
    %21 = arith.truncf %20 : vector<64x72xf32> to vector<64x72xbf16>
    %22 = tpu.iota {dimensions = array<i32: 0>} : vector<8x8x64xi32>
    %23 = tpu.iota {dimensions = array<i32: 1>} : vector<8x8x64xi32>
    %24 = tpu.iota {dimensions = array<i32: 2>} : vector<8x8x64xi32>
    %cst_11 = arith.constant 0.000000e+00 : f32
    %25 = vector.broadcast %cst_11 : f32 to vector<64x8xf32>
    %c1_i32 = arith.constant 1 : i32
    %26 = vector.broadcast %c1_i32 : i32 to vector<8x8x64xi32>
    %27 = arith.muli %26, %22 : vector<8x8x64xi32>
    %c-1_i32 = arith.constant -1 : i32
    %28 = vector.broadcast %c-1_i32 : i32 to vector<8x8x64xi32>
    %29 = arith.addi %27, %28 : vector<8x8x64xi32>
    %c1_i32_12 = arith.constant 1 : i32
    %30 = vector.broadcast %c1_i32_12 : i32 to vector<8x8x64xi32>
    %31 = arith.muli %30, %23 : vector<8x8x64xi32>
    %c-1_i32_13 = arith.constant -1 : i32
    %32 = vector.broadcast %c-1_i32_13 : i32 to vector<8x8x64xi32>
    %33 = arith.addi %31, %32 : vector<8x8x64xi32>
    %c8_i32 = arith.constant 8 : i32
    %34 = vector.broadcast %c8_i32 : i32 to vector<8x8x64xi32>
    %35 = arith.muli %29, %34 : vector<8x8x64xi32>
    %36 = arith.addi %35, %33 : vector<8x8x64xi32>
    %37 = arith.cmpi eq, %24, %36 : vector<8x8x64xi32>
    %c0_i32 = arith.constant 0 : i32
    %38 = vector.broadcast %c0_i32 : i32 to vector<8x8x64xi32>
    %39 = arith.cmpi sge, %29, %38 : vector<8x8x64xi32>
    %40 = arith.andi %37, %39 : vector<8x8x64xi1>
    %c8_i32_14 = arith.constant 8 : i32
    %41 = vector.broadcast %c8_i32_14 : i32 to vector<8x8x64xi32>
    %42 = arith.cmpi slt, %29, %41 : vector<8x8x64xi32>
    %43 = arith.andi %40, %42 : vector<8x8x64xi1>
    %c0_i32_15 = arith.constant 0 : i32
    %44 = vector.broadcast %c0_i32_15 : i32 to vector<8x8x64xi32>
    %45 = arith.cmpi sge, %33, %44 : vector<8x8x64xi32>
    %46 = arith.andi %43, %45 : vector<8x8x64xi1>
    %c8_i32_16 = arith.constant 8 : i32
    %47 = vector.broadcast %c8_i32_16 : i32 to vector<8x8x64xi32>
    %48 = arith.cmpi slt, %33, %47 : vector<8x8x64xi32>
    %49 = arith.andi %46, %48 : vector<8x8x64xi1>
    %cst_17 = arith.constant 1.000000e+00 : f32
    %cst_18 = arith.constant 0.000000e+00 : f32
    %50 = vector.broadcast %cst_17 : f32 to vector<8x8x64xf32>
    %51 = vector.broadcast %cst_18 : f32 to vector<8x8x64xf32>
    %52 = arith.select %49, %50, %51 : vector<8x8x64xi1>, vector<8x8x64xf32>
    %53 = vector.shape_cast %52 : vector<8x8x64xf32> to vector<64x64xf32>
    %54 = arith.truncf %53 : vector<64x64xf32> to vector<64x64xbf16>
    %55 = vector.extract_strided_slice %21 {offsets = [0, 0], sizes = [64, 8], strides = [1, 1]} : vector<64x72xbf16> to vector<64x8xbf16>
    %cst_19 = arith.constant dense<0.000000e+00> : vector<64x8xf32>
    %56 = tpu.matmul %54, %55, %cst_19 {dimension_numbers = #tpu.dot_dimension_numbers<[1], [0], [0], [1], [0, 0, 1, 1], [], []>} : vector<64x64xbf16>, vector<64x8xbf16>, vector<64x8xf32> -> vector<64x8xf32>
    %57 = arith.addf %25, %56 : vector<64x8xf32>
    %c1_i32_20 = arith.constant 1 : i32
    %58 = vector.broadcast %c1_i32_20 : i32 to vector<8x8x64xi32>
    %59 = arith.muli %58, %22 : vector<8x8x64xi32>
    %c-1_i32_21 = arith.constant -1 : i32
    %60 = vector.broadcast %c-1_i32_21 : i32 to vector<8x8x64xi32>
    %61 = arith.addi %59, %60 : vector<8x8x64xi32>
    %c1_i32_22 = arith.constant 1 : i32
    %62 = vector.broadcast %c1_i32_22 : i32 to vector<8x8x64xi32>
    %63 = arith.muli %62, %23 : vector<8x8x64xi32>
    %c0_i32_23 = arith.constant 0 : i32
    %64 = vector.broadcast %c0_i32_23 : i32 to vector<8x8x64xi32>
    %65 = arith.addi %63, %64 : vector<8x8x64xi32>
    %c8_i32_24 = arith.constant 8 : i32
    %66 = vector.broadcast %c8_i32_24 : i32 to vector<8x8x64xi32>
    %67 = arith.muli %61, %66 : vector<8x8x64xi32>
    %68 = arith.addi %67, %65 : vector<8x8x64xi32>
    %69 = arith.cmpi eq, %24, %68 : vector<8x8x64xi32>
    %c0_i32_25 = arith.constant 0 : i32
    %70 = vector.broadcast %c0_i32_25 : i32 to vector<8x8x64xi32>
    %71 = arith.cmpi sge, %61, %70 : vector<8x8x64xi32>
    %72 = arith.andi %69, %71 : vector<8x8x64xi1>
    %c8_i32_26 = arith.constant 8 : i32
    %73 = vector.broadcast %c8_i32_26 : i32 to vector<8x8x64xi32>
    %74 = arith.cmpi slt, %61, %73 : vector<8x8x64xi32>
    %75 = arith.andi %72, %74 : vector<8x8x64xi1>
    %c0_i32_27 = arith.constant 0 : i32
    %76 = vector.broadcast %c0_i32_27 : i32 to vector<8x8x64xi32>
    %77 = arith.cmpi sge, %65, %76 : vector<8x8x64xi32>
    %78 = arith.andi %75, %77 : vector<8x8x64xi1>
    %c8_i32_28 = arith.constant 8 : i32
    %79 = vector.broadcast %c8_i32_28 : i32 to vector<8x8x64xi32>
    %80 = arith.cmpi slt, %65, %79 : vector<8x8x64xi32>
    %81 = arith.andi %78, %80 : vector<8x8x64xi1>
    %cst_29 = arith.constant 1.000000e+00 : f32
    %cst_30 = arith.constant 0.000000e+00 : f32
    %82 = vector.broadcast %cst_29 : f32 to vector<8x8x64xf32>
    %83 = vector.broadcast %cst_30 : f32 to vector<8x8x64xf32>
    %84 = arith.select %81, %82, %83 : vector<8x8x64xi1>, vector<8x8x64xf32>
    %85 = vector.shape_cast %84 : vector<8x8x64xf32> to vector<64x64xf32>
    %86 = arith.truncf %85 : vector<64x64xf32> to vector<64x64xbf16>
    %87 = vector.extract_strided_slice %21 {offsets = [0, 8], sizes = [64, 8], strides = [1, 1]} : vector<64x72xbf16> to vector<64x8xbf16>
    %cst_31 = arith.constant dense<0.000000e+00> : vector<64x8xf32>
    %88 = tpu.matmul %86, %87, %cst_31 {dimension_numbers = #tpu.dot_dimension_numbers<[1], [0], [0], [1], [0, 0, 1, 1], [], []>} : vector<64x64xbf16>, vector<64x8xbf16>, vector<64x8xf32> -> vector<64x8xf32>
    %89 = arith.addf %57, %88 : vector<64x8xf32>
    %c1_i32_32 = arith.constant 1 : i32
    %90 = vector.broadcast %c1_i32_32 : i32 to vector<8x8x64xi32>
    %91 = arith.muli %90, %22 : vector<8x8x64xi32>
    %c-1_i32_33 = arith.constant -1 : i32
    %92 = vector.broadcast %c-1_i32_33 : i32 to vector<8x8x64xi32>
    %93 = arith.addi %91, %92 : vector<8x8x64xi32>
    %c1_i32_34 = arith.constant 1 : i32
    %94 = vector.broadcast %c1_i32_34 : i32 to vector<8x8x64xi32>
    %95 = arith.muli %94, %23 : vector<8x8x64xi32>
    %c1_i32_35 = arith.constant 1 : i32
    %96 = vector.broadcast %c1_i32_35 : i32 to vector<8x8x64xi32>
    %97 = arith.addi %95, %96 : vector<8x8x64xi32>
    %c8_i32_36 = arith.constant 8 : i32
    %98 = vector.broadcast %c8_i32_36 : i32 to vector<8x8x64xi32>
    %99 = arith.muli %93, %98 : vector<8x8x64xi32>
    %100 = arith.addi %99, %97 : vector<8x8x64xi32>
    %101 = arith.cmpi eq, %24, %100 : vector<8x8x64xi32>
    %c0_i32_37 = arith.constant 0 : i32
    %102 = vector.broadcast %c0_i32_37 : i32 to vector<8x8x64xi32>
    %103 = arith.cmpi sge, %93, %102 : vector<8x8x64xi32>
    %104 = arith.andi %101, %103 : vector<8x8x64xi1>
    %c8_i32_38 = arith.constant 8 : i32
    %105 = vector.broadcast %c8_i32_38 : i32 to vector<8x8x64xi32>
    %106 = arith.cmpi slt, %93, %105 : vector<8x8x64xi32>
    %107 = arith.andi %104, %106 : vector<8x8x64xi1>
    %c0_i32_39 = arith.constant 0 : i32
    %108 = vector.broadcast %c0_i32_39 : i32 to vector<8x8x64xi32>
    %109 = arith.cmpi sge, %97, %108 : vector<8x8x64xi32>
    %110 = arith.andi %107, %109 : vector<8x8x64xi1>
    %c8_i32_40 = arith.constant 8 : i32
    %111 = vector.broadcast %c8_i32_40 : i32 to vector<8x8x64xi32>
    %112 = arith.cmpi slt, %97, %111 : vector<8x8x64xi32>
    %113 = arith.andi %110, %112 : vector<8x8x64xi1>
    %cst_41 = arith.constant 1.000000e+00 : f32
    %cst_42 = arith.constant 0.000000e+00 : f32
    %114 = vector.broadcast %cst_41 : f32 to vector<8x8x64xf32>
    %115 = vector.broadcast %cst_42 : f32 to vector<8x8x64xf32>
    %116 = arith.select %113, %114, %115 : vector<8x8x64xi1>, vector<8x8x64xf32>
    %117 = vector.shape_cast %116 : vector<8x8x64xf32> to vector<64x64xf32>
    %118 = arith.truncf %117 : vector<64x64xf32> to vector<64x64xbf16>
    %119 = vector.extract_strided_slice %21 {offsets = [0, 16], sizes = [64, 8], strides = [1, 1]} : vector<64x72xbf16> to vector<64x8xbf16>
    %cst_43 = arith.constant dense<0.000000e+00> : vector<64x8xf32>
    %120 = tpu.matmul %118, %119, %cst_43 {dimension_numbers = #tpu.dot_dimension_numbers<[1], [0], [0], [1], [0, 0, 1, 1], [], []>} : vector<64x64xbf16>, vector<64x8xbf16>, vector<64x8xf32> -> vector<64x8xf32>
    %121 = arith.addf %89, %120 : vector<64x8xf32>
    %c1_i32_44 = arith.constant 1 : i32
    %122 = vector.broadcast %c1_i32_44 : i32 to vector<8x8x64xi32>
    %123 = arith.muli %122, %22 : vector<8x8x64xi32>
    %c0_i32_45 = arith.constant 0 : i32
    %124 = vector.broadcast %c0_i32_45 : i32 to vector<8x8x64xi32>
    %125 = arith.addi %123, %124 : vector<8x8x64xi32>
    %c1_i32_46 = arith.constant 1 : i32
    %126 = vector.broadcast %c1_i32_46 : i32 to vector<8x8x64xi32>
    %127 = arith.muli %126, %23 : vector<8x8x64xi32>
    %c-1_i32_47 = arith.constant -1 : i32
    %128 = vector.broadcast %c-1_i32_47 : i32 to vector<8x8x64xi32>
    %129 = arith.addi %127, %128 : vector<8x8x64xi32>
    %c8_i32_48 = arith.constant 8 : i32
    %130 = vector.broadcast %c8_i32_48 : i32 to vector<8x8x64xi32>
    %131 = arith.muli %125, %130 : vector<8x8x64xi32>
    %132 = arith.addi %131, %129 : vector<8x8x64xi32>
    %133 = arith.cmpi eq, %24, %132 : vector<8x8x64xi32>
    %c0_i32_49 = arith.constant 0 : i32
    %134 = vector.broadcast %c0_i32_49 : i32 to vector<8x8x64xi32>
    %135 = arith.cmpi sge, %125, %134 : vector<8x8x64xi32>
    %136 = arith.andi %133, %135 : vector<8x8x64xi1>
    %c8_i32_50 = arith.constant 8 : i32
    %137 = vector.broadcast %c8_i32_50 : i32 to vector<8x8x64xi32>
    %138 = arith.cmpi slt, %125, %137 : vector<8x8x64xi32>
    %139 = arith.andi %136, %138 : vector<8x8x64xi1>
    %c0_i32_51 = arith.constant 0 : i32
    %140 = vector.broadcast %c0_i32_51 : i32 to vector<8x8x64xi32>
    %141 = arith.cmpi sge, %129, %140 : vector<8x8x64xi32>
    %142 = arith.andi %139, %141 : vector<8x8x64xi1>
    %c8_i32_52 = arith.constant 8 : i32
    %143 = vector.broadcast %c8_i32_52 : i32 to vector<8x8x64xi32>
    %144 = arith.cmpi slt, %129, %143 : vector<8x8x64xi32>
    %145 = arith.andi %142, %144 : vector<8x8x64xi1>
    %cst_53 = arith.constant 1.000000e+00 : f32
    %cst_54 = arith.constant 0.000000e+00 : f32
    %146 = vector.broadcast %cst_53 : f32 to vector<8x8x64xf32>
    %147 = vector.broadcast %cst_54 : f32 to vector<8x8x64xf32>
    %148 = arith.select %145, %146, %147 : vector<8x8x64xi1>, vector<8x8x64xf32>
    %149 = vector.shape_cast %148 : vector<8x8x64xf32> to vector<64x64xf32>
    %150 = arith.truncf %149 : vector<64x64xf32> to vector<64x64xbf16>
    %151 = vector.extract_strided_slice %21 {offsets = [0, 24], sizes = [64, 8], strides = [1, 1]} : vector<64x72xbf16> to vector<64x8xbf16>
    %cst_55 = arith.constant dense<0.000000e+00> : vector<64x8xf32>
    %152 = tpu.matmul %150, %151, %cst_55 {dimension_numbers = #tpu.dot_dimension_numbers<[1], [0], [0], [1], [0, 0, 1, 1], [], []>} : vector<64x64xbf16>, vector<64x8xbf16>, vector<64x8xf32> -> vector<64x8xf32>
    %153 = arith.addf %121, %152 : vector<64x8xf32>
    %c1_i32_56 = arith.constant 1 : i32
    %154 = vector.broadcast %c1_i32_56 : i32 to vector<8x8x64xi32>
    %155 = arith.muli %154, %22 : vector<8x8x64xi32>
    %c0_i32_57 = arith.constant 0 : i32
    %156 = vector.broadcast %c0_i32_57 : i32 to vector<8x8x64xi32>
    %157 = arith.addi %155, %156 : vector<8x8x64xi32>
    %c1_i32_58 = arith.constant 1 : i32
    %158 = vector.broadcast %c1_i32_58 : i32 to vector<8x8x64xi32>
    %159 = arith.muli %158, %23 : vector<8x8x64xi32>
    %c0_i32_59 = arith.constant 0 : i32
    %160 = vector.broadcast %c0_i32_59 : i32 to vector<8x8x64xi32>
    %161 = arith.addi %159, %160 : vector<8x8x64xi32>
    %c8_i32_60 = arith.constant 8 : i32
    %162 = vector.broadcast %c8_i32_60 : i32 to vector<8x8x64xi32>
    %163 = arith.muli %157, %162 : vector<8x8x64xi32>
    %164 = arith.addi %163, %161 : vector<8x8x64xi32>
    %165 = arith.cmpi eq, %24, %164 : vector<8x8x64xi32>
    %c0_i32_61 = arith.constant 0 : i32
    %166 = vector.broadcast %c0_i32_61 : i32 to vector<8x8x64xi32>
    %167 = arith.cmpi sge, %157, %166 : vector<8x8x64xi32>
    %168 = arith.andi %165, %167 : vector<8x8x64xi1>
    %c8_i32_62 = arith.constant 8 : i32
    %169 = vector.broadcast %c8_i32_62 : i32 to vector<8x8x64xi32>
    %170 = arith.cmpi slt, %157, %169 : vector<8x8x64xi32>
    %171 = arith.andi %168, %170 : vector<8x8x64xi1>
    %c0_i32_63 = arith.constant 0 : i32
    %172 = vector.broadcast %c0_i32_63 : i32 to vector<8x8x64xi32>
    %173 = arith.cmpi sge, %161, %172 : vector<8x8x64xi32>
    %174 = arith.andi %171, %173 : vector<8x8x64xi1>
    %c8_i32_64 = arith.constant 8 : i32
    %175 = vector.broadcast %c8_i32_64 : i32 to vector<8x8x64xi32>
    %176 = arith.cmpi slt, %161, %175 : vector<8x8x64xi32>
    %177 = arith.andi %174, %176 : vector<8x8x64xi1>
    %cst_65 = arith.constant 1.000000e+00 : f32
    %cst_66 = arith.constant 0.000000e+00 : f32
    %178 = vector.broadcast %cst_65 : f32 to vector<8x8x64xf32>
    %179 = vector.broadcast %cst_66 : f32 to vector<8x8x64xf32>
    %180 = arith.select %177, %178, %179 : vector<8x8x64xi1>, vector<8x8x64xf32>
    %181 = vector.shape_cast %180 : vector<8x8x64xf32> to vector<64x64xf32>
    %182 = arith.truncf %181 : vector<64x64xf32> to vector<64x64xbf16>
    %183 = vector.extract_strided_slice %21 {offsets = [0, 32], sizes = [64, 8], strides = [1, 1]} : vector<64x72xbf16> to vector<64x8xbf16>
    %cst_67 = arith.constant dense<0.000000e+00> : vector<64x8xf32>
    %184 = tpu.matmul %182, %183, %cst_67 {dimension_numbers = #tpu.dot_dimension_numbers<[1], [0], [0], [1], [0, 0, 1, 1], [], []>} : vector<64x64xbf16>, vector<64x8xbf16>, vector<64x8xf32> -> vector<64x8xf32>
    %185 = arith.addf %153, %184 : vector<64x8xf32>
    %c1_i32_68 = arith.constant 1 : i32
    %186 = vector.broadcast %c1_i32_68 : i32 to vector<8x8x64xi32>
    %187 = arith.muli %186, %22 : vector<8x8x64xi32>
    %c0_i32_69 = arith.constant 0 : i32
    %188 = vector.broadcast %c0_i32_69 : i32 to vector<8x8x64xi32>
    %189 = arith.addi %187, %188 : vector<8x8x64xi32>
    %c1_i32_70 = arith.constant 1 : i32
    %190 = vector.broadcast %c1_i32_70 : i32 to vector<8x8x64xi32>
    %191 = arith.muli %190, %23 : vector<8x8x64xi32>
    %c1_i32_71 = arith.constant 1 : i32
    %192 = vector.broadcast %c1_i32_71 : i32 to vector<8x8x64xi32>
    %193 = arith.addi %191, %192 : vector<8x8x64xi32>
    %c8_i32_72 = arith.constant 8 : i32
    %194 = vector.broadcast %c8_i32_72 : i32 to vector<8x8x64xi32>
    %195 = arith.muli %189, %194 : vector<8x8x64xi32>
    %196 = arith.addi %195, %193 : vector<8x8x64xi32>
    %197 = arith.cmpi eq, %24, %196 : vector<8x8x64xi32>
    %c0_i32_73 = arith.constant 0 : i32
    %198 = vector.broadcast %c0_i32_73 : i32 to vector<8x8x64xi32>
    %199 = arith.cmpi sge, %189, %198 : vector<8x8x64xi32>
    %200 = arith.andi %197, %199 : vector<8x8x64xi1>
    %c8_i32_74 = arith.constant 8 : i32
    %201 = vector.broadcast %c8_i32_74 : i32 to vector<8x8x64xi32>
    %202 = arith.cmpi slt, %189, %201 : vector<8x8x64xi32>
    %203 = arith.andi %200, %202 : vector<8x8x64xi1>
    %c0_i32_75 = arith.constant 0 : i32
    %204 = vector.broadcast %c0_i32_75 : i32 to vector<8x8x64xi32>
    %205 = arith.cmpi sge, %193, %204 : vector<8x8x64xi32>
    %206 = arith.andi %203, %205 : vector<8x8x64xi1>
    %c8_i32_76 = arith.constant 8 : i32
    %207 = vector.broadcast %c8_i32_76 : i32 to vector<8x8x64xi32>
    %208 = arith.cmpi slt, %193, %207 : vector<8x8x64xi32>
    %209 = arith.andi %206, %208 : vector<8x8x64xi1>
    %cst_77 = arith.constant 1.000000e+00 : f32
    %cst_78 = arith.constant 0.000000e+00 : f32
    %210 = vector.broadcast %cst_77 : f32 to vector<8x8x64xf32>
    %211 = vector.broadcast %cst_78 : f32 to vector<8x8x64xf32>
    %212 = arith.select %209, %210, %211 : vector<8x8x64xi1>, vector<8x8x64xf32>
    %213 = vector.shape_cast %212 : vector<8x8x64xf32> to vector<64x64xf32>
    %214 = arith.truncf %213 : vector<64x64xf32> to vector<64x64xbf16>
    %215 = vector.extract_strided_slice %21 {offsets = [0, 40], sizes = [64, 8], strides = [1, 1]} : vector<64x72xbf16> to vector<64x8xbf16>
    %cst_79 = arith.constant dense<0.000000e+00> : vector<64x8xf32>
    %216 = tpu.matmul %214, %215, %cst_79 {dimension_numbers = #tpu.dot_dimension_numbers<[1], [0], [0], [1], [0, 0, 1, 1], [], []>} : vector<64x64xbf16>, vector<64x8xbf16>, vector<64x8xf32> -> vector<64x8xf32>
    %217 = arith.addf %185, %216 : vector<64x8xf32>
    %c1_i32_80 = arith.constant 1 : i32
    %218 = vector.broadcast %c1_i32_80 : i32 to vector<8x8x64xi32>
    %219 = arith.muli %218, %22 : vector<8x8x64xi32>
    %c1_i32_81 = arith.constant 1 : i32
    %220 = vector.broadcast %c1_i32_81 : i32 to vector<8x8x64xi32>
    %221 = arith.addi %219, %220 : vector<8x8x64xi32>
    %c1_i32_82 = arith.constant 1 : i32
    %222 = vector.broadcast %c1_i32_82 : i32 to vector<8x8x64xi32>
    %223 = arith.muli %222, %23 : vector<8x8x64xi32>
    %c-1_i32_83 = arith.constant -1 : i32
    %224 = vector.broadcast %c-1_i32_83 : i32 to vector<8x8x64xi32>
    %225 = arith.addi %223, %224 : vector<8x8x64xi32>
    %c8_i32_84 = arith.constant 8 : i32
    %226 = vector.broadcast %c8_i32_84 : i32 to vector<8x8x64xi32>
    %227 = arith.muli %221, %226 : vector<8x8x64xi32>
    %228 = arith.addi %227, %225 : vector<8x8x64xi32>
    %229 = arith.cmpi eq, %24, %228 : vector<8x8x64xi32>
    %c0_i32_85 = arith.constant 0 : i32
    %230 = vector.broadcast %c0_i32_85 : i32 to vector<8x8x64xi32>
    %231 = arith.cmpi sge, %221, %230 : vector<8x8x64xi32>
    %232 = arith.andi %229, %231 : vector<8x8x64xi1>
    %c8_i32_86 = arith.constant 8 : i32
    %233 = vector.broadcast %c8_i32_86 : i32 to vector<8x8x64xi32>
    %234 = arith.cmpi slt, %221, %233 : vector<8x8x64xi32>
    %235 = arith.andi %232, %234 : vector<8x8x64xi1>
    %c0_i32_87 = arith.constant 0 : i32
    %236 = vector.broadcast %c0_i32_87 : i32 to vector<8x8x64xi32>
    %237 = arith.cmpi sge, %225, %236 : vector<8x8x64xi32>
    %238 = arith.andi %235, %237 : vector<8x8x64xi1>
    %c8_i32_88 = arith.constant 8 : i32
    %239 = vector.broadcast %c8_i32_88 : i32 to vector<8x8x64xi32>
    %240 = arith.cmpi slt, %225, %239 : vector<8x8x64xi32>
    %241 = arith.andi %238, %240 : vector<8x8x64xi1>
    %cst_89 = arith.constant 1.000000e+00 : f32
    %cst_90 = arith.constant 0.000000e+00 : f32
    %242 = vector.broadcast %cst_89 : f32 to vector<8x8x64xf32>
    %243 = vector.broadcast %cst_90 : f32 to vector<8x8x64xf32>
    %244 = arith.select %241, %242, %243 : vector<8x8x64xi1>, vector<8x8x64xf32>
    %245 = vector.shape_cast %244 : vector<8x8x64xf32> to vector<64x64xf32>
    %246 = arith.truncf %245 : vector<64x64xf32> to vector<64x64xbf16>
    %247 = vector.extract_strided_slice %21 {offsets = [0, 48], sizes = [64, 8], strides = [1, 1]} : vector<64x72xbf16> to vector<64x8xbf16>
    %cst_91 = arith.constant dense<0.000000e+00> : vector<64x8xf32>
    %248 = tpu.matmul %246, %247, %cst_91 {dimension_numbers = #tpu.dot_dimension_numbers<[1], [0], [0], [1], [0, 0, 1, 1], [], []>} : vector<64x64xbf16>, vector<64x8xbf16>, vector<64x8xf32> -> vector<64x8xf32>
    %249 = arith.addf %217, %248 : vector<64x8xf32>
    %c1_i32_92 = arith.constant 1 : i32
    %250 = vector.broadcast %c1_i32_92 : i32 to vector<8x8x64xi32>
    %251 = arith.muli %250, %22 : vector<8x8x64xi32>
    %c1_i32_93 = arith.constant 1 : i32
    %252 = vector.broadcast %c1_i32_93 : i32 to vector<8x8x64xi32>
    %253 = arith.addi %251, %252 : vector<8x8x64xi32>
    %c1_i32_94 = arith.constant 1 : i32
    %254 = vector.broadcast %c1_i32_94 : i32 to vector<8x8x64xi32>
    %255 = arith.muli %254, %23 : vector<8x8x64xi32>
    %c0_i32_95 = arith.constant 0 : i32
    %256 = vector.broadcast %c0_i32_95 : i32 to vector<8x8x64xi32>
    %257 = arith.addi %255, %256 : vector<8x8x64xi32>
    %c8_i32_96 = arith.constant 8 : i32
    %258 = vector.broadcast %c8_i32_96 : i32 to vector<8x8x64xi32>
    %259 = arith.muli %253, %258 : vector<8x8x64xi32>
    %260 = arith.addi %259, %257 : vector<8x8x64xi32>
    %261 = arith.cmpi eq, %24, %260 : vector<8x8x64xi32>
    %c0_i32_97 = arith.constant 0 : i32
    %262 = vector.broadcast %c0_i32_97 : i32 to vector<8x8x64xi32>
    %263 = arith.cmpi sge, %253, %262 : vector<8x8x64xi32>
    %264 = arith.andi %261, %263 : vector<8x8x64xi1>
    %c8_i32_98 = arith.constant 8 : i32
    %265 = vector.broadcast %c8_i32_98 : i32 to vector<8x8x64xi32>
    %266 = arith.cmpi slt, %253, %265 : vector<8x8x64xi32>
    %267 = arith.andi %264, %266 : vector<8x8x64xi1>
    %c0_i32_99 = arith.constant 0 : i32
    %268 = vector.broadcast %c0_i32_99 : i32 to vector<8x8x64xi32>
    %269 = arith.cmpi sge, %257, %268 : vector<8x8x64xi32>
    %270 = arith.andi %267, %269 : vector<8x8x64xi1>
    %c8_i32_100 = arith.constant 8 : i32
    %271 = vector.broadcast %c8_i32_100 : i32 to vector<8x8x64xi32>
    %272 = arith.cmpi slt, %257, %271 : vector<8x8x64xi32>
    %273 = arith.andi %270, %272 : vector<8x8x64xi1>
    %cst_101 = arith.constant 1.000000e+00 : f32
    %cst_102 = arith.constant 0.000000e+00 : f32
    %274 = vector.broadcast %cst_101 : f32 to vector<8x8x64xf32>
    %275 = vector.broadcast %cst_102 : f32 to vector<8x8x64xf32>
    %276 = arith.select %273, %274, %275 : vector<8x8x64xi1>, vector<8x8x64xf32>
    %277 = vector.shape_cast %276 : vector<8x8x64xf32> to vector<64x64xf32>
    %278 = arith.truncf %277 : vector<64x64xf32> to vector<64x64xbf16>
    %279 = vector.extract_strided_slice %21 {offsets = [0, 56], sizes = [64, 8], strides = [1, 1]} : vector<64x72xbf16> to vector<64x8xbf16>
    %cst_103 = arith.constant dense<0.000000e+00> : vector<64x8xf32>
    %280 = tpu.matmul %278, %279, %cst_103 {dimension_numbers = #tpu.dot_dimension_numbers<[1], [0], [0], [1], [0, 0, 1, 1], [], []>} : vector<64x64xbf16>, vector<64x8xbf16>, vector<64x8xf32> -> vector<64x8xf32>
    %281 = arith.addf %249, %280 : vector<64x8xf32>
    %c1_i32_104 = arith.constant 1 : i32
    %282 = vector.broadcast %c1_i32_104 : i32 to vector<8x8x64xi32>
    %283 = arith.muli %282, %22 : vector<8x8x64xi32>
    %c1_i32_105 = arith.constant 1 : i32
    %284 = vector.broadcast %c1_i32_105 : i32 to vector<8x8x64xi32>
    %285 = arith.addi %283, %284 : vector<8x8x64xi32>
    %c1_i32_106 = arith.constant 1 : i32
    %286 = vector.broadcast %c1_i32_106 : i32 to vector<8x8x64xi32>
    %287 = arith.muli %286, %23 : vector<8x8x64xi32>
    %c1_i32_107 = arith.constant 1 : i32
    %288 = vector.broadcast %c1_i32_107 : i32 to vector<8x8x64xi32>
    %289 = arith.addi %287, %288 : vector<8x8x64xi32>
    %c8_i32_108 = arith.constant 8 : i32
    %290 = vector.broadcast %c8_i32_108 : i32 to vector<8x8x64xi32>
    %291 = arith.muli %285, %290 : vector<8x8x64xi32>
    %292 = arith.addi %291, %289 : vector<8x8x64xi32>
    %293 = arith.cmpi eq, %24, %292 : vector<8x8x64xi32>
    %c0_i32_109 = arith.constant 0 : i32
    %294 = vector.broadcast %c0_i32_109 : i32 to vector<8x8x64xi32>
    %295 = arith.cmpi sge, %285, %294 : vector<8x8x64xi32>
    %296 = arith.andi %293, %295 : vector<8x8x64xi1>
    %c8_i32_110 = arith.constant 8 : i32
    %297 = vector.broadcast %c8_i32_110 : i32 to vector<8x8x64xi32>
    %298 = arith.cmpi slt, %285, %297 : vector<8x8x64xi32>
    %299 = arith.andi %296, %298 : vector<8x8x64xi1>
    %c0_i32_111 = arith.constant 0 : i32
    %300 = vector.broadcast %c0_i32_111 : i32 to vector<8x8x64xi32>
    %301 = arith.cmpi sge, %289, %300 : vector<8x8x64xi32>
    %302 = arith.andi %299, %301 : vector<8x8x64xi1>
    %c8_i32_112 = arith.constant 8 : i32
    %303 = vector.broadcast %c8_i32_112 : i32 to vector<8x8x64xi32>
    %304 = arith.cmpi slt, %289, %303 : vector<8x8x64xi32>
    %305 = arith.andi %302, %304 : vector<8x8x64xi1>
    %cst_113 = arith.constant 1.000000e+00 : f32
    %cst_114 = arith.constant 0.000000e+00 : f32
    %306 = vector.broadcast %cst_113 : f32 to vector<8x8x64xf32>
    %307 = vector.broadcast %cst_114 : f32 to vector<8x8x64xf32>
    %308 = arith.select %305, %306, %307 : vector<8x8x64xi1>, vector<8x8x64xf32>
    %309 = vector.shape_cast %308 : vector<8x8x64xf32> to vector<64x64xf32>
    %310 = arith.truncf %309 : vector<64x64xf32> to vector<64x64xbf16>
    %311 = vector.extract_strided_slice %21 {offsets = [0, 64], sizes = [64, 8], strides = [1, 1]} : vector<64x72xbf16> to vector<64x8xbf16>
    %cst_115 = arith.constant dense<0.000000e+00> : vector<64x8xf32>
    %312 = tpu.matmul %310, %311, %cst_115 {dimension_numbers = #tpu.dot_dimension_numbers<[1], [0], [0], [1], [0, 0, 1, 1], [], []>} : vector<64x64xbf16>, vector<64x8xbf16>, vector<64x8xf32> -> vector<64x8xf32>
    %313 = arith.addf %281, %312 : vector<64x8xf32>
    %c0_116 = arith.constant 0 : index
    %c0_117 = arith.constant 0 : index
    %314 = vector.load %arg5[%c0_116, %c0_117] : memref<1x8xf32, #tpu.memory_space<vmem>>, vector<1x8xf32>
    %315 = vector.shape_cast %314 : vector<1x8xf32> to vector<8xf32>
    %316 = vector.shape_cast %315 : vector<8xf32> to vector<1x8xf32>
    %317 = vector.broadcast %316 : vector<1x8xf32> to vector<64x8xf32>
    %318 = arith.mulf %313, %317 : vector<64x8xf32>
    %c0_118 = arith.constant 0 : index
    %c0_119 = arith.constant 0 : index
    %319 = vector.load %arg6[%c0_118, %c0_119] : memref<1x8xf32, #tpu.memory_space<vmem>>, vector<1x8xf32>
    %320 = vector.shape_cast %319 : vector<1x8xf32> to vector<8xf32>
    %321 = vector.shape_cast %320 : vector<8xf32> to vector<1x8xf32>
    %322 = vector.broadcast %321 : vector<1x8xf32> to vector<64x8xf32>
    %323 = arith.addf %318, %322 : vector<64x8xf32>
    %cst_120 = arith.constant 0.000000e+00 : f32
    %324 = vector.broadcast %cst_120 : f32 to vector<64x8xf32>
    %325 = arith.cmpf ogt, %323, %324 : vector<64x8xf32>
    %cst_121 = arith.constant 1.000000e-01 : f32
    %326 = vector.broadcast %cst_121 : f32 to vector<64x8xf32>
    %327 = arith.mulf %326, %323 : vector<64x8xf32>
    %328 = arith.select %325, %323, %327 : vector<64x8xi1>, vector<64x8xf32>
    %329 = arith.truncf %328 : vector<64x8xf32> to vector<64x8xbf16>
    %c0_122 = arith.constant 0 : index
    %c0_123 = arith.constant 0 : index
    %330 = vector.load %arg7[%c0_122, %c0_123] : memref<8x72xbf16, #tpu.memory_space<vmem>>, vector<8x72xbf16>
    %cst_124 = arith.constant dense<0.000000e+00> : vector<64x72xf32>
    %331 = tpu.matmul %329, %330, %cst_124 {dimension_numbers = #tpu.dot_dimension_numbers<[1], [0], [0], [1], [0, 0, 1, 1], [], []>} : vector<64x8xbf16>, vector<8x72xbf16>, vector<64x72xf32> -> vector<64x72xf32>
    %332 = arith.truncf %331 : vector<64x72xf32> to vector<64x72xbf16>
    %333 = tpu.iota {dimensions = array<i32: 0>} : vector<8x8x64xi32>
    %334 = tpu.iota {dimensions = array<i32: 1>} : vector<8x8x64xi32>
    %335 = tpu.iota {dimensions = array<i32: 2>} : vector<8x8x64xi32>
    %cst_125 = arith.constant 0.000000e+00 : f32
    %336 = vector.broadcast %cst_125 : f32 to vector<64x8xf32>
    %c1_i32_126 = arith.constant 1 : i32
    %337 = vector.broadcast %c1_i32_126 : i32 to vector<8x8x64xi32>
    %338 = arith.muli %337, %333 : vector<8x8x64xi32>
    %c-1_i32_127 = arith.constant -1 : i32
    %339 = vector.broadcast %c-1_i32_127 : i32 to vector<8x8x64xi32>
    %340 = arith.addi %338, %339 : vector<8x8x64xi32>
    %c1_i32_128 = arith.constant 1 : i32
    %341 = vector.broadcast %c1_i32_128 : i32 to vector<8x8x64xi32>
    %342 = arith.muli %341, %334 : vector<8x8x64xi32>
    %c-1_i32_129 = arith.constant -1 : i32
    %343 = vector.broadcast %c-1_i32_129 : i32 to vector<8x8x64xi32>
    %344 = arith.addi %342, %343 : vector<8x8x64xi32>
    %c8_i32_130 = arith.constant 8 : i32
    %345 = vector.broadcast %c8_i32_130 : i32 to vector<8x8x64xi32>
    %346 = arith.muli %340, %345 : vector<8x8x64xi32>
    %347 = arith.addi %346, %344 : vector<8x8x64xi32>
    %348 = arith.cmpi eq, %335, %347 : vector<8x8x64xi32>
    %c0_i32_131 = arith.constant 0 : i32
    %349 = vector.broadcast %c0_i32_131 : i32 to vector<8x8x64xi32>
    %350 = arith.cmpi sge, %340, %349 : vector<8x8x64xi32>
    %351 = arith.andi %348, %350 : vector<8x8x64xi1>
    %c8_i32_132 = arith.constant 8 : i32
    %352 = vector.broadcast %c8_i32_132 : i32 to vector<8x8x64xi32>
    %353 = arith.cmpi slt, %340, %352 : vector<8x8x64xi32>
    %354 = arith.andi %351, %353 : vector<8x8x64xi1>
    %c0_i32_133 = arith.constant 0 : i32
    %355 = vector.broadcast %c0_i32_133 : i32 to vector<8x8x64xi32>
    %356 = arith.cmpi sge, %344, %355 : vector<8x8x64xi32>
    %357 = arith.andi %354, %356 : vector<8x8x64xi1>
    %c8_i32_134 = arith.constant 8 : i32
    %358 = vector.broadcast %c8_i32_134 : i32 to vector<8x8x64xi32>
    %359 = arith.cmpi slt, %344, %358 : vector<8x8x64xi32>
    %360 = arith.andi %357, %359 : vector<8x8x64xi1>
    %cst_135 = arith.constant 1.000000e+00 : f32
    %cst_136 = arith.constant 0.000000e+00 : f32
    %361 = vector.broadcast %cst_135 : f32 to vector<8x8x64xf32>
    %362 = vector.broadcast %cst_136 : f32 to vector<8x8x64xf32>
    %363 = arith.select %360, %361, %362 : vector<8x8x64xi1>, vector<8x8x64xf32>
    %364 = vector.shape_cast %363 : vector<8x8x64xf32> to vector<64x64xf32>
    %365 = arith.truncf %364 : vector<64x64xf32> to vector<64x64xbf16>
    %366 = vector.extract_strided_slice %332 {offsets = [0, 0], sizes = [64, 8], strides = [1, 1]} : vector<64x72xbf16> to vector<64x8xbf16>
    %cst_137 = arith.constant dense<0.000000e+00> : vector<64x8xf32>
    %367 = tpu.matmul %365, %366, %cst_137 {dimension_numbers = #tpu.dot_dimension_numbers<[1], [0], [0], [1], [0, 0, 1, 1], [], []>} : vector<64x64xbf16>, vector<64x8xbf16>, vector<64x8xf32> -> vector<64x8xf32>
    %368 = arith.addf %336, %367 : vector<64x8xf32>
    %c1_i32_138 = arith.constant 1 : i32
    %369 = vector.broadcast %c1_i32_138 : i32 to vector<8x8x64xi32>
    %370 = arith.muli %369, %333 : vector<8x8x64xi32>
    %c-1_i32_139 = arith.constant -1 : i32
    %371 = vector.broadcast %c-1_i32_139 : i32 to vector<8x8x64xi32>
    %372 = arith.addi %370, %371 : vector<8x8x64xi32>
    %c1_i32_140 = arith.constant 1 : i32
    %373 = vector.broadcast %c1_i32_140 : i32 to vector<8x8x64xi32>
    %374 = arith.muli %373, %334 : vector<8x8x64xi32>
    %c0_i32_141 = arith.constant 0 : i32
    %375 = vector.broadcast %c0_i32_141 : i32 to vector<8x8x64xi32>
    %376 = arith.addi %374, %375 : vector<8x8x64xi32>
    %c8_i32_142 = arith.constant 8 : i32
    %377 = vector.broadcast %c8_i32_142 : i32 to vector<8x8x64xi32>
    %378 = arith.muli %372, %377 : vector<8x8x64xi32>
    %379 = arith.addi %378, %376 : vector<8x8x64xi32>
    %380 = arith.cmpi eq, %335, %379 : vector<8x8x64xi32>
    %c0_i32_143 = arith.constant 0 : i32
    %381 = vector.broadcast %c0_i32_143 : i32 to vector<8x8x64xi32>
    %382 = arith.cmpi sge, %372, %381 : vector<8x8x64xi32>
    %383 = arith.andi %380, %382 : vector<8x8x64xi1>
    %c8_i32_144 = arith.constant 8 : i32
    %384 = vector.broadcast %c8_i32_144 : i32 to vector<8x8x64xi32>
    %385 = arith.cmpi slt, %372, %384 : vector<8x8x64xi32>
    %386 = arith.andi %383, %385 : vector<8x8x64xi1>
    %c0_i32_145 = arith.constant 0 : i32
    %387 = vector.broadcast %c0_i32_145 : i32 to vector<8x8x64xi32>
    %388 = arith.cmpi sge, %376, %387 : vector<8x8x64xi32>
    %389 = arith.andi %386, %388 : vector<8x8x64xi1>
    %c8_i32_146 = arith.constant 8 : i32
    %390 = vector.broadcast %c8_i32_146 : i32 to vector<8x8x64xi32>
    %391 = arith.cmpi slt, %376, %390 : vector<8x8x64xi32>
    %392 = arith.andi %389, %391 : vector<8x8x64xi1>
    %cst_147 = arith.constant 1.000000e+00 : f32
    %cst_148 = arith.constant 0.000000e+00 : f32
    %393 = vector.broadcast %cst_147 : f32 to vector<8x8x64xf32>
    %394 = vector.broadcast %cst_148 : f32 to vector<8x8x64xf32>
    %395 = arith.select %392, %393, %394 : vector<8x8x64xi1>, vector<8x8x64xf32>
    %396 = vector.shape_cast %395 : vector<8x8x64xf32> to vector<64x64xf32>
    %397 = arith.truncf %396 : vector<64x64xf32> to vector<64x64xbf16>
    %398 = vector.extract_strided_slice %332 {offsets = [0, 8], sizes = [64, 8], strides = [1, 1]} : vector<64x72xbf16> to vector<64x8xbf16>
    %cst_149 = arith.constant dense<0.000000e+00> : vector<64x8xf32>
    %399 = tpu.matmul %397, %398, %cst_149 {dimension_numbers = #tpu.dot_dimension_numbers<[1], [0], [0], [1], [0, 0, 1, 1], [], []>} : vector<64x64xbf16>, vector<64x8xbf16>, vector<64x8xf32> -> vector<64x8xf32>
    %400 = arith.addf %368, %399 : vector<64x8xf32>
    %c1_i32_150 = arith.constant 1 : i32
    %401 = vector.broadcast %c1_i32_150 : i32 to vector<8x8x64xi32>
    %402 = arith.muli %401, %333 : vector<8x8x64xi32>
    %c-1_i32_151 = arith.constant -1 : i32
    %403 = vector.broadcast %c-1_i32_151 : i32 to vector<8x8x64xi32>
    %404 = arith.addi %402, %403 : vector<8x8x64xi32>
    %c1_i32_152 = arith.constant 1 : i32
    %405 = vector.broadcast %c1_i32_152 : i32 to vector<8x8x64xi32>
    %406 = arith.muli %405, %334 : vector<8x8x64xi32>
    %c1_i32_153 = arith.constant 1 : i32
    %407 = vector.broadcast %c1_i32_153 : i32 to vector<8x8x64xi32>
    %408 = arith.addi %406, %407 : vector<8x8x64xi32>
    %c8_i32_154 = arith.constant 8 : i32
    %409 = vector.broadcast %c8_i32_154 : i32 to vector<8x8x64xi32>
    %410 = arith.muli %404, %409 : vector<8x8x64xi32>
    %411 = arith.addi %410, %408 : vector<8x8x64xi32>
    %412 = arith.cmpi eq, %335, %411 : vector<8x8x64xi32>
    %c0_i32_155 = arith.constant 0 : i32
    %413 = vector.broadcast %c0_i32_155 : i32 to vector<8x8x64xi32>
    %414 = arith.cmpi sge, %404, %413 : vector<8x8x64xi32>
    %415 = arith.andi %412, %414 : vector<8x8x64xi1>
    %c8_i32_156 = arith.constant 8 : i32
    %416 = vector.broadcast %c8_i32_156 : i32 to vector<8x8x64xi32>
    %417 = arith.cmpi slt, %404, %416 : vector<8x8x64xi32>
    %418 = arith.andi %415, %417 : vector<8x8x64xi1>
    %c0_i32_157 = arith.constant 0 : i32
    %419 = vector.broadcast %c0_i32_157 : i32 to vector<8x8x64xi32>
    %420 = arith.cmpi sge, %408, %419 : vector<8x8x64xi32>
    %421 = arith.andi %418, %420 : vector<8x8x64xi1>
    %c8_i32_158 = arith.constant 8 : i32
    %422 = vector.broadcast %c8_i32_158 : i32 to vector<8x8x64xi32>
    %423 = arith.cmpi slt, %408, %422 : vector<8x8x64xi32>
    %424 = arith.andi %421, %423 : vector<8x8x64xi1>
    %cst_159 = arith.constant 1.000000e+00 : f32
    %cst_160 = arith.constant 0.000000e+00 : f32
    %425 = vector.broadcast %cst_159 : f32 to vector<8x8x64xf32>
    %426 = vector.broadcast %cst_160 : f32 to vector<8x8x64xf32>
    %427 = arith.select %424, %425, %426 : vector<8x8x64xi1>, vector<8x8x64xf32>
    %428 = vector.shape_cast %427 : vector<8x8x64xf32> to vector<64x64xf32>
    %429 = arith.truncf %428 : vector<64x64xf32> to vector<64x64xbf16>
    %430 = vector.extract_strided_slice %332 {offsets = [0, 16], sizes = [64, 8], strides = [1, 1]} : vector<64x72xbf16> to vector<64x8xbf16>
    %cst_161 = arith.constant dense<0.000000e+00> : vector<64x8xf32>
    %431 = tpu.matmul %429, %430, %cst_161 {dimension_numbers = #tpu.dot_dimension_numbers<[1], [0], [0], [1], [0, 0, 1, 1], [], []>} : vector<64x64xbf16>, vector<64x8xbf16>, vector<64x8xf32> -> vector<64x8xf32>
    %432 = arith.addf %400, %431 : vector<64x8xf32>
    %c1_i32_162 = arith.constant 1 : i32
    %433 = vector.broadcast %c1_i32_162 : i32 to vector<8x8x64xi32>
    %434 = arith.muli %433, %333 : vector<8x8x64xi32>
    %c0_i32_163 = arith.constant 0 : i32
    %435 = vector.broadcast %c0_i32_163 : i32 to vector<8x8x64xi32>
    %436 = arith.addi %434, %435 : vector<8x8x64xi32>
    %c1_i32_164 = arith.constant 1 : i32
    %437 = vector.broadcast %c1_i32_164 : i32 to vector<8x8x64xi32>
    %438 = arith.muli %437, %334 : vector<8x8x64xi32>
    %c-1_i32_165 = arith.constant -1 : i32
    %439 = vector.broadcast %c-1_i32_165 : i32 to vector<8x8x64xi32>
    %440 = arith.addi %438, %439 : vector<8x8x64xi32>
    %c8_i32_166 = arith.constant 8 : i32
    %441 = vector.broadcast %c8_i32_166 : i32 to vector<8x8x64xi32>
    %442 = arith.muli %436, %441 : vector<8x8x64xi32>
    %443 = arith.addi %442, %440 : vector<8x8x64xi32>
    %444 = arith.cmpi eq, %335, %443 : vector<8x8x64xi32>
    %c0_i32_167 = arith.constant 0 : i32
    %445 = vector.broadcast %c0_i32_167 : i32 to vector<8x8x64xi32>
    %446 = arith.cmpi sge, %436, %445 : vector<8x8x64xi32>
    %447 = arith.andi %444, %446 : vector<8x8x64xi1>
    %c8_i32_168 = arith.constant 8 : i32
    %448 = vector.broadcast %c8_i32_168 : i32 to vector<8x8x64xi32>
    %449 = arith.cmpi slt, %436, %448 : vector<8x8x64xi32>
    %450 = arith.andi %447, %449 : vector<8x8x64xi1>
    %c0_i32_169 = arith.constant 0 : i32
    %451 = vector.broadcast %c0_i32_169 : i32 to vector<8x8x64xi32>
    %452 = arith.cmpi sge, %440, %451 : vector<8x8x64xi32>
    %453 = arith.andi %450, %452 : vector<8x8x64xi1>
    %c8_i32_170 = arith.constant 8 : i32
    %454 = vector.broadcast %c8_i32_170 : i32 to vector<8x8x64xi32>
    %455 = arith.cmpi slt, %440, %454 : vector<8x8x64xi32>
    %456 = arith.andi %453, %455 : vector<8x8x64xi1>
    %cst_171 = arith.constant 1.000000e+00 : f32
    %cst_172 = arith.constant 0.000000e+00 : f32
    %457 = vector.broadcast %cst_171 : f32 to vector<8x8x64xf32>
    %458 = vector.broadcast %cst_172 : f32 to vector<8x8x64xf32>
    %459 = arith.select %456, %457, %458 : vector<8x8x64xi1>, vector<8x8x64xf32>
    %460 = vector.shape_cast %459 : vector<8x8x64xf32> to vector<64x64xf32>
    %461 = arith.truncf %460 : vector<64x64xf32> to vector<64x64xbf16>
    %462 = vector.extract_strided_slice %332 {offsets = [0, 24], sizes = [64, 8], strides = [1, 1]} : vector<64x72xbf16> to vector<64x8xbf16>
    %cst_173 = arith.constant dense<0.000000e+00> : vector<64x8xf32>
    %463 = tpu.matmul %461, %462, %cst_173 {dimension_numbers = #tpu.dot_dimension_numbers<[1], [0], [0], [1], [0, 0, 1, 1], [], []>} : vector<64x64xbf16>, vector<64x8xbf16>, vector<64x8xf32> -> vector<64x8xf32>
    %464 = arith.addf %432, %463 : vector<64x8xf32>
    %c1_i32_174 = arith.constant 1 : i32
    %465 = vector.broadcast %c1_i32_174 : i32 to vector<8x8x64xi32>
    %466 = arith.muli %465, %333 : vector<8x8x64xi32>
    %c0_i32_175 = arith.constant 0 : i32
    %467 = vector.broadcast %c0_i32_175 : i32 to vector<8x8x64xi32>
    %468 = arith.addi %466, %467 : vector<8x8x64xi32>
    %c1_i32_176 = arith.constant 1 : i32
    %469 = vector.broadcast %c1_i32_176 : i32 to vector<8x8x64xi32>
    %470 = arith.muli %469, %334 : vector<8x8x64xi32>
    %c0_i32_177 = arith.constant 0 : i32
    %471 = vector.broadcast %c0_i32_177 : i32 to vector<8x8x64xi32>
    %472 = arith.addi %470, %471 : vector<8x8x64xi32>
    %c8_i32_178 = arith.constant 8 : i32
    %473 = vector.broadcast %c8_i32_178 : i32 to vector<8x8x64xi32>
    %474 = arith.muli %468, %473 : vector<8x8x64xi32>
    %475 = arith.addi %474, %472 : vector<8x8x64xi32>
    %476 = arith.cmpi eq, %335, %475 : vector<8x8x64xi32>
    %c0_i32_179 = arith.constant 0 : i32
    %477 = vector.broadcast %c0_i32_179 : i32 to vector<8x8x64xi32>
    %478 = arith.cmpi sge, %468, %477 : vector<8x8x64xi32>
    %479 = arith.andi %476, %478 : vector<8x8x64xi1>
    %c8_i32_180 = arith.constant 8 : i32
    %480 = vector.broadcast %c8_i32_180 : i32 to vector<8x8x64xi32>
    %481 = arith.cmpi slt, %468, %480 : vector<8x8x64xi32>
    %482 = arith.andi %479, %481 : vector<8x8x64xi1>
    %c0_i32_181 = arith.constant 0 : i32
    %483 = vector.broadcast %c0_i32_181 : i32 to vector<8x8x64xi32>
    %484 = arith.cmpi sge, %472, %483 : vector<8x8x64xi32>
    %485 = arith.andi %482, %484 : vector<8x8x64xi1>
    %c8_i32_182 = arith.constant 8 : i32
    %486 = vector.broadcast %c8_i32_182 : i32 to vector<8x8x64xi32>
    %487 = arith.cmpi slt, %472, %486 : vector<8x8x64xi32>
    %488 = arith.andi %485, %487 : vector<8x8x64xi1>
    %cst_183 = arith.constant 1.000000e+00 : f32
    %cst_184 = arith.constant 0.000000e+00 : f32
    %489 = vector.broadcast %cst_183 : f32 to vector<8x8x64xf32>
    %490 = vector.broadcast %cst_184 : f32 to vector<8x8x64xf32>
    %491 = arith.select %488, %489, %490 : vector<8x8x64xi1>, vector<8x8x64xf32>
    %492 = vector.shape_cast %491 : vector<8x8x64xf32> to vector<64x64xf32>
    %493 = arith.truncf %492 : vector<64x64xf32> to vector<64x64xbf16>
    %494 = vector.extract_strided_slice %332 {offsets = [0, 32], sizes = [64, 8], strides = [1, 1]} : vector<64x72xbf16> to vector<64x8xbf16>
    %cst_185 = arith.constant dense<0.000000e+00> : vector<64x8xf32>
    %495 = tpu.matmul %493, %494, %cst_185 {dimension_numbers = #tpu.dot_dimension_numbers<[1], [0], [0], [1], [0, 0, 1, 1], [], []>} : vector<64x64xbf16>, vector<64x8xbf16>, vector<64x8xf32> -> vector<64x8xf32>
    %496 = arith.addf %464, %495 : vector<64x8xf32>
    %c1_i32_186 = arith.constant 1 : i32
    %497 = vector.broadcast %c1_i32_186 : i32 to vector<8x8x64xi32>
    %498 = arith.muli %497, %333 : vector<8x8x64xi32>
    %c0_i32_187 = arith.constant 0 : i32
    %499 = vector.broadcast %c0_i32_187 : i32 to vector<8x8x64xi32>
    %500 = arith.addi %498, %499 : vector<8x8x64xi32>
    %c1_i32_188 = arith.constant 1 : i32
    %501 = vector.broadcast %c1_i32_188 : i32 to vector<8x8x64xi32>
    %502 = arith.muli %501, %334 : vector<8x8x64xi32>
    %c1_i32_189 = arith.constant 1 : i32
    %503 = vector.broadcast %c1_i32_189 : i32 to vector<8x8x64xi32>
    %504 = arith.addi %502, %503 : vector<8x8x64xi32>
    %c8_i32_190 = arith.constant 8 : i32
    %505 = vector.broadcast %c8_i32_190 : i32 to vector<8x8x64xi32>
    %506 = arith.muli %500, %505 : vector<8x8x64xi32>
    %507 = arith.addi %506, %504 : vector<8x8x64xi32>
    %508 = arith.cmpi eq, %335, %507 : vector<8x8x64xi32>
    %c0_i32_191 = arith.constant 0 : i32
    %509 = vector.broadcast %c0_i32_191 : i32 to vector<8x8x64xi32>
    %510 = arith.cmpi sge, %500, %509 : vector<8x8x64xi32>
    %511 = arith.andi %508, %510 : vector<8x8x64xi1>
    %c8_i32_192 = arith.constant 8 : i32
    %512 = vector.broadcast %c8_i32_192 : i32 to vector<8x8x64xi32>
    %513 = arith.cmpi slt, %500, %512 : vector<8x8x64xi32>
    %514 = arith.andi %511, %513 : vector<8x8x64xi1>
    %c0_i32_193 = arith.constant 0 : i32
    %515 = vector.broadcast %c0_i32_193 : i32 to vector<8x8x64xi32>
    %516 = arith.cmpi sge, %504, %515 : vector<8x8x64xi32>
    %517 = arith.andi %514, %516 : vector<8x8x64xi1>
    %c8_i32_194 = arith.constant 8 : i32
    %518 = vector.broadcast %c8_i32_194 : i32 to vector<8x8x64xi32>
    %519 = arith.cmpi slt, %504, %518 : vector<8x8x64xi32>
    %520 = arith.andi %517, %519 : vector<8x8x64xi1>
    %cst_195 = arith.constant 1.000000e+00 : f32
    %cst_196 = arith.constant 0.000000e+00 : f32
    %521 = vector.broadcast %cst_195 : f32 to vector<8x8x64xf32>
    %522 = vector.broadcast %cst_196 : f32 to vector<8x8x64xf32>
    %523 = arith.select %520, %521, %522 : vector<8x8x64xi1>, vector<8x8x64xf32>
    %524 = vector.shape_cast %523 : vector<8x8x64xf32> to vector<64x64xf32>
    %525 = arith.truncf %524 : vector<64x64xf32> to vector<64x64xbf16>
    %526 = vector.extract_strided_slice %332 {offsets = [0, 40], sizes = [64, 8], strides = [1, 1]} : vector<64x72xbf16> to vector<64x8xbf16>
    %cst_197 = arith.constant dense<0.000000e+00> : vector<64x8xf32>
    %527 = tpu.matmul %525, %526, %cst_197 {dimension_numbers = #tpu.dot_dimension_numbers<[1], [0], [0], [1], [0, 0, 1, 1], [], []>} : vector<64x64xbf16>, vector<64x8xbf16>, vector<64x8xf32> -> vector<64x8xf32>
    %528 = arith.addf %496, %527 : vector<64x8xf32>
    %c1_i32_198 = arith.constant 1 : i32
    %529 = vector.broadcast %c1_i32_198 : i32 to vector<8x8x64xi32>
    %530 = arith.muli %529, %333 : vector<8x8x64xi32>
    %c1_i32_199 = arith.constant 1 : i32
    %531 = vector.broadcast %c1_i32_199 : i32 to vector<8x8x64xi32>
    %532 = arith.addi %530, %531 : vector<8x8x64xi32>
    %c1_i32_200 = arith.constant 1 : i32
    %533 = vector.broadcast %c1_i32_200 : i32 to vector<8x8x64xi32>
    %534 = arith.muli %533, %334 : vector<8x8x64xi32>
    %c-1_i32_201 = arith.constant -1 : i32
    %535 = vector.broadcast %c-1_i32_201 : i32 to vector<8x8x64xi32>
    %536 = arith.addi %534, %535 : vector<8x8x64xi32>
    %c8_i32_202 = arith.constant 8 : i32
    %537 = vector.broadcast %c8_i32_202 : i32 to vector<8x8x64xi32>
    %538 = arith.muli %532, %537 : vector<8x8x64xi32>
    %539 = arith.addi %538, %536 : vector<8x8x64xi32>
    %540 = arith.cmpi eq, %335, %539 : vector<8x8x64xi32>
    %c0_i32_203 = arith.constant 0 : i32
    %541 = vector.broadcast %c0_i32_203 : i32 to vector<8x8x64xi32>
    %542 = arith.cmpi sge, %532, %541 : vector<8x8x64xi32>
    %543 = arith.andi %540, %542 : vector<8x8x64xi1>
    %c8_i32_204 = arith.constant 8 : i32
    %544 = vector.broadcast %c8_i32_204 : i32 to vector<8x8x64xi32>
    %545 = arith.cmpi slt, %532, %544 : vector<8x8x64xi32>
    %546 = arith.andi %543, %545 : vector<8x8x64xi1>
    %c0_i32_205 = arith.constant 0 : i32
    %547 = vector.broadcast %c0_i32_205 : i32 to vector<8x8x64xi32>
    %548 = arith.cmpi sge, %536, %547 : vector<8x8x64xi32>
    %549 = arith.andi %546, %548 : vector<8x8x64xi1>
    %c8_i32_206 = arith.constant 8 : i32
    %550 = vector.broadcast %c8_i32_206 : i32 to vector<8x8x64xi32>
    %551 = arith.cmpi slt, %536, %550 : vector<8x8x64xi32>
    %552 = arith.andi %549, %551 : vector<8x8x64xi1>
    %cst_207 = arith.constant 1.000000e+00 : f32
    %cst_208 = arith.constant 0.000000e+00 : f32
    %553 = vector.broadcast %cst_207 : f32 to vector<8x8x64xf32>
    %554 = vector.broadcast %cst_208 : f32 to vector<8x8x64xf32>
    %555 = arith.select %552, %553, %554 : vector<8x8x64xi1>, vector<8x8x64xf32>
    %556 = vector.shape_cast %555 : vector<8x8x64xf32> to vector<64x64xf32>
    %557 = arith.truncf %556 : vector<64x64xf32> to vector<64x64xbf16>
    %558 = vector.extract_strided_slice %332 {offsets = [0, 48], sizes = [64, 8], strides = [1, 1]} : vector<64x72xbf16> to vector<64x8xbf16>
    %cst_209 = arith.constant dense<0.000000e+00> : vector<64x8xf32>
    %559 = tpu.matmul %557, %558, %cst_209 {dimension_numbers = #tpu.dot_dimension_numbers<[1], [0], [0], [1], [0, 0, 1, 1], [], []>} : vector<64x64xbf16>, vector<64x8xbf16>, vector<64x8xf32> -> vector<64x8xf32>
    %560 = arith.addf %528, %559 : vector<64x8xf32>
    %c1_i32_210 = arith.constant 1 : i32
    %561 = vector.broadcast %c1_i32_210 : i32 to vector<8x8x64xi32>
    %562 = arith.muli %561, %333 : vector<8x8x64xi32>
    %c1_i32_211 = arith.constant 1 : i32
    %563 = vector.broadcast %c1_i32_211 : i32 to vector<8x8x64xi32>
    %564 = arith.addi %562, %563 : vector<8x8x64xi32>
    %c1_i32_212 = arith.constant 1 : i32
    %565 = vector.broadcast %c1_i32_212 : i32 to vector<8x8x64xi32>
    %566 = arith.muli %565, %334 : vector<8x8x64xi32>
    %c0_i32_213 = arith.constant 0 : i32
    %567 = vector.broadcast %c0_i32_213 : i32 to vector<8x8x64xi32>
    %568 = arith.addi %566, %567 : vector<8x8x64xi32>
    %c8_i32_214 = arith.constant 8 : i32
    %569 = vector.broadcast %c8_i32_214 : i32 to vector<8x8x64xi32>
    %570 = arith.muli %564, %569 : vector<8x8x64xi32>
    %571 = arith.addi %570, %568 : vector<8x8x64xi32>
    %572 = arith.cmpi eq, %335, %571 : vector<8x8x64xi32>
    %c0_i32_215 = arith.constant 0 : i32
    %573 = vector.broadcast %c0_i32_215 : i32 to vector<8x8x64xi32>
    %574 = arith.cmpi sge, %564, %573 : vector<8x8x64xi32>
    %575 = arith.andi %572, %574 : vector<8x8x64xi1>
    %c8_i32_216 = arith.constant 8 : i32
    %576 = vector.broadcast %c8_i32_216 : i32 to vector<8x8x64xi32>
    %577 = arith.cmpi slt, %564, %576 : vector<8x8x64xi32>
    %578 = arith.andi %575, %577 : vector<8x8x64xi1>
    %c0_i32_217 = arith.constant 0 : i32
    %579 = vector.broadcast %c0_i32_217 : i32 to vector<8x8x64xi32>
    %580 = arith.cmpi sge, %568, %579 : vector<8x8x64xi32>
    %581 = arith.andi %578, %580 : vector<8x8x64xi1>
    %c8_i32_218 = arith.constant 8 : i32
    %582 = vector.broadcast %c8_i32_218 : i32 to vector<8x8x64xi32>
    %583 = arith.cmpi slt, %568, %582 : vector<8x8x64xi32>
    %584 = arith.andi %581, %583 : vector<8x8x64xi1>
    %cst_219 = arith.constant 1.000000e+00 : f32
    %cst_220 = arith.constant 0.000000e+00 : f32
    %585 = vector.broadcast %cst_219 : f32 to vector<8x8x64xf32>
    %586 = vector.broadcast %cst_220 : f32 to vector<8x8x64xf32>
    %587 = arith.select %584, %585, %586 : vector<8x8x64xi1>, vector<8x8x64xf32>
    %588 = vector.shape_cast %587 : vector<8x8x64xf32> to vector<64x64xf32>
    %589 = arith.truncf %588 : vector<64x64xf32> to vector<64x64xbf16>
    %590 = vector.extract_strided_slice %332 {offsets = [0, 56], sizes = [64, 8], strides = [1, 1]} : vector<64x72xbf16> to vector<64x8xbf16>
    %cst_221 = arith.constant dense<0.000000e+00> : vector<64x8xf32>
    %591 = tpu.matmul %589, %590, %cst_221 {dimension_numbers = #tpu.dot_dimension_numbers<[1], [0], [0], [1], [0, 0, 1, 1], [], []>} : vector<64x64xbf16>, vector<64x8xbf16>, vector<64x8xf32> -> vector<64x8xf32>
    %592 = arith.addf %560, %591 : vector<64x8xf32>
    %c1_i32_222 = arith.constant 1 : i32
    %593 = vector.broadcast %c1_i32_222 : i32 to vector<8x8x64xi32>
    %594 = arith.muli %593, %333 : vector<8x8x64xi32>
    %c1_i32_223 = arith.constant 1 : i32
    %595 = vector.broadcast %c1_i32_223 : i32 to vector<8x8x64xi32>
    %596 = arith.addi %594, %595 : vector<8x8x64xi32>
    %c1_i32_224 = arith.constant 1 : i32
    %597 = vector.broadcast %c1_i32_224 : i32 to vector<8x8x64xi32>
    %598 = arith.muli %597, %334 : vector<8x8x64xi32>
    %c1_i32_225 = arith.constant 1 : i32
    %599 = vector.broadcast %c1_i32_225 : i32 to vector<8x8x64xi32>
    %600 = arith.addi %598, %599 : vector<8x8x64xi32>
    %c8_i32_226 = arith.constant 8 : i32
    %601 = vector.broadcast %c8_i32_226 : i32 to vector<8x8x64xi32>
    %602 = arith.muli %596, %601 : vector<8x8x64xi32>
    %603 = arith.addi %602, %600 : vector<8x8x64xi32>
    %604 = arith.cmpi eq, %335, %603 : vector<8x8x64xi32>
    %c0_i32_227 = arith.constant 0 : i32
    %605 = vector.broadcast %c0_i32_227 : i32 to vector<8x8x64xi32>
    %606 = arith.cmpi sge, %596, %605 : vector<8x8x64xi32>
    %607 = arith.andi %604, %606 : vector<8x8x64xi1>
    %c8_i32_228 = arith.constant 8 : i32
    %608 = vector.broadcast %c8_i32_228 : i32 to vector<8x8x64xi32>
    %609 = arith.cmpi slt, %596, %608 : vector<8x8x64xi32>
    %610 = arith.andi %607, %609 : vector<8x8x64xi1>
    %c0_i32_229 = arith.constant 0 : i32
    %611 = vector.broadcast %c0_i32_229 : i32 to vector<8x8x64xi32>
    %612 = arith.cmpi sge, %600, %611 : vector<8x8x64xi32>
    %613 = arith.andi %610, %612 : vector<8x8x64xi1>
    %c8_i32_230 = arith.constant 8 : i32
    %614 = vector.broadcast %c8_i32_230 : i32 to vector<8x8x64xi32>
    %615 = arith.cmpi slt, %600, %614 : vector<8x8x64xi32>
    %616 = arith.andi %613, %615 : vector<8x8x64xi1>
    %cst_231 = arith.constant 1.000000e+00 : f32
    %cst_232 = arith.constant 0.000000e+00 : f32
    %617 = vector.broadcast %cst_231 : f32 to vector<8x8x64xf32>
    %618 = vector.broadcast %cst_232 : f32 to vector<8x8x64xf32>
    %619 = arith.select %616, %617, %618 : vector<8x8x64xi1>, vector<8x8x64xf32>
    %620 = vector.shape_cast %619 : vector<8x8x64xf32> to vector<64x64xf32>
    %621 = arith.truncf %620 : vector<64x64xf32> to vector<64x64xbf16>
    %622 = vector.extract_strided_slice %332 {offsets = [0, 64], sizes = [64, 8], strides = [1, 1]} : vector<64x72xbf16> to vector<64x8xbf16>
    %cst_233 = arith.constant dense<0.000000e+00> : vector<64x8xf32>
    %623 = tpu.matmul %621, %622, %cst_233 {dimension_numbers = #tpu.dot_dimension_numbers<[1], [0], [0], [1], [0, 0, 1, 1], [], []>} : vector<64x64xbf16>, vector<64x8xbf16>, vector<64x8xf32> -> vector<64x8xf32>
    %624 = arith.addf %592, %623 : vector<64x8xf32>
    %625 = arith.addf %624, %2 : vector<64x8xf32>
    %626 = vector.shape_cast %625 : vector<64x8xf32> to vector<8x8x8xf32>
    %c0_234 = arith.constant 0 : index
    %c0_235 = arith.constant 0 : index
    %c0_236 = arith.constant 0 : index
    %c0_237 = arith.constant 0 : index
    %627 = vector.load %arg8[%c0_234, %c0_235, %c0_236, %c0_237] : memref<1x8x8x8xf32, #tpu.memory_space<vmem>>, vector<1x8x8x8xf32>
    %628 = vector.shape_cast %627 : vector<1x8x8x8xf32> to vector<8x8x8xf32>
    %629 = vector.shape_cast %626 : vector<8x8x8xf32> to vector<1x8x8x8xf32>
    tpu.vector_store %arg8[%c0_234, %c0_235, %c0_236, %c0_237], %629 {strides = array<i32>} : memref<1x8x8x8xf32, #tpu.memory_space<vmem>>, vector<1x8x8x8xf32>,
    return
  }
  func.func @transform_0(%arg0: i32) -> (i32, i32, i32, i32) {
    %c0_i32 = arith.constant 0 : i32
    %c0_i32_0 = arith.constant 0 : i32
    %c0_i32_1 = arith.constant 0 : i32
    %c0_i32_2 = arith.constant 0 : i32
    return %arg0, %c0_i32, %c0_i32_0, %c0_i32_1 : i32, i32, i32, i32
  }
  func.func @transform_1(%arg0: i32) -> (i32, i32) {
    %c0_i32 = arith.constant 0 : i32
    %c0_i32_0 = arith.constant 0 : i32
    %c0_i32_1 = arith.constant 0 : i32
    return %c0_i32, %c0_i32_0 : i32, i32
  }
  func.func @transform_2(%arg0: i32) -> (i32, i32) {
    %c0_i32 = arith.constant 0 : i32
    %c0_i32_0 = arith.constant 0 : i32
    %c0_i32_1 = arith.constant 0 : i32
    return %c0_i32, %c0_i32_0 : i32, i32
  }
  func.func @transform_3(%arg0: i32) -> (i32, i32) {
    %c0_i32 = arith.constant 0 : i32
    %c0_i32_0 = arith.constant 0 : i32
    %c0_i32_1 = arith.constant 0 : i32
    return %c0_i32, %c0_i32_0 : i32, i32
  }
  func.func @transform_4(%arg0: i32) -> (i32, i32) {
    %c0_i32 = arith.constant 0 : i32
    %c0_i32_0 = arith.constant 0 : i32
    %c0_i32_1 = arith.constant 0 : i32
    return %c0_i32, %c0_i32_0 : i32, i32
  }
  func.func @transform_5(%arg0: i32) -> (i32, i32) {
    %c0_i32 = arith.constant 0 : i32
    %c0_i32_0 = arith.constant 0 : i32
    %c0_i32_1 = arith.constant 0 : i32
    return %c0_i32, %c0_i32_0 : i32, i32
  }
  func.func @transform_6(%arg0: i32) -> (i32, i32) {
    %c0_i32 = arith.constant 0 : i32
    %c0_i32_0 = arith.constant 0 : i32
    %c0_i32_1 = arith.constant 0 : i32
    return %c0_i32, %c0_i32_0 : i32, i32
  }
  func.func @transform_7(%arg0: i32) -> (i32, i32, i32, i32) {
    %c0_i32 = arith.constant 0 : i32
    %c0_i32_0 = arith.constant 0 : i32
    %c0_i32_1 = arith.constant 0 : i32
    %c0_i32_2 = arith.constant 0 : i32
    return %arg0, %c0_i32, %c0_i32_0, %c0_i32_1 : i32, i32, i32, i32
  }
}

module attributes {stable_mosaic.version = 11 : i64} {
  func.func @_basic_block_kernel(%arg0: i32, %arg1: memref<1x16x16x4xf32, #tpu.memory_space<vmem>>, %arg2: memref<1x4xf32, #tpu.memory_space<vmem>>, %arg3: memref<1x4xf32, #tpu.memory_space<vmem>>, %arg4: memref<4x72xbf16, #tpu.memory_space<vmem>>, %arg5: memref<1x8xf32, #tpu.memory_space<vmem>>, %arg6: memref<1x8xf32, #tpu.memory_space<vmem>>, %arg7: memref<8x72xbf16, #tpu.memory_space<vmem>>, %arg8: memref<4x8xbf16, #tpu.memory_space<vmem>>, %arg9: memref<1x8x8x8xf32, #tpu.memory_space<vmem>>) attributes {dimension_semantics = [#tpu.dimension_semantics<parallel>], iteration_bounds = array<i64: 2>, scalar_prefetch = 0 : i64, scratch_operands = 0 : i64, tpu.core_type = #tpu.core_type<tc>, window_params = [{transform_indices = @transform_0, window_bounds = array<i64: 1, 16, 16, 4>}, {pipeline_mode = #tpu.pipeline_mode<synchronous>, transform_indices = @transform_1, window_bounds = array<i64: 1, 4>}, {pipeline_mode = #tpu.pipeline_mode<synchronous>, transform_indices = @transform_2, window_bounds = array<i64: 1, 4>}, {pipeline_mode = #tpu.pipeline_mode<synchronous>, transform_indices = @transform_3, window_bounds = array<i64: 4, 72>}, {pipeline_mode = #tpu.pipeline_mode<synchronous>, transform_indices = @transform_4, window_bounds = array<i64: 1, 8>}, {pipeline_mode = #tpu.pipeline_mode<synchronous>, transform_indices = @transform_5, window_bounds = array<i64: 1, 8>}, {pipeline_mode = #tpu.pipeline_mode<synchronous>, transform_indices = @transform_6, window_bounds = array<i64: 8, 72>}, {pipeline_mode = #tpu.pipeline_mode<synchronous>, transform_indices = @transform_7, window_bounds = array<i64: 4, 8>}, {transform_indices = @transform_8, window_bounds = array<i64: 1, 8, 8, 8>}]} {
    %c0 = arith.constant 0 : index
    %c0_0 = arith.constant 0 : index
    %c0_1 = arith.constant 0 : index
    %c0_2 = arith.constant 0 : index
    %0 = vector.load %arg1[%c0, %c0_0, %c0_1, %c0_2] : memref<1x16x16x4xf32, #tpu.memory_space<vmem>>, vector<1x16x16x4xf32>
    %1 = vector.shape_cast %0 : vector<1x16x16x4xf32> to vector<16x16x4xf32>
    %2 = vector.shape_cast %1 : vector<16x16x4xf32> to vector<256x4xf32>
    %c0_3 = arith.constant 0 : index
    %c0_4 = arith.constant 0 : index
    %3 = vector.load %arg2[%c0_3, %c0_4] : memref<1x4xf32, #tpu.memory_space<vmem>>, vector<1x4xf32>
    %4 = vector.shape_cast %3 : vector<1x4xf32> to vector<4xf32>
    %5 = vector.shape_cast %4 : vector<4xf32> to vector<1x4xf32>
    %6 = vector.broadcast %5 : vector<1x4xf32> to vector<256x4xf32>
    %7 = arith.mulf %2, %6 : vector<256x4xf32>
    %c0_5 = arith.constant 0 : index
    %c0_6 = arith.constant 0 : index
    %8 = vector.load %arg3[%c0_5, %c0_6] : memref<1x4xf32, #tpu.memory_space<vmem>>, vector<1x4xf32>
    %9 = vector.shape_cast %8 : vector<1x4xf32> to vector<4xf32>
    %10 = vector.shape_cast %9 : vector<4xf32> to vector<1x4xf32>
    %11 = vector.broadcast %10 : vector<1x4xf32> to vector<256x4xf32>
    %12 = arith.addf %7, %11 : vector<256x4xf32>
    %cst = arith.constant 0.000000e+00 : f32
    %13 = vector.broadcast %cst : f32 to vector<256x4xf32>
    %14 = arith.cmpf ogt, %12, %13 : vector<256x4xf32>
    %cst_7 = arith.constant 1.000000e-01 : f32
    %15 = vector.broadcast %cst_7 : f32 to vector<256x4xf32>
    %16 = arith.mulf %15, %12 : vector<256x4xf32>
    %17 = arith.select %14, %12, %16 : vector<256x4xi1>, vector<256x4xf32>
    %18 = arith.truncf %17 : vector<256x4xf32> to vector<256x4xbf16>
    %c0_8 = arith.constant 0 : index
    %c0_9 = arith.constant 0 : index
    %19 = vector.load %arg4[%c0_8, %c0_9] : memref<4x72xbf16, #tpu.memory_space<vmem>>, vector<4x72xbf16>
    %cst_10 = arith.constant dense<0.000000e+00> : vector<256x72xf32>
    %20 = tpu.matmul %18, %19, %cst_10 {dimension_numbers = #tpu.dot_dimension_numbers<[1], [0], [0], [1], [0, 0, 1, 1], [], []>} : vector<256x4xbf16>, vector<4x72xbf16>, vector<256x72xf32> -> vector<256x72xf32>
    %21 = arith.truncf %20 : vector<256x72xf32> to vector<256x72xbf16>
    %22 = tpu.iota {dimensions = array<i32: 0>} : vector<8x8x256xi32>
    %23 = tpu.iota {dimensions = array<i32: 1>} : vector<8x8x256xi32>
    %24 = tpu.iota {dimensions = array<i32: 2>} : vector<8x8x256xi32>
    %cst_11 = arith.constant 0.000000e+00 : f32
    %25 = vector.broadcast %cst_11 : f32 to vector<64x8xf32>
    %c2_i32 = arith.constant 2 : i32
    %26 = vector.broadcast %c2_i32 : i32 to vector<8x8x256xi32>
    %27 = arith.muli %26, %22 : vector<8x8x256xi32>
    %c-1_i32 = arith.constant -1 : i32
    %28 = vector.broadcast %c-1_i32 : i32 to vector<8x8x256xi32>
    %29 = arith.addi %27, %28 : vector<8x8x256xi32>
    %c2_i32_12 = arith.constant 2 : i32
    %30 = vector.broadcast %c2_i32_12 : i32 to vector<8x8x256xi32>
    %31 = arith.muli %30, %23 : vector<8x8x256xi32>
    %c-1_i32_13 = arith.constant -1 : i32
    %32 = vector.broadcast %c-1_i32_13 : i32 to vector<8x8x256xi32>
    %33 = arith.addi %31, %32 : vector<8x8x256xi32>
    %c16_i32 = arith.constant 16 : i32
    %34 = vector.broadcast %c16_i32 : i32 to vector<8x8x256xi32>
    %35 = arith.muli %29, %34 : vector<8x8x256xi32>
    %36 = arith.addi %35, %33 : vector<8x8x256xi32>
    %37 = arith.cmpi eq, %24, %36 : vector<8x8x256xi32>
    %c0_i32 = arith.constant 0 : i32
    %38 = vector.broadcast %c0_i32 : i32 to vector<8x8x256xi32>
    %39 = arith.cmpi sge, %29, %38 : vector<8x8x256xi32>
    %40 = arith.andi %37, %39 : vector<8x8x256xi1>
    %c16_i32_14 = arith.constant 16 : i32
    %41 = vector.broadcast %c16_i32_14 : i32 to vector<8x8x256xi32>
    %42 = arith.cmpi slt, %29, %41 : vector<8x8x256xi32>
    %43 = arith.andi %40, %42 : vector<8x8x256xi1>
    %c0_i32_15 = arith.constant 0 : i32
    %44 = vector.broadcast %c0_i32_15 : i32 to vector<8x8x256xi32>
    %45 = arith.cmpi sge, %33, %44 : vector<8x8x256xi32>
    %46 = arith.andi %43, %45 : vector<8x8x256xi1>
    %c16_i32_16 = arith.constant 16 : i32
    %47 = vector.broadcast %c16_i32_16 : i32 to vector<8x8x256xi32>
    %48 = arith.cmpi slt, %33, %47 : vector<8x8x256xi32>
    %49 = arith.andi %46, %48 : vector<8x8x256xi1>
    %cst_17 = arith.constant 1.000000e+00 : f32
    %cst_18 = arith.constant 0.000000e+00 : f32
    %50 = vector.broadcast %cst_17 : f32 to vector<8x8x256xf32>
    %51 = vector.broadcast %cst_18 : f32 to vector<8x8x256xf32>
    %52 = arith.select %49, %50, %51 : vector<8x8x256xi1>, vector<8x8x256xf32>
    %53 = vector.shape_cast %52 : vector<8x8x256xf32> to vector<64x256xf32>
    %54 = arith.truncf %53 : vector<64x256xf32> to vector<64x256xbf16>
    %55 = vector.extract_strided_slice %21 {offsets = [0, 0], sizes = [256, 8], strides = [1, 1]} : vector<256x72xbf16> to vector<256x8xbf16>
    %cst_19 = arith.constant dense<0.000000e+00> : vector<64x8xf32>
    %56 = tpu.matmul %54, %55, %cst_19 {dimension_numbers = #tpu.dot_dimension_numbers<[1], [0], [0], [1], [0, 0, 1, 1], [], []>} : vector<64x256xbf16>, vector<256x8xbf16>, vector<64x8xf32> -> vector<64x8xf32>
    %57 = arith.addf %25, %56 : vector<64x8xf32>
    %c2_i32_20 = arith.constant 2 : i32
    %58 = vector.broadcast %c2_i32_20 : i32 to vector<8x8x256xi32>
    %59 = arith.muli %58, %22 : vector<8x8x256xi32>
    %c-1_i32_21 = arith.constant -1 : i32
    %60 = vector.broadcast %c-1_i32_21 : i32 to vector<8x8x256xi32>
    %61 = arith.addi %59, %60 : vector<8x8x256xi32>
    %c2_i32_22 = arith.constant 2 : i32
    %62 = vector.broadcast %c2_i32_22 : i32 to vector<8x8x256xi32>
    %63 = arith.muli %62, %23 : vector<8x8x256xi32>
    %c0_i32_23 = arith.constant 0 : i32
    %64 = vector.broadcast %c0_i32_23 : i32 to vector<8x8x256xi32>
    %65 = arith.addi %63, %64 : vector<8x8x256xi32>
    %c16_i32_24 = arith.constant 16 : i32
    %66 = vector.broadcast %c16_i32_24 : i32 to vector<8x8x256xi32>
    %67 = arith.muli %61, %66 : vector<8x8x256xi32>
    %68 = arith.addi %67, %65 : vector<8x8x256xi32>
    %69 = arith.cmpi eq, %24, %68 : vector<8x8x256xi32>
    %c0_i32_25 = arith.constant 0 : i32
    %70 = vector.broadcast %c0_i32_25 : i32 to vector<8x8x256xi32>
    %71 = arith.cmpi sge, %61, %70 : vector<8x8x256xi32>
    %72 = arith.andi %69, %71 : vector<8x8x256xi1>
    %c16_i32_26 = arith.constant 16 : i32
    %73 = vector.broadcast %c16_i32_26 : i32 to vector<8x8x256xi32>
    %74 = arith.cmpi slt, %61, %73 : vector<8x8x256xi32>
    %75 = arith.andi %72, %74 : vector<8x8x256xi1>
    %c0_i32_27 = arith.constant 0 : i32
    %76 = vector.broadcast %c0_i32_27 : i32 to vector<8x8x256xi32>
    %77 = arith.cmpi sge, %65, %76 : vector<8x8x256xi32>
    %78 = arith.andi %75, %77 : vector<8x8x256xi1>
    %c16_i32_28 = arith.constant 16 : i32
    %79 = vector.broadcast %c16_i32_28 : i32 to vector<8x8x256xi32>
    %80 = arith.cmpi slt, %65, %79 : vector<8x8x256xi32>
    %81 = arith.andi %78, %80 : vector<8x8x256xi1>
    %cst_29 = arith.constant 1.000000e+00 : f32
    %cst_30 = arith.constant 0.000000e+00 : f32
    %82 = vector.broadcast %cst_29 : f32 to vector<8x8x256xf32>
    %83 = vector.broadcast %cst_30 : f32 to vector<8x8x256xf32>
    %84 = arith.select %81, %82, %83 : vector<8x8x256xi1>, vector<8x8x256xf32>
    %85 = vector.shape_cast %84 : vector<8x8x256xf32> to vector<64x256xf32>
    %86 = arith.truncf %85 : vector<64x256xf32> to vector<64x256xbf16>
    %87 = vector.extract_strided_slice %21 {offsets = [0, 8], sizes = [256, 8], strides = [1, 1]} : vector<256x72xbf16> to vector<256x8xbf16>
    %cst_31 = arith.constant dense<0.000000e+00> : vector<64x8xf32>
    %88 = tpu.matmul %86, %87, %cst_31 {dimension_numbers = #tpu.dot_dimension_numbers<[1], [0], [0], [1], [0, 0, 1, 1], [], []>} : vector<64x256xbf16>, vector<256x8xbf16>, vector<64x8xf32> -> vector<64x8xf32>
    %89 = arith.addf %57, %88 : vector<64x8xf32>
    %c2_i32_32 = arith.constant 2 : i32
    %90 = vector.broadcast %c2_i32_32 : i32 to vector<8x8x256xi32>
    %91 = arith.muli %90, %22 : vector<8x8x256xi32>
    %c-1_i32_33 = arith.constant -1 : i32
    %92 = vector.broadcast %c-1_i32_33 : i32 to vector<8x8x256xi32>
    %93 = arith.addi %91, %92 : vector<8x8x256xi32>
    %c2_i32_34 = arith.constant 2 : i32
    %94 = vector.broadcast %c2_i32_34 : i32 to vector<8x8x256xi32>
    %95 = arith.muli %94, %23 : vector<8x8x256xi32>
    %c1_i32 = arith.constant 1 : i32
    %96 = vector.broadcast %c1_i32 : i32 to vector<8x8x256xi32>
    %97 = arith.addi %95, %96 : vector<8x8x256xi32>
    %c16_i32_35 = arith.constant 16 : i32
    %98 = vector.broadcast %c16_i32_35 : i32 to vector<8x8x256xi32>
    %99 = arith.muli %93, %98 : vector<8x8x256xi32>
    %100 = arith.addi %99, %97 : vector<8x8x256xi32>
    %101 = arith.cmpi eq, %24, %100 : vector<8x8x256xi32>
    %c0_i32_36 = arith.constant 0 : i32
    %102 = vector.broadcast %c0_i32_36 : i32 to vector<8x8x256xi32>
    %103 = arith.cmpi sge, %93, %102 : vector<8x8x256xi32>
    %104 = arith.andi %101, %103 : vector<8x8x256xi1>
    %c16_i32_37 = arith.constant 16 : i32
    %105 = vector.broadcast %c16_i32_37 : i32 to vector<8x8x256xi32>
    %106 = arith.cmpi slt, %93, %105 : vector<8x8x256xi32>
    %107 = arith.andi %104, %106 : vector<8x8x256xi1>
    %c0_i32_38 = arith.constant 0 : i32
    %108 = vector.broadcast %c0_i32_38 : i32 to vector<8x8x256xi32>
    %109 = arith.cmpi sge, %97, %108 : vector<8x8x256xi32>
    %110 = arith.andi %107, %109 : vector<8x8x256xi1>
    %c16_i32_39 = arith.constant 16 : i32
    %111 = vector.broadcast %c16_i32_39 : i32 to vector<8x8x256xi32>
    %112 = arith.cmpi slt, %97, %111 : vector<8x8x256xi32>
    %113 = arith.andi %110, %112 : vector<8x8x256xi1>
    %cst_40 = arith.constant 1.000000e+00 : f32
    %cst_41 = arith.constant 0.000000e+00 : f32
    %114 = vector.broadcast %cst_40 : f32 to vector<8x8x256xf32>
    %115 = vector.broadcast %cst_41 : f32 to vector<8x8x256xf32>
    %116 = arith.select %113, %114, %115 : vector<8x8x256xi1>, vector<8x8x256xf32>
    %117 = vector.shape_cast %116 : vector<8x8x256xf32> to vector<64x256xf32>
    %118 = arith.truncf %117 : vector<64x256xf32> to vector<64x256xbf16>
    %119 = vector.extract_strided_slice %21 {offsets = [0, 16], sizes = [256, 8], strides = [1, 1]} : vector<256x72xbf16> to vector<256x8xbf16>
    %cst_42 = arith.constant dense<0.000000e+00> : vector<64x8xf32>
    %120 = tpu.matmul %118, %119, %cst_42 {dimension_numbers = #tpu.dot_dimension_numbers<[1], [0], [0], [1], [0, 0, 1, 1], [], []>} : vector<64x256xbf16>, vector<256x8xbf16>, vector<64x8xf32> -> vector<64x8xf32>
    %121 = arith.addf %89, %120 : vector<64x8xf32>
    %c2_i32_43 = arith.constant 2 : i32
    %122 = vector.broadcast %c2_i32_43 : i32 to vector<8x8x256xi32>
    %123 = arith.muli %122, %22 : vector<8x8x256xi32>
    %c0_i32_44 = arith.constant 0 : i32
    %124 = vector.broadcast %c0_i32_44 : i32 to vector<8x8x256xi32>
    %125 = arith.addi %123, %124 : vector<8x8x256xi32>
    %c2_i32_45 = arith.constant 2 : i32
    %126 = vector.broadcast %c2_i32_45 : i32 to vector<8x8x256xi32>
    %127 = arith.muli %126, %23 : vector<8x8x256xi32>
    %c-1_i32_46 = arith.constant -1 : i32
    %128 = vector.broadcast %c-1_i32_46 : i32 to vector<8x8x256xi32>
    %129 = arith.addi %127, %128 : vector<8x8x256xi32>
    %c16_i32_47 = arith.constant 16 : i32
    %130 = vector.broadcast %c16_i32_47 : i32 to vector<8x8x256xi32>
    %131 = arith.muli %125, %130 : vector<8x8x256xi32>
    %132 = arith.addi %131, %129 : vector<8x8x256xi32>
    %133 = arith.cmpi eq, %24, %132 : vector<8x8x256xi32>
    %c0_i32_48 = arith.constant 0 : i32
    %134 = vector.broadcast %c0_i32_48 : i32 to vector<8x8x256xi32>
    %135 = arith.cmpi sge, %125, %134 : vector<8x8x256xi32>
    %136 = arith.andi %133, %135 : vector<8x8x256xi1>
    %c16_i32_49 = arith.constant 16 : i32
    %137 = vector.broadcast %c16_i32_49 : i32 to vector<8x8x256xi32>
    %138 = arith.cmpi slt, %125, %137 : vector<8x8x256xi32>
    %139 = arith.andi %136, %138 : vector<8x8x256xi1>
    %c0_i32_50 = arith.constant 0 : i32
    %140 = vector.broadcast %c0_i32_50 : i32 to vector<8x8x256xi32>
    %141 = arith.cmpi sge, %129, %140 : vector<8x8x256xi32>
    %142 = arith.andi %139, %141 : vector<8x8x256xi1>
    %c16_i32_51 = arith.constant 16 : i32
    %143 = vector.broadcast %c16_i32_51 : i32 to vector<8x8x256xi32>
    %144 = arith.cmpi slt, %129, %143 : vector<8x8x256xi32>
    %145 = arith.andi %142, %144 : vector<8x8x256xi1>
    %cst_52 = arith.constant 1.000000e+00 : f32
    %cst_53 = arith.constant 0.000000e+00 : f32
    %146 = vector.broadcast %cst_52 : f32 to vector<8x8x256xf32>
    %147 = vector.broadcast %cst_53 : f32 to vector<8x8x256xf32>
    %148 = arith.select %145, %146, %147 : vector<8x8x256xi1>, vector<8x8x256xf32>
    %149 = vector.shape_cast %148 : vector<8x8x256xf32> to vector<64x256xf32>
    %150 = arith.truncf %149 : vector<64x256xf32> to vector<64x256xbf16>
    %151 = vector.extract_strided_slice %21 {offsets = [0, 24], sizes = [256, 8], strides = [1, 1]} : vector<256x72xbf16> to vector<256x8xbf16>
    %cst_54 = arith.constant dense<0.000000e+00> : vector<64x8xf32>
    %152 = tpu.matmul %150, %151, %cst_54 {dimension_numbers = #tpu.dot_dimension_numbers<[1], [0], [0], [1], [0, 0, 1, 1], [], []>} : vector<64x256xbf16>, vector<256x8xbf16>, vector<64x8xf32> -> vector<64x8xf32>
    %153 = arith.addf %121, %152 : vector<64x8xf32>
    %c2_i32_55 = arith.constant 2 : i32
    %154 = vector.broadcast %c2_i32_55 : i32 to vector<8x8x256xi32>
    %155 = arith.muli %154, %22 : vector<8x8x256xi32>
    %c0_i32_56 = arith.constant 0 : i32
    %156 = vector.broadcast %c0_i32_56 : i32 to vector<8x8x256xi32>
    %157 = arith.addi %155, %156 : vector<8x8x256xi32>
    %c2_i32_57 = arith.constant 2 : i32
    %158 = vector.broadcast %c2_i32_57 : i32 to vector<8x8x256xi32>
    %159 = arith.muli %158, %23 : vector<8x8x256xi32>
    %c0_i32_58 = arith.constant 0 : i32
    %160 = vector.broadcast %c0_i32_58 : i32 to vector<8x8x256xi32>
    %161 = arith.addi %159, %160 : vector<8x8x256xi32>
    %c16_i32_59 = arith.constant 16 : i32
    %162 = vector.broadcast %c16_i32_59 : i32 to vector<8x8x256xi32>
    %163 = arith.muli %157, %162 : vector<8x8x256xi32>
    %164 = arith.addi %163, %161 : vector<8x8x256xi32>
    %165 = arith.cmpi eq, %24, %164 : vector<8x8x256xi32>
    %c0_i32_60 = arith.constant 0 : i32
    %166 = vector.broadcast %c0_i32_60 : i32 to vector<8x8x256xi32>
    %167 = arith.cmpi sge, %157, %166 : vector<8x8x256xi32>
    %168 = arith.andi %165, %167 : vector<8x8x256xi1>
    %c16_i32_61 = arith.constant 16 : i32
    %169 = vector.broadcast %c16_i32_61 : i32 to vector<8x8x256xi32>
    %170 = arith.cmpi slt, %157, %169 : vector<8x8x256xi32>
    %171 = arith.andi %168, %170 : vector<8x8x256xi1>
    %c0_i32_62 = arith.constant 0 : i32
    %172 = vector.broadcast %c0_i32_62 : i32 to vector<8x8x256xi32>
    %173 = arith.cmpi sge, %161, %172 : vector<8x8x256xi32>
    %174 = arith.andi %171, %173 : vector<8x8x256xi1>
    %c16_i32_63 = arith.constant 16 : i32
    %175 = vector.broadcast %c16_i32_63 : i32 to vector<8x8x256xi32>
    %176 = arith.cmpi slt, %161, %175 : vector<8x8x256xi32>
    %177 = arith.andi %174, %176 : vector<8x8x256xi1>
    %cst_64 = arith.constant 1.000000e+00 : f32
    %cst_65 = arith.constant 0.000000e+00 : f32
    %178 = vector.broadcast %cst_64 : f32 to vector<8x8x256xf32>
    %179 = vector.broadcast %cst_65 : f32 to vector<8x8x256xf32>
    %180 = arith.select %177, %178, %179 : vector<8x8x256xi1>, vector<8x8x256xf32>
    %181 = vector.shape_cast %180 : vector<8x8x256xf32> to vector<64x256xf32>
    %182 = arith.truncf %181 : vector<64x256xf32> to vector<64x256xbf16>
    %183 = vector.extract_strided_slice %21 {offsets = [0, 32], sizes = [256, 8], strides = [1, 1]} : vector<256x72xbf16> to vector<256x8xbf16>
    %cst_66 = arith.constant dense<0.000000e+00> : vector<64x8xf32>
    %184 = tpu.matmul %182, %183, %cst_66 {dimension_numbers = #tpu.dot_dimension_numbers<[1], [0], [0], [1], [0, 0, 1, 1], [], []>} : vector<64x256xbf16>, vector<256x8xbf16>, vector<64x8xf32> -> vector<64x8xf32>
    %185 = arith.addf %153, %184 : vector<64x8xf32>
    %c2_i32_67 = arith.constant 2 : i32
    %186 = vector.broadcast %c2_i32_67 : i32 to vector<8x8x256xi32>
    %187 = arith.muli %186, %22 : vector<8x8x256xi32>
    %c0_i32_68 = arith.constant 0 : i32
    %188 = vector.broadcast %c0_i32_68 : i32 to vector<8x8x256xi32>
    %189 = arith.addi %187, %188 : vector<8x8x256xi32>
    %c2_i32_69 = arith.constant 2 : i32
    %190 = vector.broadcast %c2_i32_69 : i32 to vector<8x8x256xi32>
    %191 = arith.muli %190, %23 : vector<8x8x256xi32>
    %c1_i32_70 = arith.constant 1 : i32
    %192 = vector.broadcast %c1_i32_70 : i32 to vector<8x8x256xi32>
    %193 = arith.addi %191, %192 : vector<8x8x256xi32>
    %c16_i32_71 = arith.constant 16 : i32
    %194 = vector.broadcast %c16_i32_71 : i32 to vector<8x8x256xi32>
    %195 = arith.muli %189, %194 : vector<8x8x256xi32>
    %196 = arith.addi %195, %193 : vector<8x8x256xi32>
    %197 = arith.cmpi eq, %24, %196 : vector<8x8x256xi32>
    %c0_i32_72 = arith.constant 0 : i32
    %198 = vector.broadcast %c0_i32_72 : i32 to vector<8x8x256xi32>
    %199 = arith.cmpi sge, %189, %198 : vector<8x8x256xi32>
    %200 = arith.andi %197, %199 : vector<8x8x256xi1>
    %c16_i32_73 = arith.constant 16 : i32
    %201 = vector.broadcast %c16_i32_73 : i32 to vector<8x8x256xi32>
    %202 = arith.cmpi slt, %189, %201 : vector<8x8x256xi32>
    %203 = arith.andi %200, %202 : vector<8x8x256xi1>
    %c0_i32_74 = arith.constant 0 : i32
    %204 = vector.broadcast %c0_i32_74 : i32 to vector<8x8x256xi32>
    %205 = arith.cmpi sge, %193, %204 : vector<8x8x256xi32>
    %206 = arith.andi %203, %205 : vector<8x8x256xi1>
    %c16_i32_75 = arith.constant 16 : i32
    %207 = vector.broadcast %c16_i32_75 : i32 to vector<8x8x256xi32>
    %208 = arith.cmpi slt, %193, %207 : vector<8x8x256xi32>
    %209 = arith.andi %206, %208 : vector<8x8x256xi1>
    %cst_76 = arith.constant 1.000000e+00 : f32
    %cst_77 = arith.constant 0.000000e+00 : f32
    %210 = vector.broadcast %cst_76 : f32 to vector<8x8x256xf32>
    %211 = vector.broadcast %cst_77 : f32 to vector<8x8x256xf32>
    %212 = arith.select %209, %210, %211 : vector<8x8x256xi1>, vector<8x8x256xf32>
    %213 = vector.shape_cast %212 : vector<8x8x256xf32> to vector<64x256xf32>
    %214 = arith.truncf %213 : vector<64x256xf32> to vector<64x256xbf16>
    %215 = vector.extract_strided_slice %21 {offsets = [0, 40], sizes = [256, 8], strides = [1, 1]} : vector<256x72xbf16> to vector<256x8xbf16>
    %cst_78 = arith.constant dense<0.000000e+00> : vector<64x8xf32>
    %216 = tpu.matmul %214, %215, %cst_78 {dimension_numbers = #tpu.dot_dimension_numbers<[1], [0], [0], [1], [0, 0, 1, 1], [], []>} : vector<64x256xbf16>, vector<256x8xbf16>, vector<64x8xf32> -> vector<64x8xf32>
    %217 = arith.addf %185, %216 : vector<64x8xf32>
    %c2_i32_79 = arith.constant 2 : i32
    %218 = vector.broadcast %c2_i32_79 : i32 to vector<8x8x256xi32>
    %219 = arith.muli %218, %22 : vector<8x8x256xi32>
    %c1_i32_80 = arith.constant 1 : i32
    %220 = vector.broadcast %c1_i32_80 : i32 to vector<8x8x256xi32>
    %221 = arith.addi %219, %220 : vector<8x8x256xi32>
    %c2_i32_81 = arith.constant 2 : i32
    %222 = vector.broadcast %c2_i32_81 : i32 to vector<8x8x256xi32>
    %223 = arith.muli %222, %23 : vector<8x8x256xi32>
    %c-1_i32_82 = arith.constant -1 : i32
    %224 = vector.broadcast %c-1_i32_82 : i32 to vector<8x8x256xi32>
    %225 = arith.addi %223, %224 : vector<8x8x256xi32>
    %c16_i32_83 = arith.constant 16 : i32
    %226 = vector.broadcast %c16_i32_83 : i32 to vector<8x8x256xi32>
    %227 = arith.muli %221, %226 : vector<8x8x256xi32>
    %228 = arith.addi %227, %225 : vector<8x8x256xi32>
    %229 = arith.cmpi eq, %24, %228 : vector<8x8x256xi32>
    %c0_i32_84 = arith.constant 0 : i32
    %230 = vector.broadcast %c0_i32_84 : i32 to vector<8x8x256xi32>
    %231 = arith.cmpi sge, %221, %230 : vector<8x8x256xi32>
    %232 = arith.andi %229, %231 : vector<8x8x256xi1>
    %c16_i32_85 = arith.constant 16 : i32
    %233 = vector.broadcast %c16_i32_85 : i32 to vector<8x8x256xi32>
    %234 = arith.cmpi slt, %221, %233 : vector<8x8x256xi32>
    %235 = arith.andi %232, %234 : vector<8x8x256xi1>
    %c0_i32_86 = arith.constant 0 : i32
    %236 = vector.broadcast %c0_i32_86 : i32 to vector<8x8x256xi32>
    %237 = arith.cmpi sge, %225, %236 : vector<8x8x256xi32>
    %238 = arith.andi %235, %237 : vector<8x8x256xi1>
    %c16_i32_87 = arith.constant 16 : i32
    %239 = vector.broadcast %c16_i32_87 : i32 to vector<8x8x256xi32>
    %240 = arith.cmpi slt, %225, %239 : vector<8x8x256xi32>
    %241 = arith.andi %238, %240 : vector<8x8x256xi1>
    %cst_88 = arith.constant 1.000000e+00 : f32
    %cst_89 = arith.constant 0.000000e+00 : f32
    %242 = vector.broadcast %cst_88 : f32 to vector<8x8x256xf32>
    %243 = vector.broadcast %cst_89 : f32 to vector<8x8x256xf32>
    %244 = arith.select %241, %242, %243 : vector<8x8x256xi1>, vector<8x8x256xf32>
    %245 = vector.shape_cast %244 : vector<8x8x256xf32> to vector<64x256xf32>
    %246 = arith.truncf %245 : vector<64x256xf32> to vector<64x256xbf16>
    %247 = vector.extract_strided_slice %21 {offsets = [0, 48], sizes = [256, 8], strides = [1, 1]} : vector<256x72xbf16> to vector<256x8xbf16>
    %cst_90 = arith.constant dense<0.000000e+00> : vector<64x8xf32>
    %248 = tpu.matmul %246, %247, %cst_90 {dimension_numbers = #tpu.dot_dimension_numbers<[1], [0], [0], [1], [0, 0, 1, 1], [], []>} : vector<64x256xbf16>, vector<256x8xbf16>, vector<64x8xf32> -> vector<64x8xf32>
    %249 = arith.addf %217, %248 : vector<64x8xf32>
    %c2_i32_91 = arith.constant 2 : i32
    %250 = vector.broadcast %c2_i32_91 : i32 to vector<8x8x256xi32>
    %251 = arith.muli %250, %22 : vector<8x8x256xi32>
    %c1_i32_92 = arith.constant 1 : i32
    %252 = vector.broadcast %c1_i32_92 : i32 to vector<8x8x256xi32>
    %253 = arith.addi %251, %252 : vector<8x8x256xi32>
    %c2_i32_93 = arith.constant 2 : i32
    %254 = vector.broadcast %c2_i32_93 : i32 to vector<8x8x256xi32>
    %255 = arith.muli %254, %23 : vector<8x8x256xi32>
    %c0_i32_94 = arith.constant 0 : i32
    %256 = vector.broadcast %c0_i32_94 : i32 to vector<8x8x256xi32>
    %257 = arith.addi %255, %256 : vector<8x8x256xi32>
    %c16_i32_95 = arith.constant 16 : i32
    %258 = vector.broadcast %c16_i32_95 : i32 to vector<8x8x256xi32>
    %259 = arith.muli %253, %258 : vector<8x8x256xi32>
    %260 = arith.addi %259, %257 : vector<8x8x256xi32>
    %261 = arith.cmpi eq, %24, %260 : vector<8x8x256xi32>
    %c0_i32_96 = arith.constant 0 : i32
    %262 = vector.broadcast %c0_i32_96 : i32 to vector<8x8x256xi32>
    %263 = arith.cmpi sge, %253, %262 : vector<8x8x256xi32>
    %264 = arith.andi %261, %263 : vector<8x8x256xi1>
    %c16_i32_97 = arith.constant 16 : i32
    %265 = vector.broadcast %c16_i32_97 : i32 to vector<8x8x256xi32>
    %266 = arith.cmpi slt, %253, %265 : vector<8x8x256xi32>
    %267 = arith.andi %264, %266 : vector<8x8x256xi1>
    %c0_i32_98 = arith.constant 0 : i32
    %268 = vector.broadcast %c0_i32_98 : i32 to vector<8x8x256xi32>
    %269 = arith.cmpi sge, %257, %268 : vector<8x8x256xi32>
    %270 = arith.andi %267, %269 : vector<8x8x256xi1>
    %c16_i32_99 = arith.constant 16 : i32
    %271 = vector.broadcast %c16_i32_99 : i32 to vector<8x8x256xi32>
    %272 = arith.cmpi slt, %257, %271 : vector<8x8x256xi32>
    %273 = arith.andi %270, %272 : vector<8x8x256xi1>
    %cst_100 = arith.constant 1.000000e+00 : f32
    %cst_101 = arith.constant 0.000000e+00 : f32
    %274 = vector.broadcast %cst_100 : f32 to vector<8x8x256xf32>
    %275 = vector.broadcast %cst_101 : f32 to vector<8x8x256xf32>
    %276 = arith.select %273, %274, %275 : vector<8x8x256xi1>, vector<8x8x256xf32>
    %277 = vector.shape_cast %276 : vector<8x8x256xf32> to vector<64x256xf32>
    %278 = arith.truncf %277 : vector<64x256xf32> to vector<64x256xbf16>
    %279 = vector.extract_strided_slice %21 {offsets = [0, 56], sizes = [256, 8], strides = [1, 1]} : vector<256x72xbf16> to vector<256x8xbf16>
    %cst_102 = arith.constant dense<0.000000e+00> : vector<64x8xf32>
    %280 = tpu.matmul %278, %279, %cst_102 {dimension_numbers = #tpu.dot_dimension_numbers<[1], [0], [0], [1], [0, 0, 1, 1], [], []>} : vector<64x256xbf16>, vector<256x8xbf16>, vector<64x8xf32> -> vector<64x8xf32>
    %281 = arith.addf %249, %280 : vector<64x8xf32>
    %c2_i32_103 = arith.constant 2 : i32
    %282 = vector.broadcast %c2_i32_103 : i32 to vector<8x8x256xi32>
    %283 = arith.muli %282, %22 : vector<8x8x256xi32>
    %c1_i32_104 = arith.constant 1 : i32
    %284 = vector.broadcast %c1_i32_104 : i32 to vector<8x8x256xi32>
    %285 = arith.addi %283, %284 : vector<8x8x256xi32>
    %c2_i32_105 = arith.constant 2 : i32
    %286 = vector.broadcast %c2_i32_105 : i32 to vector<8x8x256xi32>
    %287 = arith.muli %286, %23 : vector<8x8x256xi32>
    %c1_i32_106 = arith.constant 1 : i32
    %288 = vector.broadcast %c1_i32_106 : i32 to vector<8x8x256xi32>
    %289 = arith.addi %287, %288 : vector<8x8x256xi32>
    %c16_i32_107 = arith.constant 16 : i32
    %290 = vector.broadcast %c16_i32_107 : i32 to vector<8x8x256xi32>
    %291 = arith.muli %285, %290 : vector<8x8x256xi32>
    %292 = arith.addi %291, %289 : vector<8x8x256xi32>
    %293 = arith.cmpi eq, %24, %292 : vector<8x8x256xi32>
    %c0_i32_108 = arith.constant 0 : i32
    %294 = vector.broadcast %c0_i32_108 : i32 to vector<8x8x256xi32>
    %295 = arith.cmpi sge, %285, %294 : vector<8x8x256xi32>
    %296 = arith.andi %293, %295 : vector<8x8x256xi1>
    %c16_i32_109 = arith.constant 16 : i32
    %297 = vector.broadcast %c16_i32_109 : i32 to vector<8x8x256xi32>
    %298 = arith.cmpi slt, %285, %297 : vector<8x8x256xi32>
    %299 = arith.andi %296, %298 : vector<8x8x256xi1>
    %c0_i32_110 = arith.constant 0 : i32
    %300 = vector.broadcast %c0_i32_110 : i32 to vector<8x8x256xi32>
    %301 = arith.cmpi sge, %289, %300 : vector<8x8x256xi32>
    %302 = arith.andi %299, %301 : vector<8x8x256xi1>
    %c16_i32_111 = arith.constant 16 : i32
    %303 = vector.broadcast %c16_i32_111 : i32 to vector<8x8x256xi32>
    %304 = arith.cmpi slt, %289, %303 : vector<8x8x256xi32>
    %305 = arith.andi %302, %304 : vector<8x8x256xi1>
    %cst_112 = arith.constant 1.000000e+00 : f32
    %cst_113 = arith.constant 0.000000e+00 : f32
    %306 = vector.broadcast %cst_112 : f32 to vector<8x8x256xf32>
    %307 = vector.broadcast %cst_113 : f32 to vector<8x8x256xf32>
    %308 = arith.select %305, %306, %307 : vector<8x8x256xi1>, vector<8x8x256xf32>
    %309 = vector.shape_cast %308 : vector<8x8x256xf32> to vector<64x256xf32>
    %310 = arith.truncf %309 : vector<64x256xf32> to vector<64x256xbf16>
    %311 = vector.extract_strided_slice %21 {offsets = [0, 64], sizes = [256, 8], strides = [1, 1]} : vector<256x72xbf16> to vector<256x8xbf16>
    %cst_114 = arith.constant dense<0.000000e+00> : vector<64x8xf32>
    %312 = tpu.matmul %310, %311, %cst_114 {dimension_numbers = #tpu.dot_dimension_numbers<[1], [0], [0], [1], [0, 0, 1, 1], [], []>} : vector<64x256xbf16>, vector<256x8xbf16>, vector<64x8xf32> -> vector<64x8xf32>
    %313 = arith.addf %281, %312 : vector<64x8xf32>
    %c0_115 = arith.constant 0 : index
    %c0_116 = arith.constant 0 : index
    %314 = vector.load %arg5[%c0_115, %c0_116] : memref<1x8xf32, #tpu.memory_space<vmem>>, vector<1x8xf32>
    %315 = vector.shape_cast %314 : vector<1x8xf32> to vector<8xf32>
    %316 = vector.shape_cast %315 : vector<8xf32> to vector<1x8xf32>
    %317 = vector.broadcast %316 : vector<1x8xf32> to vector<64x8xf32>
    %318 = arith.mulf %313, %317 : vector<64x8xf32>
    %c0_117 = arith.constant 0 : index
    %c0_118 = arith.constant 0 : index
    %319 = vector.load %arg6[%c0_117, %c0_118] : memref<1x8xf32, #tpu.memory_space<vmem>>, vector<1x8xf32>
    %320 = vector.shape_cast %319 : vector<1x8xf32> to vector<8xf32>
    %321 = vector.shape_cast %320 : vector<8xf32> to vector<1x8xf32>
    %322 = vector.broadcast %321 : vector<1x8xf32> to vector<64x8xf32>
    %323 = arith.addf %318, %322 : vector<64x8xf32>
    %cst_119 = arith.constant 0.000000e+00 : f32
    %324 = vector.broadcast %cst_119 : f32 to vector<64x8xf32>
    %325 = arith.cmpf ogt, %323, %324 : vector<64x8xf32>
    %cst_120 = arith.constant 1.000000e-01 : f32
    %326 = vector.broadcast %cst_120 : f32 to vector<64x8xf32>
    %327 = arith.mulf %326, %323 : vector<64x8xf32>
    %328 = arith.select %325, %323, %327 : vector<64x8xi1>, vector<64x8xf32>
    %329 = arith.truncf %328 : vector<64x8xf32> to vector<64x8xbf16>
    %c0_121 = arith.constant 0 : index
    %c0_122 = arith.constant 0 : index
    %330 = vector.load %arg7[%c0_121, %c0_122] : memref<8x72xbf16, #tpu.memory_space<vmem>>, vector<8x72xbf16>
    %cst_123 = arith.constant dense<0.000000e+00> : vector<64x72xf32>
    %331 = tpu.matmul %329, %330, %cst_123 {dimension_numbers = #tpu.dot_dimension_numbers<[1], [0], [0], [1], [0, 0, 1, 1], [], []>} : vector<64x8xbf16>, vector<8x72xbf16>, vector<64x72xf32> -> vector<64x72xf32>
    %332 = arith.truncf %331 : vector<64x72xf32> to vector<64x72xbf16>
    %333 = tpu.iota {dimensions = array<i32: 0>} : vector<8x8x64xi32>
    %334 = tpu.iota {dimensions = array<i32: 1>} : vector<8x8x64xi32>
    %335 = tpu.iota {dimensions = array<i32: 2>} : vector<8x8x64xi32>
    %cst_124 = arith.constant 0.000000e+00 : f32
    %336 = vector.broadcast %cst_124 : f32 to vector<64x8xf32>
    %c1_i32_125 = arith.constant 1 : i32
    %337 = vector.broadcast %c1_i32_125 : i32 to vector<8x8x64xi32>
    %338 = arith.muli %337, %333 : vector<8x8x64xi32>
    %c-1_i32_126 = arith.constant -1 : i32
    %339 = vector.broadcast %c-1_i32_126 : i32 to vector<8x8x64xi32>
    %340 = arith.addi %338, %339 : vector<8x8x64xi32>
    %c1_i32_127 = arith.constant 1 : i32
    %341 = vector.broadcast %c1_i32_127 : i32 to vector<8x8x64xi32>
    %342 = arith.muli %341, %334 : vector<8x8x64xi32>
    %c-1_i32_128 = arith.constant -1 : i32
    %343 = vector.broadcast %c-1_i32_128 : i32 to vector<8x8x64xi32>
    %344 = arith.addi %342, %343 : vector<8x8x64xi32>
    %c8_i32 = arith.constant 8 : i32
    %345 = vector.broadcast %c8_i32 : i32 to vector<8x8x64xi32>
    %346 = arith.muli %340, %345 : vector<8x8x64xi32>
    %347 = arith.addi %346, %344 : vector<8x8x64xi32>
    %348 = arith.cmpi eq, %335, %347 : vector<8x8x64xi32>
    %c0_i32_129 = arith.constant 0 : i32
    %349 = vector.broadcast %c0_i32_129 : i32 to vector<8x8x64xi32>
    %350 = arith.cmpi sge, %340, %349 : vector<8x8x64xi32>
    %351 = arith.andi %348, %350 : vector<8x8x64xi1>
    %c8_i32_130 = arith.constant 8 : i32
    %352 = vector.broadcast %c8_i32_130 : i32 to vector<8x8x64xi32>
    %353 = arith.cmpi slt, %340, %352 : vector<8x8x64xi32>
    %354 = arith.andi %351, %353 : vector<8x8x64xi1>
    %c0_i32_131 = arith.constant 0 : i32
    %355 = vector.broadcast %c0_i32_131 : i32 to vector<8x8x64xi32>
    %356 = arith.cmpi sge, %344, %355 : vector<8x8x64xi32>
    %357 = arith.andi %354, %356 : vector<8x8x64xi1>
    %c8_i32_132 = arith.constant 8 : i32
    %358 = vector.broadcast %c8_i32_132 : i32 to vector<8x8x64xi32>
    %359 = arith.cmpi slt, %344, %358 : vector<8x8x64xi32>
    %360 = arith.andi %357, %359 : vector<8x8x64xi1>
    %cst_133 = arith.constant 1.000000e+00 : f32
    %cst_134 = arith.constant 0.000000e+00 : f32
    %361 = vector.broadcast %cst_133 : f32 to vector<8x8x64xf32>
    %362 = vector.broadcast %cst_134 : f32 to vector<8x8x64xf32>
    %363 = arith.select %360, %361, %362 : vector<8x8x64xi1>, vector<8x8x64xf32>
    %364 = vector.shape_cast %363 : vector<8x8x64xf32> to vector<64x64xf32>
    %365 = arith.truncf %364 : vector<64x64xf32> to vector<64x64xbf16>
    %366 = vector.extract_strided_slice %332 {offsets = [0, 0], sizes = [64, 8], strides = [1, 1]} : vector<64x72xbf16> to vector<64x8xbf16>
    %cst_135 = arith.constant dense<0.000000e+00> : vector<64x8xf32>
    %367 = tpu.matmul %365, %366, %cst_135 {dimension_numbers = #tpu.dot_dimension_numbers<[1], [0], [0], [1], [0, 0, 1, 1], [], []>} : vector<64x64xbf16>, vector<64x8xbf16>, vector<64x8xf32> -> vector<64x8xf32>
    %368 = arith.addf %336, %367 : vector<64x8xf32>
    %c1_i32_136 = arith.constant 1 : i32
    %369 = vector.broadcast %c1_i32_136 : i32 to vector<8x8x64xi32>
    %370 = arith.muli %369, %333 : vector<8x8x64xi32>
    %c-1_i32_137 = arith.constant -1 : i32
    %371 = vector.broadcast %c-1_i32_137 : i32 to vector<8x8x64xi32>
    %372 = arith.addi %370, %371 : vector<8x8x64xi32>
    %c1_i32_138 = arith.constant 1 : i32
    %373 = vector.broadcast %c1_i32_138 : i32 to vector<8x8x64xi32>
    %374 = arith.muli %373, %334 : vector<8x8x64xi32>
    %c0_i32_139 = arith.constant 0 : i32
    %375 = vector.broadcast %c0_i32_139 : i32 to vector<8x8x64xi32>
    %376 = arith.addi %374, %375 : vector<8x8x64xi32>
    %c8_i32_140 = arith.constant 8 : i32
    %377 = vector.broadcast %c8_i32_140 : i32 to vector<8x8x64xi32>
    %378 = arith.muli %372, %377 : vector<8x8x64xi32>
    %379 = arith.addi %378, %376 : vector<8x8x64xi32>
    %380 = arith.cmpi eq, %335, %379 : vector<8x8x64xi32>
    %c0_i32_141 = arith.constant 0 : i32
    %381 = vector.broadcast %c0_i32_141 : i32 to vector<8x8x64xi32>
    %382 = arith.cmpi sge, %372, %381 : vector<8x8x64xi32>
    %383 = arith.andi %380, %382 : vector<8x8x64xi1>
    %c8_i32_142 = arith.constant 8 : i32
    %384 = vector.broadcast %c8_i32_142 : i32 to vector<8x8x64xi32>
    %385 = arith.cmpi slt, %372, %384 : vector<8x8x64xi32>
    %386 = arith.andi %383, %385 : vector<8x8x64xi1>
    %c0_i32_143 = arith.constant 0 : i32
    %387 = vector.broadcast %c0_i32_143 : i32 to vector<8x8x64xi32>
    %388 = arith.cmpi sge, %376, %387 : vector<8x8x64xi32>
    %389 = arith.andi %386, %388 : vector<8x8x64xi1>
    %c8_i32_144 = arith.constant 8 : i32
    %390 = vector.broadcast %c8_i32_144 : i32 to vector<8x8x64xi32>
    %391 = arith.cmpi slt, %376, %390 : vector<8x8x64xi32>
    %392 = arith.andi %389, %391 : vector<8x8x64xi1>
    %cst_145 = arith.constant 1.000000e+00 : f32
    %cst_146 = arith.constant 0.000000e+00 : f32
    %393 = vector.broadcast %cst_145 : f32 to vector<8x8x64xf32>
    %394 = vector.broadcast %cst_146 : f32 to vector<8x8x64xf32>
    %395 = arith.select %392, %393, %394 : vector<8x8x64xi1>, vector<8x8x64xf32>
    %396 = vector.shape_cast %395 : vector<8x8x64xf32> to vector<64x64xf32>
    %397 = arith.truncf %396 : vector<64x64xf32> to vector<64x64xbf16>
    %398 = vector.extract_strided_slice %332 {offsets = [0, 8], sizes = [64, 8], strides = [1, 1]} : vector<64x72xbf16> to vector<64x8xbf16>
    %cst_147 = arith.constant dense<0.000000e+00> : vector<64x8xf32>
    %399 = tpu.matmul %397, %398, %cst_147 {dimension_numbers = #tpu.dot_dimension_numbers<[1], [0], [0], [1], [0, 0, 1, 1], [], []>} : vector<64x64xbf16>, vector<64x8xbf16>, vector<64x8xf32> -> vector<64x8xf32>
    %400 = arith.addf %368, %399 : vector<64x8xf32>
    %c1_i32_148 = arith.constant 1 : i32
    %401 = vector.broadcast %c1_i32_148 : i32 to vector<8x8x64xi32>
    %402 = arith.muli %401, %333 : vector<8x8x64xi32>
    %c-1_i32_149 = arith.constant -1 : i32
    %403 = vector.broadcast %c-1_i32_149 : i32 to vector<8x8x64xi32>
    %404 = arith.addi %402, %403 : vector<8x8x64xi32>
    %c1_i32_150 = arith.constant 1 : i32
    %405 = vector.broadcast %c1_i32_150 : i32 to vector<8x8x64xi32>
    %406 = arith.muli %405, %334 : vector<8x8x64xi32>
    %c1_i32_151 = arith.constant 1 : i32
    %407 = vector.broadcast %c1_i32_151 : i32 to vector<8x8x64xi32>
    %408 = arith.addi %406, %407 : vector<8x8x64xi32>
    %c8_i32_152 = arith.constant 8 : i32
    %409 = vector.broadcast %c8_i32_152 : i32 to vector<8x8x64xi32>
    %410 = arith.muli %404, %409 : vector<8x8x64xi32>
    %411 = arith.addi %410, %408 : vector<8x8x64xi32>
    %412 = arith.cmpi eq, %335, %411 : vector<8x8x64xi32>
    %c0_i32_153 = arith.constant 0 : i32
    %413 = vector.broadcast %c0_i32_153 : i32 to vector<8x8x64xi32>
    %414 = arith.cmpi sge, %404, %413 : vector<8x8x64xi32>
    %415 = arith.andi %412, %414 : vector<8x8x64xi1>
    %c8_i32_154 = arith.constant 8 : i32
    %416 = vector.broadcast %c8_i32_154 : i32 to vector<8x8x64xi32>
    %417 = arith.cmpi slt, %404, %416 : vector<8x8x64xi32>
    %418 = arith.andi %415, %417 : vector<8x8x64xi1>
    %c0_i32_155 = arith.constant 0 : i32
    %419 = vector.broadcast %c0_i32_155 : i32 to vector<8x8x64xi32>
    %420 = arith.cmpi sge, %408, %419 : vector<8x8x64xi32>
    %421 = arith.andi %418, %420 : vector<8x8x64xi1>
    %c8_i32_156 = arith.constant 8 : i32
    %422 = vector.broadcast %c8_i32_156 : i32 to vector<8x8x64xi32>
    %423 = arith.cmpi slt, %408, %422 : vector<8x8x64xi32>
    %424 = arith.andi %421, %423 : vector<8x8x64xi1>
    %cst_157 = arith.constant 1.000000e+00 : f32
    %cst_158 = arith.constant 0.000000e+00 : f32
    %425 = vector.broadcast %cst_157 : f32 to vector<8x8x64xf32>
    %426 = vector.broadcast %cst_158 : f32 to vector<8x8x64xf32>
    %427 = arith.select %424, %425, %426 : vector<8x8x64xi1>, vector<8x8x64xf32>
    %428 = vector.shape_cast %427 : vector<8x8x64xf32> to vector<64x64xf32>
    %429 = arith.truncf %428 : vector<64x64xf32> to vector<64x64xbf16>
    %430 = vector.extract_strided_slice %332 {offsets = [0, 16], sizes = [64, 8], strides = [1, 1]} : vector<64x72xbf16> to vector<64x8xbf16>
    %cst_159 = arith.constant dense<0.000000e+00> : vector<64x8xf32>
    %431 = tpu.matmul %429, %430, %cst_159 {dimension_numbers = #tpu.dot_dimension_numbers<[1], [0], [0], [1], [0, 0, 1, 1], [], []>} : vector<64x64xbf16>, vector<64x8xbf16>, vector<64x8xf32> -> vector<64x8xf32>
    %432 = arith.addf %400, %431 : vector<64x8xf32>
    %c1_i32_160 = arith.constant 1 : i32
    %433 = vector.broadcast %c1_i32_160 : i32 to vector<8x8x64xi32>
    %434 = arith.muli %433, %333 : vector<8x8x64xi32>
    %c0_i32_161 = arith.constant 0 : i32
    %435 = vector.broadcast %c0_i32_161 : i32 to vector<8x8x64xi32>
    %436 = arith.addi %434, %435 : vector<8x8x64xi32>
    %c1_i32_162 = arith.constant 1 : i32
    %437 = vector.broadcast %c1_i32_162 : i32 to vector<8x8x64xi32>
    %438 = arith.muli %437, %334 : vector<8x8x64xi32>
    %c-1_i32_163 = arith.constant -1 : i32
    %439 = vector.broadcast %c-1_i32_163 : i32 to vector<8x8x64xi32>
    %440 = arith.addi %438, %439 : vector<8x8x64xi32>
    %c8_i32_164 = arith.constant 8 : i32
    %441 = vector.broadcast %c8_i32_164 : i32 to vector<8x8x64xi32>
    %442 = arith.muli %436, %441 : vector<8x8x64xi32>
    %443 = arith.addi %442, %440 : vector<8x8x64xi32>
    %444 = arith.cmpi eq, %335, %443 : vector<8x8x64xi32>
    %c0_i32_165 = arith.constant 0 : i32
    %445 = vector.broadcast %c0_i32_165 : i32 to vector<8x8x64xi32>
    %446 = arith.cmpi sge, %436, %445 : vector<8x8x64xi32>
    %447 = arith.andi %444, %446 : vector<8x8x64xi1>
    %c8_i32_166 = arith.constant 8 : i32
    %448 = vector.broadcast %c8_i32_166 : i32 to vector<8x8x64xi32>
    %449 = arith.cmpi slt, %436, %448 : vector<8x8x64xi32>
    %450 = arith.andi %447, %449 : vector<8x8x64xi1>
    %c0_i32_167 = arith.constant 0 : i32
    %451 = vector.broadcast %c0_i32_167 : i32 to vector<8x8x64xi32>
    %452 = arith.cmpi sge, %440, %451 : vector<8x8x64xi32>
    %453 = arith.andi %450, %452 : vector<8x8x64xi1>
    %c8_i32_168 = arith.constant 8 : i32
    %454 = vector.broadcast %c8_i32_168 : i32 to vector<8x8x64xi32>
    %455 = arith.cmpi slt, %440, %454 : vector<8x8x64xi32>
    %456 = arith.andi %453, %455 : vector<8x8x64xi1>
    %cst_169 = arith.constant 1.000000e+00 : f32
    %cst_170 = arith.constant 0.000000e+00 : f32
    %457 = vector.broadcast %cst_169 : f32 to vector<8x8x64xf32>
    %458 = vector.broadcast %cst_170 : f32 to vector<8x8x64xf32>
    %459 = arith.select %456, %457, %458 : vector<8x8x64xi1>, vector<8x8x64xf32>
    %460 = vector.shape_cast %459 : vector<8x8x64xf32> to vector<64x64xf32>
    %461 = arith.truncf %460 : vector<64x64xf32> to vector<64x64xbf16>
    %462 = vector.extract_strided_slice %332 {offsets = [0, 24], sizes = [64, 8], strides = [1, 1]} : vector<64x72xbf16> to vector<64x8xbf16>
    %cst_171 = arith.constant dense<0.000000e+00> : vector<64x8xf32>
    %463 = tpu.matmul %461, %462, %cst_171 {dimension_numbers = #tpu.dot_dimension_numbers<[1], [0], [0], [1], [0, 0, 1, 1], [], []>} : vector<64x64xbf16>, vector<64x8xbf16>, vector<64x8xf32> -> vector<64x8xf32>
    %464 = arith.addf %432, %463 : vector<64x8xf32>
    %c1_i32_172 = arith.constant 1 : i32
    %465 = vector.broadcast %c1_i32_172 : i32 to vector<8x8x64xi32>
    %466 = arith.muli %465, %333 : vector<8x8x64xi32>
    %c0_i32_173 = arith.constant 0 : i32
    %467 = vector.broadcast %c0_i32_173 : i32 to vector<8x8x64xi32>
    %468 = arith.addi %466, %467 : vector<8x8x64xi32>
    %c1_i32_174 = arith.constant 1 : i32
    %469 = vector.broadcast %c1_i32_174 : i32 to vector<8x8x64xi32>
    %470 = arith.muli %469, %334 : vector<8x8x64xi32>
    %c0_i32_175 = arith.constant 0 : i32
    %471 = vector.broadcast %c0_i32_175 : i32 to vector<8x8x64xi32>
    %472 = arith.addi %470, %471 : vector<8x8x64xi32>
    %c8_i32_176 = arith.constant 8 : i32
    %473 = vector.broadcast %c8_i32_176 : i32 to vector<8x8x64xi32>
    %474 = arith.muli %468, %473 : vector<8x8x64xi32>
    %475 = arith.addi %474, %472 : vector<8x8x64xi32>
    %476 = arith.cmpi eq, %335, %475 : vector<8x8x64xi32>
    %c0_i32_177 = arith.constant 0 : i32
    %477 = vector.broadcast %c0_i32_177 : i32 to vector<8x8x64xi32>
    %478 = arith.cmpi sge, %468, %477 : vector<8x8x64xi32>
    %479 = arith.andi %476, %478 : vector<8x8x64xi1>
    %c8_i32_178 = arith.constant 8 : i32
    %480 = vector.broadcast %c8_i32_178 : i32 to vector<8x8x64xi32>
    %481 = arith.cmpi slt, %468, %480 : vector<8x8x64xi32>
    %482 = arith.andi %479, %481 : vector<8x8x64xi1>
    %c0_i32_179 = arith.constant 0 : i32
    %483 = vector.broadcast %c0_i32_179 : i32 to vector<8x8x64xi32>
    %484 = arith.cmpi sge, %472, %483 : vector<8x8x64xi32>
    %485 = arith.andi %482, %484 : vector<8x8x64xi1>
    %c8_i32_180 = arith.constant 8 : i32
    %486 = vector.broadcast %c8_i32_180 : i32 to vector<8x8x64xi32>
    %487 = arith.cmpi slt, %472, %486 : vector<8x8x64xi32>
    %488 = arith.andi %485, %487 : vector<8x8x64xi1>
    %cst_181 = arith.constant 1.000000e+00 : f32
    %cst_182 = arith.constant 0.000000e+00 : f32
    %489 = vector.broadcast %cst_181 : f32 to vector<8x8x64xf32>
    %490 = vector.broadcast %cst_182 : f32 to vector<8x8x64xf32>
    %491 = arith.select %488, %489, %490 : vector<8x8x64xi1>, vector<8x8x64xf32>
    %492 = vector.shape_cast %491 : vector<8x8x64xf32> to vector<64x64xf32>
    %493 = arith.truncf %492 : vector<64x64xf32> to vector<64x64xbf16>
    %494 = vector.extract_strided_slice %332 {offsets = [0, 32], sizes = [64, 8], strides = [1, 1]} : vector<64x72xbf16> to vector<64x8xbf16>
    %cst_183 = arith.constant dense<0.000000e+00> : vector<64x8xf32>
    %495 = tpu.matmul %493, %494, %cst_183 {dimension_numbers = #tpu.dot_dimension_numbers<[1], [0], [0], [1], [0, 0, 1, 1], [], []>} : vector<64x64xbf16>, vector<64x8xbf16>, vector<64x8xf32> -> vector<64x8xf32>
    %496 = arith.addf %464, %495 : vector<64x8xf32>
    %c1_i32_184 = arith.constant 1 : i32
    %497 = vector.broadcast %c1_i32_184 : i32 to vector<8x8x64xi32>
    %498 = arith.muli %497, %333 : vector<8x8x64xi32>
    %c0_i32_185 = arith.constant 0 : i32
    %499 = vector.broadcast %c0_i32_185 : i32 to vector<8x8x64xi32>
    %500 = arith.addi %498, %499 : vector<8x8x64xi32>
    %c1_i32_186 = arith.constant 1 : i32
    %501 = vector.broadcast %c1_i32_186 : i32 to vector<8x8x64xi32>
    %502 = arith.muli %501, %334 : vector<8x8x64xi32>
    %c1_i32_187 = arith.constant 1 : i32
    %503 = vector.broadcast %c1_i32_187 : i32 to vector<8x8x64xi32>
    %504 = arith.addi %502, %503 : vector<8x8x64xi32>
    %c8_i32_188 = arith.constant 8 : i32
    %505 = vector.broadcast %c8_i32_188 : i32 to vector<8x8x64xi32>
    %506 = arith.muli %500, %505 : vector<8x8x64xi32>
    %507 = arith.addi %506, %504 : vector<8x8x64xi32>
    %508 = arith.cmpi eq, %335, %507 : vector<8x8x64xi32>
    %c0_i32_189 = arith.constant 0 : i32
    %509 = vector.broadcast %c0_i32_189 : i32 to vector<8x8x64xi32>
    %510 = arith.cmpi sge, %500, %509 : vector<8x8x64xi32>
    %511 = arith.andi %508, %510 : vector<8x8x64xi1>
    %c8_i32_190 = arith.constant 8 : i32
    %512 = vector.broadcast %c8_i32_190 : i32 to vector<8x8x64xi32>
    %513 = arith.cmpi slt, %500, %512 : vector<8x8x64xi32>
    %514 = arith.andi %511, %513 : vector<8x8x64xi1>
    %c0_i32_191 = arith.constant 0 : i32
    %515 = vector.broadcast %c0_i32_191 : i32 to vector<8x8x64xi32>
    %516 = arith.cmpi sge, %504, %515 : vector<8x8x64xi32>
    %517 = arith.andi %514, %516 : vector<8x8x64xi1>
    %c8_i32_192 = arith.constant 8 : i32
    %518 = vector.broadcast %c8_i32_192 : i32 to vector<8x8x64xi32>
    %519 = arith.cmpi slt, %504, %518 : vector<8x8x64xi32>
    %520 = arith.andi %517, %519 : vector<8x8x64xi1>
    %cst_193 = arith.constant 1.000000e+00 : f32
    %cst_194 = arith.constant 0.000000e+00 : f32
    %521 = vector.broadcast %cst_193 : f32 to vector<8x8x64xf32>
    %522 = vector.broadcast %cst_194 : f32 to vector<8x8x64xf32>
    %523 = arith.select %520, %521, %522 : vector<8x8x64xi1>, vector<8x8x64xf32>
    %524 = vector.shape_cast %523 : vector<8x8x64xf32> to vector<64x64xf32>
    %525 = arith.truncf %524 : vector<64x64xf32> to vector<64x64xbf16>
    %526 = vector.extract_strided_slice %332 {offsets = [0, 40], sizes = [64, 8], strides = [1, 1]} : vector<64x72xbf16> to vector<64x8xbf16>
    %cst_195 = arith.constant dense<0.000000e+00> : vector<64x8xf32>
    %527 = tpu.matmul %525, %526, %cst_195 {dimension_numbers = #tpu.dot_dimension_numbers<[1], [0], [0], [1], [0, 0, 1, 1], [], []>} : vector<64x64xbf16>, vector<64x8xbf16>, vector<64x8xf32> -> vector<64x8xf32>
    %528 = arith.addf %496, %527 : vector<64x8xf32>
    %c1_i32_196 = arith.constant 1 : i32
    %529 = vector.broadcast %c1_i32_196 : i32 to vector<8x8x64xi32>
    %530 = arith.muli %529, %333 : vector<8x8x64xi32>
    %c1_i32_197 = arith.constant 1 : i32
    %531 = vector.broadcast %c1_i32_197 : i32 to vector<8x8x64xi32>
    %532 = arith.addi %530, %531 : vector<8x8x64xi32>
    %c1_i32_198 = arith.constant 1 : i32
    %533 = vector.broadcast %c1_i32_198 : i32 to vector<8x8x64xi32>
    %534 = arith.muli %533, %334 : vector<8x8x64xi32>
    %c-1_i32_199 = arith.constant -1 : i32
    %535 = vector.broadcast %c-1_i32_199 : i32 to vector<8x8x64xi32>
    %536 = arith.addi %534, %535 : vector<8x8x64xi32>
    %c8_i32_200 = arith.constant 8 : i32
    %537 = vector.broadcast %c8_i32_200 : i32 to vector<8x8x64xi32>
    %538 = arith.muli %532, %537 : vector<8x8x64xi32>
    %539 = arith.addi %538, %536 : vector<8x8x64xi32>
    %540 = arith.cmpi eq, %335, %539 : vector<8x8x64xi32>
    %c0_i32_201 = arith.constant 0 : i32
    %541 = vector.broadcast %c0_i32_201 : i32 to vector<8x8x64xi32>
    %542 = arith.cmpi sge, %532, %541 : vector<8x8x64xi32>
    %543 = arith.andi %540, %542 : vector<8x8x64xi1>
    %c8_i32_202 = arith.constant 8 : i32
    %544 = vector.broadcast %c8_i32_202 : i32 to vector<8x8x64xi32>
    %545 = arith.cmpi slt, %532, %544 : vector<8x8x64xi32>
    %546 = arith.andi %543, %545 : vector<8x8x64xi1>
    %c0_i32_203 = arith.constant 0 : i32
    %547 = vector.broadcast %c0_i32_203 : i32 to vector<8x8x64xi32>
    %548 = arith.cmpi sge, %536, %547 : vector<8x8x64xi32>
    %549 = arith.andi %546, %548 : vector<8x8x64xi1>
    %c8_i32_204 = arith.constant 8 : i32
    %550 = vector.broadcast %c8_i32_204 : i32 to vector<8x8x64xi32>
    %551 = arith.cmpi slt, %536, %550 : vector<8x8x64xi32>
    %552 = arith.andi %549, %551 : vector<8x8x64xi1>
    %cst_205 = arith.constant 1.000000e+00 : f32
    %cst_206 = arith.constant 0.000000e+00 : f32
    %553 = vector.broadcast %cst_205 : f32 to vector<8x8x64xf32>
    %554 = vector.broadcast %cst_206 : f32 to vector<8x8x64xf32>
    %555 = arith.select %552, %553, %554 : vector<8x8x64xi1>, vector<8x8x64xf32>
    %556 = vector.shape_cast %555 : vector<8x8x64xf32> to vector<64x64xf32>
    %557 = arith.truncf %556 : vector<64x64xf32> to vector<64x64xbf16>
    %558 = vector.extract_strided_slice %332 {offsets = [0, 48], sizes = [64, 8], strides = [1, 1]} : vector<64x72xbf16> to vector<64x8xbf16>
    %cst_207 = arith.constant dense<0.000000e+00> : vector<64x8xf32>
    %559 = tpu.matmul %557, %558, %cst_207 {dimension_numbers = #tpu.dot_dimension_numbers<[1], [0], [0], [1], [0, 0, 1, 1], [], []>} : vector<64x64xbf16>, vector<64x8xbf16>, vector<64x8xf32> -> vector<64x8xf32>
    %560 = arith.addf %528, %559 : vector<64x8xf32>
    %c1_i32_208 = arith.constant 1 : i32
    %561 = vector.broadcast %c1_i32_208 : i32 to vector<8x8x64xi32>
    %562 = arith.muli %561, %333 : vector<8x8x64xi32>
    %c1_i32_209 = arith.constant 1 : i32
    %563 = vector.broadcast %c1_i32_209 : i32 to vector<8x8x64xi32>
    %564 = arith.addi %562, %563 : vector<8x8x64xi32>
    %c1_i32_210 = arith.constant 1 : i32
    %565 = vector.broadcast %c1_i32_210 : i32 to vector<8x8x64xi32>
    %566 = arith.muli %565, %334 : vector<8x8x64xi32>
    %c0_i32_211 = arith.constant 0 : i32
    %567 = vector.broadcast %c0_i32_211 : i32 to vector<8x8x64xi32>
    %568 = arith.addi %566, %567 : vector<8x8x64xi32>
    %c8_i32_212 = arith.constant 8 : i32
    %569 = vector.broadcast %c8_i32_212 : i32 to vector<8x8x64xi32>
    %570 = arith.muli %564, %569 : vector<8x8x64xi32>
    %571 = arith.addi %570, %568 : vector<8x8x64xi32>
    %572 = arith.cmpi eq, %335, %571 : vector<8x8x64xi32>
    %c0_i32_213 = arith.constant 0 : i32
    %573 = vector.broadcast %c0_i32_213 : i32 to vector<8x8x64xi32>
    %574 = arith.cmpi sge, %564, %573 : vector<8x8x64xi32>
    %575 = arith.andi %572, %574 : vector<8x8x64xi1>
    %c8_i32_214 = arith.constant 8 : i32
    %576 = vector.broadcast %c8_i32_214 : i32 to vector<8x8x64xi32>
    %577 = arith.cmpi slt, %564, %576 : vector<8x8x64xi32>
    %578 = arith.andi %575, %577 : vector<8x8x64xi1>
    %c0_i32_215 = arith.constant 0 : i32
    %579 = vector.broadcast %c0_i32_215 : i32 to vector<8x8x64xi32>
    %580 = arith.cmpi sge, %568, %579 : vector<8x8x64xi32>
    %581 = arith.andi %578, %580 : vector<8x8x64xi1>
    %c8_i32_216 = arith.constant 8 : i32
    %582 = vector.broadcast %c8_i32_216 : i32 to vector<8x8x64xi32>
    %583 = arith.cmpi slt, %568, %582 : vector<8x8x64xi32>
    %584 = arith.andi %581, %583 : vector<8x8x64xi1>
    %cst_217 = arith.constant 1.000000e+00 : f32
    %cst_218 = arith.constant 0.000000e+00 : f32
    %585 = vector.broadcast %cst_217 : f32 to vector<8x8x64xf32>
    %586 = vector.broadcast %cst_218 : f32 to vector<8x8x64xf32>
    %587 = arith.select %584, %585, %586 : vector<8x8x64xi1>, vector<8x8x64xf32>
    %588 = vector.shape_cast %587 : vector<8x8x64xf32> to vector<64x64xf32>
    %589 = arith.truncf %588 : vector<64x64xf32> to vector<64x64xbf16>
    %590 = vector.extract_strided_slice %332 {offsets = [0, 56], sizes = [64, 8], strides = [1, 1]} : vector<64x72xbf16> to vector<64x8xbf16>
    %cst_219 = arith.constant dense<0.000000e+00> : vector<64x8xf32>
    %591 = tpu.matmul %589, %590, %cst_219 {dimension_numbers = #tpu.dot_dimension_numbers<[1], [0], [0], [1], [0, 0, 1, 1], [], []>} : vector<64x64xbf16>, vector<64x8xbf16>, vector<64x8xf32> -> vector<64x8xf32>
    %592 = arith.addf %560, %591 : vector<64x8xf32>
    %c1_i32_220 = arith.constant 1 : i32
    %593 = vector.broadcast %c1_i32_220 : i32 to vector<8x8x64xi32>
    %594 = arith.muli %593, %333 : vector<8x8x64xi32>
    %c1_i32_221 = arith.constant 1 : i32
    %595 = vector.broadcast %c1_i32_221 : i32 to vector<8x8x64xi32>
    %596 = arith.addi %594, %595 : vector<8x8x64xi32>
    %c1_i32_222 = arith.constant 1 : i32
    %597 = vector.broadcast %c1_i32_222 : i32 to vector<8x8x64xi32>
    %598 = arith.muli %597, %334 : vector<8x8x64xi32>
    %c1_i32_223 = arith.constant 1 : i32
    %599 = vector.broadcast %c1_i32_223 : i32 to vector<8x8x64xi32>
    %600 = arith.addi %598, %599 : vector<8x8x64xi32>
    %c8_i32_224 = arith.constant 8 : i32
    %601 = vector.broadcast %c8_i32_224 : i32 to vector<8x8x64xi32>
    %602 = arith.muli %596, %601 : vector<8x8x64xi32>
    %603 = arith.addi %602, %600 : vector<8x8x64xi32>
    %604 = arith.cmpi eq, %335, %603 : vector<8x8x64xi32>
    %c0_i32_225 = arith.constant 0 : i32
    %605 = vector.broadcast %c0_i32_225 : i32 to vector<8x8x64xi32>
    %606 = arith.cmpi sge, %596, %605 : vector<8x8x64xi32>
    %607 = arith.andi %604, %606 : vector<8x8x64xi1>
    %c8_i32_226 = arith.constant 8 : i32
    %608 = vector.broadcast %c8_i32_226 : i32 to vector<8x8x64xi32>
    %609 = arith.cmpi slt, %596, %608 : vector<8x8x64xi32>
    %610 = arith.andi %607, %609 : vector<8x8x64xi1>
    %c0_i32_227 = arith.constant 0 : i32
    %611 = vector.broadcast %c0_i32_227 : i32 to vector<8x8x64xi32>
    %612 = arith.cmpi sge, %600, %611 : vector<8x8x64xi32>
    %613 = arith.andi %610, %612 : vector<8x8x64xi1>
    %c8_i32_228 = arith.constant 8 : i32
    %614 = vector.broadcast %c8_i32_228 : i32 to vector<8x8x64xi32>
    %615 = arith.cmpi slt, %600, %614 : vector<8x8x64xi32>
    %616 = arith.andi %613, %615 : vector<8x8x64xi1>
    %cst_229 = arith.constant 1.000000e+00 : f32
    %cst_230 = arith.constant 0.000000e+00 : f32
    %617 = vector.broadcast %cst_229 : f32 to vector<8x8x64xf32>
    %618 = vector.broadcast %cst_230 : f32 to vector<8x8x64xf32>
    %619 = arith.select %616, %617, %618 : vector<8x8x64xi1>, vector<8x8x64xf32>
    %620 = vector.shape_cast %619 : vector<8x8x64xf32> to vector<64x64xf32>
    %621 = arith.truncf %620 : vector<64x64xf32> to vector<64x64xbf16>
    %622 = vector.extract_strided_slice %332 {offsets = [0, 64], sizes = [64, 8], strides = [1, 1]} : vector<64x72xbf16> to vector<64x8xbf16>
    %cst_231 = arith.constant dense<0.000000e+00> : vector<64x8xf32>
    %623 = tpu.matmul %621, %622, %cst_231 {dimension_numbers = #tpu.dot_dimension_numbers<[1], [0], [0], [1], [0, 0, 1, 1], [], []>} : vector<64x64xbf16>, vector<64x8xbf16>, vector<64x8xf32> -> vector<64x8xf32>
    %624 = arith.addf %592, %623 : vector<64x8xf32>
    %cst_232 = arith.constant dense<0.000000e+00> : vector<64x4xf32>
    %625 = tpu.matmul %182, %18, %cst_232 {dimension_numbers = #tpu.dot_dimension_numbers<[1], [0], [0], [1], [0, 0, 1, 1], [], []>} : vector<64x256xbf16>, vector<256x4xbf16>, vector<64x4xf32> -> vector<64x4xf32>
    %626 = arith.truncf %625 : vector<64x4xf32> to vector<64x4xbf16>
    %c0_233 = arith.constant 0 : index
    %c0_234 = arith.constant 0 : index
    %627 = vector.load %arg8[%c0_233, %c0_234] : memref<4x8xbf16, #tpu.memory_space<vmem>>, vector<4x8xbf16>
    %cst_235 = arith.constant dense<0.000000e+00> : vector<64x8xf32>
    %628 = tpu.matmul %626, %627, %cst_235 {dimension_numbers = #tpu.dot_dimension_numbers<[1], [0], [0], [1], [0, 0, 1, 1], [], []>} : vector<64x4xbf16>, vector<4x8xbf16>, vector<64x8xf32> -> vector<64x8xf32>
    %629 = arith.addf %624, %628 : vector<64x8xf32>
    %630 = vector.shape_cast %629 : vector<64x8xf32> to vector<8x8x8xf32>
    %c0_236 = arith.constant 0 : index
    %c0_237 = arith.constant 0 : index
    %c0_238 = arith.constant 0 : index
    %c0_239 = arith.constant 0 : index
    %631 = vector.load %arg9[%c0_236, %c0_237, %c0_238, %c0_239] : memref<1x8x8x8xf32, #tpu.memory_space<vmem>>, vector<1x8x8x8xf32>
    %632 = vector.shape_cast %631 : vector<1x8x8x8xf32> to vector<8x8x8xf32>
    %633 = vector.shape_cast %630 : vector<8x8x8xf32> to vector<1x8x8x8xf32>
    tpu.vector_store %arg9[%c0_236, %c0_237, %c0_238, %c0_239], %633 {strides = array<i32>} : memref<1x8x8x8xf32, #tpu.memory_space<vmem>>, vector<1x8x8x8xf32>,
    return
  }
  func.func @transform_0(%arg0: i32) -> (i32, i32, i32, i32) {
    %c0_i32 = arith.constant 0 : i32
    %c0_i32_0 = arith.constant 0 : i32
    %c0_i32_1 = arith.constant 0 : i32
    %c0_i32_2 = arith.constant 0 : i32
    return %arg0, %c0_i32, %c0_i32_0, %c0_i32_1 : i32, i32, i32, i32
  }
  func.func @transform_1(%arg0: i32) -> (i32, i32) {
    %c0_i32 = arith.constant 0 : i32
    %c0_i32_0 = arith.constant 0 : i32
    %c0_i32_1 = arith.constant 0 : i32
    return %c0_i32, %c0_i32_0 : i32, i32
  }
  func.func @transform_2(%arg0: i32) -> (i32, i32) {
    %c0_i32 = arith.constant 0 : i32
    %c0_i32_0 = arith.constant 0 : i32
    %c0_i32_1 = arith.constant 0 : i32
    return %c0_i32, %c0_i32_0 : i32, i32
  }
  func.func @transform_3(%arg0: i32) -> (i32, i32) {
    %c0_i32 = arith.constant 0 : i32
    %c0_i32_0 = arith.constant 0 : i32
    %c0_i32_1 = arith.constant 0 : i32
    return %c0_i32, %c0_i32_0 : i32, i32
  }
  func.func @transform_4(%arg0: i32) -> (i32, i32) {
    %c0_i32 = arith.constant 0 : i32
    %c0_i32_0 = arith.constant 0 : i32
    %c0_i32_1 = arith.constant 0 : i32
    return %c0_i32, %c0_i32_0 : i32, i32
  }
  func.func @transform_5(%arg0: i32) -> (i32, i32) {
    %c0_i32 = arith.constant 0 : i32
    %c0_i32_0 = arith.constant 0 : i32
    %c0_i32_1 = arith.constant 0 : i32
    return %c0_i32, %c0_i32_0 : i32, i32
  }
  func.func @transform_6(%arg0: i32) -> (i32, i32) {
    %c0_i32 = arith.constant 0 : i32
    %c0_i32_0 = arith.constant 0 : i32
    %c0_i32_1 = arith.constant 0 : i32
    return %c0_i32, %c0_i32_0 : i32, i32
  }
  func.func @transform_7(%arg0: i32) -> (i32, i32) {
    %c0_i32 = arith.constant 0 : i32
    %c0_i32_0 = arith.constant 0 : i32
    %c0_i32_1 = arith.constant 0 : i32
    return %c0_i32, %c0_i32_0 : i32, i32
  }
  func.func @transform_8(%arg0: i32) -> (i32, i32, i32, i32) {
    %c0_i32 = arith.constant 0 : i32
    %c0_i32_0 = arith.constant 0 : i32
    %c0_i32_1 = arith.constant 0 : i32
    %c0_i32_2 = arith.constant 0 : i32
    return %arg0, %c0_i32, %c0_i32_0, %c0_i32_1 : i32, i32, i32, i32
  }
}

</mosaic_0001>

<bundles_post_ra>
// kernel: network_block_forward.3
= control target key start
LH: loop header
LB: loop body
LE: loop exit
PB: predicated region body
PF: predicated region fallthrough
CT: control target
= control target key end

     0   :  { %s3204_s24 = smov 0   ;;  %s3810_s0 = inlined_call_operand.vmem [shape: f32[2,8,8,8], index: 0, kind: input, shape index: {}]   ;;  %s3811_s1 = inlined_call_operand.vmem [shape: f32[1,8], index: 1, kind: input, shape index: {}]   ;;  %s3812_s2 = inlined_call_operand.vmem [shape: f32[1,8], index: 2, kind: input, shape index: {}]   ;;  %s3813_s3 = inlined_call_operand.vmem [shape: bf16[8,72], index: 3, kind: input, shape index: {}]   ;;  %s3814_s4 = inlined_call_operand.vmem [shape: f32[1,8], index: 4, kind: input, shape index: {}]   ;;  %s3815_s5 = inlined_call_operand.vmem [shape: f32[1,8], index: 5, kind: input, shape index: {}]   ;;  %s3816_s6 = inlined_call_operand.vmem [shape: bf16[8,72], index: 6, kind: input, shape index: {}]   ;;  %s3817_s7 = inlined_call_operand.vmem [shape: f32[2,8,8,8], index: 7, kind: output, shape index: {}]  }
   0x1 LB: > { %s2433_s25 = sadd.s32 4294967295, %s3153_s24   ;;  %p2437_p0 = scmp.ge.s32.totalorder %s3153_s24, 1  ;;  %s3153_s24 = sphi %s3204_s24, %s17_s24  }
   0x2   : > { %p237_p1 = scmp.lt.s32.totalorder %s3153_s24, 3 }
   0x4   : > { %p238_p2 = pnand %p2437_p0, %p237_p1 }
   0x5   : > { %v346_v0 = vld [vmem:[%s3813_s3] sm:$0xf] (!%p238_p2)  ;;  %vm360_vm0 = vcmask (!%p238_p2), 1043456   ;;  %p269_p3 = scmp.lt.s32.totalorder (!%p238_p2), %s2433_s25, 1  ;;  %vm347_vm1 = vcmask (!%p238_p2), 64512   ;;  %v433_v48 = vlaneseq (!%p238_p2)  ;;  %v3155_v57 = vmov (!%p238_p2), 0.0  }
   0x6   : > { %241 = sbr.rel (%p238_p2) target bundleno = 1430 (0x596), region = 48  ;;  %3120 = vmatprep.subr.msk.bf16.mxu1 (!%p238_p2), %vm360_vm0, %v346_v0  ;;  %v362_v1 = vsel (!%p238_p2), %vm360_vm0, %v346_v0, 0  ;;  %v2442_v2 = vld [vmem:[%s3811_s1] ss:$0 sm:$0xff] (!%p238_p2)  ;;  %s3156_s13 = smov (!%p238_p2), 120   ;;  %vm562_vm11 = vcmask (!%p238_p2), 523264  }
   0x7   : > { %2685 = vmatpush3.bf16.msra.mxu1 (!%p238_p2), %v362_v1  ;;  %v2443_v3 = vld [vmem:[%s3812_s2] ss:$0 sm:$0xff] (!%p238_p2)  ;;  %v3245_v51 = vshrl.u32 (!%p238_p2), %v433_v48, 7  ;;  %v3247_v53 = vand.u32 (!%p238_p2), 127, %v433_v48  ;;  %s3157_s14 = smov (!%p238_p2), 112   ;;  %s3158_s15 = smov (!%p238_p2), 104  }
   0x8   : > { %s3159_s16 = smov (!%p238_p2), 96   ;;  %s3160_s17 = smov (!%p238_p2), 88  }
   0x9   : > { %vm500_vm10 = vcmp.eq.s32.totalorder (!%p238_p2), %v3247_v53, %v3245_v51  ;;  %s3161_s18 = smov (!%p238_p2), 80   ;;  %s3162_s19 = smov (!%p238_p2), 72  }
   0xa   : > { %v3256_v58 = vsel (!%p238_p2), %vm500_vm10, 1.0, %v3155_v57  ;;  %s3163_s20 = smov (!%p238_p2), 64  }
   0xb   : > { %v3262_v59 = vpack.c.bf16 (!%p238_p2), %v3256_v58, %v3155_v57 }
   0xd   : > { %s3819_s25 = smov (!%p269_p3, %s2433_s25), 1 }
   0xe   : > { %s2528_s28 = sshll.u32 %s3819_s25, 6 }
   0xf   : > { %s3228_s10 = scalar_lea.vmem %s3810_s0, %s2528_s28  ;;  %s3781_s9 = scalar_lea.vmem %s3817_s7, %s2528_s28 }
  0x10   : > { %v280_v4 = vld [vmem:[%s3228_s10] sm:$0xff]  ;;  %v281_v5 = vld [vmem:[%s3228_s10 + $0x8] sm:$0xff]  ;;  %v282_v6 = vld [vmem:[%s3228_s10 + $0x10] sm:$0xff] }
  0x11   : > { %v295_v7 = vmul.f32 %v2442_v2, %v280_v4  ;;  %v296_v8 = vmul.f32 %v2442_v2, %v281_v5  ;;  %v283_v9 = vld [vmem:[%s3228_s10 + $0x18] sm:$0xff]  ;;  %v297_v10 = vmul.f32 %v2442_v2, %v282_v6  ;;  %v284_v11 = vld [vmem:[%s3228_s10 + $0x20] sm:$0xff]  ;;  %v285_v12 = vld [vmem:[%s3228_s10 + $0x28] sm:$0xff]  ;;  %v494_v4 = vadd.s32 16, %v3245_v51 }
  0x12   : > { %v298_v13 = vmul.f32 %v2442_v2, %v283_v9  ;;  %v299_v14 = vmul.f32 %v2442_v2, %v284_v11  ;;  %v300_v15 = vmul.f32 %v2442_v2, %v285_v12  ;;  %v286_v16 = vld [vmem:[%s3228_s10 + $0x30] sm:$0xff]  ;;  %v287_v17 = vld [vmem:[%s3228_s10 + $0x38] sm:$0xff]  ;;  %v495_v6 = vadd.s32 24, %v3245_v51 }
  0x13   : > { %v310_v18 = vadd.f32 %v2443_v3, %v295_v7  ;;  %v311_v19 = vadd.f32 %v2443_v3, %v296_v8  ;;  %v312_v20 = vadd.f32 %v2443_v3, %v297_v10  ;;  %v301_v21 = vmul.f32 %v2442_v2, %v286_v16 }
  0x14   : > { %v313_v22 = vadd.f32 %v2443_v3, %v298_v13  ;;  %v314_v23 = vadd.f32 %v2443_v3, %v299_v14  ;;  %v315_v24 = vadd.f32 %v2443_v3, %v300_v15  ;;  %v302_v25 = vmul.f32 %v2442_v2, %v287_v17 }
  0x15   : > { %vm318_vm2 = vcmp.gt.f32.partialorder %v310_v18, 0.0  ;;  %vm319_vm3 = vcmp.gt.f32.partialorder %v311_v19, 0.0  ;;  %v326_v26 = vmul.f32 0.1, %v310_v18  ;;  %v327_v27 = vmul.f32 0.1, %v311_v19 }
  0x16   : > { %vm320_vm4 = vcmp.gt.f32.partialorder %v312_v20, 0.0  ;;  %vm321_vm5 = vcmp.gt.f32.partialorder %v313_v22, 0.0  ;;  %v328_v28 = vmul.f32 0.1, %v312_v20  ;;  %v329_v29 = vmul.f32 0.1, %v313_v22 }
  0x17   : > { %v334_v30 = vsel %vm318_vm2, %v310_v18, %v326_v26  ;;  %v335_v31 = vsel %vm319_vm3, %v311_v19, %v327_v27  ;;  %vm322_vm6 = vcmp.gt.f32.partialorder %v314_v23, 0.0  ;;  %vm323_vm7 = vcmp.gt.f32.partialorder %v315_v24, 0.0 }
  0x18   : > { %v342_v32 = vpack.c.bf16 %v335_v31, %v334_v30  ;;  %v336_v33 = vsel %vm320_vm4, %v312_v20, %v328_v28  ;;  %v337_v34 = vsel %vm321_vm5, %v313_v22, %v329_v29  ;;  %v330_v35 = vmul.f32 0.1, %v314_v23 }
  0x19   : > { %v343_v36 = vpack.c.bf16 %v337_v34, %v336_v33  ;;  %v331_v37 = vmul.f32 0.1, %v315_v24  ;;  %v316_v38 = vadd.f32 %v2443_v3, %v301_v21  ;;  %v317_v39 = vadd.f32 %v2443_v3, %v302_v25 }
  0x1a   : > { %2686 = vmatprep.mubr.msk.bf16.mxu1 %vm347_vm1, %v342_v32  ;;  %v338_v40 = vsel %vm322_vm6, %v314_v23, %v330_v35  ;;  %v493_v3 = vadd.s32 8, %v3245_v51  ;;  %v496_v7 = vadd.s32 32, %v3245_v51  ;;  %vm502_vm13 = vcmp.eq.s32.totalorder %v3247_v53, %v494_v4 }
  0x1b   : > { %2687 = vmatmul.mubr.msk.bf16.vlgmr.msra.gmra.mrb[0].mxu1 %vm347_vm1, %v343_v36  ;;  %v339_v41 = vsel %vm323_vm7, %v315_v24, %v331_v37  ;;  %vm324_vm8 = vcmp.gt.f32.partialorder %v316_v38, 0.0  ;;  %vm325_vm9 = vcmp.gt.f32.partialorder %v317_v39, 0.0  ;;  %v332_v42 = vmul.f32 0.1, %v316_v38 }
  0x1c   : > { %v344_v43 = vpack.c.bf16 %v339_v41, %v338_v40  ;;  %v333_v44 = vmul.f32 0.1, %v317_v39  ;;  %vm501_vm12 = vcmp.eq.s32.totalorder %v3247_v53, %v493_v3  ;;  %vm503_vm14 = vcmp.eq.s32.totalorder %v3247_v53, %v495_v6 }
  0x1d   : > { %v340_v45 = vsel %vm324_vm8, %v316_v38, %v332_v42  ;;  %vm504_vm15 = vcmp.eq.s32.totalorder %v3247_v53, %v496_v7  ;;  %v3341_v9 = vadd.s32 4294967295, %v3245_v51  ;;  %v3344_v10 = vsel %vm501_vm12, 1.0, %v3155_v57 }
  0x1e   : > { %2690 = vmatprep.mubr.msk.bf16.mxu1 %vm347_vm1, %v344_v43  ;;  %v341_v46 = vsel %vm325_vm9, %v317_v39, %v333_v44  ;;  %v3347_v11 = vsel %vm502_vm13, 1.0, %v3155_v57  ;;  %v3350_v12 = vsel %vm503_vm14, 1.0, %v3155_v57  ;;  %v3353_v13 = vsel %vm504_vm15, 1.0, %v3155_v57 }
  0x1f   : > { %v345_v47 = vpack.c.bf16 %v341_v46, %v340_v45  ;;  %v497_v14 = vadd.s32 40, %v3245_v51  ;;  %v498_v15 = vadd.s32 48, %v3245_v51  ;;  %v3359_v17 = vpack.c.bf16 %v3347_v11, %v3344_v10 }
  0x20   : > { %vm446_vm2 = vcmp.eq.s32.totalorder %v3247_v53, %v3341_v9  ;;  %vm462_vm3 = vcmp.ge.s32.totalorder %v3341_v9, 0  ;;  %v3366_v18 = vpack.c.bf16 %v3353_v13, %v3350_v12  ;;  %v439_v19 = vadd.s32 8, %v3341_v9 }
  0x21   : > { %vm505_vm4 = vcmp.eq.s32.totalorder %v3247_v53, %v497_v14  ;;  %vm506_vm5 = vcmp.eq.s32.totalorder %v3247_v53, %v498_v15  ;;  %v440_v20 = vadd.s32 16, %v3341_v9  ;;  %vm464_vm6 = vmand %vm446_vm2, %vm462_vm3  ;;  %v441_v21 = vadd.s32 24, %v3341_v9 }
  0x22   : > { %v442_v22 = vadd.s32 32, %v3341_v9  ;;  %v3383_v23 = vsel %vm505_vm4, 1.0, %v3155_v57  ;;  %v3386_v24 = vsel %vm506_vm5, 1.0, %v3155_v57  ;;  %vm447_vm7 = vcmp.eq.s32.totalorder %v3247_v53, %v439_v19 }
  0x23   : > { %2691 = vmatmul.mubr.msk.bf16.gmra.mrb[4].mxu1 %vm347_vm1, %v345_v47  ;;  %v3391_v25 = vsel %vm464_vm6, 1.0, %v3155_v57  ;;  %vm448_vm8 = vcmp.eq.s32.totalorder %v3247_v53, %v440_v20  ;;  %vm449_vm9 = vcmp.eq.s32.totalorder %v3247_v53, %v441_v21  ;;  %v3397_v26 = vpack.c.bf16 %v3386_v24, %v3383_v23  ;;  %vm465_vm10 = vmand %vm447_vm7, %vm462_vm3 }
  0x24   : > { %2702 = vmatprep.mubr.msk.bf16.mxu1 %vm562_vm11, %v3262_v59  ;;  %vm450_vm12 = vcmp.eq.s32.totalorder %v3247_v53, %v442_v22  ;;  %v3405_v27 = vpack.c.bf16 %v3391_v25, %v3155_v57  ;;  %vm466_vm13 = vmand %vm448_vm8, %vm462_vm3  ;;  %v443_v28 = vadd.s32 40, %v3341_v9  ;;  %v444_v29 = vadd.s32 48, %v3341_v9 }
  0x25   : > { %vm467_vm14 = vmand %vm449_vm9, %vm462_vm3  ;;  %v3419_v30 = vadd.s32 1, %v3245_v51  ;;  %v3425_v31 = vsel %vm465_vm10, 1.0, %v3155_v57  ;;  %v3428_v32 = vsel %vm466_vm13, 1.0, %v3155_v57  ;;  %v869_v6 = vadd.s32 56, %v3341_v9 }
  0x26   : > { %vm468_vm15 = vmand %vm450_vm12, %vm462_vm3  ;;  %v3432_v33 = vsel %vm467_vm14, 1.0, %v3155_v57  ;;  %vm451_vm2 = vcmp.eq.s32.totalorder %v3247_v53, %v443_v28  ;;  %vm452_vm4 = vcmp.eq.s32.totalorder %v3247_v53, %v444_v29  ;;  %v3441_v35 = vpack.c.bf16 %v3428_v32, %v3425_v31 }
  0x27   : > { %v3435_v34 = vsel %vm468_vm15, 1.0, %v3155_v57  ;;  %vm726_vm5 = vcmp.eq.s32.totalorder %v3247_v53, %v3419_v30  ;;  %vm751_vm6 = vcmp.lt.s32.totalorder %v3419_v30, 8  ;;  %vm469_vm7 = vmand %vm451_vm2, %vm462_vm3  ;;  %v719_v38 = vadd.s32 8, %v3419_v30 }
  0x28   : > { %v3449_v37 = vpack.c.bf16 %v3435_v34, %v3432_v33  ;;  %vm470_vm8 = vmand %vm452_vm4, %vm462_vm3  ;;  %v720_v39 = vadd.s32 16, %v3419_v30  ;;  %v721_v40 = vadd.s32 24, %v3419_v30  ;;  %v722_v41 = vadd.s32 32, %v3419_v30 }
  0x29   : > { %vm753_vm9 = vmand %vm726_vm5, %vm751_vm6  ;;  %v486_v43 = vsel %vm469_vm7, 1.0, %v3155_v57  ;;  %v3467_v44 = vsel %vm470_vm8, 1.0, %v3155_v57  ;;  %vm727_vm10 = vcmp.eq.s32.totalorder %v3247_v53, %v719_v38  ;;  %v3569_v9 = vpack.c.bf16 %v3344_v10, %v3256_v58 }
  0x2a   : > { %v3471_v45 = vsel %vm753_vm9, 1.0, %v3155_v57  ;;  %vm728_vm12 = vcmp.eq.s32.totalorder %v3247_v53, %v720_v39  ;;  %vm729_vm13 = vcmp.eq.s32.totalorder %v3247_v53, %v721_v40  ;;  %v3476_v46 = vpack.c.bf16 %v3467_v44, %v486_v43  ;;  %vm754_vm14 = vmand %vm727_vm10, %vm751_vm6 }
  0x2b   : > { %vm730_vm15 = vcmp.eq.s32.totalorder %v3247_v53, %v722_v41  ;;  %v3483_v48 = vpack.c.bf16 %v3471_v45, %v3155_v57  ;;  %vm755_vm2 = vmand %vm728_vm12, %vm751_vm6  ;;  %vm870_vm12 = vcmp.eq.s32.totalorder %v3247_v53, %v869_v6  ;;  %v3552_v15 = vpack.c.bf16 %v486_v43, %v3435_v34 }
  0x2c   : > { %vm756_vm4 = vmand %vm729_vm13, %vm751_vm6  ;;  %v3578_v28 = vpack.c.bf16 %v3350_v12, %v3347_v11  ;;  %v3582_v58 = vpack.c.bf16 %v3383_v23, %v3353_v13  ;;  %v1083_v23 = vadd.s32 56, %v3419_v30 }
  0x2d   : > { %vm757_vm5 = vmand %vm730_vm15, %vm751_vm6 }
  0x2e   : > { %vm872_vm13 = vmand %vm870_vm12, %vm462_vm3 }
  0x2f   : > { %v3561_v19 = vsel %vm872_vm13, 1.0, %v3155_v57 }
  0x30   : > { %v3565_v20 = vpack.c.bf16 %v3561_v19, %v3467_v44  ;;  %v3631_v41 = vpack.c.bf16 %v3155_v57, %v3561_v19 }
  0xee   : > { %v2688_v49 = vpop.f32.mrb[0].mxu1 }
  0xef   : > { %v398_v50 = vpop.f32.mrb[1].mxu1 }
  0xf0   : > { %v2689_v52 = vpop.f32.mrb[2].mxu1 }
  0xf1   : > { %v3249_v54 = vpack.c.bf16 %v2689_v52, %v2688_v49  ;;  %v401_v55 = vpop.f32.mrb[3].mxu1  ;;  %v723_v49 = vadd.s32 40, %v3419_v30 }
  0xf2   : > { %v3251_v56 = vpack.c.bf16 %v401_v55, %v398_v50  ;;  %v724_v50 = vadd.s32 48, %v3419_v30  ;;  %v3501_v55 = vsel %vm755_vm2, 1.0, %v3155_v57 }
  0xf3   : > { %vm731_vm7 = vcmp.eq.s32.totalorder %v3247_v53, %v723_v49 }
  0xf4   : > { %550 = vrot.lane.b32.xlu0 %v3251_v56, %s3156_s13  ;;  %vm732_vm8 = vcmp.eq.s32.totalorder %v3247_v53, %v724_v50  ;;  %vm758_vm9 = vmand %vm731_vm7, %vm751_vm6 }
  0xf5   : > { %vm759_vm10 = vmand %vm732_vm8, %vm751_vm6 }
  0xf6   : > { %v2692_v60 = vpop.f32.mrb[4].mxu1 }
  0xf7   : > { %v414_v61 = vpop.f32.mrb[5].mxu1 }
  0xf8   : > { %552 = vrot.lane.b32.xlu0 %v3249_v54, %s3156_s13  ;;  %v2693_v62 = vpop.f32.mrb[6].mxu1 }
  0xf9   : > { %v3268_v63 = vpack.c.bf16 %v2693_v62, %v2692_v60  ;;  %v417_v0 = vpop.f32.mrb[7].mxu1  ;;  %v3507_v60 = vsel %vm757_vm5, 1.0, %v3155_v57 }
  0xfa   : > { %v3270_v1 = vpack.c.bf16 %v417_v0, %v414_v61 }
  0xfc   : > { %772 = vrot.lane.b32.xlu0 %v3251_v56, %s3157_s14  ;;  %554 = vrot.lane.b32.xlu1 %v3270_v1, %s3156_s13 }
 0x100   : > { %776 = vrot.lane.b32.xlu0 %v3270_v1, %s3157_s14  ;;  %556 = vrot.lane.b32.xlu1 %v3268_v63, %s3156_s13 }
 0x104   : > { %879 = vrot.lane.b32.xlu0 %v3251_v56, %s3158_s15  ;;  %774 = vrot.lane.b32.xlu1 %v3249_v54, %s3157_s14 }
 0x108   : > { %883 = vrot.lane.b32.xlu0 %v3270_v1, %s3158_s15  ;;  %778 = vrot.lane.b32.xlu1 %v3268_v63, %s3157_s14 }
 0x10c   : > { %986 = vrot.lane.b32.xlu0 %v3251_v56, %s3159_s16  ;;  %881 = vrot.lane.b32.xlu1 %v3249_v54, %s3158_s15 }
 0x110   : > { %990 = vrot.lane.b32.xlu0 %v3270_v1, %s3159_s16  ;;  %885 = vrot.lane.b32.xlu1 %v3268_v63, %s3158_s15 }
 0x114   : > { %1093 = vrot.lane.b32.xlu0 %v3251_v56, %s3160_s17  ;;  %988 = vrot.lane.b32.xlu1 %v3249_v54, %s3159_s16 }
 0x118   : > { %1097 = vrot.lane.b32.xlu0 %v3270_v1, %s3160_s17  ;;  %992 = vrot.lane.b32.xlu1 %v3268_v63, %s3159_s16 }
 0x11c   : > { %1198 = vrot.lane.b32.xlu0 %v3251_v56, %s3161_s18  ;;  %1095 = vrot.lane.b32.xlu1 %v3249_v54, %s3160_s17 }
 0x120   : > { %1202 = vrot.lane.b32.xlu0 %v3270_v1, %s3161_s18  ;;  %1099 = vrot.lane.b32.xlu1 %v3268_v63, %s3160_s17 }
 0x124   : > { %1294 = vrot.lane.b32.xlu0 %v3251_v56, %s3162_s19  ;;  %1200 = vrot.lane.b32.xlu1 %v3249_v54, %s3161_s18 }
 0x128   : > { %1298 = vrot.lane.b32.xlu0 %v3270_v1, %s3162_s19  ;;  %1204 = vrot.lane.b32.xlu1 %v3268_v63, %s3161_s18 }
 0x12c   : > { %1390 = vrot.lane.b32.xlu0 %v3251_v56, %s3163_s20  ;;  %1296 = vrot.lane.b32.xlu1 %v3249_v54, %s3162_s19 }
 0x130   : > { %1394 = vrot.lane.b32.xlu0 %v3270_v1, %s3163_s20  ;;  %1300 = vrot.lane.b32.xlu1 %v3268_v63, %s3162_s19 }
 0x134   : > { %1392 = vrot.lane.b32.xlu1 %v3249_v54, %s3163_s20 }
 0x138   : > { %1396 = vrot.lane.b32.xlu1 %v3268_v63, %s3163_s20 }
 0x166   : > { %v551_v2 = vpop.permute.xlu0 %550 }
 0x167   : > { %2694 = vmatprep.subr.bf16.mxu1 %v551_v2 }
 0x168   : > { %2695 = vmatpush3.bf16.msra.mxu1 %v551_v2  ;;  %v3531_v2 = vsel %vm759_vm10, 1.0, %v3155_v57 }
 0x16a   : > { %v553_v5 = vpop.permute.xlu0 %552 }
 0x16b   : > { %2696 = vmatprep.subr.bf16.mxu1 %v553_v5 }
 0x16c   : > { %2697 = vmatpush3.bf16.msra.mxu1 %v553_v5  ;;  %v3539_v5 = vpack.c.bf16 %v3425_v31, %v3391_v25  ;;  %v976_v25 = vadd.s32 56, %v3245_v51 }
 0x16e   : > { %v555_v8 = vpop.permute.xlu1 %554  ;;  %v773_v36 = vpop.permute.xlu0 %772  ;;  %vm977_vm3 = vcmp.eq.s32.totalorder %v3247_v53, %v976_v25 }
 0x16f   : > { %2698 = vmatprep.subr.bf16.mxu1 %v555_v8  ;;  %v981_v51 = vsel %vm977_vm3, 1.0, %v3155_v57 }
 0x170   : > { %2699 = vmatpush3.bf16.msra.mxu1 %v555_v8  ;;  %v3549_v8 = vpack.c.bf16 %v3432_v33, %v3428_v32  ;;  %v3591_v11 = vpack.c.bf16 %v981_v51, %v3386_v24 }
 0x172   : > { %v557_v16 = vpop.permute.xlu1 %556  ;;  %v777_v47 = vpop.permute.xlu0 %776 }
 0x173   : > { %2700 = vmatprep.subr.bf16.mxu1 %v557_v16 }
 0x174   : > { %2701 = vmatpush3.bf16.msra.mxu1 %v557_v16 }
 0x175   : > { %2710 = vmatprep.subr.bf16.mxu1 %v3251_v56 }
 0x176   : > { %v775_v42 = vpop.permute.xlu1 %774  ;;  %v880_v62 = vpop.permute.xlu0 %879 }
 0x177   : > { %2703 = vmatmul.mubr.msk.bf16.vlgmr.msra.gmra.mrb[8].mxu1 %vm562_vm11, %v3359_v17 }
 0x178   : > { %2711 = vmatpush3.bf16.msra.mxu1 %v3251_v56  ;;  %2706 = vmatprep.mubr.msk.bf16.mxu1 %vm562_vm11, %v3366_v18  ;;  %v3504_v56 = vsel %vm756_vm4, 1.0, %v3155_v57 }
 0x179   : > { %2712 = vmatprep.subr.bf16.mxu1 %v3249_v54  ;;  %v3605_v24 = vpack.c.bf16 %v3504_v56, %v3501_v55 }
 0x17a   : > { %v779_v52 = vpop.permute.xlu1 %778  ;;  %v884_v4 = vpop.permute.xlu0 %883 }
 0x17c   : > { %2713 = vmatpush3.bf16.msra.mxu1 %v3249_v54  ;;  %v3498_v54 = vsel %vm754_vm14, 1.0, %v3155_v57  ;;  %vm1084_vm14 = vcmp.eq.s32.totalorder %v3247_v53, %v1083_v23 }
 0x17d   : > { %2714 = vmatprep.subr.bf16.mxu1 %v3270_v1  ;;  %v3513_v61 = vpack.c.bf16 %v3501_v55, %v3498_v54  ;;  %v3595_v13 = vpack.c.bf16 %v3498_v54, %v3471_v45  ;;  %vm1087_vm15 = vmand %vm1084_vm14, %vm751_vm6  ;;  %v1536_v54 = vld [vmem:[%s3816_s6] sm:$0xf] }
 0x17e   : > { %v882_v0 = vpop.permute.xlu1 %881  ;;  %v987_v14 = vpop.permute.xlu0 %986  ;;  %v1088_v53 = vsel %vm1087_vm15, 1.0, %v3155_v57  ;;  %3121 = vmatprep.subr.msk.bf16.mxu0 %vm360_vm0, %v1536_v54  ;;  %v1550_v55 = vsel %vm360_vm0, %v1536_v54, 0 }
 0x17f   : > { %2707 = vmatmul.mubr.msk.bf16.gmra.mrb[12].mxu1 %vm562_vm11, %v3397_v26  ;;  %2839 = vmatpush3.bf16.msra.mxu0 %v1550_v55 }
 0x180   : > { %2715 = vmatpush3.bf16.msra.mxu1 %v3270_v1  ;;  %2718 = vmatprep.mubr.msk.bf16.mxu1 %vm562_vm11, %v3405_v27  ;;  %v3528_v1 = vsel %vm758_vm9, 1.0, %v3155_v57 }
 0x181   : > { %2716 = vmatprep.subr.bf16.mxu1 %v3268_v63  ;;  %v3535_v3 = vpack.c.bf16 %v3531_v2, %v3528_v1  ;;  %v3609_v33 = vpack.c.bf16 %v3528_v1, %v3507_v60 }
 0x182   : > { %v886_v7 = vpop.permute.xlu1 %885  ;;  %v991_v21 = vpop.permute.xlu0 %990 }
 0x184   : > { %2717 = vmatpush3.bf16.msra.mxu1 %v3268_v63  ;;  %v3517_v63 = vpack.c.bf16 %v3507_v60, %v3504_v56  ;;  %v2484_v56 = vld [vmem:[%s3814_s4] ss:$0 sm:$0xff] }
 0x185   : > { %2726 = vmatprep.subr.bf16.mxu1 %v773_v36 }
 0x186   : > { %v989_v16 = vpop.permute.xlu1 %988  ;;  %v1094_v29 = vpop.permute.xlu0 %1093 }
 0x187   : > { %2719 = vmatmul.mubr.msk.bf16.vlgmr.msra.gmra.mrb[8].mxu1 %vm562_vm11, %v3441_v35 }
 0x188   : > { %2727 = vmatpush3.bf16.msra.mxu1 %v773_v36  ;;  %2722 = vmatprep.mubr.msk.bf16.mxu1 %vm562_vm11, %v3449_v37  ;;  %v3619_v36 = vpack.c.bf16 %v1088_v53, %v3531_v2 }
 0x189   : > { %2728 = vmatprep.subr.bf16.mxu1 %v775_v42 }
 0x18a   : > { %v993_v22 = vpop.permute.xlu1 %992  ;;  %v1098_v12 = vpop.permute.xlu0 %1097 }
 0x18c   : > { %2729 = vmatpush3.bf16.msra.mxu1 %v775_v42 }
 0x18d   : > { %2730 = vmatprep.subr.bf16.mxu1 %v777_v47 }
 0x18e   : > { %v1096_v10 = vpop.permute.xlu1 %1095  ;;  %v1199_v32 = vpop.permute.xlu0 %1198 }
 0x18f   : > { %2723 = vmatmul.mubr.msk.bf16.gmra.mrb[12].mxu1 %vm562_vm11, %v3476_v46 }
 0x190   : > { %2731 = vmatpush3.bf16.msra.mxu1 %v777_v47  ;;  %2734 = vmatprep.mubr.msk.bf16.mxu1 %vm562_vm11, %v3483_v48  ;;  %v3642_v47 = vpack.c.bf16 %v3155_v57, %v981_v51 }
 0x191   : > { %2732 = vmatprep.subr.bf16.mxu1 %v779_v52 }
 0x192   : > { %v1100_v31 = vpop.permute.xlu1 %1099  ;;  %v1203_v38 = vpop.permute.xlu0 %1202 }
 0x194   : > { %2733 = vmatpush3.bf16.msra.mxu1 %v779_v52  ;;  %v3653_v52 = vpack.c.bf16 %v3155_v57, %v1088_v53  ;;  %v2485_v57 = vld [vmem:[%s3815_s5] ss:$0 sm:$0xff] }
 0x195   : > { %2742 = vmatprep.subr.bf16.mxu1 %v880_v62 }
 0x196   : > { %v1201_v34 = vpop.permute.xlu1 %1200  ;;  %v1295_v39 = vpop.permute.xlu0 %1294 }
 0x197   : > { %2735 = vmatmul.mubr.msk.bf16.vlgmr.msra.gmra.mrb[8].mxu1 %vm562_vm11, %v3513_v61 }
 0x198   : > { %2743 = vmatpush3.bf16.msra.mxu1 %v880_v62  ;;  %2738 = vmatprep.mubr.msk.bf16.mxu1 %vm562_vm11, %v3517_v63 }
 0x199   : > { %2744 = vmatprep.subr.bf16.mxu1 %v882_v0 }
 0x19a   : > { %v1205_v30 = vpop.permute.xlu1 %1204  ;;  %v1299_v42 = vpop.permute.xlu0 %1298 }
 0x19c   : > { %2745 = vmatpush3.bf16.msra.mxu1 %v882_v0 }
 0x19d   : > { %2746 = vmatprep.subr.bf16.mxu1 %v884_v4 }
 0x19e   : > { %v1297_v40 = vpop.permute.xlu1 %1296  ;;  %v1391_v44 = vpop.permute.xlu0 %1390 }
 0x19f   : > { %2739 = vmatmul.mubr.msk.bf16.gmra.mrb[12].mxu1 %vm562_vm11, %v3535_v3 }
 0x1a0   : > { %2747 = vmatpush3.bf16.msra.mxu1 %v884_v4  ;;  %2750 = vmatprep.mubr.msk.bf16.mxu1 %vm562_vm11, %v3539_v5 }
 0x1a1   : > { %2748 = vmatprep.subr.bf16.mxu1 %v886_v7 }
 0x1a2   : > { %v1301_v43 = vpop.permute.xlu1 %1300  ;;  %v1395_v49 = vpop.permute.xlu0 %1394 }
 0x1a4   : > { %2749 = vmatpush3.bf16.msra.mxu1 %v886_v7 }
 0x1a5   : > { %2758 = vmatprep.subr.bf16.mxu1 %v987_v14 }
 0x1a6   : > { %v1393_v45 = vpop.permute.xlu1 %1392 }
 0x1a7   : > { %2751 = vmatmul.mubr.msk.bf16.vlgmr.msra.gmra.mrb[8].mxu1 %vm562_vm11, %v3549_v8 }
 0x1a8   : > { %2759 = vmatpush3.bf16.msra.mxu1 %v987_v14  ;;  %2754 = vmatprep.mubr.msk.bf16.mxu1 %vm562_vm11, %v3552_v15 }
 0x1a9   : > { %2760 = vmatprep.subr.bf16.mxu1 %v989_v16 }
 0x1aa   : > { %v1397_v50 = vpop.permute.xlu1 %1396 }
 0x1ac   : > { %2761 = vmatpush3.bf16.msra.mxu1 %v989_v16 }
 0x1ad   : > { %2762 = vmatprep.subr.bf16.mxu1 %v991_v21 }
 0x1af   : > { %2755 = vmatmul.mubr.msk.bf16.gmra.mrb[12].mxu1 %vm562_vm11, %v3565_v20 }
 0x1b0   : > { %2763 = vmatpush3.bf16.msra.mxu1 %v991_v21  ;;  %2766 = vmatprep.mubr.msk.bf16.mxu1 %vm562_vm11, %v3569_v9 }
 0x1b1   : > { %2764 = vmatprep.subr.bf16.mxu1 %v993_v22 }
 0x1b4   : > { %2765 = vmatpush3.bf16.msra.mxu1 %v993_v22 }
 0x1b5   : > { %2774 = vmatprep.subr.bf16.mxu1 %v1094_v29 }
 0x1b7   : > { %2767 = vmatmul.mubr.msk.bf16.vlgmr.msra.gmra.mrb[8].mxu1 %vm562_vm11, %v3578_v28 }
 0x1b8   : > { %2775 = vmatpush3.bf16.msra.mxu1 %v1094_v29  ;;  %2770 = vmatprep.mubr.msk.bf16.mxu1 %vm562_vm11, %v3582_v58 }
 0x1b9   : > { %2776 = vmatprep.subr.bf16.mxu1 %v1096_v10 }
 0x1bc   : > { %2777 = vmatpush3.bf16.msra.mxu1 %v1096_v10 }
 0x1bd   : > { %2778 = vmatprep.subr.bf16.mxu1 %v1098_v12 }
 0x1bf   : > { %2771 = vmatmul.mubr.msk.bf16.gmra.mrb[12].mxu1 %vm562_vm11, %v3591_v11 }
 0x1c0   : > { %2779 = vmatpush3.bf16.msra.mxu1 %v1098_v12  ;;  %2782 = vmatprep.mubr.msk.bf16.mxu1 %vm562_vm11, %v3595_v13 }
 0x1c1   : > { %2780 = vmatprep.subr.bf16.mxu1 %v1100_v31 }
 0x1c4   : > { %2781 = vmatpush3.bf16.msra.mxu1 %v1100_v31 }
 0x1c5   : > { %2790 = vmatprep.subr.bf16.mxu1 %v1199_v32 }
 0x1c7   : > { %2783 = vmatmul.mubr.msk.bf16.vlgmr.msra.gmra.mrb[8].mxu1 %vm562_vm11, %v3605_v24 }
 0x1c8   : > { %2791 = vmatpush3.bf16.msra.mxu1 %v1199_v32  ;;  %2786 = vmatprep.mubr.msk.bf16.mxu1 %vm562_vm11, %v3609_v33 }
 0x1c9   : > { %2792 = vmatprep.subr.bf16.mxu1 %v1201_v34 }
 0x1cc   : > { %2793 = vmatpush3.bf16.msra.mxu1 %v1201_v34 }
 0x1cd   : > { %2794 = vmatprep.subr.bf16.mxu1 %v1203_v38 }
 0x1cf   : > { %2787 = vmatmul.mubr.msk.bf16.gmra.mrb[12].mxu1 %vm562_vm11, %v3619_v36 }
 0x1d0   : > { %2795 = vmatpush3.bf16.msra.mxu1 %v1203_v38  ;;  %2798 = vmatprep.mubr.msk.bf16.mxu1 %vm562_vm11, %v3441_v35 }
 0x1d1   : > { %2796 = vmatprep.subr.bf16.mxu1 %v1205_v30 }
 0x1d4   : > { %2797 = vmatpush3.bf16.msra.mxu1 %v1205_v30 }
 0x1d5   : > { %2806 = vmatprep.subr.bf16.mxu1 %v1295_v39 }
 0x1d7   : > { %2799 = vmatmul.mubr.msk.bf16.vlgmr.msra.gmra.mrb[8].mxu1 %vm562_vm11, %v3449_v37 }
 0x1d8   : > { %2807 = vmatpush3.bf16.msra.mxu1 %v1295_v39  ;;  %2802 = vmatprep.mubr.msk.bf16.mxu1 %vm562_vm11, %v3476_v46 }
 0x1d9   : > { %2808 = vmatprep.subr.bf16.mxu1 %v1297_v40 }
 0x1dc   : > { %2809 = vmatpush3.bf16.msra.mxu1 %v1297_v40 }
 0x1dd   : > { %2810 = vmatprep.subr.bf16.mxu1 %v1299_v42 }
 0x1df   : > { %2803 = vmatmul.mubr.msk.bf16.gmra.mrb[12].mxu1 %vm562_vm11, %v3631_v41 }
 0x1e0   : > { %2811 = vmatpush3.bf16.msra.mxu1 %v1299_v42  ;;  %2814 = vmatprep.mubr.msk.bf16.mxu1 %vm562_vm11, %v3359_v17 }
 0x1e1   : > { %2812 = vmatprep.subr.bf16.mxu1 %v1301_v43 }
 0x1e4   : > { %2813 = vmatpush3.bf16.msra.mxu1 %v1301_v43 }
 0x1e5   : > { %2822 = vmatprep.subr.bf16.mxu1 %v1391_v44 }
 0x1e7   : > { %2815 = vmatmul.mubr.msk.bf16.vlgmr.msra.gmra.mrb[8].mxu1 %vm562_vm11, %v3366_v18 }
 0x1e8   : > { %2823 = vmatpush3.bf16.msra.mxu1 %v1391_v44  ;;  %2818 = vmatprep.mubr.msk.bf16.mxu1 %vm562_vm11, %v3397_v26 }
 0x1e9   : > { %2824 = vmatprep.subr.bf16.mxu1 %v1393_v45 }
 0x1ec   : > { %2825 = vmatpush3.bf16.msra.mxu1 %v1393_v45 }
 0x1ed   : > { %2826 = vmatprep.subr.bf16.mxu1 %v1395_v49 }
 0x1ef   : > { %2819 = vmatmul.mubr.msk.bf16.gmra.mrb[12].mxu1 %vm562_vm11, %v3642_v47 }
 0x1f0   : > { %2827 = vmatpush3.bf16.msra.mxu1 %v1395_v49  ;;  %2830 = vmatprep.mubr.msk.bf16.mxu1 %vm562_vm11, %v3513_v61 }
 0x1f1   : > { %2828 = vmatprep.subr.bf16.mxu1 %v1397_v50 }
 0x1f4   : > { %2829 = vmatpush3.bf16.msra.mxu1 %v1397_v50 }
 0x1f7   : > { %2831 = vmatmul.mubr.msk.bf16.vlgmr.msra.gmra.mrb[8].mxu1 %vm562_vm11, %v3517_v63 }
 0x1f8   : > { %2834 = vmatprep.mubr.msk.bf16.mxu1 %vm562_vm11, %v3535_v3 }
 0x1ff   : > { %2835 = vmatmul.mubr.msk.bf16.gmra.mrb[12].mxu1 %vm562_vm11, %v3653_v52 }
 0x2ca   : > { %v2832_v60 = vpop.f32.mrb[8].mxu1 }
 0x2cb   : > { %v1487_v62 = vmul.f32 %v2832_v60, %v2484_v56  ;;  %v1439_v0 = vpop.f32.mrb[9].mxu1 }
 0x2cc   : > { %v1485_v1 = vmul.f32 %v2484_v56, %v1439_v0  ;;  %v2833_v2 = vpop.f32.mrb[10].mxu1 }
 0x2cd   : > { %v1502_v4 = vadd.f32 %v2485_v57, %v1487_v62  ;;  %v1488_v6 = vmul.f32 %v2833_v2, %v2484_v56  ;;  %v1442_v7 = vpop.f32.mrb[11].mxu1 }
 0x2ce   : > { %v1500_v14 = vadd.f32 %v2485_v57, %v1485_v1  ;;  %v1486_v16 = vmul.f32 %v2484_v56, %v1442_v7 }
 0x2cf   : > { %v1518_v19 = vmul.f32 0.1, %v1502_v4  ;;  %v1503_v21 = vadd.f32 %v2485_v57, %v1488_v6  ;;  %vm1510_vm0 = vcmp.gt.f32.partialorder %v1502_v4, 0.0 }
 0x2d0   : > { %v1501_v22 = vadd.f32 %v2485_v57, %v1486_v16  ;;  %v1516_v25 = vmul.f32 0.1, %v1500_v14  ;;  %vm1508_vm2 = vcmp.gt.f32.partialorder %v1500_v14, 0.0 }
 0x2d1   : > { %vm1511_vm6 = vcmp.gt.f32.partialorder %v1503_v21, 0.0  ;;  %v1519_v29 = vmul.f32 0.1, %v1503_v21  ;;  %v1526_v12 = vsel %vm1510_vm0, %v1502_v4, %v1518_v19 }
 0x2d2   : > { %v2836_v10 = vpop.f32.mrb[12].mxu1  ;;  %vm1509_vm4 = vcmp.gt.f32.partialorder %v1501_v22, 0.0  ;;  %v1517_v51 = vmul.f32 0.1, %v1501_v22  ;;  %v1524_v38 = vsel %vm1508_vm2, %v1500_v14, %v1516_v25 }
 0x2d3   : > { %v1527_v23 = vsel %vm1511_vm6, %v1503_v21, %v1519_v29  ;;  %v1491_v31 = vmul.f32 %v2836_v10, %v2484_v56  ;;  %v1455_v32 = vpop.f32.mrb[13].mxu1 }
 0x2d4   : > { %v1489_v34 = vmul.f32 %v2484_v56, %v1455_v32  ;;  %v2837_v53 = vpop.f32.mrb[14].mxu1  ;;  %v1525_v30 = vsel %vm1509_vm4, %v1501_v22, %v1517_v51  ;;  %v1533_v39 = vpack.c.bf16 %v1527_v23, %v1526_v12 }
 0x2d5   : > { %v1506_v40 = vadd.f32 %v2485_v57, %v1491_v31  ;;  %v1492_v42 = vmul.f32 %v2837_v53, %v2484_v56  ;;  %v1458_v43 = vpop.f32.mrb[15].mxu1  ;;  %v1532_v44 = vpack.c.bf16 %v1525_v30, %v1524_v38 }
 0x2d6   : > { %v1504_v45 = vadd.f32 %v2485_v57, %v1489_v34  ;;  %v1490_v49 = vmul.f32 %v2484_v56, %v1458_v43 }
 0x2d7   : > { %v1522_v50 = vmul.f32 0.1, %v1506_v40  ;;  %v1507_v54 = vadd.f32 %v2485_v57, %v1492_v42  ;;  %2840 = vmatprep.mubr.msk.bf16.mxu0 %vm347_vm1, %v1532_v44  ;;  %vm1514_vm5 = vcmp.gt.f32.partialorder %v1506_v40, 0.0 }
 0x2d8   : > { %v1520_v55 = vmul.f32 0.1, %v1504_v45  ;;  %v1505_v60 = vadd.f32 %v2485_v57, %v1490_v49  ;;  %2841 = vmatmul.mubr.msk.bf16.vlgmr.msra.gmra.mrb[0].mxu0 %vm347_vm1, %v1533_v39  ;;  %vm1512_vm7 = vcmp.gt.f32.partialorder %v1504_v45, 0.0 }
 0x2d9   : > { %vm1515_vm8 = vcmp.gt.f32.partialorder %v1507_v54, 0.0  ;;  %v1523_v62 = vmul.f32 0.1, %v1507_v54  ;;  %v1530_v1 = vsel %vm1514_vm5, %v1506_v40, %v1522_v50 }
 0x2da   : > { %vm1513_vm9 = vcmp.gt.f32.partialorder %v1505_v60, 0.0  ;;  %v1521_v0 = vmul.f32 0.1, %v1505_v60  ;;  %v1528_v4 = vsel %vm1512_vm7, %v1504_v45, %v1520_v55  ;;  %v3142_v55 = vld [vmem:[%s3228_s10 + $0x8] sm:$0xff] }
 0x2db   : > { %v1531_v2 = vsel %vm1515_vm8, %v1507_v54, %v1523_v62 }
 0x2dc   : > { %v1529_v6 = vsel %vm1513_vm9, %v1505_v60, %v1521_v0  ;;  %v1535_v7 = vpack.c.bf16 %v1531_v2, %v1530_v1  ;;  %v3143_v0 = vld [vmem:[%s3228_s10 + $0x30] sm:$0xff] }
 0x2dd   : > { %v1534_v56 = vpack.c.bf16 %v1529_v6, %v1528_v4  ;;  %v3144_v4 = vld [vmem:[%s3228_s10 + $0x20] sm:$0xff] }
 0x2df   : > { %2844 = vmatprep.mubr.msk.bf16.mxu0 %vm347_vm1, %v1534_v56  ;;  %v3145_v56 = vld [vmem:[%s3228_s10 + $0x38] sm:$0xff] }
 0x2e0   : > { %2845 = vmatmul.mubr.msk.bf16.gmra.mrb[4].mxu0 %vm347_vm1, %v1535_v7 }
 0x2e1   : > { %2856 = vmatprep.mubr.msk.bf16.mxu0 %vm562_vm11, %v3262_v59 }
 0x3ab   : > { %v2842_v57 = vpop.f32.mrb[0].mxu0 }
 0x3ac   : > { %v1586_v14 = vpop.f32.mrb[1].mxu0 }
 0x3ad   : > { %v2843_v16 = vpop.f32.mrb[2].mxu0 }
 0x3ae   : > { %v1618_v19 = vpack.c.bf16 %v2843_v16, %v2842_v57  ;;  %v1589_v21 = vpop.f32.mrb[3].mxu0  ;;  %v3146_v16 = vld [vmem:[%s3228_s10 + $0x28] sm:$0xff] }
 0x3af   : > { %v1617_v22 = vpack.c.bf16 %v1589_v21, %v1586_v14 }
 0x3b0   : > { %1627 = vrot.lane.b32.xlu1 %v1618_v19, %s3156_s13 }
 0x3b1   : > { %1625 = vrot.lane.b32.xlu0 %v1617_v22, %s3156_s13 }
 0x3b3   : > { %v2846_v25 = vpop.f32.mrb[4].mxu0 }
 0x3b4   : > { %v1602_v29 = vpop.f32.mrb[5].mxu0 }
 0x3b5   : > { %v2847_v10 = vpop.f32.mrb[6].mxu0 }
 0x3b6   : > { %v1620_v51 = vpack.c.bf16 %v2847_v10, %v2846_v25  ;;  %v1605_v12 = vpop.f32.mrb[7].mxu0 }
 0x3b7   : > { %v1619_v23 = vpack.c.bf16 %v1605_v12, %v1602_v29 }
 0x3b8   : > { %1631 = vrot.lane.b32.xlu1 %v1620_v51, %s3156_s13 }
 0x3b9   : > { %1629 = vrot.lane.b32.xlu0 %v1619_v23, %s3156_s13 }
 0x3bc   : > { %1769 = vrot.lane.b32.xlu1 %v1618_v19, %s3157_s14 }
 0x3bd   : > { %1767 = vrot.lane.b32.xlu0 %v1617_v22, %s3157_s14 }
 0x3c0   : > { %1773 = vrot.lane.b32.xlu1 %v1620_v51, %s3157_s14 }
 0x3c1   : > { %1771 = vrot.lane.b32.xlu0 %v1619_v23, %s3157_s14 }
 0x3c4   : > { %1854 = vrot.lane.b32.xlu1 %v1618_v19, %s3158_s15 }
 0x3c5   : > { %1852 = vrot.lane.b32.xlu0 %v1617_v22, %s3158_s15 }
 0x3c8   : > { %1858 = vrot.lane.b32.xlu1 %v1620_v51, %s3158_s15 }
 0x3c9   : > { %1856 = vrot.lane.b32.xlu0 %v1619_v23, %s3158_s15 }
 0x3cc   : > { %1939 = vrot.lane.b32.xlu1 %v1618_v19, %s3159_s16 }
 0x3cd   : > { %1937 = vrot.lane.b32.xlu0 %v1617_v22, %s3159_s16 }
 0x3d0   : > { %1943 = vrot.lane.b32.xlu1 %v1620_v51, %s3159_s16 }
 0x3d1   : > { %1941 = vrot.lane.b32.xlu0 %v1619_v23, %s3159_s16 }
 0x3d4   : > { %2024 = vrot.lane.b32.xlu1 %v1618_v19, %s3160_s17 }
 0x3d5   : > { %2022 = vrot.lane.b32.xlu0 %v1617_v22, %s3160_s17 }
 0x3d8   : > { %2028 = vrot.lane.b32.xlu1 %v1620_v51, %s3160_s17 }
 0x3d9   : > { %2026 = vrot.lane.b32.xlu0 %v1619_v23, %s3160_s17 }
 0x3dc   : > { %2109 = vrot.lane.b32.xlu1 %v1618_v19, %s3161_s18 }
 0x3dd   : > { %2107 = vrot.lane.b32.xlu0 %v1617_v22, %s3161_s18 }
 0x3e0   : > { %2113 = vrot.lane.b32.xlu1 %v1620_v51, %s3161_s18 }
 0x3e1   : > { %2111 = vrot.lane.b32.xlu0 %v1619_v23, %s3161_s18 }
 0x3e4   : > { %2194 = vrot.lane.b32.xlu1 %v1618_v19, %s3162_s19 }
 0x3e5   : > { %2192 = vrot.lane.b32.xlu0 %v1617_v22, %s3162_s19 }
 0x3e8   : > { %2198 = vrot.lane.b32.xlu1 %v1620_v51, %s3162_s19 }
 0x3e9   : > { %2196 = vrot.lane.b32.xlu0 %v1619_v23, %s3162_s19 }
 0x3ec   : > { %2279 = vrot.lane.b32.xlu1 %v1618_v19, %s3163_s20 }
 0x3ed   : > { %2277 = vrot.lane.b32.xlu0 %v1617_v22, %s3163_s20 }
 0x3f0   : > { %2283 = vrot.lane.b32.xlu1 %v1620_v51, %s3163_s20 }
 0x3f1   : > { %2281 = vrot.lane.b32.xlu0 %v1619_v23, %s3163_s20 }
 0x422   : > { %v1628_v31 = vpop.permute.xlu1 %1627 }
 0x423   : > { %v1626_v59 = vpop.permute.xlu0 %1625 }
 0x424   : > { %2848 = vmatprep.subr.bf16.mxu0 %v1626_v59 }
 0x425   : > { %2849 = vmatpush3.bf16.msra.mxu0 %v1626_v59 }
 0x426   : > { %2850 = vmatprep.subr.bf16.mxu0 %v1628_v31 }
 0x429   : > { %2851 = vmatpush3.bf16.msra.mxu0 %v1628_v31 }
 0x42a   : > { %v1632_v34 = vpop.permute.xlu1 %1631 }
 0x42b   : > { %v1630_v32 = vpop.permute.xlu0 %1629 }
 0x42c   : > { %2852 = vmatprep.subr.bf16.mxu0 %v1630_v32 }
 0x42d   : > { %2853 = vmatpush3.bf16.msra.mxu0 %v1630_v32 }
 0x42e   : > { %2854 = vmatprep.subr.bf16.mxu0 %v1632_v34  ;;  %v1770_v38 = vpop.permute.xlu1 %1769 }
 0x42f   : > { %v1768_v53 = vpop.permute.xlu0 %1767 }
 0x431   : > { %2855 = vmatpush3.bf16.msra.mxu0 %v1632_v34 }
 0x432   : > { %2864 = vmatprep.subr.bf16.mxu0 %v1617_v22 }
 0x433   : > { %v1772_v30 = vpop.permute.xlu0 %1771 }
 0x434   : > { %2857 = vmatmul.mubr.msk.bf16.vlgmr.msra.gmra.mrb[8].mxu0 %vm562_vm11, %v3359_v17 }
 0x435   : > { %2865 = vmatpush3.bf16.msra.mxu0 %v1617_v22  ;;  %2860 = vmatprep.mubr.msk.bf16.mxu0 %vm562_vm11, %v3366_v18 }
 0x436   : > { %2866 = vmatprep.subr.bf16.mxu0 %v1618_v19 }
 0x437   : > { %v1853_v39 = vpop.permute.xlu0 %1852 }
 0x439   : > { %2867 = vmatpush3.bf16.msra.mxu0 %v1618_v19 }
 0x43a   : > { %2868 = vmatprep.subr.bf16.mxu0 %v1619_v23 }
 0x43b   : > { %v1857_v42 = vpop.permute.xlu0 %1856 }
 0x43c   : > { %2861 = vmatmul.mubr.msk.bf16.gmra.mrb[12].mxu0 %vm562_vm11, %v3397_v26 }
 0x43d   : > { %2869 = vmatpush3.bf16.msra.mxu0 %v1619_v23  ;;  %2872 = vmatprep.mubr.msk.bf16.mxu0 %vm562_vm11, %v3405_v27  ;;  %v1774_v27 = vpop.permute.xlu1 %1773 }
 0x43e   : > { %2870 = vmatprep.subr.bf16.mxu0 %v1620_v51 }
 0x43f   : > { %v1938_v43 = vpop.permute.xlu0 %1937 }
 0x441   : > { %2871 = vmatpush3.bf16.msra.mxu0 %v1620_v51  ;;  %v1855_v40 = vpop.permute.xlu1 %1854 }
 0x442   : > { %2880 = vmatprep.subr.bf16.mxu0 %v1768_v53 }
 0x443   : > { %v1942_v45 = vpop.permute.xlu0 %1941 }
 0x444   : > { %2873 = vmatmul.mubr.msk.bf16.vlgmr.msra.gmra.mrb[8].mxu0 %vm562_vm11, %v3441_v35 }
 0x445   : > { %2881 = vmatpush3.bf16.msra.mxu0 %v1768_v53  ;;  %2876 = vmatprep.mubr.msk.bf16.mxu0 %vm562_vm11, %v3449_v37 }
 0x446   : > { %2882 = vmatprep.subr.bf16.mxu0 %v1770_v38 }
 0x447   : > { %v2023_v49 = vpop.permute.xlu0 %2022 }
 0x449   : > { %2883 = vmatpush3.bf16.msra.mxu0 %v1770_v38 }
 0x44a   : > { %2884 = vmatprep.subr.bf16.mxu0 %v1772_v30 }
 0x44c   : > { %2877 = vmatmul.mubr.msk.bf16.gmra.mrb[12].mxu0 %vm562_vm11, %v3476_v46 }
 0x44d   : > { %2885 = vmatpush3.bf16.msra.mxu0 %v1772_v30  ;;  %2888 = vmatprep.mubr.msk.bf16.mxu0 %vm562_vm11, %v3483_v48  ;;  %v1859_v48 = vpop.permute.xlu1 %1858 }
 0x44e   : > { %2886 = vmatprep.subr.bf16.mxu0 %v1774_v27 }
 0x451   : > { %2887 = vmatpush3.bf16.msra.mxu0 %v1774_v27  ;;  %v1940_v44 = vpop.permute.xlu1 %1939 }
 0x452   : > { %2896 = vmatprep.subr.bf16.mxu0 %v1853_v39 }
 0x454   : > { %2889 = vmatmul.mubr.msk.bf16.vlgmr.msra.gmra.mrb[8].mxu0 %vm562_vm11, %v3513_v61 }
 0x455   : > { %2897 = vmatpush3.bf16.msra.mxu0 %v1853_v39  ;;  %2892 = vmatprep.mubr.msk.bf16.mxu0 %vm562_vm11, %v3517_v63 }
 0x456   : > { %2898 = vmatprep.subr.bf16.mxu0 %v1855_v40 }
 0x459   : > { %2899 = vmatpush3.bf16.msra.mxu0 %v1855_v40 }
 0x45a   : > { %2900 = vmatprep.subr.bf16.mxu0 %v1857_v42 }
 0x45c   : > { %2893 = vmatmul.mubr.msk.bf16.gmra.mrb[12].mxu0 %vm562_vm11, %v3535_v3 }
 0x45d   : > { %2901 = vmatpush3.bf16.msra.mxu0 %v1857_v42  ;;  %2904 = vmatprep.mubr.msk.bf16.mxu0 %vm562_vm11, %v3539_v5  ;;  %v1944_v5 = vpop.permute.xlu1 %1943 }
 0x45e   : > { %2902 = vmatprep.subr.bf16.mxu0 %v1859_v48 }
 0x461   : > { %2903 = vmatpush3.bf16.msra.mxu0 %v1859_v48 }
 0x462   : > { %2912 = vmatprep.subr.bf16.mxu0 %v1938_v43 }
 0x464   : > { %2905 = vmatmul.mubr.msk.bf16.vlgmr.msra.gmra.mrb[8].mxu0 %vm562_vm11, %v3549_v8  ;;  %v2025_v8 = vpop.permute.xlu1 %2024 }
 0x465   : > { %2913 = vmatpush3.bf16.msra.mxu0 %v1938_v43  ;;  %2908 = vmatprep.mubr.msk.bf16.mxu0 %vm562_vm11, %v3552_v15  ;;  %v2027_v15 = vpop.permute.xlu0 %2026 }
 0x466   : > { %2914 = vmatprep.subr.bf16.mxu0 %v1940_v44 }
 0x469   : > { %2915 = vmatpush3.bf16.msra.mxu0 %v1940_v44 }
 0x46a   : > { %2916 = vmatprep.subr.bf16.mxu0 %v1942_v45 }
 0x46c   : > { %2909 = vmatmul.mubr.msk.bf16.gmra.mrb[12].mxu0 %vm562_vm11, %v3565_v20  ;;  %v2029_v20 = vpop.permute.xlu1 %2028 }
 0x46d   : > { %2917 = vmatpush3.bf16.msra.mxu0 %v1942_v45  ;;  %2920 = vmatprep.mubr.msk.bf16.mxu0 %vm562_vm11, %v3569_v9  ;;  %v2108_v9 = vpop.permute.xlu0 %2107 }
 0x46e   : > { %2918 = vmatprep.subr.bf16.mxu0 %v1944_v5 }
 0x471   : > { %2919 = vmatpush3.bf16.msra.mxu0 %v1944_v5 }
 0x472   : > { %2928 = vmatprep.subr.bf16.mxu0 %v2023_v49 }
 0x474   : > { %2921 = vmatmul.mubr.msk.bf16.vlgmr.msra.gmra.mrb[8].mxu0 %vm562_vm11, %v3578_v28  ;;  %v2110_v28 = vpop.permute.xlu1 %2109 }
 0x475   : > { %2929 = vmatpush3.bf16.msra.mxu0 %v2023_v49  ;;  %2924 = vmatprep.mubr.msk.bf16.mxu0 %vm562_vm11, %v3582_v58  ;;  %v2112_v58 = vpop.permute.xlu0 %2111 }
 0x476   : > { %2930 = vmatprep.subr.bf16.mxu0 %v2025_v8 }
 0x479   : > { %2931 = vmatpush3.bf16.msra.mxu0 %v2025_v8 }
 0x47a   : > { %2932 = vmatprep.subr.bf16.mxu0 %v2027_v15 }
 0x47c   : > { %2925 = vmatmul.mubr.msk.bf16.gmra.mrb[12].mxu0 %vm562_vm11, %v3591_v11  ;;  %v2114_v11 = vpop.permute.xlu1 %2113 }
 0x47d   : > { %2933 = vmatpush3.bf16.msra.mxu0 %v2027_v15  ;;  %2936 = vmatprep.mubr.msk.bf16.mxu0 %vm562_vm11, %v3595_v13  ;;  %v2193_v13 = vpop.permute.xlu0 %2192 }
 0x47e   : > { %2934 = vmatprep.subr.bf16.mxu0 %v2029_v20 }
 0x481   : > { %2935 = vmatpush3.bf16.msra.mxu0 %v2029_v20 }
 0x482   : > { %2944 = vmatprep.subr.bf16.mxu0 %v2108_v9 }
 0x484   : > { %2937 = vmatmul.mubr.msk.bf16.vlgmr.msra.gmra.mrb[8].mxu0 %vm562_vm11, %v3605_v24  ;;  %v2195_v24 = vpop.permute.xlu1 %2194 }
 0x485   : > { %2945 = vmatpush3.bf16.msra.mxu0 %v2108_v9  ;;  %2940 = vmatprep.mubr.msk.bf16.mxu0 %vm562_vm11, %v3609_v33  ;;  %v2197_v33 = vpop.permute.xlu0 %2196 }
 0x486   : > { %2946 = vmatprep.subr.bf16.mxu0 %v2110_v28 }
 0x489   : > { %2947 = vmatpush3.bf16.msra.mxu0 %v2110_v28 }
 0x48a   : > { %2948 = vmatprep.subr.bf16.mxu0 %v2112_v58 }
 0x48c   : > { %2941 = vmatmul.mubr.msk.bf16.gmra.mrb[12].mxu0 %vm562_vm11, %v3619_v36  ;;  %v2278_v36 = vpop.permute.xlu0 %2277 }
 0x48d   : > { %2949 = vmatpush3.bf16.msra.mxu0 %v2112_v58  ;;  %2952 = vmatprep.mubr.msk.bf16.mxu0 %vm562_vm11, %v3441_v35  ;;  %v2199_v35 = vpop.permute.xlu1 %2198 }
 0x48e   : > { %2950 = vmatprep.subr.bf16.mxu0 %v2114_v11 }
 0x491   : > { %2951 = vmatpush3.bf16.msra.mxu0 %v2114_v11 }
 0x492   : > { %2960 = vmatprep.subr.bf16.mxu0 %v2193_v13 }
 0x494   : > { %2953 = vmatmul.mubr.msk.bf16.vlgmr.msra.gmra.mrb[8].mxu0 %vm562_vm11, %v3449_v37  ;;  %v2280_v37 = vpop.permute.xlu1 %2279 }
 0x495   : > { %2961 = vmatpush3.bf16.msra.mxu0 %v2193_v13  ;;  %2956 = vmatprep.mubr.msk.bf16.mxu0 %vm562_vm11, %v3476_v46  ;;  %v2282_v46 = vpop.permute.xlu0 %2281 }
 0x496   : > { %2962 = vmatprep.subr.bf16.mxu0 %v2195_v24 }
 0x499   : > { %2963 = vmatpush3.bf16.msra.mxu0 %v2195_v24 }
 0x49a   : > { %2964 = vmatprep.subr.bf16.mxu0 %v2197_v33 }
 0x49c   : > { %2957 = vmatmul.mubr.msk.bf16.gmra.mrb[12].mxu0 %vm562_vm11, %v3631_v41  ;;  %v3140_v41 = vld [vmem:[%s3228_s10] sm:$0xff] }
 0x49d   : > { %2965 = vmatpush3.bf16.msra.mxu0 %v2197_v33  ;;  %2968 = vmatprep.mubr.msk.bf16.mxu0 %vm562_vm11, %v3359_v17  ;;  %v2284_v17 = vpop.permute.xlu1 %2283 }
 0x49e   : > { %2966 = vmatprep.subr.bf16.mxu0 %v2199_v35 }
 0x4a1   : > { %2967 = vmatpush3.bf16.msra.mxu0 %v2199_v35 }
 0x4a2   : > { %2976 = vmatprep.subr.bf16.mxu0 %v2278_v36 }
 0x4a4   : > { %2969 = vmatmul.mubr.msk.bf16.vlgmr.msra.gmra.mrb[8].mxu0 %vm562_vm11, %v3366_v18 }
 0x4a5   : > { %2977 = vmatpush3.bf16.msra.mxu0 %v2278_v36  ;;  %2972 = vmatprep.mubr.msk.bf16.mxu0 %vm562_vm11, %v3397_v26  ;;  %v3139_v26 = vld [vmem:[%s3228_s10 + $0x10] sm:$0xff] }
 0x4a6   : > { %2978 = vmatprep.subr.bf16.mxu0 %v2280_v37 }
 0x4a9   : > { %2979 = vmatpush3.bf16.msra.mxu0 %v2280_v37 }
 0x4aa   : > { %2980 = vmatprep.subr.bf16.mxu0 %v2282_v46 }
 0x4ac   : > { %2973 = vmatmul.mubr.msk.bf16.gmra.mrb[12].mxu0 %vm562_vm11, %v3642_v47 }
 0x4ad   : > { %2981 = vmatpush3.bf16.msra.mxu0 %v2282_v46  ;;  %2984 = vmatprep.mubr.msk.bf16.mxu0 %vm562_vm11, %v3513_v61 }
 0x4ae   : > { %2982 = vmatprep.subr.bf16.mxu0 %v2284_v17 }
 0x4b1   : > { %2983 = vmatpush3.bf16.msra.mxu0 %v2284_v17 }
 0x4b4   : > { %2985 = vmatmul.mubr.msk.bf16.vlgmr.msra.gmra.mrb[8].mxu0 %vm562_vm11, %v3517_v63 }
 0x4b5   : > { %2988 = vmatprep.mubr.msk.bf16.mxu0 %vm562_vm11, %v3535_v3 }
 0x4bc   : > { %2989 = vmatmul.mubr.msk.bf16.gmra.mrb[12].mxu0 %vm562_vm11, %v3653_v52  ;;  %v3141_v52 = vld [vmem:[%s3228_s10 + $0x18] sm:$0xff] }
 0x587   : > { %v2986_v18 = vpop.f32.mrb[8].mxu0 }
 0x588   : > { %v2364_v61 = vadd.f32 %v3139_v26, %v2986_v18  ;;  %v2323_v63 = vpop.f32.mrb[9].mxu0 }
 0x589   : > { %v2362_v3 = vadd.f32 %v3140_v41, %v2323_v63  ;;  %v2987_v47 = vpop.f32.mrb[10].mxu0 }
 0x58a   : > { %2372 = vst.msk [vmem:[%s3781_s9 + $0x10] sm:$0xff] %vm347_vm1, %v2364_v61  ;;  %v2365_v50 = vadd.f32 %v3141_v52, %v2987_v47  ;;  %v2326_v54 = vpop.f32.mrb[11].mxu0 }
 0x58b   : > { %2370 = vst.msk [vmem:[%s3781_s9] sm:$0xff] %vm347_vm1, %v2362_v3  ;;  %v2363_v60 = vadd.f32 %v3142_v55, %v2326_v54 }
 0x58c   : > { %2373 = vst.msk [vmem:[%s3781_s9 + $0x18] sm:$0xff] %vm347_vm1, %v2365_v50 }
 0x58d   : > { %2371 = vst.msk [vmem:[%s3781_s9 + $0x8] sm:$0xff] %vm347_vm1, %v2363_v60 }
 0x58f   : > { %v2990_v62 = vpop.f32.mrb[12].mxu0 }
 0x590   : > { %v2368_v1 = vadd.f32 %v3143_v0, %v2990_v62  ;;  %v2339_v2 = vpop.f32.mrb[13].mxu0 }
 0x591   : > { %v2366_v6 = vadd.f32 %v3144_v4, %v2339_v2  ;;  %v2991_v7 = vpop.f32.mrb[14].mxu0 }
 0x592   : > { %2376 = vst.msk [vmem:[%s3781_s9 + $0x30] sm:$0xff] %vm347_vm1, %v2368_v1  ;;  %v2369_v57 = vadd.f32 %v3145_v56, %v2991_v7  ;;  %v2342_v14 = vpop.f32.mrb[15].mxu0 }
 0x593   : > { %2374 = vst.msk [vmem:[%s3781_s9 + $0x20] sm:$0xff] %vm347_vm1, %v2366_v6  ;;  %v2367_v19 = vadd.f32 %v3146_v16, %v2342_v14 }
 0x594   : > { %2377 = vst.msk [vmem:[%s3781_s9 + $0x38] sm:$0xff] %vm347_vm1, %v2369_v57 }
 0x595   : > { %2375 = vst.msk [vmem:[%s3781_s9 + $0x28] sm:$0xff] %vm347_vm1, %v2367_v19 }
 0x596 PF: > { %s17_s24 = sadd.s32 1, %s3153_s24  }
 0x597   : > { %p14_p4 = scmp.ge.s32.totalorder %s17_s24, 4  }
 0x599   :  { %16 = sbr.rel (!%p14_p4) target bundleno = 1 (0x1), region = 78 }

// kernel: network_block_forward.2
= control target key start
LH: loop header
LB: loop body
LE: loop exit
PB: predicated region body
PF: predicated region fallthrough
CT: control target
= control target key end

     0   :  { %s4974_s27 = smov 0   ;;  %s8197_s0 = inlined_call_operand.vmem [shape: f32[2,16,16,4], index: 0, kind: input, shape index: {}]   ;;  %s8198_s1 = inlined_call_operand.vmem [shape: f32[1,4], index: 1, kind: input, shape index: {}]   ;;  %s8199_s2 = inlined_call_operand.vmem [shape: f32[1,4], index: 2, kind: input, shape index: {}]   ;;  %s8200_s3 = inlined_call_operand.vmem [shape: bf16[4,72], index: 3, kind: input, shape index: {}]   ;;  %s8201_s4 = inlined_call_operand.vmem [shape: f32[1,8], index: 4, kind: input, shape index: {}]   ;;  %s8202_s5 = inlined_call_operand.vmem [shape: f32[1,8], index: 5, kind: input, shape index: {}]   ;;  %s8203_s6 = inlined_call_operand.vmem [shape: bf16[8,72], index: 6, kind: input, shape index: {}]   ;;  %s8204_s7 = inlined_call_operand.vmem [shape: bf16[4,8], index: 7, kind: input, shape index: {}]   ;;  %s8205_s8 = inlined_call_operand.vmem [shape: f32[2,8,8,8], index: 8, kind: output, shape index: {}]  }
   0x1 LB: > { %s3858_s28 = sadd.s32 4294967295, %s4915_s27   ;;  %p3862_p0 = scmp.ge.s32.totalorder %s4915_s27, 1  ;;  %s4915_s27 = sphi %s4974_s27, %s18_s27  }
   0x2   : > { %p262_p1 = scmp.lt.s32.totalorder %s4915_s27, 3 }
   0x4   : > { %p263_p2 = pnand %p3862_p0, %p262_p1 }
   0x6   : > { %266 = sbr.rel (%p263_p2) target bundleno = 1698 (0x6a2), region = 52 }
   0xd   : > { %v529_v0 = vld [vmem:[%s8200_s3] sm:$0x3]  ;;  %vm8216_vm0 = vcmask 1041408   ;;  %p296_p3 = scmp.lt.s32.totalorder %s3858_s28, 1  ;;  %vm8215_vm1 = vcmask 31744   ;;  %s4917_s17 = smov 120  }
   0xe   : > { %4886 = vmatprep.subr.msk.bf16.mxu1 %vm8216_vm0, %v529_v0  ;;  %v581_v1 = vsel %vm8216_vm0, %v529_v0, 0  ;;  %v4993_v2 = vld [vmem:[%s8198_s1] ss:$0 sm:$0xff]  ;;  %s4918_s18 = smov 112   ;;  %s4919_s19 = smov 104  }
   0xf   : > { %4601 = vmatpush3.bf16.msra.mxu1 %v581_v1  ;;  %s9221_s28 = smov (!%p296_p3, %s3858_s28), 1  ;;  %v5003_v3 = vld [vmem:[%s8199_s2] ss:$0 sm:$0xff]  ;;  %s4920_s20 = smov 96  }
  0x10   : > { %s4099_s9 = sshll.u32 %s9221_s28, 8  ;;  %s4921_s21 = smov 88  }
  0x11   : > { %s4998_s14 = scalar_lea.vmem %s8197_s0, %s4099_s9  ;;  %s4925_s22 = smov 80  }
  0x12   : > { %v307_v4 = vld [vmem:[%s4998_s14] sm:$0xff]  ;;  %v308_v5 = vld [vmem:[%s4998_s14 + $0x8] sm:$0xff]  ;;  %v309_v6 = vld [vmem:[%s4998_s14 + $0x10] sm:$0xff]  ;;  %s4926_s23 = smov 72   ;;  %s4927_s24 = smov 64  }
  0x13   : > { %v346_v7 = vmul.f32 %v4993_v2, %v307_v4  ;;  %v347_v8 = vmul.f32 %v4993_v2, %v308_v5  ;;  %v310_v9 = vld [vmem:[%s4998_s14 + $0x18] sm:$0xff]  ;;  %v348_v10 = vmul.f32 %v4993_v2, %v309_v6  ;;  %v311_v11 = vld [vmem:[%s4998_s14 + $0x20] sm:$0xff]  ;;  %v312_v12 = vld [vmem:[%s4998_s14 + $0x28] sm:$0xff]  ;;  %s4100_s13 = sshll.u32 %s9221_s28, 6 }
  0x14   : > { %v349_v13 = vmul.f32 %v4993_v2, %v310_v9  ;;  %v350_v14 = vmul.f32 %v4993_v2, %v311_v11  ;;  %v351_v15 = vmul.f32 %v4993_v2, %v312_v12  ;;  %v313_v16 = vld [vmem:[%s4998_s14 + $0x30] sm:$0xff]  ;;  %v314_v17 = vld [vmem:[%s4998_s14 + $0x38] sm:$0xff]  ;;  %v315_v32 = vld [vmem:[%s4998_s14 + $0x40] sm:$0xff]  ;;  %s305_s16 = scalar_lea.vmem %s8205_s8, %s4100_s13 }
  0x15   : > { %v385_v18 = vadd.f32 %v5003_v3, %v346_v7  ;;  %v386_v19 = vadd.f32 %v5003_v3, %v347_v8  ;;  %v387_v20 = vadd.f32 %v5003_v3, %v348_v10  ;;  %v352_v21 = vmul.f32 %v4993_v2, %v313_v16  ;;  %v316_v33 = vld [vmem:[%s4998_s14 + $0x48] sm:$0xff]  ;;  %v317_v34 = vld [vmem:[%s4998_s14 + $0x50] sm:$0xff]  ;;  %v318_v46 = vld [vmem:[%s4998_s14 + $0x58] sm:$0xff] }
  0x16   : > { %v388_v22 = vadd.f32 %v5003_v3, %v349_v13  ;;  %v389_v23 = vadd.f32 %v5003_v3, %v350_v14  ;;  %v390_v24 = vadd.f32 %v5003_v3, %v351_v15  ;;  %v353_v25 = vmul.f32 %v4993_v2, %v314_v17  ;;  %v319_v48 = vld [vmem:[%s4998_s14 + $0x60] sm:$0xff]  ;;  %v320_v58 = vld [vmem:[%s4998_s14 + $0x68] sm:$0xff]  ;;  %v321_v62 = vld [vmem:[%s4998_s14 + $0x70] sm:$0xff] }
  0x17   : > { %vm417_vm2 = vcmp.gt.f32.partialorder %v385_v18, 0.0  ;;  %vm418_vm3 = vcmp.gt.f32.partialorder %v386_v19, 0.0  ;;  %v449_v26 = vmul.f32 0.1, %v385_v18  ;;  %v450_v27 = vmul.f32 0.1, %v386_v19 }
  0x18   : > { %vm419_vm4 = vcmp.gt.f32.partialorder %v387_v20, 0.0  ;;  %vm420_vm5 = vcmp.gt.f32.partialorder %v388_v22, 0.0  ;;  %v451_v28 = vmul.f32 0.1, %v387_v20  ;;  %v452_v29 = vmul.f32 0.1, %v388_v22 }
  0x19   : > { %v481_v30 = vsel %vm417_vm2, %v385_v18, %v449_v26  ;;  %v482_v31 = vsel %vm418_vm3, %v386_v19, %v450_v27  ;;  %vm421_vm6 = vcmp.gt.f32.partialorder %v389_v23, 0.0  ;;  %vm422_vm7 = vcmp.gt.f32.partialorder %v390_v24, 0.0  ;;  %v322_v8 = vld [vmem:[%s4998_s14 + $0x78] sm:$0xff]  ;;  %v323_v12 = vld [vmem:[%s4998_s14 + $0x80] sm:$0xff]  ;;  %v324_v19 = vld [vmem:[%s4998_s14 + $0x88] sm:$0xff] }
  0x1a   : > { %v5030_v35 = vpack.c.bf16 %v482_v31, %v481_v30  ;;  %v483_v36 = vsel %vm419_vm4, %v387_v20, %v451_v28  ;;  %v484_v37 = vsel %vm420_vm5, %v388_v22, %v452_v29  ;;  %v453_v38 = vmul.f32 0.1, %v389_v23  ;;  %v325_v20 = vld [vmem:[%s4998_s14 + $0x90] sm:$0xff]  ;;  %v326_v26 = vld [vmem:[%s4998_s14 + $0x98] sm:$0xff]  ;;  %v327_v31 = vld [vmem:[%s4998_s14 + $0xa0] sm:$0xff] }
  0x1b   : > { %v5032_v39 = vpack.c.bf16 %v484_v37, %v483_v36  ;;  %v454_v40 = vmul.f32 0.1, %v390_v24  ;;  %v391_v41 = vadd.f32 %v5003_v3, %v352_v21  ;;  %v392_v42 = vadd.f32 %v5003_v3, %v353_v25 }
  0x1c   : > { %8383 = vst [vmem:[#allocation2_spill] sm:$0xff] %v5030_v35  ;;  %4602 = vmatprep.mubr.msk.bf16.mxu1 %vm8215_vm1, %v5030_v35  ;;  %v485_v43 = vsel %vm421_vm6, %v389_v23, %v453_v38  ;;  %v354_v44 = vmul.f32 %v4993_v2, %v315_v32  ;;  %v355_v45 = vmul.f32 %v4993_v2, %v316_v33  ;;  %v328_v32 = vld [vmem:[%s4998_s14 + $0xa8] sm:$0xff] }
  0x1d   : > { %8384 = vst [vmem:[#allocation3_spill] sm:$0xff] %v5032_v39  ;;  %v356_v47 = vmul.f32 %v4993_v2, %v317_v34  ;;  %4603 = vmatmul.mubr.msk.bf16.vlgmr.msra.gmra.mrb[0].mxu1 %vm8215_vm1, %v5032_v39  ;;  %v486_v49 = vsel %vm422_vm7, %v390_v24, %v454_v40  ;;  %vm423_vm8 = vcmp.gt.f32.partialorder %v391_v41, 0.0  ;;  %vm424_vm9 = vcmp.gt.f32.partialorder %v392_v42, 0.0 }
  0x1e   : > { %v455_v50 = vmul.f32 0.1, %v391_v41  ;;  %v5046_v51 = vpack.c.bf16 %v486_v49, %v485_v43  ;;  %v456_v52 = vmul.f32 0.1, %v392_v42  ;;  %v393_v53 = vadd.f32 %v5003_v3, %v354_v44 }
  0x1f   : > { %v394_v54 = vadd.f32 %v5003_v3, %v355_v45  ;;  %v357_v56 = vmul.f32 %v4993_v2, %v318_v46  ;;  %v395_v57 = vadd.f32 %v5003_v3, %v356_v47  ;;  %v358_v59 = vmul.f32 %v4993_v2, %v319_v48 }
  0x20   : > { %8385 = vst [vmem:[#allocation4_spill] sm:$0xff] %v5046_v51  ;;  %v487_v55 = vsel %vm423_vm8, %v391_v41, %v455_v50  ;;  %4606 = vmatprep.mubr.msk.bf16.mxu1 %vm8215_vm1, %v5046_v51  ;;  %v488_v60 = vsel %vm424_vm9, %v392_v42, %v456_v52  ;;  %vm425_vm10 = vcmp.gt.f32.partialorder %v393_v53, 0.0  ;;  %v457_v61 = vmul.f32 0.1, %v393_v53  ;;  %v329_v52 = vld [vmem:[%s4998_s14 + $0xb0] sm:$0xff] }
  0x21   : > { %vm426_vm11 = vcmp.gt.f32.partialorder %v394_v54, 0.0  ;;  %v5057_v63 = vpack.c.bf16 %v488_v60, %v487_v55  ;;  %v458_v0 = vmul.f32 0.1, %v394_v54  ;;  %v396_v1 = vadd.f32 %v5003_v3, %v357_v56 }
  0x22   : > { %vm427_vm12 = vcmp.gt.f32.partialorder %v395_v57, 0.0  ;;  %v489_v4 = vsel %vm425_vm10, %v393_v53, %v457_v61  ;;  %v459_v5 = vmul.f32 0.1, %v395_v57  ;;  %v359_v6 = vmul.f32 %v4993_v2, %v320_v58  ;;  %v330_v53 = vld [vmem:[%s4998_s14 + $0xb8] sm:$0xff]  ;;  %v332_v58 = vld [vmem:[%s4998_s14 + $0xc8] sm:$0xff] }
  0x23   : > { %8386 = vst [vmem:[#allocation5_spill] sm:$0xff] %v5057_v63  ;;  %v397_v7 = vadd.f32 %v5003_v3, %v358_v59  ;;  %v490_v9 = vsel %vm426_vm11, %v394_v54, %v458_v0  ;;  %vm428_vm13 = vcmp.gt.f32.partialorder %v396_v1, 0.0  ;;  %v460_v10 = vmul.f32 0.1, %v396_v1 }
  0x24   : > { %v360_v11 = vmul.f32 %v4993_v2, %v321_v62  ;;  %v5065_v13 = vpack.c.bf16 %v490_v9, %v489_v4  ;;  %v398_v14 = vadd.f32 %v5003_v3, %v359_v6  ;;  %v491_v15 = vsel %vm427_vm12, %v395_v57, %v459_v5  ;;  %v331_v57 = vld [vmem:[%s4998_s14 + $0xc0] sm:$0xff] }
  0x25   : > { %vm429_vm14 = vcmp.gt.f32.partialorder %v397_v7, 0.0  ;;  %4607 = vmatmul.mubr.msk.bf16.gmra.mrb[4].mxu1 %vm8215_vm1, %v5057_v63  ;;  %v461_v16 = vmul.f32 0.1, %v397_v7  ;;  %v361_v17 = vmul.f32 %v4993_v2, %v322_v8  ;;  %v492_v21 = vsel %vm428_vm13, %v396_v1, %v460_v10 }
  0x26   : > { %8387 = vst [vmem:[#allocation6_spill] sm:$0xff] %v5065_v13  ;;  %v399_v18 = vadd.f32 %v5003_v3, %v360_v11  ;;  %4610 = vmatprep.mubr.msk.bf16.mxu1 %vm8215_vm1, %v5065_v13  ;;  %vm430_vm15 = vcmp.gt.f32.partialorder %v398_v14, 0.0  ;;  %v462_v22 = vmul.f32 0.1, %v398_v14  ;;  %v362_v23 = vmul.f32 %v4993_v2, %v323_v12 }
  0x27   : > { %v493_v24 = vsel %vm429_vm14, %v397_v7, %v461_v16  ;;  %v400_v25 = vadd.f32 %v5003_v3, %v361_v17  ;;  %v363_v28 = vmul.f32 %v4993_v2, %v324_v19  ;;  %v364_v30 = vmul.f32 %v4993_v2, %v325_v20  ;;  %v333_v16 = vld [vmem:[%s4998_s14 + $0xd0] sm:$0xff]  ;;  %v334_v17 = vld [vmem:[%s4998_s14 + $0xd8] sm:$0xff]  ;;  %v336_v19 = vld [vmem:[%s4998_s14 + $0xe8] sm:$0xff] }
  0x28   : > { %v494_v27 = vsel %vm430_vm15, %v398_v14, %v462_v22  ;;  %v401_v29 = vadd.f32 %v5003_v3, %v362_v23  ;;  %v5084_v33 = vpack.c.bf16 %v492_v21, %v491_v15  ;;  %vm431_vm2 = vcmp.gt.f32.partialorder %v399_v18, 0.0 }
  0x29   : > { %v463_v34 = vmul.f32 0.1, %v399_v18  ;;  %v464_v36 = vmul.f32 0.1, %v400_v25  ;;  %v5086_v37 = vpack.c.bf16 %v494_v27, %v493_v24  ;;  %vm432_vm3 = vcmp.gt.f32.partialorder %v400_v25, 0.0 }
  0x2a   : > { %8388 = vst [vmem:[#allocation7_spill] sm:$0xff] %v5084_v33  ;;  %v402_v38 = vadd.f32 %v5003_v3, %v363_v28  ;;  %v365_v40 = vmul.f32 %v4993_v2, %v326_v26  ;;  %v465_v41 = vmul.f32 0.1, %v401_v29  ;;  %v366_v42 = vmul.f32 %v4993_v2, %v327_v31 }
  0x2b   : > { %8389 = vst [vmem:[#allocation8_spill] sm:$0xff] %v5086_v37  ;;  %v367_v43 = vmul.f32 %v4993_v2, %v328_v32  ;;  %vm433_vm4 = vcmp.gt.f32.partialorder %v401_v29, 0.0  ;;  %v403_v45 = vadd.f32 %v5003_v3, %v364_v30  ;;  %v495_v46 = vsel %vm431_vm2, %v399_v18, %v463_v34  ;;  %v335_v18 = vld [vmem:[%s4998_s14 + $0xe0] sm:$0xff] }
  0x2c   : > { %vm434_vm5 = vcmp.gt.f32.partialorder %v402_v38, 0.0  ;;  %v466_v44 = vmul.f32 0.1, %v402_v38  ;;  %v496_v47 = vsel %vm432_vm3, %v400_v25, %v464_v36  ;;  %v404_v48 = vadd.f32 %v5003_v3, %v365_v40  ;;  %v337_v36 = vld [vmem:[%s4998_s14 + $0xf0] sm:$0xff] }
  0x2d   : > { %4611 = vmatmul.mubr.msk.bf16.gmra.mrb[8].mxu1 %vm8215_vm1, %v5084_v33  ;;  %v405_v49 = vadd.f32 %v5003_v3, %v366_v42  ;;  %v406_v50 = vadd.f32 %v5003_v3, %v367_v43  ;;  %v497_v54 = vsel %vm433_vm4, %v401_v29, %v465_v41  ;;  %v5102_v56 = vpack.c.bf16 %v496_v47, %v495_v46  ;;  %v338_v43 = vld [vmem:[%s4998_s14 + $0xf8] sm:$0xff] }
  0x2e   : > { %4614 = vmatprep.mubr.msk.bf16.mxu1 %vm8215_vm1, %v5086_v37  ;;  %v498_v55 = vsel %vm434_vm5, %v402_v38, %v466_v44  ;;  %vm435_vm6 = vcmp.gt.f32.partialorder %v403_v45, 0.0  ;;  %vm436_vm7 = vcmp.gt.f32.partialorder %v404_v48, 0.0  ;;  %v467_v59 = vmul.f32 0.1, %v403_v45 }
  0x2f   : > { %8390 = vst [vmem:[#allocation9_spill] sm:$0xff] %v5102_v56  ;;  %v368_v60 = vmul.f32 %v4993_v2, %v329_v52  ;;  %v369_v61 = vmul.f32 %v4993_v2, %v330_v53  ;;  %v5108_v62 = vpack.c.bf16 %v498_v55, %v497_v54  ;;  %v468_v0 = vmul.f32 0.1, %v404_v48 }
  0x30   : > { %v469_v1 = vmul.f32 0.1, %v405_v49  ;;  %v470_v4 = vmul.f32 0.1, %v406_v50  ;;  %vm437_vm8 = vcmp.gt.f32.partialorder %v405_v49, 0.0  ;;  %vm438_vm9 = vcmp.gt.f32.partialorder %v406_v50, 0.0 }
  0x31   : > { %8391 = vst [vmem:[#allocation10_spill] sm:$0xff] %v5108_v62  ;;  %v370_v5 = vmul.f32 %v4993_v2, %v331_v57  ;;  %v371_v6 = vmul.f32 %v4993_v2, %v332_v58  ;;  %v407_v7 = vadd.f32 %v5003_v3, %v368_v60  ;;  %v408_v8 = vadd.f32 %v5003_v3, %v369_v61 }
  0x32   : > { %v499_v9 = vsel %vm435_vm6, %v403_v45, %v467_v59  ;;  %v500_v10 = vsel %vm436_vm7, %v404_v48, %v468_v0  ;;  %v501_v11 = vsel %vm437_vm8, %v405_v49, %v469_v1  ;;  %v502_v12 = vsel %vm438_vm9, %v406_v50, %v470_v4 }
  0x33   : > { %v409_v14 = vadd.f32 %v5003_v3, %v370_v5  ;;  %v410_v15 = vadd.f32 %v5003_v3, %v371_v6  ;;  %v5126_v20 = vpack.c.bf16 %v500_v10, %v499_v9  ;;  %v5128_v21 = vpack.c.bf16 %v502_v12, %v501_v11 }
  0x34   : > { %vm439_vm10 = vcmp.gt.f32.partialorder %v407_v7, 0.0  ;;  %vm440_vm11 = vcmp.gt.f32.partialorder %v408_v8, 0.0  ;;  %v471_v22 = vmul.f32 0.1, %v407_v7  ;;  %v472_v23 = vmul.f32 0.1, %v408_v8 }
  0x35   : > { %4615 = vmatmul.mubr.msk.bf16.gmra.mrb[12].mxu1 %vm8215_vm1, %v5102_v56  ;;  %8392 = vst [vmem:[#allocation11_spill] sm:$0xff] %v5126_v20  ;;  %8393 = vst [vmem:[#allocation12_spill] sm:$0xff] %v5128_v21  ;;  %v372_v24 = vmul.f32 %v4993_v2, %v333_v16  ;;  %v373_v25 = vmul.f32 %v4993_v2, %v334_v17  ;;  %v473_v26 = vmul.f32 0.1, %v409_v14  ;;  %v474_v27 = vmul.f32 0.1, %v410_v15 }
  0x36   : > { %4618 = vmatprep.mubr.msk.bf16.mxu1 %vm8215_vm1, %v5108_v62  ;;  %v374_v28 = vmul.f32 %v4993_v2, %v335_v18  ;;  %v375_v29 = vmul.f32 %v4993_v2, %v336_v19  ;;  %vm441_vm12 = vcmp.gt.f32.partialorder %v409_v14, 0.0  ;;  %vm442_vm13 = vcmp.gt.f32.partialorder %v410_v15, 0.0 }
  0x37   : > { %v503_v30 = vsel %vm439_vm10, %v407_v7, %v471_v22  ;;  %v504_v31 = vsel %vm440_vm11, %v408_v8, %v472_v23  ;;  %v411_v32 = vadd.f32 %v5003_v3, %v372_v24  ;;  %v412_v34 = vadd.f32 %v5003_v3, %v373_v25 }
  0x38   : > { %v505_v38 = vsel %vm441_vm12, %v409_v14, %v473_v26  ;;  %v506_v40 = vsel %vm442_vm13, %v410_v15, %v474_v27  ;;  %v413_v41 = vadd.f32 %v5003_v3, %v374_v28  ;;  %v414_v42 = vadd.f32 %v5003_v3, %v375_v29 }
  0x39   : > { %v5144_v44 = vpack.c.bf16 %v504_v31, %v503_v30  ;;  %v376_v45 = vmul.f32 %v4993_v2, %v337_v36  ;;  %v5147_v46 = vpack.c.bf16 %v506_v40, %v505_v38  ;;  %v475_v47 = vmul.f32 0.1, %v411_v32 }
  0x3a   : > { %v476_v48 = vmul.f32 0.1, %v412_v34  ;;  %v377_v49 = vmul.f32 %v4993_v2, %v338_v43  ;;  %vm443_vm14 = vcmp.gt.f32.partialorder %v411_v32, 0.0  ;;  %vm444_vm15 = vcmp.gt.f32.partialorder %v412_v34, 0.0 }
  0x3b   : > { %8394 = vst [vmem:[#allocation13_spill] sm:$0xff] %v5144_v44  ;;  %8395 = vst [vmem:[#allocation14_spill] sm:$0xff] %v5147_v46  ;;  %v477_v50 = vmul.f32 0.1, %v413_v41  ;;  %v478_v52 = vmul.f32 0.1, %v414_v42  ;;  %v507_v53 = vsel %vm443_vm14, %v411_v32, %v475_v47  ;;  %v415_v55 = vadd.f32 %v5003_v3, %v376_v45 }
  0x3c   : > { %vm445_vm2 = vcmp.gt.f32.partialorder %v413_v41, 0.0  ;;  %vm446_vm3 = vcmp.gt.f32.partialorder %v414_v42, 0.0  ;;  %v508_v54 = vsel %vm444_vm15, %v412_v34, %v476_v48  ;;  %v416_v57 = vadd.f32 %v5003_v3, %v377_v49 }
  0x3d   : > { %4619 = vmatmul.mubr.msk.bf16.gmra.mrb[16].mxu1 %vm8215_vm1, %v5126_v20  ;;  %v509_v58 = vsel %vm445_vm2, %v413_v41, %v477_v50  ;;  %v510_v2 = vsel %vm446_vm3, %v414_v42, %v478_v52  ;;  %v5156_v59 = vpack.c.bf16 %v508_v54, %v507_v53  ;;  %v479_v61 = vmul.f32 0.1, %v415_v55 }
  0x3e   : > { %4622 = vmatprep.mubr.msk.bf16.mxu1 %vm8215_vm1, %v5128_v21  ;;  %v5158_v60 = vpack.c.bf16 %v510_v2, %v509_v58  ;;  %v480_v0 = vmul.f32 0.1, %v416_v57  ;;  %vm447_vm4 = vcmp.gt.f32.partialorder %v415_v55, 0.0  ;;  %vm448_vm5 = vcmp.gt.f32.partialorder %v416_v57, 0.0 }
  0x3f   : > { %8396 = vst [vmem:[#allocation15_spill] sm:$0xff] %v5156_v59  ;;  %v511_v1 = vsel %vm447_vm4, %v415_v55, %v479_v61  ;;  %vm8229_vm11 = vmmov 1   ;;  %v8475_v62 = vmov 0 }
  0x40   : > { %8397 = vst [vmem:[#allocation16_spill] sm:$0xff] %v5158_v60  ;;  %v512_v4 = vsel %vm448_vm5, %v416_v57, %v480_v0 }
  0x41   : > { %v5164_v5 = vpack.c.bf16 %v512_v4, %v511_v1 }
  0x43   : > { %8398 = vst [vmem:[#allocation17_spill] sm:$0xff] %v5164_v5 }
  0x45   : > { %4623 = vmatmul.mubr.msk.bf16.gmra.mrb[20].mxu1 %vm8215_vm1, %v5144_v44 }
  0x46   : > { %4626 = vmatprep.mubr.msk.bf16.mxu1 %vm8215_vm1, %v5147_v46  ;;  %v8417_v46 = vmov 0 }
  0x4d   : > { %4627 = vmatmul.mubr.msk.bf16.gmra.mrb[24].mxu1 %vm8215_vm1, %v5156_v59 }
  0x4e   : > { %4630 = vmatprep.mubr.msk.bf16.mxu1 %vm8215_vm1, %v5158_v60 }
  0x55   : > { %4631 = vmatmul.mubr.msk.bf16.gmra.mrb[28].mxu1 %vm8215_vm1, %v5164_v5 }
  0xf0   : > { %v4604_v3 = vpop.f32.mrb[0].mxu1 }
  0xf1   : > { %v617_v6 = vpop.f32.mrb[1].mxu1 }
  0xf2   : > { %v4605_v7 = vpop.f32.mrb[2].mxu1 }
  0xf3   : > { %v5168_v8 = vpack.c.bf16 %v4605_v7, %v4604_v3  ;;  %v620_v9 = vpop.f32.mrb[3].mxu1  ;;  %v760_v3 = vlaneseq }
  0xf4   : > { %v5170_v10 = vpack.c.bf16 %v620_v9, %v617_v6 }
  0xf5   : > { %985 = vrot.lane.b32.xlu1 %v5168_v8, %s4917_s17  ;;  %v5286_v6 = vshrl.u32 %v760_v3, 7  ;;  %v5288_v7 = vand.u32 127, %v760_v3 }
  0xf6   : > { %983 = vrot.lane.b32.xlu0 %v5170_v10, %s4917_s17 }
  0xf7   : > { %8399 = vst [vmem:[#allocation18_spill] sm:$0xff] %v5286_v6  ;;  %v5291_v9 = vmul.u32 2, %v5286_v6 }
  0xf8   : > { %v4608_v11 = vpop.f32.mrb[4].mxu1 }
  0xf9   : > { %1264 = vrot.lane.b32.xlu1 %v5168_v8, %s4918_s18  ;;  %v633_v12 = vpop.f32.mrb[5].mxu1  ;;  %vm8233_vm7 = vcmp.ge.s32.totalorder %v5291_v9, 0  ;;  %vm8241_vm9 = vcmp.lt.s32.totalorder %v5291_v9, 16 }
  0xfa   : > { %v4609_v14 = vpop.f32.mrb[6].mxu1 }
  0xfb   : > { %v5178_v15 = vpack.c.bf16 %v4609_v14, %v4608_v11  ;;  %v636_v16 = vpop.f32.mrb[7].mxu1  ;;  %v5298_v11 = vadd.s32 128, %v5288_v7  ;;  %v8400_v14 = vmov 0 }
  0xfc   : > { %v5180_v17 = vpack.c.bf16 %v636_v16, %v633_v12  ;;  %v868_v12 = vadd.s32 16, %v5291_v9  ;;  %v4922_v16 = vmov 1.0  }
  0xfd   : > { %1480 = vrot.lane.b32.xlu1 %v5168_v8, %s4919_s19  ;;  %1268 = vrot.lane.b32.xlu0 %v5178_v15, %s4918_s18 }
  0xfe   : > { %vm878_vm6 = vcmp.eq.s32.totalorder %v5298_v11, %v868_v12  ;;  %vm877_vm13 = vcmp.eq.s32.totalorder %v5288_v7, %v868_v12 }
  0xff   : > { %vm913_vm8 = vmand %vm878_vm6, %vm8233_vm7 }
 0x100   : > { %v4612_v18 = vpop.f32.mrb[8].mxu1  ;;  %vm5312_vm10 = vmand %vm913_vm8, %vm8241_vm9 }
 0x101   : > { %1696 = vrot.lane.b32.xlu1 %v5168_v8, %s4920_s20  ;;  %1266 = vrot.lane.b32.xlu0 %v5180_v17, %s4918_s18  ;;  %v649_v19 = vpop.f32.mrb[9].mxu1  ;;  %v8401_v14 = vsel %vm5312_vm10, 4294967295, %v8400_v14  ;;  %vm3885_vm12 = vmpackc.low %vm5312_vm10, %vm8229_vm11 }
 0x102   : > { %v4613_v22 = vpop.f32.mrb[10].mxu1  ;;  %8402 = vst [vmem:[#allocation19_spill] sm:$0xff] %v8401_v14  ;;  %vm912_vm15 = vmand %vm877_vm13, %vm8233_vm7  ;;  %v874_v14 = vadd.s32 208, %v5291_v9 }
 0x103   : > { %v5190_v23 = vpack.c.bf16 %v4613_v22, %v4612_v18  ;;  %v652_v24 = vpop.f32.mrb[11].mxu1  ;;  %v8206_v18 = vmov 0.0   ;;  %v5328_v22 = vadd.s32 48, %v5291_v9  ;;  %vm5351_vm3 = vmand %vm912_vm15, %vm8241_vm9 }
 0x104   : > { %v5192_v25 = vpack.c.bf16 %v652_v24, %v649_v19  ;;  %v5317_v19 = vpack.c.bf16 %v4922_v16, %v8206_v18  ;;  %v8403_v24 = vmov 0  ;;  %v8414_v16 = vmov 0 }
 0x105   : > { %1262 = vrot.lane.b32.xlu1 %v5170_v10, %s4918_s18  ;;  %1272 = vrot.lane.b32.xlu0 %v5190_v23, %s4918_s18  ;;  %vm879_vm14 = vcmp.eq.s32.totalorder %v5288_v7, %v5328_v22  ;;  %v8404_v24 = vsel %vm5351_vm3, 4294967295, %v8403_v24  ;;  %v5471_v18 = vadd.s32 1, %v5291_v9 }
 0x106   : > { %3887 = vmatprep.mubr.msk.bf16.mxu1 %vm3885_vm12, %v5317_v19  ;;  %vm914_vm2 = vmand %vm879_vm14, %vm8233_vm7  ;;  %8405 = vst [vmem:[#allocation20_spill] sm:$0xff] %v8404_v24 }
 0x107   : > { %vm5357_vm4 = vmand %vm914_vm2, %vm8241_vm9  ;;  %v5482_v5 = vadd.s32 16, %v5471_v18  ;;  %v5489_v37 = vadd.s32 48, %v5471_v18  ;;  %vm8231_vm0 = vcmp.lt.s32.totalorder %v5471_v18, 16 }
 0x108   : > { %v4616_v26 = vpop.f32.mrb[12].mxu1 }
 0x109   : > { %1478 = vrot.lane.b32.xlu1 %v5170_v10, %s4919_s19  ;;  %1270 = vrot.lane.b32.xlu0 %v5192_v25, %s4918_s18  ;;  %v665_v27 = vpop.f32.mrb[13].mxu1  ;;  %vm1175_vm1 = vcmp.eq.s32.totalorder %v5298_v11, %v5489_v37 }
 0x10a   : > { %v4617_v28 = vpop.f32.mrb[14].mxu1 }
 0x10b   : > { %v5202_v29 = vpack.c.bf16 %v4617_v28, %v4616_v26  ;;  %v668_v30 = vpop.f32.mrb[15].mxu1  ;;  %v8406_v26 = vmov 0 }
 0x10c   : > { %v5204_v31 = vpack.c.bf16 %v668_v30, %v665_v27  ;;  %v8407_v26 = vsel %vm5357_vm4, 4294967295, %v8406_v26 }
 0x10d   : > { %1694 = vrot.lane.b32.xlu1 %v5170_v10, %s4920_s20  ;;  %1276 = vrot.lane.b32.xlu0 %v5202_v29, %s4918_s18  ;;  %8408 = vst [vmem:[#allocation21_spill] sm:$0xff] %v8407_v26 }
 0x110   : > { %v4620_v32 = vpop.f32.mrb[16].mxu1 }
 0x111   : > { %989 = vrot.lane.b32.xlu1 %v5178_v15, %s4917_s17  ;;  %1492 = vrot.lane.b32.xlu0 %v5202_v29, %s4919_s19  ;;  %v681_v34 = vpop.f32.mrb[17].mxu1 }
 0x112   : > { %v4621_v36 = vpop.f32.mrb[18].mxu1 }
 0x113   : > { %v5214_v38 = vpack.c.bf16 %v4621_v36, %v4620_v32  ;;  %v684_v40 = vpop.f32.mrb[19].mxu1 }
 0x114   : > { %v5216_v41 = vpack.c.bf16 %v684_v40, %v681_v34 }
 0x115   : > { %1484 = vrot.lane.b32.xlu1 %v5178_v15, %s4919_s19  ;;  %1274 = vrot.lane.b32.xlu0 %v5204_v31, %s4918_s18 }
 0x118   : > { %v4624_v42 = vpop.f32.mrb[20].mxu1 }
 0x119   : > { %987 = vrot.lane.b32.xlu1 %v5180_v17, %s4917_s17  ;;  %1490 = vrot.lane.b32.xlu0 %v5204_v31, %s4919_s19  ;;  %v697_v43 = vpop.f32.mrb[21].mxu1 }
 0x11a   : > { %v4625_v45 = vpop.f32.mrb[22].mxu1 }
 0x11b   : > { %v5226_v47 = vpack.c.bf16 %v4625_v45, %v4624_v42  ;;  %v700_v48 = vpop.f32.mrb[23].mxu1  ;;  %v5404_v45 = vadd.s32 4294967295, %v5291_v9 }
 0x11c   : > { %v5228_v49 = vpack.c.bf16 %v700_v48, %v697_v43 }
 0x11d   : > { %1482 = vrot.lane.b32.xlu1 %v5180_v17, %s4919_s19  ;;  %1280 = vrot.lane.b32.xlu0 %v5214_v38, %s4918_s18  ;;  %vm8228_vm8 = vcmp.ge.s32.totalorder %v5404_v45, 0  ;;  %vm8219_vm13 = vcmp.lt.s32.totalorder %v5404_v45, 16 }
 0x120   : > { %v4628_v50 = vpop.f32.mrb[24].mxu1 }
 0x121   : > { %993 = vrot.lane.b32.xlu1 %v5190_v23, %s4917_s17  ;;  %999 = vrot.lane.b32.xlu0 %v5216_v41, %s4917_s17  ;;  %v713_v52 = vpop.f32.mrb[25].mxu1 }
 0x122   : > { %v4629_v53 = vpop.f32.mrb[26].mxu1 }
 0x123   : > { %v5238_v54 = vpack.c.bf16 %v4629_v53, %v4628_v50  ;;  %v716_v55 = vpop.f32.mrb[27].mxu1  ;;  %v5422_v53 = vadd.s32 48, %v5404_v45 }
 0x124   : > { %v5240_v57 = vpack.c.bf16 %v716_v55, %v713_v52  ;;  %v5415_v52 = vadd.s32 16, %v5404_v45 }
 0x125   : > { %1488 = vrot.lane.b32.xlu1 %v5190_v23, %s4919_s19  ;;  %1278 = vrot.lane.b32.xlu0 %v5216_v41, %s4918_s18  ;;  %vm779_vm12 = vcmp.eq.s32.totalorder %v5288_v7, %v5422_v53 }
 0x126   : > { %vm777_vm6 = vcmp.eq.s32.totalorder %v5288_v7, %v5415_v52  ;;  %vm814_vm15 = vmand %vm779_vm12, %vm8228_vm8 }
 0x127   : > { %vm812_vm14 = vmand %vm777_vm6, %vm8228_vm8 }
 0x128   : > { %v4632_v58 = vpop.f32.mrb[28].mxu1  ;;  %vm5452_vm2 = vmand %vm812_vm14, %vm8219_vm13  ;;  %vm1173_vm14 = vcmp.eq.s32.totalorder %v5298_v11, %v5482_v5 }
 0x129   : > { %991 = vrot.lane.b32.xlu1 %v5192_v25, %s4917_s17  ;;  %1005 = vrot.lane.b32.xlu0 %v5226_v47, %s4917_s17  ;;  %v729_v2 = vpop.f32.mrb[29].mxu1  ;;  %vm5462_vm6 = vmand %vm814_vm15, %vm8219_vm13  ;;  %vm8232_vm15 = vcmp.ge.s32.totalorder %v5471_v18, 0 }
 0x12a   : > { %v4633_v61 = vpop.f32.mrb[30].mxu1  ;;  %v8415_v16 = vsel %vm5462_vm6, 4294967295, %v8414_v16  ;;  %vm1208_vm5 = vmand %vm1173_vm14, %vm8232_vm15 }
 0x12b   : > { %v5250_v0 = vpack.c.bf16 %v4633_v61, %v4632_v58  ;;  %v732_v1 = vpop.f32.mrb[31].mxu1  ;;  %8416 = vst [vmem:[#allocation25_spill] sm:$0xff] %v8415_v16  ;;  %vm1210_vm12 = vmand %vm1175_vm1, %vm8232_vm15 }
 0x12c   : > { %v5252_v4 = vpack.c.bf16 %v732_v1, %v729_v2  ;;  %v8411_v1 = vmov 0  ;;  %vm5514_vm13 = vmand %vm1208_vm5, %vm8231_vm0 }
 0x12d   : > { %1486 = vrot.lane.b32.xlu1 %v5192_v25, %s4919_s19  ;;  %1284 = vrot.lane.b32.xlu0 %v5226_v47, %s4918_s18  ;;  %v8412_v1 = vsel %vm5452_vm2, 4294967295, %v8411_v1  ;;  %v8418_v46 = vsel %vm5514_vm13, 4294967295, %v8417_v46  ;;  %vm5522_vm14 = vmand %vm1210_vm12, %vm8231_vm0  ;;  %vm1172_vm12 = vcmp.eq.s32.totalorder %v5288_v7, %v5482_v5  ;;  %vm890_vm2 = vcmp.eq.s32.totalorder %v5298_v11, %v874_v14 }
 0x12e   : > { %8413 = vst [vmem:[#allocation24_spill] sm:$0xff] %v8412_v1  ;;  %8419 = vst [vmem:[#allocation26_spill] sm:$0xff] %v8418_v46 }
 0x12f   : > { %vm3921_vm1 = vmpackc.low %vm5514_vm13, %vm8229_vm11 }
 0x130   : > { %3923 = vmatprep.mubr.msk.bf16.mxu0 %vm3921_vm1, %v5317_v19  ;;  %vm1174_vm1 = vcmp.eq.s32.totalorder %v5288_v7, %v5489_v37  ;;  %vm1207_vm5 = vmand %vm1172_vm12, %vm8232_vm15  ;;  %v8424_v37 = vmov 0 }
 0x131   : > { %997 = vrot.lane.b32.xlu1 %v5202_v29, %s4917_s17  ;;  %1003 = vrot.lane.b32.xlu0 %v5228_v49, %s4917_s17  ;;  %vm1209_vm8 = vmand %vm1174_vm1, %vm8232_vm15 }
 0x132   : > { %vm5586_vm11 = vmand %vm1207_vm5, %vm8231_vm0 }
 0x133   : > { %v8425_v37 = vsel %vm5586_vm11, 4294967295, %v8424_v37  ;;  %vm5596_vm12 = vmand %vm1209_vm8, %vm8231_vm0  ;;  %vm880_vm8 = vcmp.eq.s32.totalorder %v5298_v11, %v5328_v22  ;;  %v872_v22 = vadd.s32 144, %v5291_v9  ;;  %vm8445_vm11 = vcmp.lt.s32.totalorder %v5291_v9, 16 }
 0x134   : > { %8426 = vst [vmem:[#allocation29_spill] sm:$0xff] %v8425_v37  ;;  %vm915_vm5 = vmand %vm880_vm8, %vm8233_vm7 }
 0x135   : > { %995 = vrot.lane.b32.xlu1 %v5204_v31, %s4917_s17  ;;  %1282 = vrot.lane.b32.xlu0 %v5228_v49, %s4918_s18  ;;  %vm5652_vm15 = vmand %vm915_vm5, %vm8241_vm9  ;;  %vm886_vm13 = vcmp.eq.s32.totalorder %v5298_v11, %v872_v22  ;;  %vm8439_vm5 = vmmov 1  }
 0x136   : > { %vm5672_vm10 = vmpackc.low %vm5351_vm3, %vm8439_vm5 }
 0x139   : > { %1001 = vrot.lane.b32.xlu1 %v5214_v38, %s4917_s17  ;;  %1714 = vrot.lane.b32.xlu0 %v5228_v49, %s4920_s20 }
 0x13d   : > { %1496 = vrot.lane.b32.xlu1 %v5214_v38, %s4919_s19  ;;  %1009 = vrot.lane.b32.xlu0 %v5238_v54, %s4917_s17 }
 0x141   : > { %1712 = vrot.lane.b32.xlu1 %v5214_v38, %s4920_s20  ;;  %1288 = vrot.lane.b32.xlu0 %v5238_v54, %s4918_s18 }
 0x145   : > { %1494 = vrot.lane.b32.xlu1 %v5216_v41, %s4919_s19  ;;  %1007 = vrot.lane.b32.xlu0 %v5240_v57, %s4917_s17 }
 0x149   : > { %1710 = vrot.lane.b32.xlu1 %v5216_v41, %s4920_s20  ;;  %1286 = vrot.lane.b32.xlu0 %v5240_v57, %s4918_s18 }
 0x14d   : > { %1926 = vrot.lane.b32.xlu1 %v5216_v41, %s4921_s21  ;;  %1013 = vrot.lane.b32.xlu0 %v5250_v0, %s4917_s17 }
 0x151   : > { %1500 = vrot.lane.b32.xlu1 %v5226_v47, %s4919_s19  ;;  %1292 = vrot.lane.b32.xlu0 %v5250_v0, %s4918_s18 }
 0x155   : > { %1498 = vrot.lane.b32.xlu1 %v5228_v49, %s4919_s19  ;;  %1508 = vrot.lane.b32.xlu0 %v5250_v0, %s4919_s19 }
 0x159   : > { %1504 = vrot.lane.b32.xlu1 %v5238_v54, %s4919_s19  ;;  %1011 = vrot.lane.b32.xlu0 %v5252_v4, %s4917_s17 }
 0x15d   : > { %1502 = vrot.lane.b32.xlu1 %v5240_v57, %s4919_s19  ;;  %1698 = vrot.lane.b32.xlu0 %v5180_v17, %s4920_s20 }
 0x161   : > { %1910 = vrot.lane.b32.xlu1 %v5170_v10, %s4921_s21  ;;  %1716 = vrot.lane.b32.xlu0 %v5226_v47, %s4920_s20 }
 0x165   : > { %1928 = vrot.lane.b32.xlu1 %v5214_v38, %s4921_s21  ;;  %1700 = vrot.lane.b32.xlu0 %v5178_v15, %s4920_s20 }
 0x167   : > { %v5369_v27 = vpop.permute.xlu1 %985 }
 0x168   : > { %v5375_v28 = vpop.permute.xlu0 %983 }
 0x169   : > { %1912 = vrot.lane.b32.xlu1 %v5168_v8, %s4921_s21  ;;  %1718 = vrot.lane.b32.xlu0 %v5240_v57, %s4920_s20 }
 0x16b   : > { %v5377_v30 = vpop.permute.xlu1 %1264 }
 0x16d   : > { %1930 = vrot.lane.b32.xlu1 %v5228_v49, %s4921_s21  ;;  %1702 = vrot.lane.b32.xlu0 %v5192_v25, %s4920_s20 }
 0x16f   : > { %v5383_v32 = vpop.permute.xlu1 %1480  ;;  %v5385_v34 = vpop.permute.xlu0 %1268 }
 0x171   : > { %1914 = vrot.lane.b32.xlu1 %v5180_v17, %s4921_s21  ;;  %1720 = vrot.lane.b32.xlu0 %v5238_v54, %s4920_s20 }
 0x173   : > { %v5391_v36 = vpop.permute.xlu1 %1696  ;;  %v5393_v40 = vpop.permute.xlu0 %1266 }
 0x174   : > { %8409 = vst [vmem:[#allocation22_spill] sm:$0xff] %v5391_v36  ;;  %v5752_v36 = vadd.s32 176, %v5471_v18 }
 0x175   : > { %1932 = vrot.lane.b32.xlu1 %v5226_v47, %s4921_s21  ;;  %1704 = vrot.lane.b32.xlu0 %v5190_v23, %s4920_s20 }
 0x177   : > { %v5399_v42 = vpop.permute.xlu1 %1262  ;;  %v5401_v43 = vpop.permute.xlu0 %1272 }
 0x179   : > { %1916 = vrot.lane.b32.xlu1 %v5178_v15, %s4921_s21  ;;  %1706 = vrot.lane.b32.xlu0 %v5204_v31, %s4920_s20 }
 0x17b   : > { %v5410_v48 = vpop.permute.xlu1 %1478  ;;  %v5412_v50 = vpop.permute.xlu0 %1270 }
 0x17d   : > { %1934 = vrot.lane.b32.xlu1 %v5240_v57, %s4921_s21  ;;  %1724 = vrot.lane.b32.xlu0 %v5250_v0, %s4920_s20 }
 0x17f   : > { %v5424_v55 = vpop.permute.xlu1 %1694  ;;  %v5426_v58 = vpop.permute.xlu0 %1276 }
 0x181   : > { %1918 = vrot.lane.b32.xlu1 %v5192_v25, %s4921_s21  ;;  %1708 = vrot.lane.b32.xlu0 %v5202_v29, %s4920_s20 }
 0x183   : > { %v5437_v2 = vpop.permute.xlu1 %989  ;;  %v5439_v61 = vpop.permute.xlu0 %1492 }
 0x184   : > { %8410 = vst [vmem:[#allocation23_spill] sm:$0xff] %v5439_v61  ;;  %v8523_v61 = vmov 0 }
 0x185   : > { %1936 = vrot.lane.b32.xlu1 %v5238_v54, %s4921_s21  ;;  %1922 = vrot.lane.b32.xlu0 %v5204_v31, %s4921_s21 }
 0x187   : > { %v5456_v3 = vpop.permute.xlu1 %1484  ;;  %v5458_v12 = vpop.permute.xlu0 %1274 }
 0x189   : > { %1920 = vrot.lane.b32.xlu1 %v5190_v23, %s4921_s21  ;;  %1940 = vrot.lane.b32.xlu0 %v5250_v0, %s4921_s21 }
 0x18b   : > { %v5477_v6 = vpop.permute.xlu1 %987  ;;  %v5479_v56 = vpop.permute.xlu0 %1490 }
 0x18d   : > { %2066 = vrot.lane.b32.xlu1 %v5216_v41, %s4925_s22  ;;  %1924 = vrot.lane.b32.xlu0 %v5202_v29, %s4921_s21 }
 0x18f   : > { %v5491_v60 = vpop.permute.xlu1 %1482  ;;  %v1281_v33 = vpop.permute.xlu0 %1280 }
 0x191   : > { %2050 = vrot.lane.b32.xlu1 %v5170_v10, %s4925_s22  ;;  %1290 = vrot.lane.b32.xlu0 %v5252_v4, %s4918_s18 }
 0x193   : > { %v5503_v59 = vpop.permute.xlu1 %993  ;;  %v1000_v13 = vpop.permute.xlu0 %999 }
 0x194   : > { %4118 = vmatprep.subr.bf16.mxu1 %v1000_v13  ;;  %v8420_v13 = vmov 0 }
 0x195   : > { %4119 = vmatpush3.bf16.msra.mxu1 %v5375_v28  ;;  %2068 = vrot.lane.b32.xlu1 %v5214_v38, %s4925_s22  ;;  %v8421_v13 = vsel %vm5522_vm14, 4294967295, %v8420_v13 }
 0x196   : > { %2070 = vrot.lane.b32.xlu0 %v5228_v49, %s4925_s22  ;;  %8422 = vst [vmem:[#allocation27_spill] sm:$0xff] %v8421_v13 }
 0x197   : > { %v5526_v63 = vpop.permute.xlu1 %1488  ;;  %v1279_v28 = vpop.permute.xlu0 %1278 }
 0x198   : > { %4198 = vmatprep.subr.bf16.mxu0 %v1279_v28 }
 0x199   : > { %4199 = vmatpush3.bf16.msra.mxu0 %v5399_v42  ;;  %2052 = vrot.lane.b32.xlu1 %v5168_v8, %s4925_s22 }
 0x19a   : > { %1506 = vrot.lane.b32.xlu0 %v5252_v4, %s4919_s19  ;;  %4200 = vmatprep.subr.bf16.mxu0 %v1281_v33 }
 0x19b   : > { %v992_v44 = vpop.permute.xlu1 %991  ;;  %v1006_v51 = vpop.permute.xlu0 %1005 }
 0x19d   : > { %4201 = vmatpush3.bf16.msra.mxu0 %v5377_v30  ;;  %2206 = vrot.lane.b32.xlu1 %v5216_v41, %s4926_s23 }
 0x19e   : > { %2054 = vrot.lane.b32.xlu0 %v5180_v17, %s4925_s22 }
 0x19f   : > { %v5546_v28 = vpop.permute.xlu1 %1486  ;;  %v1285_v42 = vpop.permute.xlu0 %1284 }
 0x1a1   : > { %2190 = vrot.lane.b32.xlu1 %v5170_v10, %s4926_s23 }
 0x1a2   : > { %2072 = vrot.lane.b32.xlu0 %v5226_v47, %s4925_s22 }
 0x1a3   : > { %v5552_v33 = vpop.permute.xlu1 %997  ;;  %v1004_v21 = vpop.permute.xlu0 %1003 }
 0x1a5   : > { %2208 = vrot.lane.b32.xlu1 %v5214_v38, %s4926_s23 }
 0x1a6   : > { %2056 = vrot.lane.b32.xlu0 %v5178_v15, %s4925_s22 }
 0x1a7   : > { %v5558_v30 = vpop.permute.xlu1 %995  ;;  %v1283_v39 = vpop.permute.xlu0 %1282 }
 0x1a8   : > { %4202 = vmatprep.subr.bf16.mxu0 %v1283_v39 }
 0x1a9   : > { %4203 = vmatpush3.bf16.msra.mxu0 %v5393_v40  ;;  %2192 = vrot.lane.b32.xlu1 %v5168_v8, %s4926_s23 }
 0x1aa   : > { %2074 = vrot.lane.b32.xlu0 %v5240_v57, %s4925_s22  ;;  %4204 = vmatprep.subr.bf16.mxu0 %v1285_v42 }
 0x1ab   : > { %v1002_v20 = vpop.permute.xlu1 %1001  ;;  %v5565_v35 = vpop.permute.xlu0 %1714 }
 0x1ac   : > { %8423 = vst [vmem:[#allocation28_spill] sm:$0xff] %v5565_v35  ;;  %4120 = vmatprep.subr.bf16.mxu1 %v1002_v20  ;;  %v8450_v35 = vmov 0 }
 0x1ad   : > { %4121 = vmatpush3.bf16.msra.mxu1 %v5369_v27  ;;  %4205 = vmatpush3.bf16.msra.mxu0 %v5385_v34 }
 0x1ae   : > { %2210 = vrot.lane.b32.xlu1 %v5228_v49, %s4926_s23  ;;  %2058 = vrot.lane.b32.xlu0 %v5192_v25, %s4925_s22 }
 0x1af   : > { %4122 = vmatprep.subr.bf16.mxu1 %v1004_v21  ;;  %v5579_v39 = vpop.permute.xlu1 %1496  ;;  %v1010_v20 = vpop.permute.xlu0 %1009  ;;  %v8427_v21 = vmov 0 }
 0x1b0   : > { %v8428_v21 = vsel %vm5596_vm12, 4294967295, %v8427_v21  ;;  %vm8442_vm12 = vcmp.ge.s32.totalorder %v5291_v9, 0 }
 0x1b1   : > { %4123 = vmatpush3.bf16.msra.mxu1 %v5477_v6  ;;  %8429 = vst [vmem:[#allocation30_spill] sm:$0xff] %v8428_v21 }
 0x1b2   : > { %2194 = vrot.lane.b32.xlu1 %v5180_v17, %s4926_s23  ;;  %1722 = vrot.lane.b32.xlu0 %v5252_v4, %s4920_s20 }
 0x1b3   : > { %4124 = vmatprep.subr.bf16.mxu1 %v1006_v51  ;;  %v5600_v5 = vpop.permute.xlu1 %1712  ;;  %v1289_v6 = vpop.permute.xlu0 %1288 }
 0x1b4   : > { %8430 = vst [vmem:[#allocation31_spill] sm:$0xff] %v5600_v5  ;;  %v8467_v5 = vmov 0 }
 0x1b5   : > { %4125 = vmatpush3.bf16.msra.mxu1 %v5437_v2  ;;  %v870_v2 = vadd.s32 80, %v5291_v9 }
 0x1b6   : > { %2212 = vrot.lane.b32.xlu1 %v5226_v47, %s4926_s23  ;;  %2076 = vrot.lane.b32.xlu0 %v5238_v54, %s4925_s22 }
 0x1b7   : > { %v5611_v27 = vpop.permute.xlu1 %1494  ;;  %v1008_v34 = vpop.permute.xlu0 %1007  ;;  %vm882_vm1 = vcmp.eq.s32.totalorder %v5298_v11, %v870_v2  ;;  %vm881_vm8 = vcmp.eq.s32.totalorder %v5288_v7, %v870_v2  ;;  %v873_v2 = vadd.s32 176, %v5291_v9 }
 0x1b8   : > { %4126 = vmatprep.subr.bf16.mxu1 %v1008_v34  ;;  %vm917_vm0 = vmand %vm882_vm1, %vm8233_vm7 }
 0x1b9   : > { %4127 = vmatpush3.bf16.msra.mxu1 %v992_v44  ;;  %vm5663_vm1 = vmand %vm917_vm0, %vm8241_vm9 }
 0x1ba   : > { %2196 = vrot.lane.b32.xlu1 %v5178_v15, %s4926_s23  ;;  %1938 = vrot.lane.b32.xlu0 %v5252_v4, %s4921_s21  ;;  %vm916_vm14 = vmand %vm881_vm8, %vm8442_vm12 }
 0x1bb   : > { %4128 = vmatprep.subr.bf16.mxu1 %v1010_v20  ;;  %v5617_v51 = vpop.permute.xlu1 %1710  ;;  %v1287_v40 = vpop.permute.xlu0 %1286  ;;  %v871_v20 = vadd.s32 112, %v5291_v9  ;;  %vm8443_vm9 = vmmov %vm8442_vm12 }
 0x1bc   : > { %4206 = vmatprep.subr.bf16.mxu0 %v1287_v40  ;;  %v8436_v40 = vmov 0  ;;  %vm8444_vm12 = vmmov %vm8443_vm9 }
 0x1bd   : > { %4129 = vmatpush3.bf16.msra.mxu1 %v5503_v59  ;;  %4207 = vmatpush3.bf16.msra.mxu0 %v5412_v50  ;;  %v8437_v40 = vsel %vm5663_vm1, 4294967295, %v8436_v40  ;;  %vm884_vm7 = vcmp.eq.s32.totalorder %v5298_v11, %v871_v20  ;;  %vm921_vm8 = vmand %vm886_vm13, %vm8444_vm12  ;;  %vm883_vm0 = vcmp.eq.s32.totalorder %v5288_v7, %v871_v20  ;;  %vm885_vm13 = vcmp.eq.s32.totalorder %v5288_v7, %v872_v22 }
 0x1be   : > { %2214 = vrot.lane.b32.xlu1 %v5240_v57, %s4926_s23  ;;  %2060 = vrot.lane.b32.xlu0 %v5190_v23, %s4925_s22  ;;  %8438 = vst [vmem:[#allocation35_spill] sm:$0xff] %v8437_v40  ;;  %vm919_vm3 = vmand %vm884_vm7, %vm8443_vm9 }
 0x1bf   : > { %4208 = vmatprep.subr.bf16.mxu0 %v1289_v6  ;;  %v5626_v44 = vpop.permute.xlu1 %1926  ;;  %v1014_v42 = vpop.permute.xlu0 %1013  ;;  %vm5696_vm6 = vmand %vm916_vm14, %vm8445_vm11 }
 0x1c0   : > { %8431 = vst [vmem:[#allocation32_spill] sm:$0xff] %v5626_v44  ;;  %v8446_v44 = vmov 0  ;;  %vm8449_vm7 = vmmov %vm8445_vm11 }
 0x1c1   : > { %4209 = vmatpush3.bf16.msra.mxu0 %v5401_v43  ;;  %v8432_v43 = vmov 0  ;;  %v8447_v44 = vsel %vm5696_vm6, 4294967295, %v8446_v44  ;;  %vm5704_vm9 = vmand %vm919_vm3, %vm8449_vm7  ;;  %vm888_vm3 = vcmp.eq.s32.totalorder %v5298_v11, %v873_v2 }
 0x1c2   : > { %2198 = vrot.lane.b32.xlu1 %v5192_v25, %s4926_s23  ;;  %2062 = vrot.lane.b32.xlu0 %v5204_v31, %s4925_s22  ;;  %v8433_v43 = vsel %vm5652_vm15, 4294967295, %v8432_v43  ;;  %8448 = vst [vmem:[#allocation36_spill] sm:$0xff] %v8447_v44  ;;  %v8451_v35 = vsel %vm5704_vm9, 4294967295, %v8450_v35  ;;  %vm8453_vm11 = vmmov %vm8449_vm7  ;;  %vm8482_vm9 = vcmp.ge.s32.totalorder %v5291_v9, 0  ;;  %v8508_v44 = vmov 0 }
 0x1c3   : > { %v5636_v59 = vpop.permute.xlu1 %1500  ;;  %v5638_v50 = vpop.permute.xlu0 %1292  ;;  %8434 = vst [vmem:[#allocation33_spill] sm:$0xff] %v8433_v43  ;;  %8452 = vst [vmem:[#allocation37_spill] sm:$0xff] %v8451_v35  ;;  %v8499_v43 = vmov 0 }
 0x1c4   : > { %vm5715_vm14 = vmand %vm921_vm8, %vm8453_vm11 }
 0x1c5   : > { %vm5726_vm7 = vmand %vm883_vm0, %vm8444_vm12  ;;  %vm8466_vm0 = vcmp.lt.s32.totalorder %v5291_v9, 16 }
 0x1c6   : > { %2216 = vrot.lane.b32.xlu1 %v5238_v54, %s4926_s23  ;;  %2080 = vrot.lane.b32.xlu0 %v5250_v0, %s4925_s22  ;;  %vm8460_vm8 = vmmov %vm8444_vm12 }
 0x1c7   : > { %v5657_v6 = vpop.permute.xlu1 %1498  ;;  %v5659_v34 = vpop.permute.xlu0 %1508  ;;  %vm5733_vm11 = vmand %vm885_vm13, %vm8460_vm8  ;;  %vm889_vm13 = vcmp.eq.s32.totalorder %v5288_v7, %v874_v14 }
 0x1c8   : > { %8435 = vst [vmem:[#allocation34_spill] sm:$0xff] %v5659_v34  ;;  %vm8463_vm12 = vmmov %vm8460_vm8 }
 0x1c9   : > { %vm5747_vm5 = vmand %vm888_vm3, %vm8463_vm12  ;;  %vm887_vm12 = vcmp.eq.s32.totalorder %v5288_v7, %v873_v2  ;;  %v8261_v2 = vmov 1.0|1.0  }
 0x1ca   : > { %2200 = vrot.lane.b32.xlu1 %v5190_v23, %s4926_s23  ;;  %2064 = vrot.lane.b32.xlu0 %v5202_v29, %s4925_s22  ;;  %vm925_vm3 = vmand %vm890_vm2, %vm8460_vm8 }
 0x1cb   : > { %v5689_v46 = vpop.permute.xlu1 %1504  ;;  %v1012_v24 = vpop.permute.xlu0 %1011  ;;  %vm5774_vm4 = vmand %vm5726_vm7, %vm8466_vm0 }
 0x1cc   : > { %4130 = vmatprep.subr.bf16.mxu1 %v1012_v24  ;;  %v8454_v24 = vmov 0  ;;  %v8468_v5 = vsel %vm5774_vm4, 4294967295, %v8467_v5  ;;  %vm8470_vm2 = vmmov %vm8466_vm0 }
 0x1cd   : > { %4131 = vmatpush3.bf16.msra.mxu1 %v5558_v30  ;;  %v8455_v24 = vsel %vm5715_vm14, 4294967295, %v8454_v24  ;;  %8469 = vst [vmem:[#allocation40_spill] sm:$0xff] %v8468_v5  ;;  %vm5786_vm8 = vmand %vm5733_vm11, %vm8470_vm2 }
 0x1ce   : > { %2346 = vrot.lane.b32.xlu1 %v5216_v41, %s4927_s24  ;;  %2202 = vrot.lane.b32.xlu0 %v5204_v31, %s4926_s23  ;;  %8456 = vst [vmem:[#allocation38_spill] sm:$0xff] %v8455_v24  ;;  %vm5803_vm11 = vmand %vm5747_vm5, %vm8466_vm0 }
 0x1cf   : > { %4132 = vmatprep.subr.bf16.mxu1 %v1014_v42  ;;  %v5720_v30 = vpop.permute.xlu1 %1502  ;;  %v5722_v20 = vpop.permute.xlu0 %1698  ;;  %v5738_v42 = vadd.s32 144, %v5471_v18  ;;  %v8476_v62 = vsel %vm5803_vm11, 4294967295, %v8475_v62  ;;  %vm8478_vm2 = vmmov %vm8466_vm0 }
 0x1d0   : > { %8457 = vst [vmem:[#allocation39_spill] sm:$0xff] %v5722_v20  ;;  %8477 = vst [vmem:[#allocation42_spill] sm:$0xff] %v8476_v62  ;;  %v1166_v62 = vadd.s32 112, %v5471_v18 }
 0x1d1   : > { %4133 = vmatpush3.bf16.msra.mxu1 %v5552_v33  ;;  %vm5809_vm7 = vmand %vm925_vm3, %vm8478_vm2  ;;  %vm8490_vm0 = vcmp.eq.s32.totalorder %v5288_v7, %v5738_v42 }
 0x1d2   : > { %2330 = vrot.lane.b32.xlu1 %v5170_v10, %s4927_s24  ;;  %2078 = vrot.lane.b32.xlu0 %v5252_v4, %s4925_s22  ;;  %vm5815_vm14 = vmand %vm887_vm12, %vm8482_vm9  ;;  %vm8489_vm12 = vcmp.ge.s32.totalorder %v5471_v18, 0 }
 0x1d3   : > { %4158 = vmatprep.subr.bf16.mxu1 %v5216_v41  ;;  %v5766_v33 = vpop.permute.xlu1 %1910  ;;  %v5768_v34 = vpop.permute.xlu0 %1716  ;;  %v8471_v41 = vmov 0  ;;  %vm8485_vm5 = vmmov %vm8482_vm9  ;;  %vm778_vm9 = vcmp.eq.s32.totalorder %v5298_v11, %v5415_v52  ;;  %v8496_v52 = vmov 0 }
 0x1d4   : > { %3890 = vmatmul.mubr.msk.bf16.vlgmr.msra.gmra.mrb[32].mxu1 %vm5672_vm10, %v5317_v19  ;;  %v8472_v41 = vsel %vm5786_vm8, 4294967295, %v8471_v41  ;;  %vm8474_vm10 = vmpackc.low %vm5663_vm1, %vm5652_vm15  ;;  %vm8492_vm15 = vcmp.ge.s32.totalorder %v5404_v45, 0  ;;  %vm8507_vm1 = vcmp.lt.s32.totalorder %v5291_v9, 16 }
 0x1d5   : > { %8473 = vst [vmem:[#allocation41_spill] sm:$0xff] %v8472_v41  ;;  %4159 = vmatpush3.bf16.msra.mxu1 %v5170_v10  ;;  %3892 = vmatprep.mubr.msk.bf16.mxu1 %vm8474_vm10, %v8261_v2  ;;  %v8479_v10 = vmov 0  ;;  %vm1182_vm10 = vcmp.eq.s32.totalorder %v5288_v7, %v5752_v36  ;;  %vm5827_vm3 = vmand %vm889_vm13, %vm8485_vm5  ;;  %v774_v41 = vadd.s32 208, %v5404_v45 }
 0x1d6   : > { %v8480_v10 = vsel %vm5809_vm7, 4294967295, %v8479_v10  ;;  %2348 = vrot.lane.b32.xlu1 %v5214_v38, %s4927_s24  ;;  %2220 = vrot.lane.b32.xlu0 %v5250_v0, %s4926_s23  ;;  %vm1215_vm2 = vmand %vm8490_vm0, %vm8489_vm12  ;;  %vm8502_vm0 = vnez %v8407_v26 }
 0x1d7   : > { %8481 = vst [vmem:[#allocation43_spill] sm:$0xff] %v8480_v10  ;;  %4160 = vmatprep.subr.bf16.mxu1 %v5214_v38  ;;  %v5834_v20 = vpop.permute.xlu1 %1928  ;;  %v5836_v22 = vpop.permute.xlu0 %1700  ;;  %vm8491_vm13 = vmmov %vm8489_vm12  ;;  %v772_v38 = vadd.s32 144, %v5404_v45 }
 0x1d8   : > { %8488 = vst [vmem:[#allocation44_spill] sm:$0xff] %v5836_v22  ;;  %vm1217_vm5 = vmand %vm1182_vm10, %vm8491_vm13  ;;  %vm8495_vm10 = vcmp.lt.s32.totalorder %v5471_v18, 16  ;;  %v770_v22 = vadd.s32 80, %v5404_v45 }
 0x1d9   : > { %4161 = vmatpush3.bf16.msra.mxu1 %v5168_v8  ;;  %vm5852_vm7 = vmand %vm778_vm9, %vm8492_vm15 }
 0x1da   : > { %2332 = vrot.lane.b32.xlu1 %v5168_v8, %s4927_s24  ;;  %2218 = vrot.lane.b32.xlu0 %v5252_v4, %s4926_s23  ;;  %vm5862_vm12 = vmand %vm1215_vm2, %vm8495_vm10  ;;  %v8501_v8 = vmov 1.0|1.0  }
 0x1db   : > { %v8497_v52 = vsel %vm5862_vm12, 4294967295, %v8496_v52  ;;  %4162 = vmatprep.subr.bf16.mxu1 %v5228_v49  ;;  %v5867_v2 = vpop.permute.xlu1 %1912  ;;  %v5869_v40 = vpop.permute.xlu0 %1718  ;;  %vm8498_vm15 = vmmov %vm8495_vm10  ;;  %vm8505_vm10 = vnez %v8451_v35 }
 0x1dc   : > { %vm5873_vm9 = vmand %vm1217_vm5, %vm8498_vm15  ;;  %vm8504_vm5 = vnez %v8455_v24  ;;  %v8512_v24 = vmov 0 }
 0x1dd   : > { %v8500_v43 = vsel %vm5873_vm9, 4294967295, %v8499_v43  ;;  %vm8503_vm2 = vmpackc.low %vm5696_vm6, %vm8502_vm0  ;;  %4163 = vmatpush3.bf16.msra.mxu1 %v5180_v17  ;;  %vm782_vm6 = vcmp.eq.s32.totalorder %v5298_v11, %v770_v22  ;;  %vm781_vm9 = vcmp.eq.s32.totalorder %v5288_v7, %v770_v22 }
 0x1de   : > { %3894 = vmatmul.mubr.msk.bf16.gmra.mrb[36].mxu1 %vm8503_vm2, %v8501_v8  ;;  %vm8506_vm15 = vmpackc.low %vm8504_vm5, %vm8505_vm10  ;;  %2334 = vrot.lane.b32.xlu1 %v5180_v17, %s4927_s24  ;;  %v8517_v17 = vmov 0 }
 0x1df   : > { %3896 = vmatprep.mubr.msk.bf16.mxu1 %vm8506_vm15, %v8501_v8  ;;  %vm5899_vm2 = vmand %vm5815_vm14, %vm8507_vm1  ;;  %2204 = vrot.lane.b32.xlu0 %v5202_v29, %s4926_s23  ;;  %v5918_v14 = vpop.permute.xlu1 %1930  ;;  %v5920_v26 = vpop.permute.xlu0 %1702  ;;  %vm8516_vm14 = vcmp.lt.s32.totalorder %v5404_v45, 16 }
 0x1e0   : > { %v8509_v44 = vsel %vm5899_vm2, 4294967295, %v8508_v44  ;;  %vm8511_vm13 = vmmov %vm8507_vm1  ;;  %vm780_vm1 = vcmp.eq.s32.totalorder %v5298_v11, %v5422_v53  ;;  %4164 = vmatprep.subr.bf16.mxu1 %v5226_v47  ;;  %8515 = vst [vmem:[#allocation47_spill] sm:$0xff] %v5920_v26  ;;  %v771_v53 = vadd.s32 112, %v5404_v45 }
 0x1e1   : > { %8510 = vst [vmem:[#allocation45_spill] sm:$0xff] %v8509_v44  ;;  %vm5911_vm5 = vmand %vm5827_vm3, %vm8511_vm13  ;;  %vm8520_vm3 = vnez %v8480_v10  ;;  %4165 = vmatpush3.bf16.msra.mxu1 %v5178_v15  ;;  %vm8522_vm13 = vmmov 1  }
 0x1e2   : > { %v8513_v24 = vsel %vm5911_vm5, 4294967295, %v8512_v24  ;;  %vm5926_vm15 = vmand %vm5852_vm7, %vm8516_vm14  ;;  %vm8521_vm7 = vcmp.ge.s32.totalorder %v5404_v45, 0  ;;  %2336 = vrot.lane.b32.xlu1 %v5178_v15, %s4927_s24  ;;  %4166 = vmatprep.subr.bf16.mxu1 %v5240_v57  ;;  %v8528_v15 = vmov 0 }
 0x1e3   : > { %8514 = vst [vmem:[#allocation46_spill] sm:$0xff] %v8513_v24  ;;  %v8518_v17 = vsel %vm5926_vm15, 4294967295, %v8517_v17  ;;  %vm815_vm14 = vmand %vm780_vm1, %vm8521_vm7  ;;  %2350 = vrot.lane.b32.xlu0 %v5228_v49, %s4927_s24  ;;  %v5957_v35 = vpop.permute.xlu1 %1914  ;;  %v5959_v26 = vpop.permute.xlu0 %1720  ;;  %v8532_v49 = vmov 0 }
 0x1e4   : > { %8519 = vst [vmem:[#allocation48_spill] sm:$0xff] %v8518_v17  ;;  %vm5950_vm10 = vmpackc.low %vm5926_vm15, %vm8522_vm13  ;;  %vm8527_vm15 = vcmp.lt.s32.totalorder %v5404_v45, 16 }
 0x1e5   : > { %v8524_v61 = vsel %vm5950_vm10, 4294967295, %v8523_v61  ;;  %vm8525_vm1 = vmmov %vm8521_vm7  ;;  %vm784_vm10 = vcmp.eq.s32.totalorder %v5298_v11, %v771_v53  ;;  %4167 = vmatpush3.bf16.msra.mxu1 %v5192_v25 }
 0x1e6   : > { %vm817_vm7 = vmand %vm782_vm6, %vm8525_vm1  ;;  %2338 = vrot.lane.b32.xlu1 %v5192_v25, %s4927_s24  ;;  %4168 = vmatprep.subr.bf16.mxu1 %v5238_v54  ;;  %v773_v25 = vadd.s32 176, %v5404_v45 }
 0x1e7   : > { %vm8526_vm0 = vmpackc.low %vm5786_vm8, %vm5774_vm4  ;;  %2352 = vrot.lane.b32.xlu0 %v5226_v47, %s4927_s24  ;;  %vm786_vm8 = vcmp.eq.s32.totalorder %v5298_v11, %v772_v38  ;;  %v5997_v22 = vpop.permute.xlu1 %1932  ;;  %v5999_v10 = vpop.permute.xlu0 %1704  ;;  %v8537_v47 = vmov 0 }
 0x1e8   : > { %3898 = vmatmul.mubr.msk.bf16.gmra.mrb[40].mxu1 %vm8526_vm0, %v8501_v8  ;;  %vm5971_vm12 = vmand %vm815_vm14, %vm8527_vm15 }
 0x1e9   : > { %v8529_v15 = vsel %vm5971_vm12, 4294967295, %v8528_v15  ;;  %vm8531_vm6 = vmpackc.low %vm8520_vm3, %vm5803_vm11  ;;  %4169 = vmatpush3.bf16.msra.mxu1 %v5190_v23  ;;  %vm790_vm12 = vcmp.eq.s32.totalorder %v5298_v11, %v774_v41 }
 0x1ea   : > { %8530 = vst [vmem:[#allocation49_spill] sm:$0xff] %v8529_v15  ;;  %3900 = vmatprep.mubr.msk.bf16.mxu1 %vm8531_vm6, %v8501_v8  ;;  %vm816_vm0 = vmand %vm781_vm9, %vm8525_vm1  ;;  %2340 = vrot.lane.b32.xlu1 %v5190_v23, %s4927_s24 }
 0x1eb   : > { %vm5991_vm14 = vmand %vm817_vm7, %vm8527_vm15  ;;  %vm783_vm7 = vcmp.eq.s32.totalorder %v5288_v7, %v771_v53  ;;  %2354 = vrot.lane.b32.xlu0 %v5240_v57, %s4927_s24  ;;  %v8544_v53 = vmov 0  ;;  %4170 = vmatprep.subr.bf16.mxu1 %v5252_v4  ;;  %v6038_v5 = vpop.permute.xlu1 %1916  ;;  %v6040_v23 = vpop.permute.xlu0 %1706  ;;  %v8549_v57 = vmov 0 }
 0x1ec   : > { %v8533_v49 = vsel %vm5991_vm14, 4294967295, %v8532_v49  ;;  %vm8535_vm9 = vmmov %vm8525_vm1 }
 0x1ed   : > { %8534 = vst [vmem:[#allocation50_spill] sm:$0xff] %v8533_v49  ;;  %vm819_vm6 = vmand %vm784_vm10, %vm8535_vm9  ;;  %4171 = vmatpush3.bf16.msra.mxu1 %v5204_v31 }
 0x1ee   : > { %vm8536_vm1 = vmmov %vm8527_vm15  ;;  %vm8540_vm15 = vnez %v8412_v1  ;;  %2342 = vrot.lane.b32.xlu1 %v5204_v31, %s4927_s24  ;;  %4172 = vmatprep.subr.bf16.mxu1 %v5250_v0  ;;  %v8559_v31 = vmov 0  ;;  %v8564_v1 = vmov 0 }
 0x1ef   : > { %vm6006_vm3 = vmand %vm816_vm0, %vm8536_vm1  ;;  %2356 = vrot.lane.b32.xlu0 %v5238_v54, %s4927_s24  ;;  %v6078_v24 = vpop.permute.xlu1 %1934  ;;  %v6080_v44 = vpop.permute.xlu0 %1724  ;;  %v1383_v54 = vadd.s32 32, %v5404_v45 }
 0x1f0   : > { %v8538_v47 = vsel %vm6006_vm3, 4294967295, %v8537_v47  ;;  %vm6016_vm11 = vmpackc.low %vm8540_vm15, %vm8522_vm13  ;;  %vm785_vm15 = vcmp.eq.s32.totalorder %v5288_v7, %v772_v38  ;;  %vm788_vm13 = vcmp.eq.s32.totalorder %v5298_v11, %v773_v25  ;;  %v8554_v38 = vmov 0 }
 0x1f1   : > { %8539 = vst [vmem:[#allocation51_spill] sm:$0xff] %v8538_v47  ;;  %vm8543_vm10 = vmmov %vm8535_vm9  ;;  %4173 = vmatpush3.bf16.msra.mxu1 %v5202_v29  ;;  %v8662_v47 = vmov 0 }
 0x1f2   : > { %vm821_vm9 = vmand %vm786_vm8, %vm8543_vm10  ;;  %2344 = vrot.lane.b32.xlu1 %v5202_v29, %s4927_s24  ;;  %4238 = vmatprep.subr.bf16.mxu1 %v5611_v27  ;;  %v8604_v27 = vmov 0 }
 0x1f3   : > { %vm6032_vm4 = vmand %vm819_vm6, %vm8536_vm1  ;;  %2358 = vrot.lane.b32.xlu0 %v5252_v4, %s4927_s24  ;;  %v6122_v29 = vpop.permute.xlu0 %1708  ;;  %v8594_v4 = vmov 0 }
 0x1f4   : > { %v8545_v53 = vsel %vm6032_vm4, 4294967295, %v8544_v53  ;;  %vm8547_vm8 = vmmov %vm8543_vm10  ;;  %8570 = vst [vmem:[#allocation56_spill] sm:$0xff] %v6122_v29  ;;  %vm1393_vm4 = vcmp.eq.s32.totalorder %v5298_v11, %v1383_v54  ;;  %v8648_v29 = vmov 0 }
 0x1f5   : > { %8546 = vst [vmem:[#allocation52_spill] sm:$0xff] %v8545_v53  ;;  %vm818_vm10 = vmand %vm783_vm7, %vm8547_vm8  ;;  %vm8552_vm7 = vnez %v8524_v61  ;;  %v1165_v61 = vadd.s32 80, %v5471_v18 }
 0x1f6   : > { %vm8548_vm6 = vmpackc.low %vm5911_vm5, %vm5899_vm2 }
 0x1f7   : > { %3902 = vmatmul.mubr.msk.bf16.gmra.mrb[44].mxu1 %vm8548_vm6, %v8501_v8  ;;  %vm6053_vm0 = vmand %vm821_vm9, %vm8536_vm1  ;;  %2360 = vrot.lane.b32.xlu0 %v5250_v0, %s4927_s24  ;;  %v6170_v17 = vpop.permute.xlu0 %1922  ;;  %v1384_v0 = vadd.s32 64, %v5404_v45 }
 0x1f8   : > { %v8550_v57 = vsel %vm6053_vm0, 4294967295, %v8549_v57  ;;  %3905 = vmatprep.mubr.msk.bf16.mxu1 %vm8552_vm7, %v5317_v19  ;;  %vm820_vm14 = vmand %vm785_vm15, %vm8547_vm8  ;;  %8588 = vst [vmem:[#allocation58_spill] sm:$0xff] %v6170_v17  ;;  %v8642_v17 = vmov 0 }
 0x1f9   : > { %8551 = vst [vmem:[#allocation53_spill] sm:$0xff] %v8550_v57  ;;  %vm8553_vm9 = vmmov %vm8536_vm1 }
 0x1fa   : > { %vm6070_vm6 = vmand %vm818_vm10, %vm8553_vm9 }
 0x1fb   : > { %v8555_v38 = vsel %vm6070_vm6, 4294967295, %v8554_v38  ;;  %vm8556_vm1 = vmmov %vm8547_vm8 }
 0x1fc   : > { %vm823_vm5 = vmand %vm788_vm13, %vm8556_vm1  ;;  %vm8562_vm13 = vnez %v8415_v16 }
 0x1fd   : > { %vm8557_vm15 = vmmov %vm8556_vm1 }
 0x1fe   : > { %vm825_vm7 = vmand %vm790_vm12, %vm8557_vm15 }
 0x1ff   : > { %vm8558_vm8 = vmmov %vm8553_vm9  ;;  %vm787_vm9 = vcmp.eq.s32.totalorder %v5288_v7, %v773_v25  ;;  %v8567_v25 = vmov 0  ;;  %3908 = vmatmul.mubr.msk.bf16.vlgmr.msra.gmra.mrb[48].mxu1 %vm6016_vm11, %v5317_v19 }
 0x200   : > { %vm6086_vm10 = vmand %vm820_vm14, %vm8558_vm8  ;;  %vm789_vm14 = vcmp.eq.s32.totalorder %v5288_v7, %v774_v41  ;;  %v6120_v41 = vpop.permute.xlu1 %1918  ;;  %4239 = vmatpush3.bf16.msra.mxu1 %v5410_v48  ;;  %v8582_v48 = vmov 0 }
 0x201   : > { %v8560_v31 = vsel %vm6086_vm10, 4294967295, %v8559_v31  ;;  %vm8563_vm2 = vmmov %vm8558_vm8  ;;  %4240 = vmatprep.subr.bf16.mxu1 %v5579_v39  ;;  %v8590_v39 = vmov 0  ;;  %vm8620_vm10 = vnez %v8550_v57 }
 0x202   : > { %8561 = vst [vmem:[#allocation54_spill] sm:$0xff] %v8560_v31  ;;  %vm6099_vm12 = vmand %vm823_vm5, %vm8563_vm2  ;;  %vm1177_vm5 = vcmp.eq.s32.totalorder %v5298_v11, %v1165_v61 }
 0x203   : > { %v8565_v1 = vsel %vm6099_vm12, 4294967295, %v8564_v1  ;;  %vm8566_vm8 = vmmov %vm8563_vm2 }
 0x204   : > { %vm6114_vm1 = vmand %vm825_vm7, %vm8566_vm8  ;;  %4241 = vmatpush3.bf16.msra.mxu1 %v5383_v32  ;;  %v8601_v32 = vmov 0 }
 0x205   : > { %v8568_v25 = vsel %vm6114_vm1, 4294967295, %v8567_v25  ;;  %vm8571_vm2 = vmmov %vm8557_vm15  ;;  %vm1391_vm15 = vcmp.eq.s32.totalorder %v5298_v11, %v5404_v45  ;;  %vm8578_vm1 = vcmp.ge.s32.totalorder %v5471_v18, 0  ;;  %4242 = vmatprep.subr.bf16.mxu1 %v5657_v6 }
 0x206   : > { %8569 = vst [vmem:[#allocation55_spill] sm:$0xff] %v8568_v25  ;;  %vm822_vm12 = vmand %vm787_vm9, %vm8571_vm2  ;;  %vm8575_vm9 = vnez %v8533_v49  ;;  %v6232_v49 = vpop.permute.xlu0 %1940 }
 0x207   : > { %vm8572_vm7 = vmmov %vm8571_vm2  ;;  %vm8576_vm2 = vnez %v8529_v15  ;;  %v6168_v15 = vpop.permute.xlu1 %1936  ;;  %8610 = vst [vmem:[#allocation62_spill] sm:$0xff] %v6232_v49  ;;  %v8673_v49 = vmov 0 }
 0x208   : > { %vm6133_vm8 = vmand %vm789_vm14, %vm8572_vm7  ;;  %vm8581_vm14 = vcmp.lt.s32.totalorder %v5404_v45, 16  ;;  %4243 = vmatpush3.bf16.msra.mxu1 %v5491_v60  ;;  %v8627_v60 = vmov 0 }
 0x209   : > { %vm8577_vm0 = vmpackc.low %vm8575_vm9, %vm8576_vm2  ;;  %4244 = vmatprep.subr.bf16.mxu1 %v5636_v59 }
 0x20a   : > { %3910 = vmatprep.mubr.msk.bf16.mxu1 %vm8577_vm0, %v8501_v8  ;;  %vm6147_vm11 = vmand %vm1177_vm5, %vm8578_vm1  ;;  %vm8585_vm0 = vcmp.ge.s32.totalorder %v5404_v45, 0  ;;  %vm1176_vm1 = vcmp.eq.s32.totalorder %v5288_v7, %v1165_v61  ;;  %v1385_v61 = vadd.s32 96, %v5404_v45  ;;  %v6290_v59 = vpop.permute.xlu0 %1924 }
 0x20b   : > { %vm6157_vm7 = vmand %vm822_vm12, %vm8581_vm14  ;;  %vm1390_vm12 = vcmp.eq.s32.totalorder %v5288_v7, %v5404_v45  ;;  %v6230_v6 = vpop.permute.xlu1 %1920  ;;  %8634 = vst [vmem:[#allocation65_spill] sm:$0xff] %v6290_v59  ;;  %v1387_v59 = vadd.s32 160, %v5404_v45 }
 0x20c   : > { %v8583_v48 = vsel %vm6157_vm7, 4294967295, %v8582_v48  ;;  %vm6163_vm9 = vmand %vm1391_vm15, %vm8585_vm0  ;;  %8609 = vst [vmem:[#allocation61_spill] sm:$0xff] %v6230_v6  ;;  %4245 = vmatpush3.bf16.msra.mxu1 %v5456_v3  ;;  %v8651_v6 = vmov 0  ;;  %v8654_v3 = vmov 0 }
 0x20d   : > { %8584 = vst [vmem:[#allocation57_spill] sm:$0xff] %v8583_v48  ;;  %vm8589_vm5 = vmmov %vm8585_vm0  ;;  %vm1392_vm0 = vcmp.eq.s32.totalorder %v5288_v7, %v1383_v54  ;;  %v8636_v54 = vmov 0  ;;  %4246 = vmatprep.subr.bf16.mxu1 %v5720_v30 }
 0x20e   : > { %vm1425_vm2 = vmand %vm1393_vm4, %vm8589_vm5  ;;  %vm8593_vm5 = vcmp.lt.s32.totalorder %v5471_v18, 16  ;;  %vm8600_vm4 = vcmp.lt.s32.totalorder %v5404_v45, 16  ;;  %v1291_v57 = vpop.permute.xlu0 %1290 }
 0x20f   : > { %vm6181_vm15 = vmand %vm6133_vm8, %vm8581_vm14  ;;  %vm8597_vm8 = vcmp.ge.s32.totalorder %v5471_v18, 0  ;;  %v6288_v16 = vpop.permute.xlu1 %2066  ;;  %4210 = vmatprep.subr.bf16.mxu0 %v1291_v57  ;;  %v8799_v57 = vld [vmem:[#allocation32_spill] sm:$0xff] }
 0x210   : > { %v8591_v39 = vsel %vm6181_vm15, 4294967295, %v8590_v39  ;;  %vm6196_vm7 = vmand %vm6147_vm11, %vm8593_vm5  ;;  %vm1179_vm15 = vcmp.eq.s32.totalorder %v5298_v11, %v1166_v62  ;;  %8633 = vst [vmem:[#allocation64_spill] sm:$0xff] %v6288_v16  ;;  %v1386_v16 = vadd.s32 128, %v5404_v45  ;;  %4211 = vmatpush3.bf16.msra.mxu0 %v5458_v12  ;;  %4247 = vmatpush3.bf16.msra.mxu1 %v5546_v28  ;;  %v8689_v12 = vmov 0 }
 0x211   : > { %8592 = vst [vmem:[#allocation59_spill] sm:$0xff] %v8591_v39  ;;  %v8595_v4 = vsel %vm6196_vm7, 4294967295, %v8594_v4  ;;  %vm6202_vm14 = vmand %vm1176_vm1, %vm8597_vm8  ;;  %vm8606_vm1 = vcmp.ge.s32.totalorder %v5404_v45, 0  ;;  %vm1181_vm7 = vcmp.eq.s32.totalorder %v5298_v11, %v5738_v42  ;;  %v1388_v42 = vadd.s32 192, %v5404_v45  ;;  %4212 = vmatprep.subr.bf16.mxu0 %v5638_v50  ;;  %4248 = vmatprep.subr.bf16.mxu1 %v5689_v46 }
 0x212   : > { %8596 = vst [vmem:[#allocation60_spill] sm:$0xff] %v8595_v4  ;;  %vm6212_vm6 = vmand %vm6163_vm9, %vm8600_vm4  ;;  %v6441_v50 = vadd.s32 224, %v5404_v45  ;;  %v8732_v28 = vmov 0 }
 0x213   : > { %v8602_v32 = vsel %vm6212_vm6, 4294967295, %v8601_v32  ;;  %vm8603_vm11 = vmmov %vm8600_vm4  ;;  %vm8617_vm6 = vcmp.ge.s32.totalorder %v5471_v18, 0  ;;  %v6382_v30 = vpop.permute.xlu1 %2050 }
 0x214   : > { %vm6218_vm5 = vmand %vm1425_vm2, %vm8603_vm11  ;;  %vm1395_vm2 = vcmp.eq.s32.totalorder %v5298_v11, %v1384_v0  ;;  %vm8630_vm11 = vcmp.ge.s32.totalorder %v5404_v45, 0  ;;  %4213 = vmatpush3.bf16.msra.mxu0 %v5426_v58  ;;  %4249 = vmatpush3.bf16.msra.mxu1 %v5526_v63  ;;  %v8712_v58 = vmov 0  ;;  %v8759_v63 = vmov 0 }
 0x215   : > { %v8605_v27 = vsel %vm6218_vm5, 4294967295, %v8604_v27  ;;  %vm6224_vm8 = vmand %vm1390_vm12, %vm8606_vm1  ;;  %4278 = vmatprep.subr.bf16.mxu0 %v5617_v51  ;;  %v8728_v51 = vmov 0 }
 0x216   : > { %vm8611_vm9 = vmmov %vm8606_vm1  ;;  %vm8616_vm1 = vnez %v8568_v25  ;;  %v6468_v25 = vpop.permute.xlu0 %2070 }
 0x217   : > { %vm6236_vm4 = vmand %vm1392_vm0, %vm8611_vm9  ;;  %vm1397_vm9 = vcmp.eq.s32.totalorder %v5298_v11, %v1385_v61  ;;  %v6443_v46 = vpop.permute.xlu1 %2068 }
 0x218   : > { %vm8614_vm12 = vmpackc.low %vm6006_vm3, %vm8562_vm13 }
 0x219   : > { %3912 = vmatmul.mubr.msk.bf16.gmra.mrb[52].mxu1 %vm8614_vm12, %v8501_v8  ;;  %vm6253_vm0 = vmand %vm1179_vm15, %vm8617_vm6  ;;  %vm8621_vm12 = vnez %v8545_v53  ;;  %v1169_v53 = vadd.s32 208, %v5471_v18 }
 0x21a   : > { %vm8622_vm3 = vmpackc.low %vm8620_vm10, %vm8621_vm12  ;;  %vm8647_vm12 = vnez %v8425_v37  ;;  %v8697_v37 = vmov 0 }
 0x21b   : > { %3914 = vmatprep.mubr.msk.bf16.mxu1 %vm8622_vm3, %v8501_v8  ;;  %vm8623_vm13 = vmmov %vm8617_vm6  ;;  %vm8626_vm6 = vcmp.lt.s32.totalorder %v5471_v18, 16 }
 0x21c   : > { %vm6267_vm5 = vmand %vm1181_vm7, %vm8623_vm13  ;;  %vm8635_vm13 = vcmp.lt.s32.totalorder %v5404_v45, 16 }
 0x21d   : > { %vm6276_vm15 = vmand %vm6202_vm14, %vm8626_vm6 }
 0x21e   : > { %v8628_v60 = vsel %vm6276_vm15, 4294967295, %v8627_v60  ;;  %vm6282_vm10 = vmand %vm1395_vm2, %vm8630_vm11  ;;  %vm8696_vm15 = vcmp.lt.s32.totalorder %v5404_v45, 16 }
 0x21f   : > { %8629 = vst [vmem:[#allocation63_spill] sm:$0xff] %v8628_v60  ;;  %vm6296_vm7 = vmand %vm6224_vm8, %vm8635_vm13 }
 0x220   : > { %v8637_v54 = vsel %vm6296_vm7, 4294967295, %v8636_v54  ;;  %vm8638_vm14 = vmmov %vm8630_vm11  ;;  %vm8646_vm11 = vmmov 1  }
 0x221   : > { %vm6302_vm2 = vmand %vm1397_vm9, %vm8638_vm14  ;;  %vm8678_vm9 = vnez %v8421_v13  ;;  %v8770_v13 = vmov 0 }
 0x222   : > { %vm8641_vm6 = vmmov %vm8635_vm13  ;;  %vm8679_vm13 = vnez %v8595_v4  ;;  %v6637_v4 = vadd.s32 96, %v5291_v9 }
 0x223   : > { %vm6312_vm3 = vmand %vm6236_vm4, %vm8641_vm6  ;;  %vm8650_vm4 = vcmp.lt.s32.totalorder %v5471_v18, 16 }
 0x224   : > { %v8643_v17 = vsel %vm6312_vm3, 4294967295, %v8642_v17  ;;  %vm6326_vm7 = vmpackc.low %vm8647_vm12, %vm8646_vm11  ;;  %vm8657_vm11 = vcmp.ge.s32.totalorder %v5471_v18, 0  ;;  %vm8658_vm12 = vcmp.eq.s32.totalorder %v5288_v7, %v1166_v62  ;;  %v8665_v62 = vmov 0 }
 0x225   : > { %v8649_v29 = vsel %vm6326_vm7, 4294967295, %v8648_v29  ;;  %vm6334_vm6 = vmand %vm6253_vm0, %vm8650_vm4  ;;  %vm1183_vm0 = vcmp.eq.s32.totalorder %v5298_v11, %v5752_v36  ;;  %v8704_v36 = vmov 0 }
 0x226   : > { %v8652_v6 = vsel %vm6334_vm6, 4294967295, %v8651_v6  ;;  %vm8653_vm8 = vmmov %vm8650_vm4  ;;  %vm8661_vm4 = vcmp.lt.s32.totalorder %v5404_v45, 16 }
 0x227   : > { %vm6342_vm14 = vmand %vm6267_vm5, %vm8653_vm8 }
 0x228   : > { %v8655_v3 = vsel %vm6342_vm14, 4294967295, %v8654_v3  ;;  %vm6350_vm7 = vmand %vm8658_vm12, %vm8657_vm11  ;;  %vm8667_vm11 = vcmp.ge.s32.totalorder %v5404_v45, 0  ;;  %vm8668_vm14 = vcmp.eq.s32.totalorder %v5288_v7, %v1384_v0  ;;  %v8721_v0 = vmov 0 }
 0x229   : > { %8656 = vst [vmem:[#allocation66_spill] sm:$0xff] %v8655_v3  ;;  %vm6361_vm5 = vmand %vm6282_vm10, %vm8661_vm4  ;;  %vm1185_vm10 = vcmp.eq.s32.totalorder %v5298_v11, %v1169_v53 }
 0x22a   : > { %v8663_v47 = vsel %vm6361_vm5, 4294967295, %v8662_v47  ;;  %vm8664_vm8 = vmmov %vm8661_vm4 }
 0x22b   : > { %vm6369_vm12 = vmand %vm6302_vm2, %vm8664_vm8  ;;  %vm8672_vm2 = vcmp.eq.s32.totalorder %v5288_v7, %v1385_v61  ;;  %v6544_v61 = vpop.permute.xlu1 %2052 }
 0x22c   : > { %v8666_v62 = vsel %vm6369_vm12, 4294967295, %v8665_v62  ;;  %vm6377_vm6 = vmand %vm8668_vm14, %vm8667_vm11  ;;  %vm1399_vm12 = vcmp.eq.s32.totalorder %v5298_v11, %v1386_v16  ;;  %vm8675_vm14 = vnez %v8560_v31  ;;  %v6480_v31 = vadd.s32 32, %v5291_v9 }
 0x22d   : > { %vm8671_vm4 = vmmov %vm8667_vm11  ;;  %vm8676_vm11 = vnez %v8555_v38 }
 0x22e   : > { %vm6388_vm8 = vmand %vm8672_vm2, %vm8671_vm4  ;;  %vm8680_vm4 = vcmp.ge.s32.totalorder %v5471_v18, 0 }
 0x22f   : > { %v8674_v49 = vsel %vm6388_vm8, 4294967295, %v8673_v49  ;;  %vm8677_vm5 = vmpackc.low %vm8675_vm14, %vm8676_vm11  ;;  %vm8691_vm11 = vcmp.ge.s32.totalorder %v5404_v45, 0 }
 0x230   : > { %3916 = vmatmul.mubr.msk.bf16.gmra.mrb[56].mxu1 %vm8677_vm5, %v8501_v8  ;;  %vm6405_vm2 = vmand %vm1183_vm0, %vm8680_vm4  ;;  %vm8688_vm0 = vcmp.lt.s32.totalorder %v5471_v18, 16  ;;  %vm8715_vm5 = vcmp.eq.s32.totalorder %v5288_v7, %v1169_v53  ;;  %v8724_v53 = vmov 0 }
 0x231   : > { %vm8685_vm8 = vmmov %vm8680_vm4 }
 0x232   : > { %vm6418_vm3 = vmand %vm1185_vm10, %vm8685_vm8  ;;  %vm8699_vm8 = vcmp.eq.s32.totalorder %v5298_v11, %v1387_v59 }
 0x233   : > { %vm6429_vm4 = vmand %vm6350_vm7, %vm8688_vm0  ;;  %vm8694_vm7 = vnez %v8565_v1 }
 0x234   : > { %v8690_v12 = vsel %vm6429_vm4, 4294967295, %v8689_v12  ;;  %vm6435_vm10 = vmand %vm1399_vm12, %vm8691_vm11 }
 0x235   : > { %vm8695_vm0 = vmpackc.low %vm8616_vm1, %vm8694_vm7  ;;  %vm8703_vm1 = vnez %v8674_v49  ;;  %vm8708_vm7 = vcmp.lt.s32.totalorder %v5471_v18, 16  ;;  %v8709_v49 = vmov 0 }
 0x236   : > { %3918 = vmatprep.mubr.msk.bf16.mxu1 %vm8695_vm0, %v8501_v8  ;;  %vm6455_vm12 = vmand %vm6377_vm6, %vm8696_vm15 }
 0x237   : > { %v8698_v37 = vsel %vm6455_vm12, 4294967295, %v8697_v37  ;;  %vm6463_vm4 = vmand %vm8699_vm8, %vm8691_vm11  ;;  %vm8726_vm11 = vcmp.ge.s32.totalorder %v5404_v45, 0 }
 0x238   : > { %vm8702_vm0 = vmmov %vm8696_vm15 }
 0x239   : > { %vm6474_vm15 = vmand %vm8703_vm1, %vm8702_vm0 }
 0x23a   : > { %v8705_v36 = vsel %vm6474_vm15, 4294967295, %v8704_v36  ;;  %vm6492_vm1 = vmand %vm6405_vm2, %vm8708_vm7  ;;  %vm8714_vm15 = vcmp.ge.s32.totalorder %v5471_v18, 0  ;;  %vm1403_vm2 = vcmp.eq.s32.totalorder %v5298_v11, %v1388_v42 }
 0x23b   : > { %v8710_v49 = vsel %vm6492_vm1, 4294967295, %v8709_v49  ;;  %vm8711_vm0 = vmmov %vm8708_vm7  ;;  %vm8737_vm1 = vnez %v8649_v29  ;;  %v8748_v29 = vld [vmem:[#allocation31_spill] sm:$0xff] }
 0x23c   : > { %vm6500_vm6 = vmand %vm6418_vm3, %vm8711_vm0  ;;  %vm8720_vm0 = vcmp.lt.s32.totalorder %v5404_v45, 16  ;;  %vm8727_vm3 = vcmp.eq.s32.totalorder %v5288_v7, %v1386_v16  ;;  %v1507_v16 = vpop.permute.xlu0 %1506  ;;  %3926 = vmatmul.mubr.msk.bf16.vlgmr.msra.gmra.mrb[0].mxu0 %vm8737_vm1, %v5317_v19  ;;  %vm8810_vm1 = vcmp.eq.s32.totalorder %v5288_v7, %v6480_v31 }
 0x23d   : > { %v8713_v58 = vsel %vm6500_vm6, 4294967295, %v8712_v58  ;;  %vm6508_vm8 = vmand %vm8715_vm5, %vm8714_vm15  ;;  %4250 = vmatprep.subr.bf16.mxu1 %v1507_v16  ;;  %4279 = vmatpush3.bf16.msra.mxu0 %v5424_v55  ;;  %v8750_v55 = vmov 0  ;;  %v8755_v16 = vld [vmem:[#allocation34_spill] sm:$0xff] }
 0x23e   : > { %vm6522_vm6 = vmand %vm6435_vm10, %vm8720_vm0  ;;  %vm1405_vm10 = vcmp.eq.s32.totalorder %v5298_v11, %v6441_v50  ;;  %4251 = vmatpush3.bf16.msra.mxu1 %v5479_v56  ;;  %4280 = vmatprep.subr.bf16.mxu0 %v8748_v29  ;;  %v6606_v56 = vadd.s32 64, %v5291_v9  ;;  %v6609_v29 = vpop.permute.xlu1 %2206 }
 0x23f   : > { %v8722_v0 = vsel %vm6522_vm6, 4294967295, %v8721_v0  ;;  %vm8723_vm5 = vmmov %vm8720_vm0  ;;  %4252 = vmatprep.subr.bf16.mxu1 %v8755_v16 }
 0x240   : > { %vm6530_vm15 = vmand %vm6463_vm4, %vm8723_vm5  ;;  %vm8731_vm4 = vcmp.eq.s32.totalorder %v5288_v7, %v1387_v59  ;;  %v8793_v59 = vmov 0 }
 0x241   : > { %v8725_v53 = vsel %vm6530_vm15, 4294967295, %v8724_v53  ;;  %vm6538_vm7 = vmand %vm8727_vm3, %vm8726_vm11  ;;  %vm1607_vm15 = vcmp.eq.s32.totalorder %v5298_v11, %v5291_v9  ;;  %vm8735_vm3 = vnez %v8583_v48 }
 0x242   : > { %v8729_v51 = vsel %vm6538_vm7, 4294967295, %v8728_v51  ;;  %vm8730_vm0 = vmmov %vm8726_vm11  ;;  %vm8734_vm11 = vnez %v8591_v39  ;;  %v8772_v39 = vld [vmem:[#allocation22_spill] sm:$0xff]  ;;  %v6725_v48 = vpop.permute.xlu1 %2190 }
 0x243   : > { %vm6550_vm5 = vmand %vm8731_vm4, %vm8730_vm0  ;;  %vm8738_vm0 = vnez %v8652_v6  ;;  %vm8739_vm4 = vnez %v8655_v3  ;;  %4281 = vmatpush3.bf16.msra.mxu0 %v8772_v39  ;;  %v8779_v39 = vld [vmem:[#allocation23_spill] sm:$0xff]  ;;  %v6873_v3 = vadd.s32 64, %v5471_v18 }
 0x244   : > { %v8733_v28 = vsel %vm6550_vm5, 4294967295, %v8732_v28  ;;  %vm8736_vm6 = vmpackc.low %vm8734_vm11, %vm8735_vm3  ;;  %vm8740_vm5 = vcmp.ge.s32.totalorder %v5404_v45, 0  ;;  %vm8752_vm11 = vcmp.ge.s32.totalorder %v5291_v9, 0  ;;  %4253 = vmatpush3.bf16.msra.mxu1 %v8779_v39  ;;  %v8787_v39 = vmov 0 }
 0x245   : > { %3920 = vmatmul.mubr.msk.bf16.gmra.mrb[60].mxu1 %vm8736_vm6, %v8501_v8  ;;  %vm6571_vm14 = vmand %vm1403_vm2, %vm8740_vm5  ;;  %vm8749_vm2 = vcmp.lt.s32.totalorder %v5471_v18, 16  ;;  %vm8789_vm6 = vcmp.lt.s32.totalorder %v5291_v9, 16  ;;  %4318 = vmatprep.subr.bf16.mxu1 %v8799_v57  ;;  %v8854_v57 = vmov 0 }
 0x246   : > { %vm8745_vm3 = vmmov %vm8740_vm5 }
 0x247   : > { %vm6584_vm12 = vmand %vm1405_vm10, %vm8745_vm3  ;;  %vm8762_vm10 = vcmp.eq.s32.totalorder %v5298_v11, %v6480_v31 }
 0x248   : > { %vm6594_vm5 = vmand %vm6508_vm8, %vm8749_vm2  ;;  %vm8761_vm2 = vcmp.ge.s32.totalorder %v5291_v9, 0 }
 0x249   : > { %v8751_v55 = vsel %vm6594_vm5, 4294967295, %v8750_v55  ;;  %vm6600_vm7 = vmand %vm1607_vm15, %vm8752_vm11  ;;  %vm8757_vm15 = vcmp.lt.s32.totalorder %v5404_v45, 16  ;;  %vm8758_vm11 = vnez %v8729_v51  ;;  %v6639_v51 = vpop.permute.xlu0 %2054 }
 0x24a   : > { %vm8756_vm8 = vmpackc.low %vm8679_vm13, %vm8678_vm9 }
 0x24b   : > { %3928 = vmatprep.mubr.msk.bf16.mxu0 %vm8756_vm8, %v8501_v8  ;;  %vm6621_vm3 = vmand %vm8758_vm11, %vm8757_vm15  ;;  %vm8765_vm15 = vnez %v8605_v27  ;;  %vm8766_vm11 = vnez %v8602_v32  ;;  %v6673_v27 = vadd.s32 32, %v5471_v18  ;;  %vm8783_vm8 = vcmp.lt.s32.totalorder %v5404_v45, 16 }
 0x24c   : > { %v8760_v63 = vsel %vm6621_vm3, 4294967295, %v8759_v63  ;;  %vm6630_vm5 = vmand %vm8762_vm10, %vm8761_vm2  ;;  %vm8768_vm10 = vcmp.lt.s32.totalorder %v5404_v45, 16  ;;  %vm8769_vm2 = vnez %v8733_v28  ;;  %v8780_v28 = vld [vmem:[#allocation28_spill] sm:$0xff]  ;;  %v6833_v32 = vadd.s32 128, %v5291_v9 }
 0x24d   : > { %vm8767_vm13 = vmpackc.low %vm8765_vm15, %vm8766_vm11  ;;  %vm8775_vm15 = vcmp.ge.s32.totalorder %v5404_v45, 0  ;;  %vm8776_vm11 = vcmp.eq.s32.totalorder %v5288_v7, %v1388_v42  ;;  %4282 = vmatprep.subr.bf16.mxu0 %v8780_v28  ;;  %v8784_v42 = vmov 0  ;;  %v8790_v28 = vmov 0 }
 0x24e   : > { %3940 = vmatprep.mubr.msk.bf16.mxu1 %vm8767_vm13, %v8501_v8  ;;  %vm6651_vm9 = vmand %vm8769_vm2, %vm8768_vm10 }
 0x24f   : > { %v8771_v13 = vsel %vm6651_vm9, 4294967295, %v8770_v13  ;;  %vm6668_vm10 = vmand %vm8776_vm11, %vm8775_vm15 }
 0x250   : > { %vm6685_vm15 = vmand %vm6571_vm14, %vm8783_vm8 }
 0x251   : > { %v8785_v42 = vsel %vm6685_vm15, 4294967295, %v8784_v42  ;;  %vm8786_vm11 = vmmov %vm8783_vm8 }
 0x252   : > { %vm6693_vm3 = vmand %vm6584_vm12, %vm8786_vm11  ;;  %vm8795_vm12 = vcmp.ge.s32.totalorder %v5404_v45, 0  ;;  %vm8796_vm11 = vcmp.eq.s32.totalorder %v5288_v7, %v6441_v50  ;;  %v6738_v50 = vpop.permute.xlu0 %2072 }
 0x253   : > { %v8788_v39 = vsel %vm6693_vm3, 4294967295, %v8787_v39  ;;  %vm6701_vm13 = vmand %vm6600_vm7, %vm8789_vm6  ;;  %vm1611_vm7 = vcmp.eq.s32.totalorder %v5298_v11, %v6606_v56 }
 0x254   : > { %v8791_v28 = vsel %vm6701_vm13, 4294967295, %v8790_v28  ;;  %vm8792_vm14 = vmmov %vm8789_vm6  ;;  %vm8800_vm6 = vcmp.ge.s32.totalorder %v5291_v9, 0 }
 0x255   : > { %vm6709_vm8 = vmand %vm6630_vm5, %vm8792_vm14  ;;  %vm8801_vm5 = vcmp.eq.s32.totalorder %v5288_v7, %v5291_v9 }
 0x256   : > { %v8794_v59 = vsel %vm6709_vm8, 4294967295, %v8793_v59  ;;  %vm6718_vm3 = vmand %vm8796_vm11, %vm8795_vm12  ;;  %vm1613_vm12 = vcmp.eq.s32.totalorder %v5298_v11, %v6637_v4  ;;  %vm8804_vm11 = vnez %v8628_v60  ;;  %vm8805_vm8 = vnez %v8428_v21  ;;  %v8816_v60 = vld [vmem:[#allocation39_spill] sm:$0xff]  ;;  %v6835_v19 = vpop.permute.xlu0 %2056 }
 0x257   : > { %vm6732_vm14 = vmand %vm8801_vm5, %vm8800_vm6  ;;  %4283 = vmatpush3.bf16.msra.mxu0 %v8816_v60  ;;  %v6855_v21 = vadd.s32 160, %v5291_v9  ;;  %v8864_v60 = vmov 0 }
 0x258   : > { %vm8806_vm13 = vmpackc.low %vm8804_vm11, %vm8805_vm8  ;;  %vm8814_vm11 = vnez %v8637_v54  ;;  %4284 = vmatprep.subr.bf16.mxu0 %v5768_v34  ;;  %v6789_v54 = vpop.permute.xlu1 %2208  ;;  %v8826_v34 = vmov 0 }
 0x259   : > { %3930 = vmatmul.mubr.msk.bf16.gmra.mrb[4].mxu0 %vm8806_vm13, %v8501_v8  ;;  %vm8809_vm5 = vmmov %vm8800_vm6  ;;  %vm8813_vm13 = vnez %v8643_v17  ;;  %v6939_v17 = vadd.s32 96, %v5471_v18  ;;  %vm8889_vm6 = vcmp.eq.s32.totalorder %v5288_v7, %v6673_v27 }
 0x25a   : > { %vm6755_vm9 = vmand %vm8810_vm1, %vm8809_vm5  ;;  %vm8831_vm1 = vcmp.lt.s32.totalorder %v5291_v9, 16  ;;  %v6941_v16 = vpop.permute.xlu0 %2074 }
 0x25b   : > { %vm8815_vm8 = vmpackc.low %vm8813_vm13, %vm8814_vm11  ;;  %vm8825_vm13 = vcmp.lt.s32.totalorder %v5404_v45, 16 }
 0x25c   : > { %3942 = vmatmul.mubr.msk.bf16.vlgmr.msra.gmra.mrb[64].mxu1 %vm8815_vm8, %v8501_v8  ;;  %vm6774_vm2 = vmand %vm1611_vm7, %vm8809_vm5  ;;  %v6909_v31 = vpop.permute.xlu1 %2192 }
 0x25d   : > { %4319 = vmatpush3.bf16.msra.mxu1 %v5766_v33  ;;  %vm8821_vm8 = vmmov %vm8809_vm5  ;;  %v8829_v33 = vmov 0 }
 0x25e   : > { %vm6784_vm11 = vmand %vm1613_vm12, %vm8821_vm8  ;;  %4320 = vmatprep.subr.bf16.mxu1 %v5834_v20  ;;  %v8833_v20 = vmov 0 }
 0x25f   : > { %vm8824_vm7 = vmpackc.low %vm8739_vm4, %vm8738_vm0 }
 0x260   : > { %3932 = vmatprep.mubr.msk.bf16.mxu0 %vm8824_vm7, %v8501_v8  ;;  %vm6801_vm5 = vmand %vm6668_vm10, %vm8825_vm13  ;;  %vm8835_vm10 = vcmp.ge.s32.totalorder %v5471_v18, 0 }
 0x261   : > { %v8827_v34 = vsel %vm6801_vm5, 4294967295, %v8826_v34  ;;  %vm8828_vm12 = vmmov %vm8825_vm13  ;;  %vm8836_vm13 = vcmp.eq.s32.totalorder %v5298_v11, %v5471_v18  ;;  %4321 = vmatpush3.bf16.msra.mxu1 %v5867_v2  ;;  %v8857_v2 = vmov 0 }
 0x262   : > { %vm6809_vm8 = vmand %vm6718_vm3, %vm8828_vm12  ;;  %vm8840_vm12 = vnez %v8663_v47  ;;  %v8849_v47 = vmov 0  ;;  %4322 = vmatprep.subr.bf16.mxu1 %v5918_v14  ;;  %vm8881_vm3 = vnez %v8698_v37  ;;  %v8970_v37 = vmov 0 }
 0x263   : > { %v8830_v33 = vsel %vm6809_vm8, 4294967295, %v8829_v33  ;;  %vm8832_vm7 = vmmov %vm6732_vm14 }
 0x264   : > { %vm6817_vm14 = vmand %vm8832_vm7, %vm8831_vm1  ;;  %vm8839_vm1 = vnez %v8666_v62  ;;  %v8845_v62 = vld [vmem:[#allocation44_spill] sm:$0xff] }
 0x265   : > { %v8834_v20 = vsel %vm6817_vm14, 4294967295, %v8833_v20  ;;  %vm6826_vm4 = vmand %vm8836_vm13, %vm8835_vm10  ;;  %vm8842_vm13 = vcmp.eq.s32.totalorder %v5298_v11, %v6673_v27  ;;  %4285 = vmatpush3.bf16.msra.mxu0 %v8845_v62  ;;  %vm8848_vm14 = vcmp.lt.s32.totalorder %v5291_v9, 16  ;;  %v8883_v62 = vld [vmem:[#allocation47_spill] sm:$0xff]  ;;  %4323 = vmatpush3.bf16.msra.mxu1 %v5957_v35  ;;  %v8899_v35 = vmov 0  ;;  %v7023_v27 = vpop.permute.xlu0 %2058 }
 0x266   : > { %vm8841_vm7 = vmpackc.low %vm8839_vm1, %vm8840_vm12  ;;  %4286 = vmatprep.subr.bf16.mxu0 %v5869_v40  ;;  %vm8859_vm1 = vcmp.ge.s32.totalorder %v5291_v9, 0  ;;  %4324 = vmatprep.subr.bf16.mxu1 %v5997_v22  ;;  %v7021_v22 = vpop.permute.xlu1 %2210  ;;  %v8910_v40 = vmov 0 }
 0x267   : > { %3944 = vmatprep.mubr.msk.bf16.mxu1 %vm8841_vm7, %v8501_v8  ;;  %vm6848_vm0 = vmand %vm8842_vm13, %vm8835_vm10  ;;  %vm8860_vm7 = vcmp.eq.s32.totalorder %v5288_v7, %v6606_v56  ;;  %v8867_v56 = vmov 0 }
 0x268   : > { %vm6866_vm10 = vmand %vm6755_vm9, %vm8848_vm14 }
 0x269   : > { %v8850_v47 = vsel %vm6866_vm10, 4294967295, %v8849_v47  ;;  %vm8853_vm9 = vmmov %vm8848_vm14  ;;  %vm8870_vm10 = vcmp.eq.s32.totalorder %v5288_v7, %v6637_v4  ;;  %v8878_v4 = vmov 0  ;;  %4287 = vmatpush3.bf16.msra.mxu0 %v8883_v62  ;;  %4325 = vmatpush3.bf16.msra.mxu1 %v6038_v5  ;;  %v8924_v5 = vmov 0  ;;  %v8993_v62 = vld [vmem:[#allocation58_spill] sm:$0xff] }
 0x26a   : > { %vm6885_vm14 = vmand %vm6774_vm2, %vm8853_vm9  ;;  %4288 = vmatprep.subr.bf16.mxu0 %v5959_v26  ;;  %v8902_v26 = vmov 0  ;;  %4326 = vmatprep.subr.bf16.mxu1 %v6078_v24  ;;  %v7090_v14 = vpop.permute.xlu1 %2194  ;;  %v7107_v24 = vadd.s32 192, %v5291_v9 }
 0x26b   : > { %v8855_v57 = vsel %vm6885_vm14, 4294967295, %v8854_v57  ;;  %vm8856_vm13 = vmmov %vm8853_vm9  ;;  %vm8880_vm14 = vnez %v8705_v36  ;;  %v8972_v36 = vld [vmem:[#allocation64_spill] sm:$0xff] }
 0x26c   : > { %vm6893_vm12 = vmand %vm6784_vm11, %vm8856_vm13  ;;  %vm8863_vm11 = vcmp.lt.s32.totalorder %v5471_v18, 16 }
 0x26d   : > { %v8858_v2 = vsel %vm6893_vm12, 4294967295, %v8857_v2  ;;  %vm6904_vm2 = vmand %vm8860_vm7, %vm8859_vm1  ;;  %vm8869_vm7 = vcmp.ge.s32.totalorder %v5291_v9, 0  ;;  %4289 = vmatpush3.bf16.msra.mxu0 %v5999_v10  ;;  %v8921_v10 = vmov 0  ;;  %4327 = vmatpush3.bf16.msra.mxu1 %v6120_v41  ;;  %v8952_v41 = vmov 0 }
 0x26e   : > { %vm6915_vm13 = vmand %vm6826_vm4, %vm8863_vm11  ;;  %vm1615_vm4 = vcmp.eq.s32.totalorder %v5298_v11, %v6833_v32  ;;  %4328 = vmatprep.subr.bf16.mxu1 %v6168_v15  ;;  %v7186_v15 = vadd.s32 128, %v5471_v18 }
 0x26f   : > { %v8865_v60 = vsel %vm6915_vm13, 4294967295, %v8864_v60  ;;  %vm8866_vm9 = vmmov %vm8863_vm11  ;;  %vm8874_vm11 = vnez %v8690_v12  ;;  %vm1617_vm13 = vcmp.eq.s32.totalorder %v5298_v11, %v6855_v21 }
 0x270   : > { %vm6923_vm1 = vmand %vm6848_vm0, %vm8866_vm9  ;;  %vm8873_vm0 = vnez %v8497_v52 }
 0x271   : > { %v8868_v56 = vsel %vm6923_vm1, 4294967295, %v8867_v56  ;;  %vm6932_vm12 = vmand %vm8870_vm10, %vm8869_vm7  ;;  %vm8876_vm10 = vcmp.ge.s32.totalorder %v5471_v18, 0  ;;  %vm8877_vm7 = vcmp.eq.s32.totalorder %v5288_v7, %v5471_v18 }
 0x272   : > { %vm8875_vm9 = vmpackc.low %vm8873_vm0, %vm8874_vm11  ;;  %vm8885_vm0 = vnez %v8788_v39  ;;  %vm8904_vm11 = vcmp.ge.s32.totalorder %v5291_v9, 0  ;;  %v8966_v39 = vld [vmem:[#allocation61_spill] sm:$0xff] }
 0x273   : > { %3934 = vmatmul.mubr.msk.bf16.gmra.mrb[8].mxu0 %vm8875_vm9, %v8501_v8  ;;  %vm6954_vm1 = vmand %vm8877_vm7, %vm8876_vm10  ;;  %4329 = vmatpush3.bf16.msra.mxu1 %v8966_v39 }
 0x274   : > { %v8879_v4 = vsel %vm6954_vm1, 4294967295, %v8878_v4  ;;  %vm8882_vm8 = vmpackc.low %vm8880_vm14, %vm8881_vm3  ;;  %vm8892_vm3 = vcmp.ge.s32.totalorder %v5291_v9, 0 }
 0x275   : > { %3946 = vmatmul.mubr.msk.bf16.gmra.mrb[68].mxu1 %vm8882_vm8, %v8501_v8  ;;  %vm8888_vm1 = vmmov %vm8876_vm10  ;;  %vm1827_vm8 = vcmp.eq.s32.totalorder %v5298_v11, %v6873_v3  ;;  %vm8898_vm10 = vcmp.lt.s32.totalorder %v5291_v9, 16 }
 0x276   : > { %vm6980_vm15 = vmand %vm8889_vm6, %vm8888_vm1  ;;  %vm8895_vm6 = vnez %v8713_v58  ;;  %vm8896_vm1 = vnez %v8710_v49 }
 0x277   : > { %vm6990_vm14 = vmand %vm1615_vm4, %vm8892_vm3 }
 0x278   : > { %vm8897_vm5 = vmpackc.low %vm8895_vm6, %vm8896_vm1 }
 0x279   : > { %3936 = vmatprep.mubr.msk.bf16.mxu0 %vm8897_vm5, %v8501_v8  ;;  %vm7005_vm7 = vmand %vm6904_vm2, %vm8898_vm10  ;;  %vm1829_vm5 = vcmp.eq.s32.totalorder %v5298_v11, %v6939_v17  ;;  %vm8905_vm2 = vnez %v8725_v53 }
 0x27a   : > { %v8900_v35 = vsel %vm7005_vm7, 4294967295, %v8899_v35  ;;  %vm8901_vm4 = vmmov %vm8898_vm10  ;;  %vm8906_vm10 = vnez %v8722_v0  ;;  %v8914_v0 = vmov 0 }
 0x27b   : > { %vm7013_vm3 = vmand %vm6932_vm12, %vm8901_vm4  ;;  %vm8908_vm12 = vcmp.lt.s32.totalorder %v5471_v18, 16  ;;  %vm8909_vm4 = vnez %v8879_v4  ;;  %v1723_v4 = vpop.permute.xlu0 %1722 }
 0x27c   : > { %v8903_v26 = vsel %vm7013_vm3, 4294967295, %v8902_v26  ;;  %vm1649_vm6 = vmand %vm1617_vm13, %vm8904_vm11  ;;  %vm8912_vm13 = vcmp.ge.s32.totalorder %v5471_v18, 0  ;;  %4290 = vmatprep.subr.bf16.mxu0 %v1723_v4 }
 0x27d   : > { %vm8907_vm1 = vmpackc.low %vm8905_vm2, %vm8906_vm10  ;;  %vm8917_vm10 = vnez %v8830_v33  ;;  %4291 = vmatpush3.bf16.msra.mxu0 %v6040_v23  ;;  %v7142_v23 = vadd.s32 224, %v5291_v9  ;;  %v9078_v33 = vld [vmem:[#allocation50_spill] sm:$0xff] }
 0x27e   : > { %3948 = vmatprep.mubr.msk.bf16.mxu1 %vm8907_vm1, %v8501_v8  ;;  %vm7035_vm3 = vmand %vm8909_vm4, %vm8908_vm12  ;;  %vm1614_vm1 = vcmp.eq.s32.totalorder %v5288_v7, %v6833_v32  ;;  %vm8919_vm4 = vnez %v8850_v47  ;;  %v8930_v32 = vmov 0  ;;  %4292 = vmatprep.subr.bf16.mxu0 %v6080_v44  ;;  %v8962_v44 = vmov 0 }
 0x27f   : > { %v8911_v40 = vsel %vm7035_vm3, 4294967295, %v8910_v40  ;;  %vm1859_vm11 = vmand %vm1827_vm8, %vm8912_vm13 }
 0x280   : > { %vm8913_vm7 = vmmov %vm8908_vm12 }
 0x281   : > { %vm7046_vm9 = vmand %vm6980_vm15, %vm8913_vm7  ;;  %vm8920_vm15 = vcmp.lt.s32.totalorder %v5291_v9, 16 }
 0x282   : > { %v8915_v0 = vsel %vm7046_vm9, 4294967295, %v8914_v0  ;;  %vm7065_vm7 = vmand %vm6990_vm14, %vm8920_vm15  ;;  %vm8929_vm14 = vcmp.lt.s32.totalorder %v5471_v18, 16 }
 0x283   : > { %v8922_v10 = vsel %vm7065_vm7, 4294967295, %v8921_v10  ;;  %vm8923_vm9 = vmmov %vm8920_vm15 }
 0x284   : > { %vm7071_vm3 = vmand %vm1649_vm6, %vm8923_vm9  ;;  %vm8932_vm9 = vnez %v8751_v55  ;;  %vm8933_vm6 = vnez %v8500_v43 }
 0x285   : > { %v8925_v5 = vsel %vm7071_vm3, 4294967295, %v8924_v5  ;;  %vm8926_vm8 = vmmov %vm8912_vm13  ;;  %vm1616_vm13 = vcmp.eq.s32.totalorder %v5288_v7, %v6855_v21  ;;  %v8977_v21 = vmov 0 }
 0x286   : > { %vm7077_vm2 = vmand %vm1829_vm5, %vm8926_vm8  ;;  %vm8935_vm8 = vcmp.ge.s32.totalorder %v5291_v9, 0 }
 0x287   : > { %vm7086_vm15 = vmand %vm1859_vm11, %vm8929_vm14  ;;  %vm8938_vm14 = vnez %v8771_v13  ;;  %v8949_v13 = vmov 0 }
 0x288   : > { %v8931_v32 = vsel %vm7086_vm15, 4294967295, %v8930_v32  ;;  %vm8934_vm5 = vmpackc.low %vm8932_vm9, %vm8933_vm6  ;;  %vm8939_vm15 = vnez %v8760_v63  ;;  %v7159_v63 = vpop.permute.xlu1 %2212 }
 0x289   : > { %3938 = vmatmul.mubr.msk.bf16.gmra.mrb[12].mxu0 %vm8934_vm5, %v8501_v8  ;;  %vm7100_vm3 = vmand %vm1614_vm1, %vm8935_vm8  ;;  %vm1619_vm1 = vcmp.eq.s32.totalorder %v5298_v11, %v7107_v24 }
 0x28a   : > { %vm8940_vm7 = vmpackc.low %vm8938_vm14, %vm8939_vm15  ;;  %vm8948_vm14 = vcmp.lt.s32.totalorder %v5471_v18, 16 }
 0x28b   : > { %3950 = vmatmul.mubr.msk.bf16.gmra.mrb[72].mxu1 %vm8940_vm7, %v8501_v8  ;;  %vm8943_vm9 = vmmov %vm8935_vm8  ;;  %vm8956_vm7 = vnez %v8785_v42  ;;  %v8965_v42 = vld [vmem:[#allocation56_spill] sm:$0xff] }
 0x28c   : > { %vm7121_vm6 = vmand %vm1616_vm13, %vm8943_vm9  ;;  %vm1828_vm13 = vcmp.eq.s32.totalorder %v5288_v7, %v6939_v17  ;;  %vm8951_vm9 = vcmp.lt.s32.totalorder %v5291_v9, 16  ;;  %v7161_v17 = vpop.permute.xlu0 %2076  ;;  %4293 = vmatpush3.bf16.msra.mxu0 %v8965_v42  ;;  %v7214_v53 = vpop.permute.xlu1 %2196  ;;  %v8995_v42 = vld [vmem:[#allocation62_spill] sm:$0xff] }
 0x28d   : > { %vm7135_vm8 = vmand %vm7077_vm2, %vm8948_vm14  ;;  %vm8954_vm2 = vcmp.ge.s32.totalorder %v5471_v18, 0  ;;  %vm8955_vm14 = vcmp.eq.s32.totalorder %v5288_v7, %v6873_v3  ;;  %v7191_v3 = vadd.s32 160, %v5471_v18  ;;  %4358 = vmatprep.subr.bf16.mxu0 %v8972_v36 }
 0x28e   : > { %v8950_v13 = vsel %vm7135_vm8, 4294967295, %v8949_v13  ;;  %vm7150_vm15 = vmand %vm7100_vm3, %vm8951_vm9  ;;  %vm8958_vm3 = vnez %v8794_v59  ;;  %vm8959_vm9 = vnez %v8791_v28  ;;  %vm8975_vm8 = vcmp.ge.s32.totalorder %v5291_v9, 0 }
 0x28f   : > { %v8953_v41 = vsel %vm7150_vm15, 4294967295, %v8952_v41  ;;  %vm1858_vm11 = vmand %vm8955_vm14, %vm8954_vm2  ;;  %vm8961_vm2 = vcmp.lt.s32.totalorder %v5291_v9, 16 }
 0x290   : > { %vm8957_vm5 = vmpackc.low %vm8885_vm0, %vm8956_vm7  ;;  %vm8964_vm0 = vcmp.ge.s32.totalorder %v5471_v18, 0  ;;  %v1939_v4 = vpop.permute.xlu0 %1938 }
 0x291   : > { %3952 = vmatprep.mubr.msk.bf16.mxu1 %vm8957_vm5, %v8501_v8  ;;  %vm8960_vm15 = vmpackc.low %vm8958_vm3, %vm8959_vm9  ;;  %4330 = vmatprep.subr.bf16.mxu1 %v1939_v4  ;;  %v9073_v4 = vld [vmem:[#allocation25_spill] sm:$0xff] }
 0x292   : > { %3956 = vmatprep.mubr.msk.bf16.mxu0 %vm8960_vm15, %v8501_v8  ;;  %vm7179_vm14 = vmand %vm7121_vm6, %vm8961_vm2  ;;  %vm8969_vm2 = vcmp.lt.s32.totalorder %v5471_v18, 16  ;;  %vm1831_vm15 = vcmp.eq.s32.totalorder %v5298_v11, %v7186_v15  ;;  %vm8985_vm6 = vcmp.ge.s32.totalorder %v5291_v9, 0  ;;  %4331 = vmatpush3.bf16.msra.mxu1 %v8993_v62  ;;  %v9080_v62 = vld [vmem:[#allocation52_spill] sm:$0xff] }
 0x293   : > { %v8963_v44 = vsel %vm7179_vm14, 4294967295, %v8962_v44  ;;  %vm1860_vm5 = vmand %vm1828_vm13, %vm8964_vm0  ;;  %vm1621_vm13 = vcmp.eq.s32.totalorder %v5298_v11, %v7142_v23  ;;  %vm8979_vm14 = vnez %v8827_v34  ;;  %v8991_v34 = vmov 0  ;;  %4332 = vmatprep.subr.bf16.mxu1 %v8995_v42 }
 0x294   : > { %vm7201_vm9 = vmand %vm1858_vm11, %vm8969_vm2  ;;  %v7266_v39 = vpop.permute.xlu0 %2060  ;;  %v2031_v42 = vadd.s32 240, %v5404_v45 }
 0x295   : > { %v8971_v37 = vsel %vm7201_vm9, 4294967295, %v8970_v37  ;;  %vm1651_vm12 = vmand %vm1619_vm1, %vm8975_vm8  ;;  %vm8981_vm1 = vnez %v8834_v20  ;;  %vm9023_vm9 = vcmp.lt.s32.totalorder %v5291_v9, 16 }
 0x296   : > { %vm8976_vm11 = vmmov %vm8969_vm2 }
 0x297   : > { %vm7218_vm2 = vmand %vm1860_vm5, %vm8976_vm11  ;;  %vm9003_vm5 = vcmp.lt.s32.totalorder %v5291_v9, 16 }
 0x298   : > { %v8978_v21 = vsel %vm7218_vm2, 4294967295, %v8977_v21  ;;  %vm8980_vm0 = vmpackc.low %vm8917_vm10, %vm8979_vm14  ;;  %vm1833_vm10 = vcmp.eq.s32.totalorder %v5298_v11, %v7191_v3  ;;  %v2063_v36 = vpop.permute.xlu0 %2062 }
 0x299   : > { %3954 = vmatmul.mubr.msk.bf16.gmra.mrb[76].mxu1 %vm8980_vm0, %v8501_v8  ;;  %vm8982_vm8 = vmpackc.low %vm8919_vm4, %vm8981_vm1  ;;  %vm8990_vm1 = vcmp.lt.s32.totalorder %v5291_v9, 16  ;;  %vm9000_vm0 = vnez %v8868_v56  ;;  %v9011_v56 = vld [vmem:[#allocation65_spill] sm:$0xff] }
 0x29a   : > { %3958 = vmatmul.mubr.msk.bf16.vlgmr.msra.gmra.mrb[16].mxu0 %vm8982_vm8, %v8501_v8  ;;  %vm7242_vm7 = vmand %vm1621_vm13, %vm8985_vm6  ;;  %vm8994_vm6 = vcmp.ge.s32.totalorder %v5471_v18, 0  ;;  %vm8996_vm8 = vnez %v8858_v2  ;;  %4333 = vmatpush3.bf16.msra.mxu1 %v9011_v56 }
 0x29b   : > { %4359 = vmatpush3.bf16.msra.mxu0 %v6382_v30  ;;  %vm7255_vm3 = vmand %vm1651_vm12, %vm8990_vm1  ;;  %v7264_v30 = vpop.permute.xlu1 %2214  ;;  %vm8997_vm12 = vnez %v8855_v57  ;;  %4398 = vmatprep.subr.bf16.mxu1 %v6609_v29  ;;  %v1821_v29 = vadd.s32 224, %v5471_v18 }
 0x29c   : > { %v8992_v34 = vsel %vm7255_vm3, 4294967295, %v8991_v34  ;;  %4360 = vmatprep.subr.bf16.mxu0 %v6443_v46  ;;  %vm1863_vm13 = vmand %vm1831_vm15, %vm8994_vm6  ;;  %vm9001_vm15 = vnez %v8865_v60  ;;  %v9004_v46 = vmov 0  ;;  %v9009_v60 = vmov 0 }
 0x29d   : > { %vm8998_vm1 = vmpackc.low %vm8996_vm8, %vm8997_vm12  ;;  %vm9017_vm8 = vnez %v8900_v35 }
 0x29e   : > { %3960 = vmatprep.mubr.msk.bf16.mxu0 %vm8998_vm1, %v8501_v8  ;;  %vm8999_vm4 = vmmov %vm8994_vm6  ;;  %vm1618_vm1 = vcmp.eq.s32.totalorder %v5288_v7, %v7107_v24 }
 0x29f   : > { %vm1865_vm14 = vmand %vm1833_vm10, %vm8999_vm4  ;;  %4361 = vmatpush3.bf16.msra.mxu0 %v6544_v61  ;;  %vm9006_vm4 = vnez %v8953_v41  ;;  %vm9007_vm10 = vnez %v8963_v44  ;;  %v9013_v61 = vmov 0  ;;  %v7318_v24 = vpop.permute.xlu1 %2198 }
 0x2a0   : > { %vm9002_vm6 = vmpackc.low %vm9000_vm0, %vm9001_vm15  ;;  %vm9008_vm0 = vcmp.lt.s32.totalorder %v5471_v18, 16  ;;  %4362 = vmatprep.subr.bf16.mxu0 %v6468_v25  ;;  %v1820_v25 = vadd.s32 192, %v5471_v18 }
 0x2a1   : > { %3972 = vmatprep.mubr.msk.bf16.mxu1 %vm9002_vm6, %v8501_v8  ;;  %vm7286_vm11 = vmand %vm7242_vm7, %vm9003_vm5  ;;  %vm9016_vm7 = vnez %v8903_v26 }
 0x2a2   : > { %v9005_v46 = vsel %vm7286_vm11, 4294967295, %v9004_v46  ;;  %vm7299_vm15 = vmand %vm1863_vm13, %vm9008_vm0  ;;  %vm1620_vm13 = vcmp.eq.s32.totalorder %v5288_v7, %v7142_v23  ;;  %v9064_v23 = vld [vmem:[#allocation48_spill] sm:$0xff] }
 0x2a3   : > { %v9010_v60 = vsel %vm7299_vm15, 4294967295, %v9009_v60  ;;  %vm9012_vm5 = vmmov %vm9008_vm0  ;;  %vm9015_vm0 = vcmp.ge.s32.totalorder %v5291_v9, 0  ;;  %4363 = vmatpush3.bf16.msra.mxu0 %v6639_v51  ;;  %v2217_v51 = vpop.permute.xlu1 %2216 }
 0x2a4   : > { %vm7311_vm6 = vmand %vm1865_vm14, %vm9012_vm5  ;;  %vm9022_vm5 = vcmp.ge.s32.totalorder %v5291_v9, 0  ;;  %4364 = vmatprep.subr.bf16.mxu0 %v6738_v50 }
 0x2a5   : > { %v9014_v61 = vsel %vm7311_vm6, 4294967295, %v9013_v61  ;;  %vm1650_vm12 = vmand %vm1618_vm1, %vm9015_vm0  ;;  %vm9019_vm1 = vnez %v8915_v0  ;;  %vm9020_vm0 = vnez %v8911_v40  ;;  %v9024_v40 = vmov 0  ;;  %v2081_v0 = vpop.permute.xlu0 %2080 }
 0x2a6   : > { %vm9018_vm14 = vmpackc.low %vm9016_vm7, %vm9017_vm8  ;;  %vm9031_vm7 = vnez %v8950_v13  ;;  %vm9034_vm6 = vcmp.lt.s32.totalorder %v5291_v9, 16 }
 0x2a7   : > { %3962 = vmatmul.mubr.msk.bf16.gmra.mrb[20].mxu0 %vm9018_vm14, %v8501_v8  ;;  %vm9021_vm2 = vmpackc.low %vm9019_vm1, %vm9020_vm0  ;;  %vm9029_vm14 = vcmp.ge.s32.totalorder %v5471_v18, 0 }
 0x2a8   : > { %3974 = vmatmul.mubr.msk.bf16.vlgmr.msra.gmra.mrb[80].mxu1 %vm9021_vm2, %v8501_v8  ;;  %vm1652_vm8 = vmand %vm1620_vm13, %vm9022_vm5  ;;  %vm1832_vm2 = vcmp.eq.s32.totalorder %v5288_v7, %v7191_v3  ;;  %vm9026_vm13 = vnez %v8925_v5  ;;  %vm9027_vm5 = vnez %v8922_v10  ;;  %4365 = vmatpush3.bf16.msra.mxu0 %v6835_v19  ;;  %v9105_v19 = vld [vmem:[#allocation54_spill] sm:$0xff] }
 0x2a9   : > { %4399 = vmatpush3.bf16.msra.mxu1 %v6725_v48  ;;  %vm7353_vm1 = vmand %vm1650_vm12, %vm9023_vm9  ;;  %vm9030_vm9 = vcmp.eq.s32.totalorder %v5288_v7, %v7186_v15  ;;  %4366 = vmatprep.subr.bf16.mxu0 %v6941_v16 }
 0x2aa   : > { %v9025_v40 = vsel %vm7353_vm1, 4294967295, %v9024_v40  ;;  %4400 = vmatprep.subr.bf16.mxu1 %v6789_v54  ;;  %vm9028_vm0 = vmpackc.low %vm9026_vm13, %vm9027_vm5  ;;  %vm9032_vm1 = vnez %v8931_v32  ;;  %v2201_v54 = vpop.permute.xlu1 %2200  ;;  %v2065_v32 = vpop.permute.xlu0 %2064 }
 0x2ab   : > { %3964 = vmatprep.mubr.msk.bf16.mxu0 %vm9028_vm0, %v8501_v8  ;;  %vm1862_vm12 = vmand %vm9030_vm9, %vm9029_vm14  ;;  %vm1835_vm0 = vcmp.eq.s32.totalorder %v5298_v11, %v1820_v25  ;;  %vm1837_vm9 = vcmp.eq.s32.totalorder %v5298_v11, %v1821_v29 }
 0x2ac   : > { %vm9033_vm15 = vmpackc.low %vm9031_vm7, %vm9032_vm1  ;;  %4367 = vmatpush3.bf16.msra.mxu0 %v7023_v27  ;;  %v9113_v27 = vld [vmem:[#allocation55_spill] sm:$0xff] }
 0x2ad   : > { %3976 = vmatprep.mubr.msk.bf16.mxu1 %vm9033_vm15, %v8501_v8  ;;  %vm7379_vm3 = vmand %vm1652_vm8, %vm9034_vm6  ;;  %4401 = vmatpush3.bf16.msra.mxu1 %v6909_v31  ;;  %vm9038_vm15 = vcmp.lt.s32.totalorder %v5471_v18, 16  ;;  %v9107_v31 = vld [vmem:[#allocation57_spill] sm:$0xff] }
 0x2ae   : > { %vm9037_vm5 = vmmov %vm9029_vm14  ;;  %4402 = vmatprep.subr.bf16.mxu1 %v7021_v22  ;;  %4368 = vmatprep.subr.bf16.mxu0 %v7161_v17  ;;  %v2347_v16 = vpop.permute.xlu1 %2346  ;;  %v2203_v22 = vpop.permute.xlu0 %2202 }
 0x2af   : > { %vm1864_vm14 = vmand %vm1832_vm2, %vm9037_vm5 }
 0x2b0   : > { %vm7392_vm7 = vmand %vm1862_vm12, %vm9038_vm15  ;;  %vm9044_vm12 = vnez %v8978_v21  ;;  %vm9045_vm15 = vnez %v8971_v37  ;;  %4369 = vmatpush3.bf16.msra.mxu0 %v7266_v39  ;;  %v9075_v21 = vld [vmem:[#allocation24_spill] sm:$0xff]  ;;  %v9084_v39 = vld [vmem:[#allocation33_spill] sm:$0xff] }
 0x2b1   : > { %vm9041_vm8 = vmmov %vm9037_vm5  ;;  %4403 = vmatpush3.bf16.msra.mxu1 %v7090_v14 }
 0x2b2   : > { %vm1867_vm6 = vmand %vm1835_vm0, %vm9041_vm8  ;;  %vm9047_vm0 = vcmp.lt.s32.totalorder %v5471_v18, 16  ;;  %4404 = vmatprep.subr.bf16.mxu1 %v7159_v63  ;;  %v2331_v14 = vpop.permute.xlu1 %2330  ;;  %v2079_v13 = vpop.permute.xlu0 %2078  ;;  %v9066_v63 = vld [vmem:[#allocation49_spill] sm:$0xff] }
 0x2b3   : > { %vm9042_vm1 = vmpackc.low %vm9007_vm10, %vm9006_vm4  ;;  %4370 = vmatprep.subr.bf16.mxu0 %v2079_v13  ;;  %v9116_v13 = vld [vmem:[#allocation38_spill] sm:$0xff] }
 0x2b4   : > { %3966 = vmatmul.mubr.msk.bf16.gmra.mrb[24].mxu0 %vm9042_vm1, %v8501_v8  ;;  %vm9043_vm2 = vmmov %vm9037_vm5 }
 0x2b5   : > { %vm1869_vm5 = vmand %vm1837_vm9, %vm9043_vm2  ;;  %4405 = vmatpush3.bf16.msra.mxu1 %v7214_v53  ;;  %4371 = vmatpush3.bf16.msra.mxu0 %v2063_v36 }
 0x2b6   : > { %vm9046_vm13 = vmpackc.low %vm9044_vm12, %vm9045_vm15  ;;  %vm9059_vm15 = vnez %v9010_v60  ;;  %4406 = vmatprep.subr.bf16.mxu1 %v7264_v30  ;;  %4372 = vmatprep.subr.bf16.mxu0 %v2081_v0  ;;  %v2349_v15 = vpop.permute.xlu1 %2348  ;;  %v2221_v3 = vpop.permute.xlu0 %2220  ;;  %v9082_v30 = vld [vmem:[#allocation19_spill] sm:$0xff]  ;;  %v9099_v0 = vld [vmem:[#allocation20_spill] sm:$0xff] }
 0x2b7   : > { %3978 = vmatmul.mubr.msk.bf16.gmra.mrb[84].mxu1 %vm9046_vm13, %v8501_v8  ;;  %vm7416_vm8 = vmand %vm1864_vm14, %vm9047_vm0  ;;  %vm9053_vm13 = vnez %v8992_v34 }
 0x2b8   : > { %vm9050_vm9 = vmmov %vm9047_vm0 }
 0x2b9   : > { %vm7424_vm1 = vmand %vm1867_vm6, %vm9050_vm9  ;;  %vm9058_vm6 = vnez %v9014_v61  ;;  %vm9061_vm9 = vnez %v9025_v40  ;;  %4407 = vmatpush3.bf16.msra.mxu1 %v7318_v24  ;;  %4373 = vmatpush3.bf16.msra.mxu0 %v2065_v32  ;;  %v9086_v61 = vld [vmem:[#allocation51_spill] sm:$0xff]  ;;  %v9089_v24 = vld [vmem:[#allocation53_spill] sm:$0xff] }
 0x2ba   : > { %vm9054_vm14 = vmpackc.low %vm7286_vm11, %vm9053_vm13  ;;  %vm9067_vm13 = vnez %v9066_v63  ;;  %4408 = vmatprep.subr.bf16.mxu1 %v2217_v51  ;;  %4438 = vmatprep.subr.bf16.mxu0 %v2347_v16  ;;  %v2333_v37 = vpop.permute.xlu1 %2332  ;;  %v2219_v53 = vpop.permute.xlu0 %2218  ;;  %v9095_v51 = vld [vmem:[#allocation37_spill] sm:$0xff] }
 0x2bb   : > { %3968 = vmatprep.mubr.msk.bf16.mxu0 %vm9054_vm14, %v8501_v8  ;;  %vm9055_vm2 = vmmov %vm9047_vm0  ;;  %vm1834_vm14 = vcmp.eq.s32.totalorder %v5288_v7, %v1820_v25 }
 0x2bc   : > { %vm7437_vm12 = vmand %vm1869_vm5, %vm9055_vm2  ;;  %vm1836_vm2 = vcmp.eq.s32.totalorder %v5288_v7, %v1821_v29  ;;  %v9093_v29 = vld [vmem:[#allocation35_spill] sm:$0xff] }
 0x2bd   : > { %vm9060_vm0 = vmpackc.low %vm9058_vm6, %vm9059_vm15  ;;  %vm9062_vm15 = vcmp.ge.s32.totalorder %v5471_v18, 0  ;;  %vm9065_vm6 = vnez %v9064_v23  ;;  %4409 = vmatpush3.bf16.msra.mxu1 %v2201_v54  ;;  %v9118_v23 = vld [vmem:[#allocation42_spill] sm:$0xff] }
 0x2be   : > { %3980 = vmatprep.mubr.msk.bf16.mxu1 %vm9060_vm0, %v8501_v8  ;;  %vm8381_vm4 = vmpackc.low %vm7379_vm3, %vm9061_vm9  ;;  %4410 = vmatprep.subr.bf16.mxu1 %v2219_v53  ;;  %v2335_v60 = vpop.permute.xlu1 %2334  ;;  %v2205_v56 = vpop.permute.xlu0 %2204  ;;  %v9131_v53 = vld [vmem:[#allocation45_spill] sm:$0xff] }
 0x2bf   : > { %vm3981_vm5 = vmpackc.low %vm7416_vm8, %vm7392_vm7  ;;  %3970 = vmatmul.mubr.msk.bf16.gmra.mrb[28].mxu0 %vm8381_vm4, %v8501_v8  ;;  %vm9119_vm4 = vnez %v9118_v23 }
 0x2c0   : > { %vm1866_vm0 = vmand %vm1834_vm14, %vm9062_vm15  ;;  %3982 = vmatmul.mubr.msk.bf16.gmra.mrb[88].mxu1 %vm3981_vm5, %v8501_v8  ;;  %vm9068_vm14 = vcmp.lt.s32.totalorder %v5471_v18, 16 }
 0x2c1   : > { %vm9063_vm7 = vmmov %vm9062_vm15  ;;  %4411 = vmatpush3.bf16.msra.mxu1 %v2203_v22  ;;  %v9111_v22 = vld [vmem:[#allocation40_spill] sm:$0xff] }
 0x2c2   : > { %vm1868_vm8 = vmand %vm1836_vm2, %vm9063_vm7  ;;  %vm9076_vm7 = vnez %v9075_v21  ;;  %4412 = vmatprep.subr.bf16.mxu1 %v2221_v3  ;;  %v2337_v36 = vpop.permute.xlu1 %2336  ;;  %v2351_v25 = vpop.permute.xlu0 %2350  ;;  %v9133_v21 = vld [vmem:[#allocation43_spill] sm:$0xff] }
 0x2c3   : > { %vm3987_vm11 = vmpackc.low %vm9067_vm13, %vm9065_vm6 }
 0x2c4   : > { %vm7482_vm15 = vmand %vm1866_vm0, %vm9068_vm14  ;;  %3988 = vmatprep.mubr.msk.bf16.mxu0 %vm3987_vm11, %v8501_v8  ;;  %vm9074_vm0 = vnez %v9073_v4  ;;  %vm9081_vm11 = vnez %v9080_v62 }
 0x2c5   : > { %vm9071_vm5 = vmpackc.low %vm7437_vm12, %vm7424_vm1  ;;  %vm9079_vm12 = vnez %v9078_v33  ;;  %4413 = vmatpush3.bf16.msra.mxu1 %v2205_v56 }
 0x2c6   : > { %3984 = vmatprep.mubr.msk.bf16.mxu1 %vm9071_vm5, %v8501_v8  ;;  %vm9072_vm13 = vmmov %vm9068_vm14  ;;  %vm9083_vm14 = vnez %v9082_v30  ;;  %4798 = vmatprep.subr.bf16.mxu1 %v2347_v16  ;;  %v2339_v54 = vpop.permute.xlu1 %2338  ;;  %v2353_v32 = vpop.permute.xlu0 %2352  ;;  %v9109_v16 = vld [vmem:[#allocation36_spill] sm:$0xff] }
 0x2c7   : > { %vm1884_vm2 = vmand %vm1868_vm8, %vm9072_vm13  ;;  %vm2033_vm13 = vcmp.eq.s32.totalorder %v5298_v11, %v2031_v42 }
 0x2c8   : > { %vm3985_vm6 = vmpackc.low %vm1884_vm2, %vm7482_vm15  ;;  %vm9085_vm15 = vnez %v9084_v39  ;;  %vm9087_vm2 = vnez %v9086_v61  ;;  %v9138_v39 = vld [vmem:[#allocation27_spill] sm:$0xff]  ;;  %v9143_v61 = vld [vmem:[#allocation46_spill] sm:$0xff] }
 0x2c9   : > { %vm9077_vm1 = vmpackc.low %vm9074_vm0, %vm9076_vm7  ;;  %3986 = vmatmul.mubr.msk.bf16.gmra.mrb[92].mxu1 %vm3985_vm6, %v8501_v8  ;;  %vm9088_vm6 = vnez %v8555_v38  ;;  %vm9090_vm7 = vnez %v9089_v24  ;;  %v9097_v38 = vld [vmem:[#allocation21_spill] sm:$0xff]  ;;  %v9148_v24 = vld [vmem:[#allocation66_spill] sm:$0xff] }
 0x2ca   : > { %3990 = vmatmul.mubr.msk.bf16.vlgmr.msra.gmra.mrb[32].mxu0 %vm9077_vm1, %v8501_v8  ;;  %vm3991_vm8 = vmpackc.low %vm9081_vm11, %vm9079_vm12  ;;  %vm9091_vm1 = vnez %v8565_v1  ;;  %vm9092_vm11 = vcmp.ge.s32.totalorder %v5404_v45, 0  ;;  %v2171_v1 = vadd.s32 240, %v5291_v9  ;;  %v2341_v63 = vpop.permute.xlu1 %2340 }
 0x2cb   : > { %4439 = vmatpush3.bf16.msra.mxu0 %v2331_v14  ;;  %vm4003_vm5 = vmpackc.low %vm9085_vm15, %vm9083_vm14  ;;  %3992 = vmatprep.mubr.msk.bf16.mxu0 %vm3991_vm8, %v8501_v8  ;;  %vm9094_vm14 = vnez %v9093_v29  ;;  %vm9096_vm15 = vnez %v9095_v51 }
 0x2cc   : > { %4440 = vmatprep.subr.bf16.mxu0 %v2349_v15  ;;  %4004 = vmatprep.mubr.msk.bf16.mxu1 %vm4003_vm5, %v8501_v8  ;;  %vm3993_vm0 = vmpackc.low %vm9088_vm6, %vm9087_vm2  ;;  %vm9098_vm2 = vnez %v9097_v38  ;;  %vm9100_vm6 = vnez %v9099_v0 }
 0x2cd   : > { %vm3995_vm12 = vmpackc.low %vm9091_vm1, %vm9090_vm7  ;;  %vm9106_vm1 = vnez %v9105_v19 }
 0x2ce   : > { %vm2037_vm8 = vmand %vm2033_vm13, %vm9092_vm11  ;;  %vm9102_vm13 = vcmp.lt.s32.totalorder %v5404_v45, 16  ;;  %vm9108_vm11 = vnez %v9107_v31  ;;  %v2343_v4 = vpop.permute.xlu1 %2342 }
 0x2cf   : > { %4441 = vmatpush3.bf16.msra.mxu0 %v2333_v37  ;;  %vm4007_vm5 = vmpackc.low %vm9096_vm15, %vm9094_vm14  ;;  %vm2032_vm15 = vcmp.eq.s32.totalorder %v5288_v7, %v2031_v42  ;;  %v2311_v42 = vadd.s32 240, %v5471_v18 }
 0x2d0   : > { %4442 = vmatprep.subr.bf16.mxu0 %v2351_v25  ;;  %vm9101_vm7 = vmpackc.low %vm9098_vm2, %vm9100_vm6  ;;  %vm9114_vm6 = vnez %v9113_v27 }
 0x2d1   : > { %4006 = vmatmul.mubr.msk.bf16.vlgmr.msra.gmra.mrb[96].mxu1 %vm9101_vm7, %v8501_v8  ;;  %vm3997_vm14 = vmpackc.low %vm9108_vm11, %vm9106_vm1  ;;  %vm9117_vm11 = vnez %v9116_v13 }
 0x2d2   : > { %3994 = vmatmul.mubr.msk.bf16.gmra.mrb[36].mxu0 %vm3993_vm0, %v8501_v8  ;;  %4806 = vmatpush3.bf16.msra.mxu1 %v2331_v14  ;;  %vm7541_vm0 = vmand %vm2037_vm8, %vm9102_vm13  ;;  %vm9112_vm8 = vnez %v9111_v22  ;;  %vm9115_vm13 = vcmp.ge.s32.totalorder %v5404_v45, 0  ;;  %v2355_v14 = vpop.permute.xlu0 %2354  ;;  %v2345_v56 = vpop.permute.xlu1 %2344 }
 0x2d3   : > { %4443 = vmatpush3.bf16.msra.mxu0 %v2335_v60  ;;  %3996 = vmatprep.mubr.msk.bf16.mxu0 %vm3995_vm12, %v8501_v8  ;;  %vm9110_vm12 = vnez %v9109_v16  ;;  %vm3999_vm7 = vmpackc.low %vm7541_vm0, %vm9114_vm6 }
 0x2d4   : > { %4799 = vmatprep.subr.bf16.mxu1 %v2349_v15  ;;  %4008 = vmatprep.mubr.msk.bf16.mxu1 %vm4007_vm5, %v8501_v8  ;;  %vm4009_vm2 = vmpackc.low %vm9112_vm8, %vm9110_vm12  ;;  %vm2173_vm5 = vcmp.eq.s32.totalorder %v5298_v11, %v2171_v1  ;;  %vm9120_vm12 = vcmp.ge.s32.totalorder %v5291_v9, 0  ;;  %vm9121_vm8 = vcmp.lt.s32.totalorder %v5404_v45, 16  ;;  %v9129_v45 = vld [vmem:[#allocation41_spill] sm:$0xff] }
 0x2d5   : > { %4444 = vmatprep.subr.bf16.mxu0 %v2353_v32  ;;  %vm2036_vm1 = vmand %vm2032_vm15, %vm9115_vm13  ;;  %vm9132_vm13 = vnez %v9131_v53 }
 0x2d6   : > { %4807 = vmatpush3.bf16.msra.mxu1 %v2333_v37  ;;  %vm4011_vm9 = vmpackc.low %vm9119_vm4, %vm9117_vm11  ;;  %v2357_v15 = vpop.permute.xlu0 %2356  ;;  %vm9124_vm4 = vcmp.lt.s32.totalorder %v5291_v9, 16  ;;  %v9127_v37 = vld [vmem:[#allocation59_spill] sm:$0xff]  ;;  %v9145_v9 = vld [vmem:[#allocation60_spill] sm:$0xff] }
 0x2d7   : > { %4445 = vmatpush3.bf16.msra.mxu0 %v2337_v36  ;;  %4800 = vmatprep.subr.bf16.mxu1 %v2351_v25  ;;  %vm2177_vm0 = vmand %vm2173_vm5, %vm9120_vm12  ;;  %vm2172_vm5 = vcmp.eq.s32.totalorder %v5288_v7, %v2171_v1  ;;  %v9153_v25 = vld [vmem:[#allocation29_spill] sm:$0xff] }
 0x2d8   : > { %4446 = vmatprep.subr.bf16.mxu0 %v2355_v14  ;;  %vm7572_vm15 = vmand %vm2036_vm1, %vm9121_vm8  ;;  %vm9134_vm1 = vnez %v9133_v21 }
 0x2d9   : > { %4010 = vmatmul.mubr.msk.bf16.gmra.mrb[100].mxu1 %vm4009_vm2, %v8501_v8  ;;  %vm9128_vm2 = vnez %v9127_v37  ;;  %vm9135_vm8 = vmmov %vm9124_vm4 }
 0x2da   : > { %3998 = vmatmul.mubr.msk.bf16.gmra.mrb[40].mxu0 %vm3997_vm14, %v8501_v8  ;;  %4808 = vmatpush3.bf16.msra.mxu1 %v2335_v60  ;;  %vm7580_vm14 = vmand %vm2177_vm0, %vm9124_vm4  ;;  %v2359_v33 = vpop.permute.xlu0 %2358  ;;  %vm9139_vm4 = vnez %v9138_v39  ;;  %v9140_v60 = vld [vmem:[#allocation26_spill] sm:$0xff] }
 0x2db   : > { %4447 = vmatpush3.bf16.msra.mxu0 %v2339_v54  ;;  %4000 = vmatprep.mubr.msk.bf16.mxu0 %vm3999_vm7, %v8501_v8  ;;  %vm4001_vm6 = vmpackc.low %vm7572_vm15, %vm9128_vm2  ;;  %vm9130_vm7 = vnez %v9129_v45 }
 0x2dc   : > { %4801 = vmatprep.subr.bf16.mxu1 %v2353_v32  ;;  %4012 = vmatprep.mubr.msk.bf16.mxu1 %vm4011_vm9, %v8501_v8  ;;  %vm4013_vm9 = vmpackc.low %vm9132_vm13, %vm9130_vm7  ;;  %vm9146_vm7 = vnez %v9145_v9  ;;  %vm9147_vm13 = vnez %v8652_v6  ;;  %v4134_v6 = vpop.f32.mrb[32].mxu1 }
 0x2dd   : > { %4448 = vmatprep.subr.bf16.mxu0 %v2357_v15  ;;  %vm4015_vm11 = vmpackc.low %vm7580_vm14, %vm9134_vm1  ;;  %vm9141_vm14 = vnez %v9140_v60  ;;  %vm2313_vm1 = vcmp.eq.s32.totalorder %v5298_v11, %v2311_v42  ;;  %v9158_v11 = vld [vmem:[#allocation63_spill] sm:$0xff] }
 0x2de   : > { %4809 = vmatpush3.bf16.msra.mxu1 %v2337_v36  ;;  %vm2176_vm0 = vmand %vm2172_vm5, %vm9120_vm12  ;;  %v2361_v30 = vpop.permute.xlu0 %2360  ;;  %vm9150_vm12 = vnez %v8710_v49  ;;  %v9151_v36 = vld [vmem:[#allocation30_spill] sm:$0xff] }
 0x2df   : > { %4449 = vmatpush3.bf16.msra.mxu0 %v2341_v63  ;;  %4802 = vmatprep.subr.bf16.mxu1 %v2355_v14  ;;  %vm7604_vm15 = vmand %vm2176_vm0, %vm9135_vm8  ;;  %vm9152_vm8 = vnez %v9151_v36 }
 0x2e0   : > { %4450 = vmatprep.subr.bf16.mxu0 %v2359_v33  ;;  %vm9142_vm2 = vmpackc.low %vm9139_vm4, %vm9141_vm14  ;;  %vm9154_vm4 = vnez %v9153_v25  ;;  %vm9156_vm14 = vcmp.ge.s32.totalorder %v5471_v18, 0  ;;  %v9168_v25 = vld [vmem:[#allocation10_spill] sm:$0xff] }
 0x2e1   : > { %4014 = vmatmul.mubr.msk.bf16.gmra.mrb[104].mxu1 %vm4013_vm9, %v8501_v8  ;;  %vm4023_vm9 = vmpackc.low %vm9147_vm13, %vm9146_vm7  ;;  %vm9159_vm13 = vnez %v9158_v11 }
 0x2e2   : > { %4002 = vmatmul.mubr.msk.bf16.gmra.mrb[44].mxu0 %vm4001_vm6, %v8501_v8  ;;  %4810 = vmatpush3.bf16.msra.mxu1 %v2339_v54  ;;  %vm9144_vm6 = vnez %v9143_v61  ;;  %v2509_v61 = vld [vmem:[%s8203_s6] sm:$0xf] }
 0x2e3   : > { %4451 = vmatpush3.bf16.msra.mxu0 %v2343_v4  ;;  %4016 = vmatprep.mubr.msk.bf16.mxu1 %vm4015_vm11, %v8501_v8  ;;  %vm4017_vm5 = vmpackc.low %vm7604_vm15, %vm9144_vm6  ;;  %vm9149_vm11 = vnez %v9148_v24  ;;  %vm9157_vm6 = vcmp.lt.s32.totalorder %v5471_v18, 16 }
 0x2e4   : > { %4803 = vmatprep.subr.bf16.mxu1 %v2357_v15  ;;  %4020 = vmatprep.mubr.msk.bf16.mxu0 %vm9142_vm2, %v8501_v8  ;;  %vm4027_vm0 = vmpackc.low %vm9150_vm12, %vm9149_vm11  ;;  %vm9160_vm11 = vnez %v8690_v12  ;;  %v4135_v12 = vpop.f32.mrb[33].mxu1 }
 0x2e5   : > { %4452 = vmatprep.subr.bf16.mxu0 %v2361_v30  ;;  %vm9155_vm15 = vmpackc.low %vm9152_vm8, %vm9154_vm4  ;;  %vm2312_vm8 = vcmp.eq.s32.totalorder %v5288_v7, %v2311_v42  ;;  %vm9163_vm4 = vnez %v8500_v43  ;;  %v4136_v49 = vadd.f32 %v4135_v12, %v4134_v6 }
 0x2e6   : > { %4811 = vmatpush3.bf16.msra.mxu1 %v2341_v63  ;;  %vm2317_vm2 = vmand %vm2313_vm1, %vm9156_vm14 }
 0x2e7   : > { %4453 = vmatpush3.bf16.msra.mxu0 %v2345_v56  ;;  %4804 = vmatprep.subr.bf16.mxu1 %v2359_v33  ;;  %vm2319_vm7 = vmand %vm2317_vm2, %vm9157_vm6 }
 0x2e8   : > { %vm4025_vm12 = vmpackc.low %vm9160_vm11, %vm9159_vm13  ;;  %vm9167_vm13 = vnez %v8751_v55  ;;  %vm2523_vm11 = vcmask 1043456  }
 0x2e9   : > { %4018 = vmatmul.mubr.msk.bf16.gmra.mrb[108].mxu1 %vm4017_vm5, %v8501_v8  ;;  %vm9161_vm5 = vnez %v8713_v58  ;;  %vm9162_vm1 = vmmov %vm9156_vm14  ;;  %v4137_v58 = vpop.f32.mrb[34].mxu1  ;;  %v2525_v9 = vsel %vm2523_vm11, %v2509_v61, 0 }
 0x2ea   : > { %4022 = vmatmul.mubr.msk.bf16.vlgmr.msra.gmra.mrb[48].mxu0 %vm9155_vm15, %v8501_v8  ;;  %4812 = vmatpush3.bf16.msra.mxu1 %v2343_v4  ;;  %vm9164_vm15 = vnez %v8497_v52  ;;  %vm9166_vm2 = vmmov %vm9157_vm6  ;;  %v4138_v29 = vpop.f32.mrb[35].mxu1 }
 0x2eb   : > { %4024 = vmatprep.mubr.msk.bf16.mxu0 %vm4023_vm9, %v8501_v8  ;;  %4028 = vmatprep.mubr.msk.bf16.mxu1 %vm4027_vm0, %v8501_v8  ;;  %vm4031_vm9 = vmpackc.low %vm2319_vm7, %vm9161_vm5  ;;  %v4139_v43 = vadd.f32 %v4138_v29, %v4137_v58  ;;  %v4140_v51 = vpop.f32.mrb[36].mxu1  ;;  %vm2510_vm5 = vcmask 64512  }
 0x2ec   : > { %4805 = vmatprep.subr.bf16.mxu1 %v2361_v30  ;;  %vm2316_vm0 = vmand %vm2312_vm8, %vm9162_vm1  ;;  %v4141_v52 = vpop.f32.mrb[37].mxu1 }
 0x2ed   : > { %vm9165_vm14 = vmpackc.low %vm9163_vm4, %vm9164_vm15  ;;  %v4142_v38 = vadd.f32 %v4141_v52, %v4140_v51  ;;  %v4143_v0 = vpop.f32.mrb[38].mxu1 }
 0x2ee   : > { %4813 = vmatpush3.bf16.msra.mxu1 %v2345_v56  ;;  %vm2318_vm6 = vmand %vm2316_vm0, %vm9166_vm2  ;;  %v4144_v1 = vpop.f32.mrb[39].mxu1  ;;  %vm9174_vm2 = vnez %v8794_v59  ;;  %v9185_v59 = vld [vmem:[#allocation17_spill] sm:$0xff] }
 0x2ef   : > { %vm4033_vm7 = vmpackc.low %vm2318_vm6, %vm9167_vm13  ;;  %v4145_v50 = vadd.f32 %v4144_v1, %v4143_v0  ;;  %v4146_v54 = vpop.f32.mrb[40].mxu1  ;;  %4887 = vmatprep.subr.msk.bf16.mxu1 %vm2523_vm11, %v2509_v61  ;;  %vm9175_vm6 = vnez %v8791_v28  ;;  %v9186_v28 = vld [vmem:[#allocation9_spill] sm:$0xff]  ;;  %vm9188_vm11 = vnez %v8834_v20 }
 0x2f0   : > { %v4147_v18 = vpop.f32.mrb[41].mxu1  ;;  %vm9176_vm13 = vmpackc.low %vm9174_vm2, %vm9175_vm6  ;;  %vm9197_vm2 = vnez %v8922_v10  ;;  %v9206_v10 = vld [vmem:[#allocation18_spill] sm:$0xff] }
 0x2f1   : > { %4030 = vmatmul.mubr.msk.bf16.vlgmr.msra.gmra.mrb[112].mxu1 %vm9165_vm14, %v8501_v8  ;;  %v4148_v32 = vadd.f32 %v4147_v18, %v4146_v54  ;;  %v4149_v19 = vpop.f32.mrb[42].mxu1 }
 0x2f2   : > { %4026 = vmatmul.mubr.msk.bf16.gmra.mrb[52].mxu0 %vm4025_vm12, %v8501_v8  ;;  %4032 = vmatprep.mubr.msk.bf16.mxu1 %vm4031_vm9, %v8501_v8  ;;  %v4150_v55 = vpop.f32.mrb[43].mxu1 }
 0x2f3   : > { %v4151_v31 = vadd.f32 %v4150_v55, %v4149_v19  ;;  %v4152_v16 = vpop.f32.mrb[44].mxu1  ;;  %4635 = vmatpush3.bf16.msra.mxu1 %v2525_v9 }
 0x2f4   : > { %v4153_v22 = vpop.f32.mrb[45].mxu1  ;;  %4555 = vmatprep.subr.bf16.mxu1 %v9168_v25 }
 0x2f5   : > { %v4154_v27 = vadd.f32 %v4153_v22, %v4152_v16  ;;  %v4155_v14 = vpop.f32.mrb[46].mxu1 }
 0x2f6   : > { %v4156_v13 = vpop.f32.mrb[47].mxu1 }
 0x2f7   : > { %v4157_v23 = vadd.f32 %v4156_v13, %v4155_v14  ;;  %v4174_v63 = vpop.f32.mrb[48].mxu1 }
 0x2f8   : > { %v4175_v17 = vpop.f32.mrb[49].mxu1 }
 0x2f9   : > { %4034 = vmatmul.mubr.msk.bf16.gmra.mrb[116].mxu1 %vm4033_vm7, %v8501_v8  ;;  %v4176_v15 = vadd.f32 %v4175_v17, %v4174_v63  ;;  %v4177_v3 = vpop.f32.mrb[50].mxu1  ;;  %vm9187_vm7 = vnez %v8850_v47 }
 0x2fa   : > { %v4178_v37 = vpop.f32.mrb[51].mxu1 }
 0x2fb   : > { %v1131_v45 = vadd.f32 %v4176_v15, %v4136_v49  ;;  %v4179_v53 = vadd.f32 %v4178_v37, %v4177_v3  ;;  %v4180_v21 = vpop.f32.mrb[52].mxu1 }
 0x2fc   : > { %v4181_v33 = vpop.f32.mrb[53].mxu1 }
 0x2fd   : > { %v1134_v4 = vadd.f32 %v4179_v53, %v4139_v43  ;;  %v4182_v62 = vadd.f32 %v4181_v33, %v4180_v21  ;;  %v4183_v42 = vpop.f32.mrb[54].mxu1 }
 0x2fe   : > { %v4184_v30 = vpop.f32.mrb[55].mxu1 }
 0x2ff   : > { %v1139_v39 = vadd.f32 %v4182_v62, %v4142_v38  ;;  %v4185_v60 = vadd.f32 %v4184_v30, %v4183_v42 }
 0x301   : > { %v1142_v56 = vadd.f32 %v4185_v60, %v4145_v50 }
 0x303   : > { %v4186_v24 = vpop.f32.mrb[56].mxu1 }
 0x304   : > { %v4187_v36 = vpop.f32.mrb[57].mxu1 }
 0x305   : > { %v4188_v11 = vadd.f32 %v4187_v36, %v4186_v24  ;;  %v4189_v6 = vpop.f32.mrb[58].mxu1 }
 0x306   : > { %v4190_v12 = vpop.f32.mrb[59].mxu1 }
 0x307   : > { %v1147_v49 = vadd.f32 %v4188_v11, %v4148_v32  ;;  %v4191_v58 = vadd.f32 %v4190_v12, %v4189_v6 }
 0x309   : > { %v1150_v29 = vadd.f32 %v4191_v58, %v4151_v31 }
 0x30f   : > { %v4214_v51 = vpop.f32.mrb[0].mxu0 }
 0x310   : > { %v4215_v38 = vpop.f32.mrb[1].mxu0 }
 0x311   : > { %v4216_v1 = vadd.f32 %v4215_v38, %v4214_v51  ;;  %v4217_v54 = vpop.f32.mrb[2].mxu0 }
 0x312   : > { %v4218_v19 = vpop.f32.mrb[3].mxu0 }
 0x313   : > { %v1375_v16 = vadd.f32 %v4216_v1, %v1131_v45  ;;  %v4219_v14 = vadd.f32 %v4218_v19, %v4217_v54 }
 0x315   : > { %v1376_v63 = vadd.f32 %v4219_v14, %v1134_v4 }
 0x318   : > { %v4192_v43 = vpop.f32.mrb[60].mxu1 }
 0x319   : > { %v4193_v52 = vpop.f32.mrb[61].mxu1 }
 0x31a   : > { %v4194_v0 = vadd.f32 %v4193_v52, %v4192_v43  ;;  %v4195_v50 = vpop.f32.mrb[62].mxu1 }
 0x31b   : > { %v4196_v18 = vpop.f32.mrb[63].mxu1 }
 0x31c   : > { %v1155_v55 = vadd.f32 %v4194_v0, %v4154_v27  ;;  %v4197_v22 = vadd.f32 %v4196_v18, %v4195_v50 }
 0x31e   : > { %v1158_v13 = vadd.f32 %v4197_v22, %v4157_v23 }
 0x32c   : > { %v4220_v17 = vpop.f32.mrb[4].mxu0 }
 0x32d   : > { %v4221_v15 = vpop.f32.mrb[5].mxu0 }
 0x32e   : > { %v4222_v31 = vadd.f32 %v4221_v15, %v4220_v17  ;;  %v4223_v37 = vpop.f32.mrb[6].mxu0 }
 0x32f   : > { %v4254_v32 = vpop.f32.mrb[64].mxu1  ;;  %v4224_v33 = vpop.f32.mrb[7].mxu0 }
 0x330   : > { %v4255_v3 = vpop.f32.mrb[65].mxu1  ;;  %v1377_v62 = vadd.f32 %v4222_v31, %v1139_v39  ;;  %v4225_v42 = vadd.f32 %v4224_v33, %v4223_v37 }
 0x331   : > { %v4256_v53 = vadd.f32 %v4255_v3, %v4254_v32  ;;  %v4257_v21 = vpop.f32.mrb[66].mxu1 }
 0x332   : > { %v4258_v30 = vpop.f32.mrb[67].mxu1  ;;  %v1378_v27 = vadd.f32 %v4225_v42, %v1142_v56 }
 0x333   : > { %v1591_v60 = vadd.f32 %v4256_v53, %v1375_v16  ;;  %v4259_v61 = vadd.f32 %v4258_v30, %v4257_v21 }
 0x335   : > { %v1592_v45 = vadd.f32 %v4259_v61, %v1376_v63 }
 0x346   : > { %v4226_v9 = vpop.f32.mrb[8].mxu0 }
 0x347   : > { %v4227_v23 = vpop.f32.mrb[9].mxu0 }
 0x348   : > { %v4260_v24 = vpop.f32.mrb[68].mxu1  ;;  %v4228_v4 = vadd.f32 %v4227_v23, %v4226_v9  ;;  %v4229_v25 = vpop.f32.mrb[10].mxu0 }
 0x349   : > { %v4261_v36 = vpop.f32.mrb[69].mxu1  ;;  %v4230_v12 = vpop.f32.mrb[11].mxu0 }
 0x34a   : > { %v4262_v11 = vadd.f32 %v4261_v36, %v4260_v24  ;;  %v4263_v6 = vpop.f32.mrb[70].mxu1  ;;  %v1379_v58 = vadd.f32 %v4228_v4, %v1147_v49  ;;  %v4231_v43 = vadd.f32 %v4230_v12, %v4229_v25 }
 0x34b   : > { %v4264_v51 = vpop.f32.mrb[71].mxu1 }
 0x34c   : > { %v1593_v52 = vadd.f32 %v4262_v11, %v1377_v62  ;;  %v4265_v39 = vadd.f32 %v4264_v51, %v4263_v6  ;;  %v1380_v38 = vadd.f32 %v4231_v43, %v1150_v29 }
 0x34e   : > { %v1594_v0 = vadd.f32 %v4265_v39, %v1378_v27 }
 0x35c   : > { %v4232_v1 = vpop.f32.mrb[12].mxu0 }
 0x35d   : > { %v4233_v56 = vpop.f32.mrb[13].mxu0 }
 0x35e   : > { %v4266_v50 = vpop.f32.mrb[72].mxu1  ;;  %v4234_v54 = vadd.f32 %v4233_v56, %v4232_v1  ;;  %v4235_v19 = vpop.f32.mrb[14].mxu0 }
 0x35f   : > { %v4267_v18 = vpop.f32.mrb[73].mxu1  ;;  %v4236_v14 = vpop.f32.mrb[15].mxu0 }
 0x360   : > { %v4268_v16 = vadd.f32 %v4267_v18, %v4266_v50  ;;  %v4269_v22 = vpop.f32.mrb[74].mxu1  ;;  %v1381_v63 = vadd.f32 %v4234_v54, %v1155_v55  ;;  %v4237_v17 = vadd.f32 %v4236_v14, %v4235_v19 }
 0x361   : > { %v4270_v32 = vpop.f32.mrb[75].mxu1 }
 0x362   : > { %v1595_v15 = vadd.f32 %v4268_v16, %v1379_v58  ;;  %v4271_v49 = vadd.f32 %v4270_v32, %v4269_v22  ;;  %v1382_v31 = vadd.f32 %v4237_v17, %v1158_v13 }
 0x364   : > { %v1596_v3 = vadd.f32 %v4271_v49, %v1380_v38 }
 0x36c   : > { %v4272_v37 = vpop.f32.mrb[76].mxu1 }
 0x36d   : > { %v4294_v53 = vpop.f32.mrb[16].mxu0  ;;  %v4273_v29 = vpop.f32.mrb[77].mxu1 }
 0x36e   : > { %v4295_v21 = vpop.f32.mrb[17].mxu0  ;;  %v4274_v33 = vadd.f32 %v4273_v29, %v4272_v37  ;;  %v4275_v42 = vpop.f32.mrb[78].mxu1 }
 0x36f   : > { %v4296_v62 = vadd.f32 %v4295_v21, %v4294_v53  ;;  %v4297_v30 = vpop.f32.mrb[18].mxu0  ;;  %v4276_v61 = vpop.f32.mrb[79].mxu1 }
 0x370   : > { %v4298_v27 = vpop.f32.mrb[19].mxu0  ;;  %v1597_v9 = vadd.f32 %v4274_v33, %v1381_v63  ;;  %v4277_v23 = vadd.f32 %v4276_v61, %v4275_v42 }
 0x371   : > { %v1807_v24 = vadd.f32 %v4296_v62, %v1591_v60  ;;  %v4299_v55 = vadd.f32 %v4298_v27, %v4297_v30 }
 0x372   : > { %v1598_v4 = vadd.f32 %v4277_v23, %v1382_v31 }
 0x373   : > { %v1808_v36 = vadd.f32 %v4299_v55, %v1592_v45 }
 0x37a   : > { %v4300_v25 = vpop.f32.mrb[20].mxu0 }
 0x37b   : > { %v4334_v11 = vpop.f32.mrb[80].mxu1  ;;  %v4301_v13 = vpop.f32.mrb[21].mxu0 }
 0x37c   : > { %v4302_v6 = vadd.f32 %v4301_v13, %v4300_v25  ;;  %v4335_v12 = vpop.f32.mrb[81].mxu1  ;;  %v4303_v58 = vpop.f32.mrb[22].mxu0 }
 0x37d   : > { %v4336_v43 = vadd.f32 %v4335_v12, %v4334_v11  ;;  %v4337_v51 = vpop.f32.mrb[82].mxu1  ;;  %v4304_v39 = vpop.f32.mrb[23].mxu0 }
 0x37e   : > { %v1809_v38 = vadd.f32 %v4302_v6, %v1593_v52  ;;  %v4305_v1 = vadd.f32 %v4304_v39, %v4303_v58  ;;  %v4338_v50 = vpop.f32.mrb[83].mxu1 }
 0x37f   : > { %v2023_v56 = vadd.f32 %v4336_v43, %v1807_v24  ;;  %v4339_v54 = vadd.f32 %v4338_v50, %v4337_v51 }
 0x380   : > { %v1810_v18 = vadd.f32 %v4305_v1, %v1594_v0 }
 0x381   : > { %v2024_v60 = vadd.f32 %v4339_v54, %v1808_v36 }
 0x387   : > { %v4306_v19 = vpop.f32.mrb[24].mxu0 }
 0x388   : > { %v4307_v22 = vpop.f32.mrb[25].mxu0 }
 0x389   : > { %v4308_v45 = vadd.f32 %v4307_v22, %v4306_v19  ;;  %v4309_v63 = vpop.f32.mrb[26].mxu0 }
 0x38a   : > { %v4340_v16 = vpop.f32.mrb[84].mxu1  ;;  %v4310_v49 = vpop.f32.mrb[27].mxu0 }
 0x38b   : > { %v4341_v14 = vpop.f32.mrb[85].mxu1  ;;  %v1811_v31 = vadd.f32 %v4308_v45, %v1595_v15  ;;  %v4311_v37 = vadd.f32 %v4310_v49, %v4309_v63 }
 0x38c   : > { %v4342_v17 = vadd.f32 %v4341_v14, %v4340_v16  ;;  %v4343_v32 = vpop.f32.mrb[86].mxu1 }
 0x38d   : > { %v4344_v53 = vpop.f32.mrb[87].mxu1  ;;  %v1812_v21 = vadd.f32 %v4311_v37, %v1596_v3 }
 0x38e   : > { %v2025_v29 = vadd.f32 %v4342_v17, %v1809_v38  ;;  %v4345_v52 = vadd.f32 %v4344_v53, %v4343_v32 }
 0x390   : > { %v2026_v33 = vadd.f32 %v4345_v52, %v1810_v18 }
 0x392   : > { %v4312_v62 = vpop.f32.mrb[28].mxu0 }
 0x393   : > { %v4346_v42 = vpop.f32.mrb[88].mxu1  ;;  %v4313_v0 = vpop.f32.mrb[29].mxu0 }
 0x394   : > { %v4314_v30 = vadd.f32 %v4313_v0, %v4312_v62  ;;  %v4347_v61 = vpop.f32.mrb[89].mxu1  ;;  %v4315_v27 = vpop.f32.mrb[30].mxu0 }
 0x395   : > { %v4348_v24 = vadd.f32 %v4347_v61, %v4346_v42  ;;  %v4349_v23 = vpop.f32.mrb[90].mxu1  ;;  %v4316_v55 = vpop.f32.mrb[31].mxu0 }
 0x396   : > { %v1813_v36 = vadd.f32 %v4314_v30, %v1597_v9  ;;  %v4317_v25 = vadd.f32 %v4316_v55, %v4315_v27  ;;  %v4350_v11 = vpop.f32.mrb[91].mxu1 }
 0x397   : > { %v2027_v13 = vadd.f32 %v4348_v24, %v1811_v31  ;;  %v4351_v15 = vadd.f32 %v4350_v11, %v4349_v23 }
 0x398   : > { %v1814_v6 = vadd.f32 %v4317_v25, %v1598_v4 }
 0x399   : > { %v2028_v12 = vadd.f32 %v4351_v15, %v1812_v21 }
 0x39c   : > { %v4352_v43 = vpop.f32.mrb[92].mxu1 }
 0x39d   : > { %v4374_v58 = vpop.f32.mrb[32].mxu0  ;;  %v4353_v51 = vpop.f32.mrb[93].mxu1 }
 0x39e   : > { %v4375_v3 = vpop.f32.mrb[33].mxu0  ;;  %v4354_v1 = vadd.f32 %v4353_v51, %v4352_v43  ;;  %v4355_v50 = vpop.f32.mrb[94].mxu1 }
 0x39f   : > { %v4376_v39 = vadd.f32 %v4375_v3, %v4374_v58  ;;  %v4377_v38 = vpop.f32.mrb[34].mxu0  ;;  %v4356_v19 = vpop.f32.mrb[95].mxu1 }
 0x3a0   : > { %v4378_v54 = vpop.f32.mrb[35].mxu0  ;;  %v2029_v22 = vadd.f32 %v4354_v1, %v1813_v36  ;;  %v4357_v9 = vadd.f32 %v4356_v19, %v4355_v50 }
 0x3a1   : > { %v2163_v18 = vadd.f32 %v4376_v39, %v2023_v56  ;;  %v4379_v16 = vadd.f32 %v4378_v54, %v4377_v38 }
 0x3a2   : > { %v2030_v14 = vadd.f32 %v4357_v9, %v1814_v6 }
 0x3a3   : > { %v2164_v45 = vadd.f32 %v4379_v16, %v2024_v60 }
 0x3a4   : > { %v4414_v17 = vpop.f32.mrb[96].mxu1 }
 0x3a5   : > { %v4380_v63 = vpop.f32.mrb[36].mxu0  ;;  %v4415_v49 = vpop.f32.mrb[97].mxu1 }
 0x3a6   : > { %v4381_v4 = vpop.f32.mrb[37].mxu0  ;;  %v4416_v37 = vadd.f32 %v4415_v49, %v4414_v17  ;;  %v4417_v53 = vpop.f32.mrb[98].mxu1 }
 0x3a7   : > { %v4382_v32 = vadd.f32 %v4381_v4, %v4380_v63  ;;  %v4383_v31 = vpop.f32.mrb[38].mxu0  ;;  %v4418_v42 = vpop.f32.mrb[99].mxu1 }
 0x3a8   : > { %v4384_v52 = vpop.f32.mrb[39].mxu0  ;;  %v2303_v0 = vadd.f32 %v4416_v37, %v2163_v18  ;;  %v4419_v56 = vadd.f32 %v4418_v42, %v4417_v53  ;;  %v7670_v42 = vld [vmem:[%s8201_s4] ss:$0 sm:$0xff] }
 0x3a9   : > { %v2165_v21 = vadd.f32 %v4382_v32, %v2025_v29  ;;  %v4385_v62 = vadd.f32 %v4384_v52, %v4383_v31 }
 0x3aa   : > { %v2304_v61 = vadd.f32 %v4419_v56, %v2164_v45 }
 0x3ab   : > { %v2166_v30 = vadd.f32 %v4385_v62, %v2026_v33 }
 0x3ac   : > { %v4420_v24 = vpop.f32.mrb[100].mxu1 }
 0x3ad   : > { %v4386_v27 = vpop.f32.mrb[40].mxu0  ;;  %v4421_v55 = vpop.f32.mrb[101].mxu1 }
 0x3ae   : > { %v4387_v60 = vpop.f32.mrb[41].mxu0  ;;  %v4422_v25 = vadd.f32 %v4421_v55, %v4420_v24  ;;  %v4423_v11 = vpop.f32.mrb[102].mxu1 }
 0x3af   : > { %v4388_v23 = vadd.f32 %v4387_v60, %v4386_v27  ;;  %v4389_v36 = vpop.f32.mrb[42].mxu0  ;;  %v4424_v43 = vpop.f32.mrb[103].mxu1 }
 0x3b0   : > { %v4390_v15 = vpop.f32.mrb[43].mxu0  ;;  %v2305_v3 = vadd.f32 %v4422_v25, %v2165_v21  ;;  %v4425_v29 = vadd.f32 %v4424_v43, %v4423_v11 }
 0x3b1   : > { %v2167_v6 = vadd.f32 %v4388_v23, %v2027_v13  ;;  %v4391_v58 = vadd.f32 %v4390_v15, %v4389_v36 }
 0x3b2   : > { %v2306_v39 = vadd.f32 %v4425_v29, %v2166_v30 }
 0x3b3   : > { %v2168_v51 = vadd.f32 %v4391_v58, %v2028_v12 }
 0x3b4   : > { %v4426_v1 = vpop.f32.mrb[104].mxu1 }
 0x3b5   : > { %v4392_v38 = vpop.f32.mrb[44].mxu0  ;;  %v4427_v54 = vpop.f32.mrb[105].mxu1 }
 0x3b6   : > { %v4393_v33 = vpop.f32.mrb[45].mxu0  ;;  %v4428_v19 = vadd.f32 %v4427_v54, %v4426_v1  ;;  %v4429_v16 = vpop.f32.mrb[106].mxu1 }
 0x3b7   : > { %v4394_v50 = vadd.f32 %v4393_v33, %v4392_v38  ;;  %v4395_v18 = vpop.f32.mrb[46].mxu0  ;;  %v4430_v17 = vpop.f32.mrb[107].mxu1 }
 0x3b8   : > { %v4396_v9 = vpop.f32.mrb[47].mxu0  ;;  %v2307_v4 = vadd.f32 %v4428_v19, %v2167_v6  ;;  %v4431_v13 = vadd.f32 %v4430_v17, %v4429_v16 }
 0x3b9   : > { %v2169_v45 = vadd.f32 %v4394_v50, %v2029_v22  ;;  %v4397_v63 = vadd.f32 %v4396_v9, %v4395_v18 }
 0x3ba   : > { %v2308_v49 = vadd.f32 %v4431_v13, %v2168_v51 }
 0x3bb   : > { %v2170_v32 = vadd.f32 %v4397_v63, %v2030_v14  ;;  %v7675_v14 = vld [vmem:[%s8202_s5] ss:$0 sm:$0xff] }
 0x3bc   : > { %v4432_v37 = vpop.f32.mrb[108].mxu1 }
 0x3bd   : > { %v4454_v31 = vpop.f32.mrb[48].mxu0  ;;  %v4433_v53 = vpop.f32.mrb[109].mxu1 }
 0x3be   : > { %v4455_v12 = vpop.f32.mrb[49].mxu0  ;;  %v4434_v62 = vadd.f32 %v4433_v53, %v4432_v37  ;;  %v4435_v56 = vpop.f32.mrb[110].mxu1 }
 0x3bf   : > { %v4456_v52 = vadd.f32 %v4455_v12, %v4454_v31  ;;  %v4457_v21 = vpop.f32.mrb[50].mxu0  ;;  %v4436_v27 = vpop.f32.mrb[111].mxu1 }
 0x3c0   : > { %v4458_v22 = vpop.f32.mrb[51].mxu0  ;;  %v2309_v60 = vadd.f32 %v4434_v62, %v2169_v45  ;;  %v4437_v23 = vadd.f32 %v4436_v27, %v4435_v56 }
 0x3c1   : > { %v2443_v30 = vadd.f32 %v4456_v52, %v2303_v0  ;;  %v4459_v24 = vadd.f32 %v4458_v22, %v4457_v21 }
 0x3c2   : > { %v2310_v25 = vadd.f32 %v4437_v23, %v2170_v32 }
 0x3c3   : > { %v2458_v55 = vmul.f32 %v7670_v42, %v2443_v30  ;;  %v2444_v36 = vadd.f32 %v4459_v24, %v2304_v61 }
 0x3c4   : > { %v4466_v58 = vpop.f32.mrb[112].mxu1 }
 0x3c5   : > { %v2473_v11 = vadd.f32 %v7675_v14, %v2458_v55  ;;  %v2459_v15 = vmul.f32 %v7670_v42, %v2444_v36  ;;  %v4460_v6 = vpop.f32.mrb[52].mxu0  ;;  %v4467_v38 = vpop.f32.mrb[113].mxu1 }
 0x3c6   : > { %v4461_v0 = vpop.f32.mrb[53].mxu0  ;;  %v4468_v33 = vadd.f32 %v4467_v38, %v4466_v58  ;;  %v4469_v50 = vpop.f32.mrb[114].mxu1 }
 0x3c7   : > { %v2489_v43 = vmul.f32 0.1, %v2473_v11  ;;  %v2474_v29 = vadd.f32 %v7675_v14, %v2459_v15  ;;  %v4462_v51 = vadd.f32 %v4461_v0, %v4460_v6  ;;  %v4463_v1 = vpop.f32.mrb[54].mxu0  ;;  %vm2481_vm12 = vcmp.gt.f32.partialorder %v2473_v11, 0.0  ;;  %v4470_v16 = vpop.f32.mrb[115].mxu1 }
 0x3c8   : > { %v4464_v54 = vpop.f32.mrb[55].mxu0  ;;  %v2447_v9 = vadd.f32 %v4468_v33, %v2307_v4  ;;  %v4471_v45 = vadd.f32 %v4470_v16, %v4469_v50 }
 0x3c9   : > { %v2490_v18 = vmul.f32 0.1, %v2474_v29  ;;  %v2445_v61 = vadd.f32 %v4462_v51, %v2305_v3  ;;  %v4465_v19 = vadd.f32 %v4464_v54, %v4463_v1  ;;  %vm2482_vm8 = vcmp.gt.f32.partialorder %v2474_v29, 0.0 }
 0x3ca   : > { %v2497_v13 = vsel %vm2481_vm12, %v2473_v11, %v2489_v43  ;;  %v2462_v31 = vmul.f32 %v7670_v42, %v2447_v9  ;;  %v2448_v37 = vadd.f32 %v4471_v45, %v2308_v49  ;;  %v9172_v9 = vld [vmem:[#allocation12_spill] sm:$0xff]  ;;  %vm9189_vm12 = vmpackc.low %vm9187_vm7, %vm9188_vm11  ;;  %vm9201_vm11 = vnez %v9005_v46 }
 0x3cb   : > { %v2460_v63 = vmul.f32 %v7670_v42, %v2445_v61  ;;  %v2446_v17 = vadd.f32 %v4465_v19, %v2306_v39  ;;  %v2498_v32 = vsel %vm2482_vm8, %v2474_v29, %v2490_v18  ;;  %v9170_v18 = vld [vmem:[#allocation11_spill] sm:$0xff]  ;;  %v9173_v45 = vld [vmem:[#allocation4_spill] sm:$0xff]  ;;  %vm9190_vm8 = vnez %v8858_v2 }
 0x3cc   : > { %v2505_v12 = vpack.c.bf16 %v2498_v32, %v2497_v13  ;;  %v2477_v3 = vadd.f32 %v7675_v14, %v2462_v31  ;;  %v2463_v21 = vmul.f32 %v7670_v42, %v2448_v37  ;;  %v4472_v4 = vpop.f32.mrb[116].mxu1  ;;  %v9180_v13 = vld [vmem:[#allocation6_spill] sm:$0xff]  ;;  %v9181_v32 = vld [vmem:[#allocation15_spill] sm:$0xff]  ;;  %v9183_v37 = vld [vmem:[#allocation16_spill] sm:$0xff] }
 0x3cd   : > { %v2475_v53 = vadd.f32 %v7675_v14, %v2460_v63  ;;  %v2461_v52 = vmul.f32 %v7670_v42, %v2446_v17  ;;  %v4473_v56 = vpop.f32.mrb[117].mxu1  ;;  %v9178_v63 = vld [vmem:[#allocation5_spill] sm:$0xff]  ;;  %v9179_v17 = vld [vmem:[#allocation14_spill] sm:$0xff]  ;;  %v9182_v31 = vld [vmem:[#allocation7_spill] sm:$0xff] }
 0x3ce   : > { %4636 = vmatprep.mubr.msk.bf16.mxu1 %vm2510_vm5, %v2505_v12  ;;  %v2493_v22 = vmul.f32 0.1, %v2477_v3  ;;  %v2478_v49 = vadd.f32 %v7675_v14, %v2463_v21  ;;  %v4474_v30 = vadd.f32 %v4473_v56, %v4472_v4  ;;  %v4475_v27 = vpop.f32.mrb[118].mxu1  ;;  %vm2485_vm1 = vcmp.gt.f32.partialorder %v2477_v3, 0.0  ;;  %v9184_v12 = vld [vmem:[#allocation8_spill] sm:$0xff] }
 0x3cf   : > { %vm2483_vm9 = vcmp.gt.f32.partialorder %v2475_v53, 0.0  ;;  %v2491_v62 = vmul.f32 0.1, %v2475_v53  ;;  %v2476_v39 = vadd.f32 %v7675_v14, %v2461_v52  ;;  %v4476_v23 = vpop.f32.mrb[119].mxu1  ;;  %v2652_v21 = vadd.s32 8, %v9206_v10 }
 0x3d0   : > { %v2494_v55 = vmul.f32 0.1, %v2478_v49  ;;  %v2449_v36 = vadd.f32 %v4474_v30, %v2309_v60  ;;  %v4477_v11 = vadd.f32 %v4476_v23, %v4475_v27  ;;  %vm2486_vm4 = vcmp.gt.f32.partialorder %v2478_v49, 0.0  ;;  %v9169_v60 = vld [vmem:[#allocation2_spill] sm:$0xff] }
 0x3d1   : > { %vm2484_vm0 = vcmp.gt.f32.partialorder %v2476_v39, 0.0  ;;  %v2492_v24 = vmul.f32 0.1, %v2476_v39  ;;  %v2499_v15 = vsel %vm2483_vm9, %v2475_v53, %v2491_v62  ;;  %v2501_v58 = vsel %vm2485_vm1, %v2477_v3, %v2493_v22 }
 0x3d2   : > { %v2464_v43 = vmul.f32 %v7670_v42, %v2449_v36  ;;  %v2450_v29 = vadd.f32 %v4477_v11, %v2310_v25  ;;  %v2502_v51 = vsel %vm2486_vm4, %v2478_v49, %v2494_v55  ;;  %v9171_v25 = vld [vmem:[#allocation3_spill] sm:$0xff]  ;;  %vm9191_vm9 = vnez %v8855_v57 }
 0x3d3   : > { %v2500_v6 = vsel %vm2484_vm0, %v2476_v39, %v2492_v24  ;;  %v2507_v38 = vpack.c.bf16 %v2502_v51, %v2501_v58  ;;  %vm9192_vm1 = vmpackc.low %vm9190_vm8, %vm9191_vm9  ;;  %vm9193_vm0 = vnez %v8903_v26  ;;  %vm9194_vm4 = vnez %v8900_v35 }
 0x3d4   : > { %v2506_v0 = vpack.c.bf16 %v2500_v6, %v2499_v15  ;;  %v2479_v1 = vadd.f32 %v7675_v14, %v2464_v43  ;;  %v2465_v33 = vmul.f32 %v7670_v42, %v2450_v29  ;;  %vm9204_vm9 = vnez %v9025_v40 }
 0x3d5   : > { %v2653_v4 = vadd.s32 16, %v9206_v10  ;;  %v2654_v62 = vadd.s32 24, %v9206_v10  ;;  %v2655_v39 = vadd.s32 32, %v9206_v10  ;;  %v7850_v30 = vadd.s32 4294967295, %v9206_v10 }
 0x3d6   : > { %4637 = vmatmul.mubr.msk.bf16.vlgmr.msra.gmra.mrb[120].mxu1 %vm2510_vm5, %v2506_v0  ;;  %v2495_v50 = vmul.f32 0.1, %v2479_v1  ;;  %v2480_v54 = vadd.f32 %v7675_v14, %v2465_v33  ;;  %vm2487_vm15 = vcmp.gt.f32.partialorder %v2479_v1, 0.0  ;;  %v9177_v14 = vld [vmem:[#allocation13_spill] sm:$0xff]  ;;  %v2656_v36 = vadd.s32 40, %v9206_v10 }
 0x3d7   : > { %4640 = vmatprep.mubr.msk.bf16.mxu1 %vm2510_vm5, %v2507_v38  ;;  %4556 = vmatpush3.bf16.msra.mxu1 %v9169_v60  ;;  %v2657_v11 = vadd.s32 48, %v9206_v10  ;;  %v2599_v33 = vadd.s32 16, %v7850_v30 }
 0x3d8   : > { %4557 = vmatprep.subr.bf16.mxu1 %v9170_v18  ;;  %v2496_v61 = vmul.f32 0.1, %v2480_v54  ;;  %vm2488_vm14 = vcmp.gt.f32.partialorder %v2480_v54, 0.0  ;;  %v2503_v19 = vsel %vm2487_vm15, %v2479_v1, %v2495_v50  ;;  %vm9195_vm15 = vmpackc.low %vm9193_vm0, %vm9194_vm4  ;;  %vm2660_vm0 = vcmp.eq.s32.totalorder %v5288_v7, %v2652_v21 }
 0x3d9   : > { %vm2661_vm4 = vcmp.eq.s32.totalorder %v5288_v7, %v2653_v4  ;;  %v2598_v1 = vadd.s32 8, %v7850_v30  ;;  %v2600_v50 = vadd.s32 24, %v7850_v30  ;;  %v2601_v18 = vadd.s32 32, %v7850_v30 }
 0x3da   : > { %v2504_v16 = vsel %vm2488_vm14, %v2480_v54, %v2496_v61  ;;  %vm9196_vm14 = vnez %v8925_v5  ;;  %v9207_v5 = vmov 0.0  }
 0x3db   : > { %4558 = vmatpush3.bf16.msra.mxu1 %v9171_v25  ;;  %v2508_v42 = vpack.c.bf16 %v2504_v16, %v2503_v19  ;;  %vm9198_vm6 = vmpackc.low %vm9196_vm14, %vm9197_vm2  ;;  %vm2663_vm14 = vcmp.eq.s32.totalorder %v5288_v7, %v2655_v39  ;;  %v7853_v23 = vsel %vm2660_vm0, 1.0, %v9207_v5  ;;  %v7856_v55 = vsel %vm2661_vm4, 1.0, %v9207_v5 }
 0x3dc   : > { %4559 = vmatprep.subr.bf16.mxu1 %v9172_v9  ;;  %v7864_v58 = vsel %vm2663_vm14, 1.0, %v9207_v5  ;;  %v7872_v29 = vpack.c.bf16 %v7856_v55, %v7853_v23  ;;  %vm2605_vm2 = vcmp.eq.s32.totalorder %v5288_v7, %v7850_v30 }
 0x3de   : > { %4641 = vmatmul.mubr.msk.bf16.gmra.mrb[124].mxu1 %vm2510_vm5, %v2508_v42 }
 0x3df   : > { %4560 = vmatpush3.bf16.msra.mxu1 %v9173_v45  ;;  %4078 = vmatprep.mubr.msk.bf16.mxu1 %vm9176_vm13, %v8501_v8  ;;  %vm9199_vm13 = vnez %v8953_v41 }
 0x3e0   : > { %4561 = vmatprep.subr.bf16.mxu1 %v9177_v14  ;;  %vm9200_vm7 = vmpackc.low %vm9007_vm10, %vm9199_vm13  ;;  %vm2659_vm10 = vcmp.eq.s32.totalorder %v5288_v7, %v9206_v10  ;;  %vm2664_vm13 = vcmp.eq.s32.totalorder %v5288_v7, %v2656_v36 }
 0x3e1   : > { %v7772_v41 = vsel %vm2659_vm10, 1.0, %v9207_v5  ;;  %v7898_v25 = vsel %vm2664_vm13, 1.0, %v9207_v5  ;;  %vm2609_vm10 = vcmp.eq.s32.totalorder %v5288_v7, %v2601_v18 }
 0x3e3   : > { %4562 = vmatpush3.bf16.msra.mxu1 %v9178_v63 }
 0x3e4   : > { %4563 = vmatprep.subr.bf16.mxu1 %v9179_v17 }
 0x3e7   : > { %4564 = vmatpush3.bf16.msra.mxu1 %v9180_v13 }
 0x3e8   : > { %4565 = vmatprep.subr.bf16.mxu1 %v9181_v32 }
 0x3eb   : > { %4566 = vmatpush3.bf16.msra.mxu1 %v9182_v31  ;;  %v2602_v31 = vadd.s32 40, %v7850_v30 }
 0x3ec   : > { %4567 = vmatprep.subr.bf16.mxu1 %v9183_v37 }
 0x3ed   : > { %vm2610_vm14 = vcmp.eq.s32.totalorder %v5288_v7, %v2602_v31 }
 0x3ef   : > { %4568 = vmatpush3.bf16.msra.mxu1 %v9184_v12  ;;  %v2603_v12 = vadd.s32 48, %v7850_v30 }
 0x3f0   : > { %4569 = vmatprep.subr.bf16.mxu1 %v9185_v59 }
 0x3f3   : > { %4570 = vmatpush3.bf16.msra.mxu1 %v9186_v28  ;;  %v7946_v28 = vadd.s32 1, %v9206_v10 }
 0x3f5   : > { %vm2885_vm13 = vcmp.eq.s32.totalorder %v5288_v7, %v7946_v28  ;;  %v2879_v21 = vadd.s32 16, %v7946_v28  ;;  %v2883_v18 = vadd.s32 48, %v7946_v28 }
 0x3f6   : > { %4080 = vmatmul.mubr.msk.bf16.vlgmr.msra.gmra.mrb[128].mxu1 %vm9189_vm12, %v8501_v8  ;;  %vm9202_vm12 = vnez %v8992_v34 }
 0x3f7   : > { %4082 = vmatprep.mubr.msk.bf16.mxu1 %vm9192_vm1, %v8501_v8  ;;  %vm9203_vm8 = vmpackc.low %vm9201_vm11, %vm9202_vm12  ;;  %vm2606_vm12 = vcmp.eq.s32.totalorder %v5288_v7, %v2598_v1 }
 0x3f8   : > { %vm9205_vm1 = vmpackc.low %vm7379_vm3, %vm9204_vm9  ;;  %vm2721_vm3 = vcmask 523264   ;;  %vm2608_vm9 = vcmp.eq.s32.totalorder %v5288_v7, %v2600_v50 }
 0x3fe   : > { %4084 = vmatmul.mubr.msk.bf16.gmra.mrb[132].mxu1 %vm9195_vm15, %v8501_v8  ;;  %vm2662_vm15 = vcmp.eq.s32.totalorder %v5288_v7, %v2654_v62  ;;  %v2881_v62 = vadd.s32 32, %v7946_v28 }
 0x3ff   : > { %4086 = vmatprep.mubr.msk.bf16.mxu1 %vm9198_vm6, %v8501_v8  ;;  %v7861_v6 = vsel %vm2662_vm15, 1.0, %v9207_v5  ;;  %vm2621_vm6 = vcmp.ge.s32.totalorder %v7850_v30, 0 }
 0x400   : > { %v7881_v38 = vpack.c.bf16 %v7864_v58, %v7861_v6  ;;  %vm2623_vm11 = vmand %vm2605_vm2, %vm2621_vm6  ;;  %vm2611_vm2 = vcmp.eq.s32.totalorder %v5288_v7, %v2603_v12 }
 0x401   : > { %v7906_v9 = vsel %vm2623_vm11, 1.0, %v9207_v5  ;;  %vm7935_vm4 = vmand %vm2608_vm9, %vm2621_vm6 }
 0x402   : > { %v2647_v13 = vpack.c.bf16 %v7906_v9, %v9207_v5  ;;  %vm2627_vm15 = vmand %vm2609_vm10, %vm2621_vm6 }
 0x403   : > { %vm2628_vm11 = vmand %vm2610_vm14, %vm2621_vm6 }
 0x406   : > { %4088 = vmatmul.mubr.msk.bf16.gmra.mrb[136].mxu1 %vm9200_vm7, %v8501_v8  ;;  %vm2665_vm7 = vcmp.eq.s32.totalorder %v5288_v7, %v2657_v11 }
 0x407   : > { %4090 = vmatprep.mubr.msk.bf16.mxu1 %vm9203_vm8, %v8501_v8  ;;  %v7901_v19 = vsel %vm2665_vm7, 1.0, %v9207_v5  ;;  %vm2607_vm8 = vcmp.eq.s32.totalorder %v5288_v7, %v2599_v33  ;;  %vm2910_vm7 = vcmp.lt.s32.totalorder %v7946_v28, 8 }
 0x408   : > { %v7916_v14 = vpack.c.bf16 %v7901_v19, %v7898_v25  ;;  %vm2625_vm0 = vmand %vm2607_vm8, %vm2621_vm6 }
 0x409   : > { %vm2912_vm8 = vmand %vm2885_vm13, %vm2910_vm7 }
 0x40a   : > { %v8011_v36 = vsel %vm2912_vm8, 1.0, %v9207_v5 }
 0x40b   : > { %v2927_v50 = vpack.c.bf16 %v8011_v36, %v9207_v5 }
 0x40e   : > { %4092 = vmatmul.mubr.msk.bf16.gmra.mrb[140].mxu1 %vm9205_vm1, %v8501_v8  ;;  %v2701_v8 = vpack.c.bf16 %v7772_v41, %v9207_v5  ;;  %vm7920_vm1 = vmand %vm2606_vm12, %vm2621_vm6 }
 0x40f   : > { %vm2629_vm12 = vmand %vm2611_vm2, %vm2621_vm6 }
 0x410   : > { %4652 = vmatprep.mubr.msk.bf16.mxu0 %vm2721_vm3, %v2701_v8  ;;  %v7967_v8 = vsel %vm2627_vm15, 1.0, %v9207_v5 }
 0x4a9   : > { %v4638_v20 = vpop.f32.mrb[120].mxu1 }
 0x4aa   : > { %v2561_v47 = vpop.f32.mrb[121].mxu1 }
 0x4ab   : > { %v4639_v57 = vpop.f32.mrb[122].mxu1 }
 0x4ac   : > { %v7761_v2 = vpack.c.bf16 %v4639_v57, %v4638_v20  ;;  %v2564_v35 = vpop.f32.mrb[123].mxu1  ;;  %v7955_v57 = vsel %vm7920_vm1, 1.0, %v9207_v5  ;;  %vm2887_vm1 = vcmp.eq.s32.totalorder %v5288_v7, %v2879_v21  ;;  %v3028_v21 = vadd.s32 56, %v7850_v30 }
 0x4ad   : > { %v7763_v26 = vpack.c.bf16 %v2564_v35, %v2561_v47  ;;  %vm2914_vm15 = vmand %vm2887_vm1, %vm2910_vm7 }
 0x4ae   : > { %2711 = vrot.lane.b32.xlu1 %v7761_v2, %s4917_s17  ;;  %v8049_v63 = vsel %vm2914_vm15, 1.0, %v9207_v5  ;;  %vm9216_vm15 = vcmask 31744  }
 0x4af   : > { %2709 = vrot.lane.b32.xlu0 %v7763_v26, %s4917_s17 }
 0x4b1   : > { %v4642_v44 = vpop.f32.mrb[124].mxu1 }
 0x4b2   : > { %v2577_v34 = vpop.f32.mrb[125].mxu1 }
 0x4b3   : > { %v4643_v46 = vpop.f32.mrb[126].mxu1 }
 0x4b4   : > { %v7777_v40 = vpack.c.bf16 %v4643_v46, %v4642_v44  ;;  %v2580_v48 = vpop.f32.mrb[127].mxu1 }
 0x4b5   : > { %v7779_v53 = vpack.c.bf16 %v2580_v48, %v2577_v34 }
 0x4b6   : > { %2715 = vrot.lane.b32.xlu1 %v7777_v40, %s4917_s17 }
 0x4b7   : > { %2713 = vrot.lane.b32.xlu0 %v7779_v53, %s4917_s17 }
 0x4ba   : > { %2933 = vrot.lane.b32.xlu1 %v7761_v2, %s4918_s18 }
 0x4bb   : > { %2931 = vrot.lane.b32.xlu0 %v7763_v26, %s4918_s18 }
 0x4be   : > { %2937 = vrot.lane.b32.xlu1 %v7777_v40, %s4918_s18 }
 0x4bf   : > { %2935 = vrot.lane.b32.xlu0 %v7779_v53, %s4918_s18 }
 0x4c2   : > { %3040 = vrot.lane.b32.xlu1 %v7761_v2, %s4919_s19 }
 0x4c3   : > { %3038 = vrot.lane.b32.xlu0 %v7763_v26, %s4919_s19 }
 0x4c6   : > { %3044 = vrot.lane.b32.xlu1 %v7777_v40, %s4919_s19 }
 0x4c7   : > { %3042 = vrot.lane.b32.xlu0 %v7779_v53, %s4919_s19 }
 0x4c9   : > { %v4571_v56 = vpop.f32.mrb[128].mxu1 }
 0x4ca   : > { %3147 = vrot.lane.b32.xlu1 %v7761_v2, %s4920_s20  ;;  %v4572_v49 = vpop.f32.mrb[129].mxu1 }
 0x4cb   : > { %3145 = vrot.lane.b32.xlu0 %v7763_v26, %s4920_s20  ;;  %v4574_v27 = vpop.f32.mrb[130].mxu1  ;;  %v7866_v0 = vadd.f32 %v4572_v49, %v4571_v56  ;;  %v8004_v49 = vsel %vm2628_vm11, 1.0, %v9207_v5  ;;  %vm2891_vm11 = vcmp.eq.s32.totalorder %v5288_v7, %v2883_v18 }
 0x4cc   : > { %v4575_v15 = vpop.f32.mrb[131].mxu1  ;;  %vm2918_vm8 = vmand %vm2891_vm11, %vm2910_vm7 }
 0x4cd   : > { %v7868_v43 = vadd.f32 %v4575_v15, %v4574_v27  ;;  %v8007_v27 = vsel %vm2629_vm12, 1.0, %v9207_v5 }
 0x4ce   : > { %3151 = vrot.lane.b32.xlu1 %v7777_v40, %s4920_s20  ;;  %v8019_v15 = vpack.c.bf16 %v8007_v27, %v8004_v49 }
 0x4cf   : > { %3149 = vrot.lane.b32.xlu0 %v7779_v53, %s4920_s20  ;;  %v3702_v51 = vpack.c.bf16 %v7868_v43, %v7866_v0 }
 0x4d1   : > { %v4577_v60 = vpop.f32.mrb[132].mxu1 }
 0x4d2   : > { %3254 = vrot.lane.b32.xlu1 %v7761_v2, %s4921_s21  ;;  %v4578_v54 = vpop.f32.mrb[133].mxu1 }
 0x4d3   : > { %3252 = vrot.lane.b32.xlu0 %v7763_v26, %s4921_s21  ;;  %v4580_v61 = vpop.f32.mrb[134].mxu1  ;;  %v7909_v42 = vadd.f32 %v4578_v54, %v4577_v60  ;;  %v2882_v54 = vadd.s32 40, %v7946_v28 }
 0x4d4   : > { %v4581_v16 = vpop.f32.mrb[135].mxu1 }
 0x4d5   : > { %v7911_v45 = vadd.f32 %v4581_v16, %v4580_v61  ;;  %vm2890_vm13 = vcmp.eq.s32.totalorder %v5288_v7, %v2882_v54 }
 0x4d6   : > { %3258 = vrot.lane.b32.xlu1 %v7777_v40, %s4921_s21  ;;  %vm2917_vm12 = vmand %vm2890_vm13, %vm2910_vm7 }
 0x4d7   : > { %3256 = vrot.lane.b32.xlu0 %v7779_v53, %s4921_s21  ;;  %v3703_v17 = vpack.c.bf16 %v7911_v45, %v7909_v42 }
 0x4d9   : > { %v4583_v37 = vpop.f32.mrb[136].mxu1 }
 0x4da   : > { %3359 = vrot.lane.b32.xlu1 %v7761_v2, %s4925_s22  ;;  %v4584_v59 = vpop.f32.mrb[137].mxu1 }
 0x4db   : > { %3357 = vrot.lane.b32.xlu0 %v7763_v26, %s4925_s22  ;;  %v7948_v20 = vadd.f32 %v4584_v59, %v4583_v37  ;;  %v4586_v47 = vpop.f32.mrb[138].mxu1 }
 0x4dc   : > { %v4587_v35 = vpop.f32.mrb[139].mxu1 }
 0x4dd   : > { %v7970_v44 = vadd.f32 %v4587_v35, %v4586_v47  ;;  %v8076_v47 = vsel %vm2917_vm12, 1.0, %v9207_v5  ;;  %v8079_v35 = vsel %vm2918_vm8, 1.0, %v9207_v5 }
 0x4de   : > { %3363 = vrot.lane.b32.xlu1 %v7777_v40, %s4925_s22 }
 0x4df   : > { %3361 = vrot.lane.b32.xlu0 %v7779_v53, %s4925_s22  ;;  %v3704_v48 = vpack.c.bf16 %v7970_v44, %v7948_v20 }
 0x4e1   : > { %v4589_v34 = vpop.f32.mrb[140].mxu1 }
 0x4e2   : > { %3455 = vrot.lane.b32.xlu1 %v7761_v2, %s4926_s23  ;;  %v4590_v4 = vpop.f32.mrb[141].mxu1 }
 0x4e3   : > { %3453 = vrot.lane.b32.xlu0 %v7763_v26, %s4926_s23  ;;  %v7999_v39 = vadd.f32 %v4590_v4, %v4589_v34  ;;  %v4592_v56 = vpop.f32.mrb[142].mxu1  ;;  %v8083_v34 = vpack.c.bf16 %v8079_v35, %v8076_v47 }
 0x4e6   : > { %3459 = vrot.lane.b32.xlu1 %v7777_v40, %s4926_s23 }
 0x4e7   : > { %3457 = vrot.lane.b32.xlu0 %v7779_v53, %s4926_s23 }
 0x4ea   : > { %3551 = vrot.lane.b32.xlu1 %v7761_v2, %s4927_s24 }
 0x4eb   : > { %3549 = vrot.lane.b32.xlu0 %v7763_v26, %s4927_s24 }
 0x4ee   : > { %3555 = vrot.lane.b32.xlu1 %v7777_v40, %s4927_s24 }
 0x4ef   : > { %3553 = vrot.lane.b32.xlu0 %v7779_v53, %s4927_s24 }
 0x520   : > { %v2712_v3 = vpop.permute.xlu1 %2711 }
 0x521   : > { %v2710_v52 = vpop.permute.xlu0 %2709 }
 0x522   : > { %4644 = vmatprep.subr.bf16.mxu0 %v2710_v52 }
 0x523   : > { %4645 = vmatpush3.bf16.msra.mxu0 %v2710_v52 }
 0x524   : > { %4646 = vmatprep.subr.bf16.mxu0 %v2712_v3 }
 0x527   : > { %4647 = vmatpush3.bf16.msra.mxu0 %v2712_v3  ;;  %v2878_v3 = vadd.s32 8, %v7946_v28 }
 0x528   : > { %v2716_v24 = vpop.permute.xlu1 %2715 }
 0x529   : > { %v2714_v22 = vpop.permute.xlu0 %2713  ;;  %vm2886_vm9 = vcmp.eq.s32.totalorder %v5288_v7, %v2878_v3  ;;  %v3034_v3 = vpack.c.bf16 %v7955_v57, %v7906_v9  ;;  %v3036_v9 = vpack.c.bf16 %v8004_v49, %v7967_v8  ;;  %v3142_v49 = vpack.c.bf16 %v7861_v6, %v7856_v55 }
 0x52a   : > { %4648 = vmatprep.subr.bf16.mxu0 %v2714_v22 }
 0x52b   : > { %4649 = vmatpush3.bf16.msra.mxu0 %v2714_v22 }
 0x52c   : > { %4650 = vmatprep.subr.bf16.mxu0 %v2716_v24  ;;  %v2934_v22 = vpop.permute.xlu1 %2933 }
 0x52f   : > { %4651 = vmatpush3.bf16.msra.mxu0 %v2716_v24  ;;  %v4593_v24 = vpop.f32.mrb[143].mxu1 }
 0x530   : > { %4660 = vmatprep.subr.bf16.mxu0 %v7763_v26  ;;  %v8014_v11 = vadd.f32 %v4593_v24, %v4592_v56  ;;  %v2938_v61 = vpop.permute.xlu1 %2937 }
 0x532   : > { %4653 = vmatmul.mubr.msk.bf16.vlgmr.msra.gmra.mrb[56].mxu0 %vm2721_vm3, %v7872_v29  ;;  %v3705_v33 = vpack.c.bf16 %v8014_v11, %v7999_v39 }
 0x533   : > { %4661 = vmatpush3.bf16.msra.mxu0 %v7763_v26  ;;  %4656 = vmatprep.mubr.msk.bf16.mxu0 %vm2721_vm3, %v7881_v38  ;;  %v7964_v26 = vsel %vm7935_vm4, 1.0, %v9207_v5  ;;  %vm2889_vm4 = vcmp.eq.s32.totalorder %v5288_v7, %v2881_v62 }
 0x534   : > { %4662 = vmatprep.subr.bf16.mxu0 %v7761_v2  ;;  %v7985_v52 = vpack.c.bf16 %v7967_v8, %v7964_v26  ;;  %vm2916_vm2 = vmand %vm2889_vm4, %vm2910_vm7  ;;  %v3041_v59 = vpop.permute.xlu1 %3040  ;;  %v3141_v8 = vpack.c.bf16 %v7853_v23, %v7772_v41 }
 0x535   : > { %v8055_v32 = vsel %vm2916_vm2, 1.0, %v9207_v5 }
 0x537   : > { %4663 = vmatpush3.bf16.msra.mxu0 %v7761_v2  ;;  %v7958_v2 = vsel %vm2625_vm0, 1.0, %v9207_v5  ;;  %vm8023_vm0 = vmand %vm2886_vm9, %vm2910_vm7  ;;  %vm3029_vm9 = vcmp.eq.s32.totalorder %v5288_v7, %v3028_v21 }
 0x538   : > { %4664 = vmatprep.subr.bf16.mxu0 %v7779_v53  ;;  %v7975_v46 = vpack.c.bf16 %v7958_v2, %v7955_v57  ;;  %v8046_v16 = vsel %vm8023_vm0, 1.0, %v9207_v5  ;;  %v3035_v4 = vpack.c.bf16 %v7964_v26, %v7958_v2  ;;  %vm3031_vm1 = vmand %vm3029_vm9, %vm2621_vm6 }
 0x539   : > { %v8061_v31 = vpack.c.bf16 %v8049_v63, %v8046_v16  ;;  %v8101_v56 = vsel %vm3031_vm1, 1.0, %v9207_v5  ;;  %v3248_v6 = vpack.c.bf16 %v8046_v16, %v8011_v36  ;;  %v3250_v36 = vpack.c.bf16 %v8076_v47, %v8055_v32 }
 0x53a   : > { %4657 = vmatmul.mubr.msk.bf16.gmra.mrb[60].mxu0 %vm2721_vm3, %v7916_v14  ;;  %v3037_v2 = vpack.c.bf16 %v8101_v56, %v8007_v27  ;;  %v3143_v27 = vpack.c.bf16 %v7898_v25, %v7864_v58  ;;  %v3242_v58 = vadd.s32 56, %v7946_v28  ;;  %v3356_v16 = vpack.c.bf16 %v9207_v5, %v8101_v56 }
 0x53b   : > { %4665 = vmatpush3.bf16.msra.mxu0 %v7779_v53  ;;  %4668 = vmatprep.mubr.msk.bf16.mxu0 %vm2721_vm3, %v2647_v13  ;;  %v2932_v53 = vpop.permute.xlu0 %2931 }
 0x53c   : > { %4666 = vmatprep.subr.bf16.mxu0 %v7777_v40 }
 0x53f   : > { %4667 = vmatpush3.bf16.msra.mxu0 %v7777_v40  ;;  %v2880_v40 = vadd.s32 24, %v7946_v28  ;;  %v2936_v60 = vpop.permute.xlu0 %2935 }
 0x540   : > { %4676 = vmatprep.subr.bf16.mxu0 %v2932_v53 }
 0x541   : > { %vm2888_vm10 = vcmp.eq.s32.totalorder %v5288_v7, %v2880_v40  ;;  %v3045_v40 = vpop.permute.xlu1 %3044 }
 0x542   : > { %4669 = vmatmul.mubr.msk.bf16.vlgmr.msra.gmra.mrb[56].mxu0 %vm2721_vm3, %v7975_v46  ;;  %vm2915_vm14 = vmand %vm2888_vm10, %vm2910_vm7  ;;  %vm3243_vm10 = vcmp.eq.s32.totalorder %v5288_v7, %v3242_v58 }
 0x543   : > { %4677 = vmatpush3.bf16.msra.mxu0 %v2932_v53  ;;  %4672 = vmatprep.mubr.msk.bf16.mxu0 %vm2721_vm3, %v7985_v52  ;;  %v8052_v13 = vsel %vm2915_vm14, 1.0, %v9207_v5  ;;  %v3039_v37 = vpop.permute.xlu0 %3038  ;;  %vm3246_vm0 = vmand %vm3243_vm10, %vm2910_vm7  ;;  %vm9214_vm7 = vcmask 1041408  }
 0x544   : > { %4678 = vmatprep.subr.bf16.mxu0 %v2934_v22  ;;  %v8065_v12 = vpack.c.bf16 %v8055_v32, %v8052_v13  ;;  %vm9215_vm4 = vmmov %vm9214_vm7 }
 0x545   : > { %v3148_v57 = vpop.permute.xlu1 %3147  ;;  %vm9217_vm14 = vmmov %vm9216_vm15 }
 0x546   : > { %vm9218_vm2 = vmmov %vm9217_vm14 }
 0x547   : > { %4679 = vmatpush3.bf16.msra.mxu0 %v2934_v22  ;;  %v3043_v53 = vpop.permute.xlu0 %3042  ;;  %v3135_v22 = vadd.s32 56, %v9206_v10  ;;  %vm9219_vm13 = vmmov %vm9218_vm2 }
 0x548   : > { %4680 = vmatprep.subr.bf16.mxu0 %v2936_v60 }
 0x549   : > { %v3152_v30 = vpop.permute.xlu1 %3151  ;;  %vm3136_vm6 = vcmp.eq.s32.totalorder %v5288_v7, %v3135_v22  ;;  %v3247_v7 = vsel %vm3246_vm0, 1.0, %v9207_v5 }
 0x54a   : > { %4673 = vmatmul.mubr.msk.bf16.gmra.mrb[60].mxu0 %vm2721_vm3, %v8019_v15  ;;  %v3140_v23 = vsel %vm3136_vm6, 1.0, %v9207_v5 }
 0x54b   : > { %4681 = vmatpush3.bf16.msra.mxu0 %v2936_v60  ;;  %4684 = vmatprep.mubr.msk.bf16.mxu0 %vm2721_vm3, %v2927_v50  ;;  %v3146_v62 = vpop.permute.xlu0 %3145  ;;  %v3144_v10 = vpack.c.bf16 %v3140_v23, %v7901_v19  ;;  %v3249_v19 = vpack.c.bf16 %v8052_v13, %v8049_v63  ;;  %v3251_v50 = vpack.c.bf16 %v3247_v7, %v8079_v35 }
 0x54c   : > { %4682 = vmatprep.subr.bf16.mxu0 %v2938_v61  ;;  %v3452_v13 = vpack.c.bf16 %v9207_v5, %v3140_v23 }
 0x54d   : > { %v3255_v41 = vpop.permute.xlu1 %3254 }
 0x54f   : > { %4683 = vmatpush3.bf16.msra.mxu0 %v2938_v61  ;;  %v3150_v26 = vpop.permute.xlu0 %3149 }
 0x550   : > { %4692 = vmatprep.subr.bf16.mxu0 %v3039_v37 }
 0x551   : > { %v3259_v25 = vpop.permute.xlu1 %3258 }
 0x552   : > { %4685 = vmatmul.mubr.msk.bf16.vlgmr.msra.gmra.mrb[56].mxu0 %vm2721_vm3, %v8061_v31 }
 0x553   : > { %4693 = vmatpush3.bf16.msra.mxu0 %v3039_v37  ;;  %4688 = vmatprep.mubr.msk.bf16.mxu0 %vm2721_vm3, %v8065_v12  ;;  %v3253_v24 = vpop.permute.xlu0 %3252  ;;  %v3548_v37 = vpack.c.bf16 %v9207_v5, %v3247_v7 }
 0x554   : > { %4694 = vmatprep.subr.bf16.mxu0 %v3041_v59 }
 0x555   : > { %v3360_v60 = vpop.permute.xlu1 %3359 }
 0x557   : > { %4695 = vmatpush3.bf16.msra.mxu0 %v3041_v59  ;;  %v3257_v55 = vpop.permute.xlu0 %3256 }
 0x558   : > { %4696 = vmatprep.subr.bf16.mxu0 %v3043_v53 }
 0x559   : > { %v3364_v18 = vpop.permute.xlu1 %3363 }
 0x55a   : > { %4689 = vmatmul.mubr.msk.bf16.gmra.mrb[60].mxu0 %vm2721_vm3, %v8083_v34 }
 0x55b   : > { %4697 = vmatpush3.bf16.msra.mxu0 %v3043_v53  ;;  %4700 = vmatprep.mubr.msk.bf16.mxu0 %vm2721_vm3, %v3034_v3  ;;  %v3358_v1 = vpop.permute.xlu0 %3357 }
 0x55c   : > { %4698 = vmatprep.subr.bf16.mxu0 %v3045_v40 }
 0x55d   : > { %v3456_v61 = vpop.permute.xlu1 %3455 }
 0x55f   : > { %4699 = vmatpush3.bf16.msra.mxu0 %v3045_v40  ;;  %v3362_v54 = vpop.permute.xlu0 %3361 }
 0x560   : > { %4708 = vmatprep.subr.bf16.mxu0 %v3146_v62 }
 0x562   : > { %4701 = vmatmul.mubr.msk.bf16.vlgmr.msra.gmra.mrb[56].mxu0 %vm2721_vm3, %v3035_v4 }
 0x563   : > { %4709 = vmatpush3.bf16.msra.mxu0 %v3146_v62  ;;  %4704 = vmatprep.mubr.msk.bf16.mxu0 %vm2721_vm3, %v3036_v9  ;;  %v3454_v28 = vpop.permute.xlu0 %3453 }
 0x564   : > { %4710 = vmatprep.subr.bf16.mxu0 %v3148_v57 }
 0x567   : > { %4711 = vmatpush3.bf16.msra.mxu0 %v3148_v57  ;;  %v3458_v63 = vpop.permute.xlu0 %3457 }
 0x568   : > { %4712 = vmatprep.subr.bf16.mxu0 %v3150_v26 }
 0x56a   : > { %4705 = vmatmul.mubr.msk.bf16.gmra.mrb[60].mxu0 %vm2721_vm3, %v3037_v2 }
 0x56b   : > { %4713 = vmatpush3.bf16.msra.mxu0 %v3150_v26  ;;  %4716 = vmatprep.mubr.msk.bf16.mxu0 %vm2721_vm3, %v3141_v8 }
 0x56c   : > { %4714 = vmatprep.subr.bf16.mxu0 %v3152_v30 }
 0x56f   : > { %4715 = vmatpush3.bf16.msra.mxu0 %v3152_v30 }
 0x570   : > { %4724 = vmatprep.subr.bf16.mxu0 %v3253_v24 }
 0x572   : > { %4717 = vmatmul.mubr.msk.bf16.vlgmr.msra.gmra.mrb[56].mxu0 %vm2721_vm3, %v3142_v49 }
 0x573   : > { %4725 = vmatpush3.bf16.msra.mxu0 %v3253_v24  ;;  %4720 = vmatprep.mubr.msk.bf16.mxu0 %vm2721_vm3, %v3143_v27 }
 0x574   : > { %4726 = vmatprep.subr.bf16.mxu0 %v3255_v41 }
 0x577   : > { %4727 = vmatpush3.bf16.msra.mxu0 %v3255_v41 }
 0x578   : > { %4728 = vmatprep.subr.bf16.mxu0 %v3257_v55 }
 0x57a   : > { %4721 = vmatmul.mubr.msk.bf16.gmra.mrb[60].mxu0 %vm2721_vm3, %v3144_v10 }
 0x57b   : > { %4729 = vmatpush3.bf16.msra.mxu0 %v3257_v55  ;;  %4732 = vmatprep.mubr.msk.bf16.mxu0 %vm2721_vm3, %v3248_v6 }
 0x57c   : > { %4730 = vmatprep.subr.bf16.mxu0 %v3259_v25 }
 0x57f   : > { %4731 = vmatpush3.bf16.msra.mxu0 %v3259_v25 }
 0x580   : > { %4740 = vmatprep.subr.bf16.mxu0 %v3358_v1 }
 0x582   : > { %4733 = vmatmul.mubr.msk.bf16.vlgmr.msra.gmra.mrb[56].mxu0 %vm2721_vm3, %v3249_v19 }
 0x583   : > { %4741 = vmatpush3.bf16.msra.mxu0 %v3358_v1  ;;  %4736 = vmatprep.mubr.msk.bf16.mxu0 %vm2721_vm3, %v3250_v36 }
 0x584   : > { %4742 = vmatprep.subr.bf16.mxu0 %v3360_v60 }
 0x587   : > { %4743 = vmatpush3.bf16.msra.mxu0 %v3360_v60 }
 0x588   : > { %4744 = vmatprep.subr.bf16.mxu0 %v3362_v54 }
 0x58a   : > { %4737 = vmatmul.mubr.msk.bf16.gmra.mrb[60].mxu0 %vm2721_vm3, %v3251_v50 }
 0x58b   : > { %4745 = vmatpush3.bf16.msra.mxu0 %v3362_v54  ;;  %4748 = vmatprep.mubr.msk.bf16.mxu0 %vm2721_vm3, %v7975_v46  ;;  %v3460_v46 = vpop.permute.xlu1 %3459 }
 0x58c   : > { %4746 = vmatprep.subr.bf16.mxu0 %v3364_v18 }
 0x58f   : > { %4747 = vmatpush3.bf16.msra.mxu0 %v3364_v18 }
 0x590   : > { %4756 = vmatprep.subr.bf16.mxu0 %v3454_v28 }
 0x592   : > { %4749 = vmatmul.mubr.msk.bf16.vlgmr.msra.gmra.mrb[56].mxu0 %vm2721_vm3, %v7985_v52  ;;  %v3550_v52 = vpop.permute.xlu0 %3549 }
 0x593   : > { %4757 = vmatpush3.bf16.msra.mxu0 %v3454_v28  ;;  %4752 = vmatprep.mubr.msk.bf16.mxu0 %vm2721_vm3, %v8019_v15  ;;  %v3552_v15 = vpop.permute.xlu1 %3551 }
 0x594   : > { %4758 = vmatprep.subr.bf16.mxu0 %v3456_v61 }
 0x596   : > { %v3554_v32 = vpop.permute.xlu0 %3553 }
 0x597   : > { %4759 = vmatpush3.bf16.msra.mxu0 %v3456_v61 }
 0x598   : > { %4760 = vmatprep.subr.bf16.mxu0 %v3458_v63 }
 0x59a   : > { %4753 = vmatmul.mubr.msk.bf16.gmra.mrb[60].mxu0 %vm2721_vm3, %v3356_v16 }
 0x59b   : > { %4761 = vmatpush3.bf16.msra.mxu0 %v3458_v63  ;;  %4764 = vmatprep.mubr.msk.bf16.mxu0 %vm2721_vm3, %v7872_v29  ;;  %v3556_v29 = vpop.permute.xlu1 %3555 }
 0x59c   : > { %4762 = vmatprep.subr.bf16.mxu0 %v3460_v46 }
 0x59f   : > { %4763 = vmatpush3.bf16.msra.mxu0 %v3460_v46 }
 0x5a0   : > { %4772 = vmatprep.subr.bf16.mxu0 %v3550_v52 }
 0x5a2   : > { %4765 = vmatmul.mubr.msk.bf16.vlgmr.msra.gmra.mrb[56].mxu0 %vm2721_vm3, %v7881_v38  ;;  %v3706_v38 = vld [vmem:[%s8204_s7] sm:$0x3] }
 0x5a3   : > { %4773 = vmatpush3.bf16.msra.mxu0 %v3550_v52  ;;  %4768 = vmatprep.mubr.msk.bf16.mxu0 %vm2721_vm3, %v7916_v14  ;;  %v3720_v14 = vsel %vm9215_vm4, %v3706_v38, 0 }
 0x5a4   : > { %4774 = vmatprep.subr.bf16.mxu0 %v3552_v15 }
 0x5a7   : > { %4775 = vmatpush3.bf16.msra.mxu0 %v3552_v15 }
 0x5a8   : > { %4776 = vmatprep.subr.bf16.mxu0 %v3554_v32 }
 0x5aa   : > { %4769 = vmatmul.mubr.msk.bf16.gmra.mrb[60].mxu0 %vm2721_vm3, %v3452_v13 }
 0x5ab   : > { %4777 = vmatpush3.bf16.msra.mxu0 %v3554_v32  ;;  %4780 = vmatprep.mubr.msk.bf16.mxu0 %vm2721_vm3, %v8061_v31 }
 0x5ac   : > { %4778 = vmatprep.subr.bf16.mxu0 %v3556_v29 }
 0x5af   : > { %4779 = vmatpush3.bf16.msra.mxu0 %v3556_v29 }
 0x5b0   : > { %4888 = vmatprep.subr.msk.bf16.mxu0 %vm9214_vm7, %v3706_v38 }
 0x5b2   : > { %4781 = vmatmul.mubr.msk.bf16.vlgmr.msra.gmra.mrb[56].mxu0 %vm2721_vm3, %v8065_v12 }
 0x5b3   : > { %4784 = vmatprep.mubr.msk.bf16.mxu0 %vm2721_vm3, %v8083_v34  ;;  %4789 = vmatpush3.bf16.msra.mxu0 %v3720_v14 }
 0x5ba   : > { %4785 = vmatmul.mubr.msk.bf16.gmra.mrb[60].mxu0 %vm2721_vm3, %v3548_v37 }
 0x5bb   : > { %4790 = vmatprep.mubr.msk.bf16.mxu0 %vm9216_vm15, %v3702_v51 }
 0x5c2   : > { %4791 = vmatmul.mubr.msk.bf16.vlgmr.msra.gmra.mrb[56].mxu0 %vm9217_vm14, %v3703_v17 }
 0x5c3   : > { %4794 = vmatprep.mubr.msk.bf16.mxu0 %vm9218_vm2, %v3704_v48 }
 0x5ca   : > { %4795 = vmatmul.mubr.msk.bf16.gmra.mrb[60].mxu0 %vm9219_vm13, %v3705_v33 }
 0x695   : > { %v4792_v5 = vpop.f32.mrb[56].mxu0 }
 0x696   : > { %3797 = vst.msk [vmem:[%s305_s16 + $0x10] sm:$0xff] %vm2510_vm5, %v4792_v5  ;;  %v3756_v0 = vpop.f32.mrb[57].mxu0 }
 0x697   : > { %3795 = vst.msk [vmem:[%s305_s16] sm:$0xff] %vm2510_vm5, %v3756_v0  ;;  %v4793_v43 = vpop.f32.mrb[58].mxu0 }
 0x698   : > { %3798 = vst.msk [vmem:[%s305_s16 + $0x18] sm:$0xff] %vm2510_vm5, %v4793_v43  ;;  %v3759_v51 = vpop.f32.mrb[59].mxu0 }
 0x699   : > { %3796 = vst.msk [vmem:[%s305_s16 + $0x8] sm:$0xff] %vm2510_vm5, %v3759_v51 }
 0x69d   : > { %v4796_v42 = vpop.f32.mrb[60].mxu0 }
 0x69e   : > { %3801 = vst.msk [vmem:[%s305_s16 + $0x30] sm:$0xff] %vm2510_vm5, %v4796_v42  ;;  %v3772_v45 = vpop.f32.mrb[61].mxu0 }
 0x69f   : > { %3799 = vst.msk [vmem:[%s305_s16 + $0x20] sm:$0xff] %vm2510_vm5, %v3772_v45  ;;  %v4797_v17 = vpop.f32.mrb[62].mxu0 }
 0x6a0   : > { %3802 = vst.msk [vmem:[%s305_s16 + $0x38] sm:$0xff] %vm2510_vm5, %v4797_v17  ;;  %v3775_v20 = vpop.f32.mrb[63].mxu0 }
 0x6a1   : > { %3800 = vst.msk [vmem:[%s305_s16 + $0x28] sm:$0xff] %vm2510_vm5, %v3775_v20 }
 0x6a2 PF: > { %s18_s27 = sadd.s32 1, %s4915_s27  }
 0x6a3   : > { %p15_p4 = scmp.ge.s32.totalorder %s18_s27, 4  }
 0x6a5   :  { %17 = sbr.rel (!%p15_p4) target bundleno = 1 (0x1), region = 82 }

</bundles_post_ra>
